<compile_context>
chip_gen: v7x
topology: tpu7x:2x2x1
jax: 0.10.0
libtpu: 0.0.40
codegen_flags: <defaults>
</compile_context>

<pallas_src>
import functools

import jax
import jax.numpy as jnp
from jax import lax
from jax.experimental import pallas as pl
from jax.experimental.pallas import tpu as pltpu


def _round_up(x, m):
    return (x + m - 1) // m * m


def _vmem_limit_bytes(resident_bytes):
    """Explicit scoped-VMEM request derived from actual block footprints."""
    return int(min(max(int(resident_bytes * 1.5) + (4 << 20), 32 << 20), 128 << 20))


def _spec(block_shape, index_map, buffers=None):
    """BlockSpec with an optional explicit buffer count (graceful fallback)."""
    if buffers is None:
        return pl.BlockSpec(block_shape, index_map)
    try:
        return pl.BlockSpec(block_shape, index_map,
                            pipeline_mode=pl.Buffered(buffers))
    except (TypeError, AttributeError):
        return pl.BlockSpec(block_shape, index_map)


# ----------------------------------------------------------------------------
# Pallas kernels
# ----------------------------------------------------------------------------
def _matmul_bias_kernel(x_ref, w_ref, b_ref, o_ref):
    """Row block of (x @ W + b): bf16 operands, f32 accumulation, bf16 output."""
    acc = jnp.dot(x_ref[...], w_ref[...],
                  preferred_element_type=jnp.float32) + b_ref[...]
    o_ref[...] = acc.astype(o_ref.dtype)


def _bilstm_kernel(gates_ref, mask_ref, whh_ref, out_ref):
    """Fused bidirectional LSTM recurrence over a resident (T, Bb, .) block.

    gates_ref: (T, Bb, 8*Hp) bf16  precomputed x@W_ih + b, [fwd 4Hp | bwd 4Hp]
    mask_ref:  (T, Bb, 1)    f32   1.0 inside sequence, 0.0 in padding
    whh_ref:   (2*Hp, 8*Hp)  bf16  block-diagonal [[W_hh_f, 0], [0, W_hh_b]]
    out_ref:   (T, Bb, 2*Hp) bf16  [fwd Hp | bwd Hp] per timestep
    """
    T, Bb, _ = gates_ref.shape
    Hp = whh_ref.shape[0] // 2
    G = 4 * Hp

    def lstm_gates(pre, c):
        i_g = jax.nn.sigmoid(pre[:, 0 * Hp:1 * Hp])
        f_g = jax.nn.sigmoid(pre[:, 1 * Hp:2 * Hp])
        g_g = jnp.tanh(pre[:, 2 * Hp:3 * Hp])
        o_g = jax.nn.sigmoid(pre[:, 3 * Hp:4 * Hp])
        c_new = f_g * c + i_g * g_g
        return o_g * jnp.tanh(c_new), c_new

    def step(t, carry):
        h_f, c_f, h_b, c_b = carry
        tr = T - 1 - t

        # One fused MXU matmul per step for BOTH directions (256-deep contraction
        # against the block-diagonal recurrent weight).
        h_cat = jnp.concatenate([h_f, h_b], axis=1).astype(jnp.bfloat16)
        rec = jnp.dot(h_cat, whh_ref[...], preferred_element_type=jnp.float32)

        # Load only the needed gate half per direction (halves gate vld traffic).
        pre_f = gates_ref[t, :, 0:G].astype(jnp.float32) + rec[:, 0:G]
        pre_b = gates_ref[tr, :, G:2 * G].astype(jnp.float32) + rec[:, G:2 * G]

        keep_f = mask_ref[t] != 0.0          # (Bb, 1)
        keep_b = mask_ref[tr] != 0.0

        hf_new, cf_new = lstm_gates(pre_f, c_f)
        hb_new, cb_new = lstm_gates(pre_b, c_b)

        out_ref[t, :, 0:Hp] = jnp.where(keep_f, hf_new, 0.0).astype(out_ref.dtype)
        out_ref[tr, :, Hp:2 * Hp] = jnp.where(keep_b, hb_new, 0.0).astype(out_ref.dtype)

        return (jnp.where(keep_f, hf_new, h_f), jnp.where(keep_f, cf_new, c_f),
                jnp.where(keep_b, hb_new, h_b), jnp.where(keep_b, cb_new, c_b))

    zero = jnp.zeros((Bb, Hp), jnp.float32)
    carry = (zero, zero, zero, zero)
    if T <= 32:
        # Tiny static T: fully unroll with static indices.
        for t in range(T):
            carry = step(t, carry)
    else:
        # Longer sequences: bounded live ranges / compile time via fori_loop.
        lax.fori_loop(0, T, step, carry, unroll=4)


def _linear_logsoftmax_kernel(x_ref, w_ref, b_ref, o_ref):
    """hidden2tag Linear + log_softmax over the (lane-padded) tag dimension.

    Padded tag columns carry bias = -1e30 and zero weights, so they do not
    affect the f32 max / sum and are sliced off by the wrapper.
    """
    z = (jnp.dot(x_ref[...], w_ref[...], preferred_element_type=jnp.float32)
         + b_ref[...])
    z = z - jnp.max(z, axis=-1, keepdims=True)
    o_ref[...] = z - jnp.log(jnp.sum(jnp.exp(z), axis=-1, keepdims=True))


# ----------------------------------------------------------------------------
# Pallas wrappers
# ----------------------------------------------------------------------------
def matmul_bias(x, w, b, *, block_rows=512):
    """Row-tiled (N, D) @ (D, G) + b with bf16 operands, bf16 output."""
    N, D = x.shape
    G = w.shape[1]
    Tn = min(block_rows, _round_up(N, 8))
    Np = _round_up(N, Tn)
    if Np != N:
        x = jnp.pad(x, ((0, Np - N), (0, 0)))
    resident = 2 * Tn * D * 2 + D * G * 2 + G * 4 + 2 * Tn * G * 2
    out = pl.pallas_call(
        _matmul_bias_kernel,
        out_shape=jax.ShapeDtypeStruct((Np, G), jnp.bfloat16),
        grid=(Np // Tn,),
        in_specs=[
            _spec((Tn, D), lambda i: (i, 0)),
            _spec((D, G), lambda i: (0, 0), buffers=1),   # resident weight
            _spec((1, G), lambda i: (0, 0), buffers=1),   # resident bias
        ],
        out_specs=_spec((Tn, G), lambda i: (i, 0)),
        compiler_params=pltpu.CompilerParams(
            dimension_semantics=("parallel",),
            vmem_limit_bytes=_vmem_limit_bytes(resident)),
    )(x, w, b)
    return out if Np == N else out[:N]


def bilstm(gates_pre, mask, w_hh_bd):
    """Fused bidirectional LSTM recurrence over the whole (resident) sequence."""
    T, Bp, G8 = gates_pre.shape
    Hp = G8 // 8
    # Batch rows are independent in the recurrence: give the call a
    # batch-parallel grid axis so megacore parts (v7x) can shard it across TCs.
    nb = 2 if (Bp >= 16 and Bp % 16 == 0) else 1
    Bb = Bp // nb
    # With a single grid step there is nothing to pipeline -> single-buffer.
    seq_buffers = 1 if nb == 1 else None
    bufcnt = 1 if nb == 1 else 2
    resident = (bufcnt * (T * Bb * G8 * 2 + T * Bb * 4 + T * Bb * 2 * Hp * 2)
                + 2 * Hp * G8 * 2)
    return pl.pallas_call(
        _bilstm_kernel,
        out_shape=jax.ShapeDtypeStruct((T, Bp, 2 * Hp), jnp.bfloat16),
        grid=(nb,),
        in_specs=[
            _spec((T, Bb, G8), lambda b: (0, b, 0), buffers=seq_buffers),
            _spec((T, Bb, 1), lambda b: (0, b, 0), buffers=seq_buffers),
            _spec((2 * Hp, G8), lambda b: (0, 0), buffers=1),  # resident W_hh
        ],
        out_specs=_spec((T, Bb, 2 * Hp), lambda b: (0, b, 0), buffers=seq_buffers),
        compiler_params=pltpu.CompilerParams(
            dimension_semantics=("parallel",),
            vmem_limit_bytes=_vmem_limit_bytes(resident)),
    )(gates_pre, mask, w_hh_bd)


def linear_logsoftmax(x, w, b, *, block_rows=512):
    """Row-tiled hidden2tag + log_softmax (lane-dense padded tag dim, f32 out)."""
    N, F = x.shape
    C = w.shape[1]
    Tn = min(block_rows, _round_up(N, 8))
    Np = _round_up(N, Tn)
    if Np != N:
        x = jnp.pad(x, ((0, Np - N), (0, 0)))
    resident = 2 * Tn * F * 2 + F * C * 2 + C * 4 + 2 * Tn * C * 4
    out = pl.pallas_call(
        _linear_logsoftmax_kernel,
        out_shape=jax.ShapeDtypeStruct((Np, C), jnp.float32),
        grid=(Np // Tn,),
        in_specs=[
            _spec((Tn, F), lambda i: (i, 0)),
            _spec((F, C), lambda i: (0, 0), buffers=1),
            _spec((1, C), lambda i: (0, 0), buffers=1),
        ],
        out_specs=_spec((Tn, C), lambda i: (i, 0)),
        compiler_params=pltpu.CompilerParams(
            dimension_semantics=("parallel",),
            vmem_limit_bytes=_vmem_limit_bytes(resident)),
    )(x, w, b)
    return out if Np == N else out[:N]


# ----------------------------------------------------------------------------
# Parameter construction: real-sized PyTorch-like init, then (8,128) padding
# ----------------------------------------------------------------------------
def _gate_pad_cols(w, H, Hp):
    """(..., 4H) -> (..., 4Hp): each H-wide gate block placed at k*Hp (zeros elsewhere)."""
    out = jnp.zeros(w.shape[:-1] + (4 * Hp,), w.dtype)
    for k in range(4):
        out = out.at[..., k * Hp:k * Hp + H].set(w[..., k * H:(k + 1) * H])
    return out


def _pad_rows_blocks(w, blocks):
    """Rows of `w` are a concat of real blocks; pad each block to its padded width."""
    parts, off = [], 0
    for real, padded in blocks:
        parts.append(jnp.pad(w[off:off + real], ((0, padded - real), (0, 0))))
        off += real
    return jnp.concatenate(parts, axis=0)


def init_params(key, *, vocab_size, embedding_dim, hidden_dim, tagset_size,
                num_layers=2):
    E, H, C = embedding_dim, hidden_dim, tagset_size
    Ep, Hp, Cp = _round_up(E, 128), _round_up(H, 128), _round_up(C, 128)

    keys = jax.random.split(key, 2 + num_layers)

    emb = 0.1 * jax.random.normal(keys[0], (vocab_size, E), jnp.float32)
    params = {"embedding": jnp.pad(emb, ((0, 0), (0, Ep - E)))}

    scale = 1.0 / (H ** 0.5)
    layers = []
    for l in range(num_layers):
        lk = jax.random.split(keys[2 + l], 8)
        d_real = E if l == 0 else 2 * H
        in_blocks = [(E, Ep)] if l == 0 else [(H, Hp), (H, Hp)]

        def u(k, shape):
            return jax.random.uniform(k, shape, jnp.float32, -scale, scale)

        w_ih_f = u(lk[0], (d_real, 4 * H)); w_hh_f = u(lk[1], (H, 4 * H))
        b_f = u(lk[2], (1, 4 * H)) + u(lk[3], (1, 4 * H))
        w_ih_b = u(lk[4], (d_real, 4 * H)); w_hh_b = u(lk[5], (H, 4 * H))
        b_b = u(lk[6], (1, 4 * H)) + u(lk[7], (1, 4 * H))

        w_ih_f_p = _gate_pad_cols(_pad_rows_blocks(w_ih_f, in_blocks), H, Hp)
        w_ih_b_p = _gate_pad_cols(_pad_rows_blocks(w_ih_b, in_blocks), H, Hp)

        w_hh_f_p = _gate_pad_cols(_pad_rows_blocks(w_hh_f, [(H, Hp)]), H, Hp)
        w_hh_b_p = _gate_pad_cols(_pad_rows_blocks(w_hh_b, [(H, Hp)]), H, Hp)
        # Block-diagonal recurrent weight: one (2Hp, 8Hp) MXU matmul per step
        # produces BOTH directions' gate increments (256-deep contraction).
        w_hh_bd = jnp.zeros((2 * Hp, 8 * Hp), jnp.float32)
        w_hh_bd = w_hh_bd.at[:Hp, :4 * Hp].set(w_hh_f_p)
        w_hh_bd = w_hh_bd.at[Hp:, 4 * Hp:].set(w_hh_b_p)

        layers.append({
            # fwd+bwd input projections fused: (Dp, 8Hp) bf16, bias (1, 8Hp) f32
            "w_cat": jnp.concatenate([w_ih_f_p, w_ih_b_p], axis=1).astype(jnp.bfloat16),
            "b_cat": jnp.concatenate([_gate_pad_cols(b_f, H, Hp),
                                      _gate_pad_cols(b_b, H, Hp)], axis=1),
            "w_hh_bd": w_hh_bd.astype(jnp.bfloat16),
        })
    params["lstm"] = layers

    w_tag = (1.0 / ((2 * H) ** 0.5)) * jax.random.normal(
        keys[1], (2 * H, C), jnp.float32)
    w_tag_p = jnp.pad(_pad_rows_blocks(w_tag, [(H, Hp), (H, Hp)]),
                      ((0, 0), (0, Cp - C)))
    params["w_tag"] = w_tag_p.astype(jnp.bfloat16)
    # Real tag bias = 0; padded tag columns get -1e30 so they vanish in log_softmax.
    params["b_tag"] = jnp.full((1, Cp), -1e30, jnp.float32).at[0, :C].set(0.0)
    return params


# ----------------------------------------------------------------------------
# Forward pass (TaskLearner.forward, task_type='SEQ', eval mode)
# ----------------------------------------------------------------------------
@functools.partial(jax.jit, static_argnames=("tagset_size",))
def task_learner_forward(params, batch_sequences, batch_lengths, *, tagset_size):
    B, T = batch_sequences.shape
    Bp = _round_up(B, 8)                                     # sublane padding

    # Embedding lookup directly in time-major layout (glue; stands in for
    # StackedEmbeddings.embed).  Padded batch rows get length 0.
    emb = jnp.take(params["embedding"], batch_sequences.T, axis=0)   # (T, B, Ep)
    x = jnp.pad(emb, ((0, 0), (0, Bp - B), (0, 0))).astype(jnp.bfloat16)  # (T, Bp, Ep)
    lengths = jnp.pad(batch_lengths, (0, Bp - B))
    mask = (jnp.arange(T)[:, None] < lengths[None, :]
            ).astype(jnp.float32)[:, :, None]                       # (T, Bp, 1)

    # sort/unsort by length is undone before returning -> elided.
    for lp in params["lstm"]:
        D = x.shape[-1]
        Hp = lp["w_hh_bd"].shape[0] // 2
        # Hoisted input projection for both directions: one big MXU matmul,
        # bf16 gates written back (dominant HBM stream halved).
        gates = matmul_bias(x.reshape(T * Bp, D), lp["w_cat"], lp["b_cat"])
        # Fused bidirectional recurrence; only [h_f|h_b] @ W_hh_blockdiag per step.
        x = bilstm(gates.reshape(T, Bp, 8 * Hp), mask, lp["w_hh_bd"])  # (T,Bp,2Hp) bf16
        # inter-layer dropout(0.5) is identity in eval mode

    # hidden2tag + log_softmax on time-major rows (lane-dense padded output).
    flat = x.reshape(T * Bp, x.shape[-1])        # already bf16, no extra cast pass
    Cp = params["w_tag"].shape[1]
    scores = linear_logsoftmax(flat, params["w_tag"], params["b_tag"])  # (T*Bp, Cp)

    # Strip padding, then a tiny transpose on the (T, B, C) result to match
    # PyTorch's batch-first .view(-1, 2H) row order (b*T + t).
    scores = scores.reshape(T, Bp, Cp)[:, :B, :tagset_size]
    return jnp.transpose(scores, (1, 0, 2)).reshape(B * T, tagset_size)


# ----------------------------------------------------------------------------
if __name__ == "__main__":
    B, T = 2, 8
    VOCAB, EMB, HID, TAGS = 50, 32, 16, 8

    key = jax.random.PRNGKey(0)
    k_par, k_tok = jax.random.split(key)

    params = init_params(k_par, vocab_size=VOCAB, embedding_dim=EMB,
                         hidden_dim=HID, tagset_size=TAGS)

    batch_sequences = jax.random.randint(k_tok, (B, T), 0, VOCAB, dtype=jnp.int32)
    batch_lengths = jnp.array([T, 5], dtype=jnp.int32)   # max length == T

    tag_scores = task_learner_forward(params, batch_sequences, batch_lengths,
                                      tagset_size=TAGS)
    jax.block_until_ready(tag_scores)

    assert tag_scores.shape == (B * T, TAGS)
    assert bool(jnp.all(jnp.isfinite(tag_scores)))
    print("KERNEL_OK")
</pallas_src>

<mosaic_0001>
module attributes {stable_mosaic.version = 11 : i64} {
  func.func @_matmul_bias_kernel(%arg0: i32, %arg1: memref<64x256xbf16, #tpu.memory_space<vmem>>, %arg2: memref<256x1024xbf16, #tpu.memory_space<vmem>>, %arg3: memref<1x1024xf32, #tpu.memory_space<vmem>>, %arg4: memref<64x1024xbf16, #tpu.memory_space<vmem>>) attributes {dimension_semantics = [#tpu.dimension_semantics<parallel>], iteration_bounds = array<i64: 1>, scalar_prefetch = 0 : i64, scratch_operands = 0 : i64, tpu.core_type = #tpu.core_type<tc>, window_params = [{transform_indices = @transform_0, window_bounds = array<i64: 64, 256>}, {pipeline_mode = #tpu.pipeline_mode<synchronous>, transform_indices = @transform_1, window_bounds = array<i64: 256, 1024>}, {pipeline_mode = #tpu.pipeline_mode<synchronous>, transform_indices = @transform_2, window_bounds = array<i64: 1, 1024>}, {transform_indices = @transform_3, window_bounds = array<i64: 64, 1024>}]} {
    %c0 = arith.constant 0 : index
    %c0_0 = arith.constant 0 : index
    %0 = vector.load %arg1[%c0, %c0_0] : memref<64x256xbf16, #tpu.memory_space<vmem>>, vector<64x256xbf16>
    %c0_1 = arith.constant 0 : index
    %c0_2 = arith.constant 0 : index
    %1 = vector.load %arg2[%c0_1, %c0_2] : memref<256x1024xbf16, #tpu.memory_space<vmem>>, vector<256x1024xbf16>
    %cst = arith.constant dense<0.000000e+00> : vector<64x1024xf32>
    %2 = tpu.matmul %0, %1, %cst {dimension_numbers = #tpu.dot_dimension_numbers<[1], [0], [0], [1], [0, 0, 1, 1], [], []>} : vector<64x256xbf16>, vector<256x1024xbf16>, vector<64x1024xf32> -> vector<64x1024xf32>
    %c0_3 = arith.constant 0 : index
    %c0_4 = arith.constant 0 : index
    %3 = vector.load %arg3[%c0_3, %c0_4] : memref<1x1024xf32, #tpu.memory_space<vmem>>, vector<1x1024xf32>
    %4 = vector.broadcast %3 : vector<1x1024xf32> to vector<64x1024xf32>
    %5 = arith.addf %2, %4 : vector<64x1024xf32>
    %6 = arith.truncf %5 : vector<64x1024xf32> to vector<64x1024xbf16>
    %c0_5 = arith.constant 0 : index
    %c0_6 = arith.constant 0 : index
    %7 = vector.load %arg4[%c0_5, %c0_6] : memref<64x1024xbf16, #tpu.memory_space<vmem>>, vector<64x1024xbf16>
    tpu.vector_store %arg4[%c0_5, %c0_6], %6 {strides = array<i32>} : memref<64x1024xbf16, #tpu.memory_space<vmem>>, vector<64x1024xbf16>,
    return
  }
  func.func @transform_0(%arg0: i32) -> (i32, i32) {
    %c0_i32 = arith.constant 0 : i32
    %c0_i32_0 = arith.constant 0 : i32
    return %arg0, %c0_i32 : i32, i32
  }
  func.func @transform_1(%arg0: i32) -> (i32, i32) {
    %c0_i32 = arith.constant 0 : i32
    %c0_i32_0 = arith.constant 0 : i32
    %c0_i32_1 = arith.constant 0 : i32
    return %c0_i32, %c0_i32_0 : i32, i32
  }
  func.func @transform_2(%arg0: i32) -> (i32, i32) {
    %c0_i32 = arith.constant 0 : i32
    %c0_i32_0 = arith.constant 0 : i32
    %c0_i32_1 = arith.constant 0 : i32
    return %c0_i32, %c0_i32_0 : i32, i32
  }
  func.func @transform_3(%arg0: i32) -> (i32, i32) {
    %c0_i32 = arith.constant 0 : i32
    %c0_i32_0 = arith.constant 0 : i32
    return %arg0, %c0_i32 : i32, i32
  }
}

module attributes {stable_mosaic.version = 11 : i64} {
  func.func @_matmul_bias_kernel(%arg0: i32, %arg1: memref<64x128xbf16, #tpu.memory_space<vmem>>, %arg2: memref<128x1024xbf16, #tpu.memory_space<vmem>>, %arg3: memref<1x1024xf32, #tpu.memory_space<vmem>>, %arg4: memref<64x1024xbf16, #tpu.memory_space<vmem>>) attributes {dimension_semantics = [#tpu.dimension_semantics<parallel>], iteration_bounds = array<i64: 1>, scalar_prefetch = 0 : i64, scratch_operands = 0 : i64, tpu.core_type = #tpu.core_type<tc>, window_params = [{transform_indices = @transform_0, window_bounds = array<i64: 64, 128>}, {pipeline_mode = #tpu.pipeline_mode<synchronous>, transform_indices = @transform_1, window_bounds = array<i64: 128, 1024>}, {pipeline_mode = #tpu.pipeline_mode<synchronous>, transform_indices = @transform_2, window_bounds = array<i64: 1, 1024>}, {transform_indices = @transform_3, window_bounds = array<i64: 64, 1024>}]} {
    %c0 = arith.constant 0 : index
    %c0_0 = arith.constant 0 : index
    %0 = vector.load %arg1[%c0, %c0_0] : memref<64x128xbf16, #tpu.memory_space<vmem>>, vector<64x128xbf16>
    %c0_1 = arith.constant 0 : index
    %c0_2 = arith.constant 0 : index
    %1 = vector.load %arg2[%c0_1, %c0_2] : memref<128x1024xbf16, #tpu.memory_space<vmem>>, vector<128x1024xbf16>
    %cst = arith.constant dense<0.000000e+00> : vector<64x1024xf32>
    %2 = tpu.matmul %0, %1, %cst {dimension_numbers = #tpu.dot_dimension_numbers<[1], [0], [0], [1], [0, 0, 1, 1], [], []>} : vector<64x128xbf16>, vector<128x1024xbf16>, vector<64x1024xf32> -> vector<64x1024xf32>
    %c0_3 = arith.constant 0 : index
    %c0_4 = arith.constant 0 : index
    %3 = vector.load %arg3[%c0_3, %c0_4] : memref<1x1024xf32, #tpu.memory_space<vmem>>, vector<1x1024xf32>
    %4 = vector.broadcast %3 : vector<1x1024xf32> to vector<64x1024xf32>
    %5 = arith.addf %2, %4 : vector<64x1024xf32>
    %6 = arith.truncf %5 : vector<64x1024xf32> to vector<64x1024xbf16>
    %c0_5 = arith.constant 0 : index
    %c0_6 = arith.constant 0 : index
    %7 = vector.load %arg4[%c0_5, %c0_6] : memref<64x1024xbf16, #tpu.memory_space<vmem>>, vector<64x1024xbf16>
    tpu.vector_store %arg4[%c0_5, %c0_6], %6 {strides = array<i32>} : memref<64x1024xbf16, #tpu.memory_space<vmem>>, vector<64x1024xbf16>,
    return
  }
  func.func @transform_0(%arg0: i32) -> (i32, i32) {
    %c0_i32 = arith.constant 0 : i32
    %c0_i32_0 = arith.constant 0 : i32
    return %arg0, %c0_i32 : i32, i32
  }
  func.func @transform_1(%arg0: i32) -> (i32, i32) {
    %c0_i32 = arith.constant 0 : i32
    %c0_i32_0 = arith.constant 0 : i32
    %c0_i32_1 = arith.constant 0 : i32
    return %c0_i32, %c0_i32_0 : i32, i32
  }
  func.func @transform_2(%arg0: i32) -> (i32, i32) {
    %c0_i32 = arith.constant 0 : i32
    %c0_i32_0 = arith.constant 0 : i32
    %c0_i32_1 = arith.constant 0 : i32
    return %c0_i32, %c0_i32_0 : i32, i32
  }
  func.func @transform_3(%arg0: i32) -> (i32, i32) {
    %c0_i32 = arith.constant 0 : i32
    %c0_i32_0 = arith.constant 0 : i32
    return %arg0, %c0_i32 : i32, i32
  }
}

module attributes {stable_mosaic.version = 11 : i64} {
  func.func @_linear_logsoftmax_kernel(%arg0: i32, %arg1: memref<64x256xbf16, #tpu.memory_space<vmem>>, %arg2: memref<256x128xbf16, #tpu.memory_space<vmem>>, %arg3: memref<1x128xf32, #tpu.memory_space<vmem>>, %arg4: memref<64x128xf32, #tpu.memory_space<vmem>>) attributes {dimension_semantics = [#tpu.dimension_semantics<parallel>], iteration_bounds = array<i64: 1>, scalar_prefetch = 0 : i64, scratch_operands = 0 : i64, tpu.core_type = #tpu.core_type<tc>, window_params = [{transform_indices = @transform_0, window_bounds = array<i64: 64, 256>}, {pipeline_mode = #tpu.pipeline_mode<synchronous>, transform_indices = @transform_1, window_bounds = array<i64: 256, 128>}, {pipeline_mode = #tpu.pipeline_mode<synchronous>, transform_indices = @transform_2, window_bounds = array<i64: 1, 128>}, {transform_indices = @transform_3, window_bounds = array<i64: 64, 128>}]} {
    %c0 = arith.constant 0 : index
    %c0_0 = arith.constant 0 : index
    %0 = vector.load %arg1[%c0, %c0_0] : memref<64x256xbf16, #tpu.memory_space<vmem>>, vector<64x256xbf16>
    %c0_1 = arith.constant 0 : index
    %c0_2 = arith.constant 0 : index
    %1 = vector.load %arg2[%c0_1, %c0_2] : memref<256x128xbf16, #tpu.memory_space<vmem>>, vector<256x128xbf16>
    %cst = arith.constant dense<0.000000e+00> : vector<64x128xf32>
    %2 = tpu.matmul %0, %1, %cst {dimension_numbers = #tpu.dot_dimension_numbers<[1], [0], [0], [1], [0, 0, 1, 1], [], []>} : vector<64x256xbf16>, vector<256x128xbf16>, vector<64x128xf32> -> vector<64x128xf32>
    %c0_3 = arith.constant 0 : index
    %c0_4 = arith.constant 0 : index
    %3 = vector.load %arg3[%c0_3, %c0_4] : memref<1x128xf32, #tpu.memory_space<vmem>>, vector<1x128xf32>
    %4 = vector.broadcast %3 : vector<1x128xf32> to vector<64x128xf32>
    %5 = arith.addf %2, %4 : vector<64x128xf32>
    %cst_5 = arith.constant dense<0xFF800000> : vector<64xf32>
    %6 = vector.multi_reduction <maximumf>, %5, %cst_5 [1] : vector<64x128xf32> to vector<64xf32>
    %7 = vector.shape_cast %6 : vector<64xf32> to vector<64x1xf32>
    %8 = vector.broadcast %7 : vector<64x1xf32> to vector<64x128xf32>
    %9 = arith.subf %5, %8 : vector<64x128xf32>
    %10 = math.exp %9 : vector<64x128xf32>
    %cst_6 = arith.constant dense<0.000000e+00> : vector<64xf32>
    %11 = vector.multi_reduction <add>, %10, %cst_6 [1] : vector<64x128xf32> to vector<64xf32>
    %12 = vector.shape_cast %11 : vector<64xf32> to vector<64x1xf32>
    %13 = math.log %12 : vector<64x1xf32>
    %14 = vector.broadcast %13 : vector<64x1xf32> to vector<64x128xf32>
    %15 = arith.subf %9, %14 : vector<64x128xf32>
    %c0_7 = arith.constant 0 : index
    %c0_8 = arith.constant 0 : index
    %16 = vector.load %arg4[%c0_7, %c0_8] : memref<64x128xf32, #tpu.memory_space<vmem>>, vector<64x128xf32>
    tpu.vector_store %arg4[%c0_7, %c0_8], %15 {strides = array<i32>} : memref<64x128xf32, #tpu.memory_space<vmem>>, vector<64x128xf32>,
    return
  }
  func.func @transform_0(%arg0: i32) -> (i32, i32) {
    %c0_i32 = arith.constant 0 : i32
    %c0_i32_0 = arith.constant 0 : i32
    return %arg0, %c0_i32 : i32, i32
  }
  func.func @transform_1(%arg0: i32) -> (i32, i32) {
    %c0_i32 = arith.constant 0 : i32
    %c0_i32_0 = arith.constant 0 : i32
    %c0_i32_1 = arith.constant 0 : i32
    return %c0_i32, %c0_i32_0 : i32, i32
  }
  func.func @transform_2(%arg0: i32) -> (i32, i32) {
    %c0_i32 = arith.constant 0 : i32
    %c0_i32_0 = arith.constant 0 : i32
    %c0_i32_1 = arith.constant 0 : i32
    return %c0_i32, %c0_i32_0 : i32, i32
  }
  func.func @transform_3(%arg0: i32) -> (i32, i32) {
    %c0_i32 = arith.constant 0 : i32
    %c0_i32_0 = arith.constant 0 : i32
    return %arg0, %c0_i32 : i32, i32
  }
}

module attributes {stable_mosaic.version = 11 : i64} {
  func.func @_bilstm_kernel(%arg0: i32, %arg1: memref<8x8x1024xbf16, #tpu.memory_space<vmem>>, %arg2: memref<8x8x1xf32, #tpu.memory_space<vmem>>, %arg3: memref<256x1024xbf16, #tpu.memory_space<vmem>>, %arg4: memref<8x8x256xbf16, #tpu.memory_space<vmem>>) attributes {dimension_semantics = [#tpu.dimension_semantics<parallel>], iteration_bounds = array<i64: 1>, scalar_prefetch = 0 : i64, scratch_operands = 0 : i64, tpu.core_type = #tpu.core_type<tc>, window_params = [{pipeline_mode = #tpu.pipeline_mode<synchronous>, transform_indices = @transform_0, window_bounds = array<i64: 8, 8, 1024>}, {pipeline_mode = #tpu.pipeline_mode<synchronous>, transform_indices = @transform_1, window_bounds = array<i64: 8, 8, 1>}, {pipeline_mode = #tpu.pipeline_mode<synchronous>, transform_indices = @transform_2, window_bounds = array<i64: 256, 1024>}, {pipeline_mode = #tpu.pipeline_mode<synchronous>, transform_indices = @transform_3, window_bounds = array<i64: 8, 8, 256>}]} {
    %cst = arith.constant 0.000000e+00 : f32
    %0 = vector.broadcast %cst : f32 to vector<8x128xf32>
    %1 = tpu.concatenate %0, %0 in 1 : vector<8x128xf32>, vector<8x128xf32> -> vector<8x256xf32>
    %2 = arith.truncf %1 : vector<8x256xf32> to vector<8x256xbf16>
    %c0 = arith.constant 0 : index
    %c0_0 = arith.constant 0 : index
    %3 = vector.load %arg3[%c0, %c0_0] : memref<256x1024xbf16, #tpu.memory_space<vmem>>, vector<256x1024xbf16>
    %cst_1 = arith.constant dense<0.000000e+00> : vector<8x1024xf32>
    %4 = tpu.matmul %2, %3, %cst_1 {dimension_numbers = #tpu.dot_dimension_numbers<[1], [0], [0], [1], [0, 0, 1, 1], [], []>} : vector<8x256xbf16>, vector<256x1024xbf16>, vector<8x1024xf32> -> vector<8x1024xf32>
    %c0_2 = arith.constant 0 : index
    %c0_3 = arith.constant 0 : index
    %c0_4 = arith.constant 0 : index
    %5 = vector.load %arg1[%c0_2, %c0_3, %c0_4] : memref<8x8x1024xbf16, #tpu.memory_space<vmem>>, vector<1x8x512xbf16>
    %6 = vector.shape_cast %5 : vector<1x8x512xbf16> to vector<8x512xbf16>
    %7 = arith.extf %6 : vector<8x512xbf16> to vector<8x512xf32>
    %8 = vector.extract_strided_slice %4 {offsets = [0, 0], sizes = [8, 512], strides = [1, 1]} : vector<8x1024xf32> to vector<8x512xf32>
    %9 = arith.addf %7, %8 : vector<8x512xf32>
    %c7 = arith.constant 7 : index
    %c0_5 = arith.constant 0 : index
    %c512 = arith.constant 512 : index
    %10 = vector.load %arg1[%c7, %c0_5, %c512] : memref<8x8x1024xbf16, #tpu.memory_space<vmem>>, vector<1x8x512xbf16>
    %11 = vector.shape_cast %10 : vector<1x8x512xbf16> to vector<8x512xbf16>
    %12 = arith.extf %11 : vector<8x512xbf16> to vector<8x512xf32>
    %13 = vector.extract_strided_slice %4 {offsets = [0, 512], sizes = [8, 512], strides = [1, 1]} : vector<8x1024xf32> to vector<8x512xf32>
    %14 = arith.addf %12, %13 : vector<8x512xf32>
    %c0_6 = arith.constant 0 : index
    %c0_7 = arith.constant 0 : index
    %c0_8 = arith.constant 0 : index
    %15 = vector.load %arg2[%c0_6, %c0_7, %c0_8] : memref<8x8x1xf32, #tpu.memory_space<vmem>>, vector<1x8x1xf32>
    %16 = vector.shape_cast %15 : vector<1x8x1xf32> to vector<8x1xf32>
    %cst_9 = arith.constant 0.000000e+00 : f32
    %17 = vector.broadcast %cst_9 : f32 to vector<8x1xf32>
    %18 = arith.cmpf one, %16, %17 : vector<8x1xf32>
    %c7_10 = arith.constant 7 : index
    %c0_11 = arith.constant 0 : index
    %c0_12 = arith.constant 0 : index
    %19 = vector.load %arg2[%c7_10, %c0_11, %c0_12] : memref<8x8x1xf32, #tpu.memory_space<vmem>>, vector<1x8x1xf32>
    %20 = vector.shape_cast %19 : vector<1x8x1xf32> to vector<8x1xf32>
    %cst_13 = arith.constant 0.000000e+00 : f32
    %21 = vector.broadcast %cst_13 : f32 to vector<8x1xf32>
    %22 = arith.cmpf one, %20, %21 : vector<8x1xf32>
    %23 = vector.extract_strided_slice %9 {offsets = [0, 0], sizes = [8, 128], strides = [1, 1]} : vector<8x512xf32> to vector<8x128xf32>
    %24 = arith.negf %23 : vector<8x128xf32>
    %25 = math.exp %24 : vector<8x128xf32>
    %cst_14 = arith.constant 1.000000e+00 : f32
    %26 = vector.broadcast %cst_14 : f32 to vector<8x128xf32>
    %27 = arith.addf %26, %25 : vector<8x128xf32>
    %28 = arith.divf %26, %27 : vector<8x128xf32>
    %29 = vector.extract_strided_slice %9 {offsets = [0, 128], sizes = [8, 128], strides = [1, 1]} : vector<8x512xf32> to vector<8x128xf32>
    %30 = arith.negf %29 : vector<8x128xf32>
    %31 = math.exp %30 : vector<8x128xf32>
    %cst_15 = arith.constant 1.000000e+00 : f32
    %32 = vector.broadcast %cst_15 : f32 to vector<8x128xf32>
    %33 = arith.addf %32, %31 : vector<8x128xf32>
    %34 = arith.divf %32, %33 : vector<8x128xf32>
    %35 = vector.extract_strided_slice %9 {offsets = [0, 256], sizes = [8, 128], strides = [1, 1]} : vector<8x512xf32> to vector<8x128xf32>
    %36 = math.tanh %35 : vector<8x128xf32>
    %37 = vector.extract_strided_slice %9 {offsets = [0, 384], sizes = [8, 128], strides = [1, 1]} : vector<8x512xf32> to vector<8x128xf32>
    %38 = arith.negf %37 : vector<8x128xf32>
    %39 = math.exp %38 : vector<8x128xf32>
    %cst_16 = arith.constant 1.000000e+00 : f32
    %40 = vector.broadcast %cst_16 : f32 to vector<8x128xf32>
    %41 = arith.addf %40, %39 : vector<8x128xf32>
    %42 = arith.divf %40, %41 : vector<8x128xf32>
    %43 = arith.mulf %34, %0 : vector<8x128xf32>
    %44 = arith.mulf %28, %36 : vector<8x128xf32>
    %45 = arith.addf %43, %44 : vector<8x128xf32>
    %46 = math.tanh %45 : vector<8x128xf32>
    %47 = arith.mulf %42, %46 : vector<8x128xf32>
    %48 = vector.extract_strided_slice %14 {offsets = [0, 0], sizes = [8, 128], strides = [1, 1]} : vector<8x512xf32> to vector<8x128xf32>
    %49 = arith.negf %48 : vector<8x128xf32>
    %50 = math.exp %49 : vector<8x128xf32>
    %cst_17 = arith.constant 1.000000e+00 : f32
    %51 = vector.broadcast %cst_17 : f32 to vector<8x128xf32>
    %52 = arith.addf %51, %50 : vector<8x128xf32>
    %53 = arith.divf %51, %52 : vector<8x128xf32>
    %54 = vector.extract_strided_slice %14 {offsets = [0, 128], sizes = [8, 128], strides = [1, 1]} : vector<8x512xf32> to vector<8x128xf32>
    %55 = arith.negf %54 : vector<8x128xf32>
    %56 = math.exp %55 : vector<8x128xf32>
    %cst_18 = arith.constant 1.000000e+00 : f32
    %57 = vector.broadcast %cst_18 : f32 to vector<8x128xf32>
    %58 = arith.addf %57, %56 : vector<8x128xf32>
    %59 = arith.divf %57, %58 : vector<8x128xf32>
    %60 = vector.extract_strided_slice %14 {offsets = [0, 256], sizes = [8, 128], strides = [1, 1]} : vector<8x512xf32> to vector<8x128xf32>
    %61 = math.tanh %60 : vector<8x128xf32>
    %62 = vector.extract_strided_slice %14 {offsets = [0, 384], sizes = [8, 128], strides = [1, 1]} : vector<8x512xf32> to vector<8x128xf32>
    %63 = arith.negf %62 : vector<8x128xf32>
    %64 = math.exp %63 : vector<8x128xf32>
    %cst_19 = arith.constant 1.000000e+00 : f32
    %65 = vector.broadcast %cst_19 : f32 to vector<8x128xf32>
    %66 = arith.addf %65, %64 : vector<8x128xf32>
    %67 = arith.divf %65, %66 : vector<8x128xf32>
    %68 = arith.mulf %59, %0 : vector<8x128xf32>
    %69 = arith.mulf %53, %61 : vector<8x128xf32>
    %70 = arith.addf %68, %69 : vector<8x128xf32>
    %71 = math.tanh %70 : vector<8x128xf32>
    %72 = arith.mulf %67, %71 : vector<8x128xf32>
    %cst_20 = arith.constant 0.000000e+00 : f32
    %73 = vector.shape_cast %18 : vector<8x1xi1> to vector<8x1xi1>
    %74 = vector.broadcast %73 : vector<8x1xi1> to vector<8x128xi1>
    %75 = vector.broadcast %cst_20 : f32 to vector<8x128xf32>
    %76 = arith.select %74, %47, %75 : vector<8x128xi1>, vector<8x128xf32>
    %77 = arith.truncf %76 : vector<8x128xf32> to vector<8x128xbf16>
    %c0_21 = arith.constant 0 : index
    %c0_22 = arith.constant 0 : index
    %c0_23 = arith.constant 0 : index
    %78 = vector.load %arg4[%c0_21, %c0_22, %c0_23] : memref<8x8x256xbf16, #tpu.memory_space<vmem>>, vector<1x8x128xbf16>
    %79 = vector.shape_cast %78 : vector<1x8x128xbf16> to vector<8x128xbf16>
    %80 = vector.shape_cast %77 : vector<8x128xbf16> to vector<1x8x128xbf16>
    tpu.vector_store %arg4[%c0_21, %c0_22, %c0_23], %80 {strides = array<i32>} : memref<8x8x256xbf16, #tpu.memory_space<vmem>>, vector<1x8x128xbf16>,
    %cst_24 = arith.constant 0.000000e+00 : f32
    %81 = vector.shape_cast %22 : vector<8x1xi1> to vector<8x1xi1>
    %82 = vector.broadcast %81 : vector<8x1xi1> to vector<8x128xi1>
    %83 = vector.broadcast %cst_24 : f32 to vector<8x128xf32>
    %84 = arith.select %82, %72, %83 : vector<8x128xi1>, vector<8x128xf32>
    %85 = arith.truncf %84 : vector<8x128xf32> to vector<8x128xbf16>
    %c7_25 = arith.constant 7 : index
    %c0_26 = arith.constant 0 : index
    %c128 = arith.constant 128 : index
    %86 = vector.load %arg4[%c7_25, %c0_26, %c128] : memref<8x8x256xbf16, #tpu.memory_space<vmem>>, vector<1x8x128xbf16>
    %87 = vector.shape_cast %86 : vector<1x8x128xbf16> to vector<8x128xbf16>
    %88 = vector.shape_cast %85 : vector<8x128xbf16> to vector<1x8x128xbf16>
    tpu.vector_store %arg4[%c7_25, %c0_26, %c128], %88 {strides = array<i32>} : memref<8x8x256xbf16, #tpu.memory_space<vmem>>, vector<1x8x128xbf16>,
    %89 = vector.shape_cast %18 : vector<8x1xi1> to vector<8x1xi1>
    %90 = vector.broadcast %89 : vector<8x1xi1> to vector<8x128xi1>
    %91 = arith.select %90, %47, %0 : vector<8x128xi1>, vector<8x128xf32>
    %92 = vector.shape_cast %18 : vector<8x1xi1> to vector<8x1xi1>
    %93 = vector.broadcast %92 : vector<8x1xi1> to vector<8x128xi1>
    %94 = arith.select %93, %45, %0 : vector<8x128xi1>, vector<8x128xf32>
    %95 = vector.shape_cast %22 : vector<8x1xi1> to vector<8x1xi1>
    %96 = vector.broadcast %95 : vector<8x1xi1> to vector<8x128xi1>
    %97 = arith.select %96, %72, %0 : vector<8x128xi1>, vector<8x128xf32>
    %98 = vector.shape_cast %22 : vector<8x1xi1> to vector<8x1xi1>
    %99 = vector.broadcast %98 : vector<8x1xi1> to vector<8x128xi1>
    %100 = arith.select %99, %70, %0 : vector<8x128xi1>, vector<8x128xf32>
    %101 = tpu.concatenate %91, %97 in 1 : vector<8x128xf32>, vector<8x128xf32> -> vector<8x256xf32>
    %102 = arith.truncf %101 : vector<8x256xf32> to vector<8x256xbf16>
    %c0_27 = arith.constant 0 : index
    %c0_28 = arith.constant 0 : index
    %103 = vector.load %arg3[%c0_27, %c0_28] : memref<256x1024xbf16, #tpu.memory_space<vmem>>, vector<256x1024xbf16>
    %cst_29 = arith.constant dense<0.000000e+00> : vector<8x1024xf32>
    %104 = tpu.matmul %102, %103, %cst_29 {dimension_numbers = #tpu.dot_dimension_numbers<[1], [0], [0], [1], [0, 0, 1, 1], [], []>} : vector<8x256xbf16>, vector<256x1024xbf16>, vector<8x1024xf32> -> vector<8x1024xf32>
    %c1 = arith.constant 1 : index
    %c0_30 = arith.constant 0 : index
    %c0_31 = arith.constant 0 : index
    %105 = vector.load %arg1[%c1, %c0_30, %c0_31] : memref<8x8x1024xbf16, #tpu.memory_space<vmem>>, vector<1x8x512xbf16>
    %106 = vector.shape_cast %105 : vector<1x8x512xbf16> to vector<8x512xbf16>
    %107 = arith.extf %106 : vector<8x512xbf16> to vector<8x512xf32>
    %108 = vector.extract_strided_slice %104 {offsets = [0, 0], sizes = [8, 512], strides = [1, 1]} : vector<8x1024xf32> to vector<8x512xf32>
    %109 = arith.addf %107, %108 : vector<8x512xf32>
    %c6 = arith.constant 6 : index
    %c0_32 = arith.constant 0 : index
    %c512_33 = arith.constant 512 : index
    %110 = vector.load %arg1[%c6, %c0_32, %c512_33] : memref<8x8x1024xbf16, #tpu.memory_space<vmem>>, vector<1x8x512xbf16>
    %111 = vector.shape_cast %110 : vector<1x8x512xbf16> to vector<8x512xbf16>
    %112 = arith.extf %111 : vector<8x512xbf16> to vector<8x512xf32>
    %113 = vector.extract_strided_slice %104 {offsets = [0, 512], sizes = [8, 512], strides = [1, 1]} : vector<8x1024xf32> to vector<8x512xf32>
    %114 = arith.addf %112, %113 : vector<8x512xf32>
    %c1_34 = arith.constant 1 : index
    %c0_35 = arith.constant 0 : index
    %c0_36 = arith.constant 0 : index
    %115 = vector.load %arg2[%c1_34, %c0_35, %c0_36] : memref<8x8x1xf32, #tpu.memory_space<vmem>>, vector<1x8x1xf32>
    %116 = vector.shape_cast %115 : vector<1x8x1xf32> to vector<8x1xf32>
    %cst_37 = arith.constant 0.000000e+00 : f32
    %117 = vector.broadcast %cst_37 : f32 to vector<8x1xf32>
    %118 = arith.cmpf one, %116, %117 : vector<8x1xf32>
    %c6_38 = arith.constant 6 : index
    %c0_39 = arith.constant 0 : index
    %c0_40 = arith.constant 0 : index
    %119 = vector.load %arg2[%c6_38, %c0_39, %c0_40] : memref<8x8x1xf32, #tpu.memory_space<vmem>>, vector<1x8x1xf32>
    %120 = vector.shape_cast %119 : vector<1x8x1xf32> to vector<8x1xf32>
    %cst_41 = arith.constant 0.000000e+00 : f32
    %121 = vector.broadcast %cst_41 : f32 to vector<8x1xf32>
    %122 = arith.cmpf one, %120, %121 : vector<8x1xf32>
    %123 = vector.extract_strided_slice %109 {offsets = [0, 0], sizes = [8, 128], strides = [1, 1]} : vector<8x512xf32> to vector<8x128xf32>
    %124 = arith.negf %123 : vector<8x128xf32>
    %125 = math.exp %124 : vector<8x128xf32>
    %cst_42 = arith.constant 1.000000e+00 : f32
    %126 = vector.broadcast %cst_42 : f32 to vector<8x128xf32>
    %127 = arith.addf %126, %125 : vector<8x128xf32>
    %128 = arith.divf %126, %127 : vector<8x128xf32>
    %129 = vector.extract_strided_slice %109 {offsets = [0, 128], sizes = [8, 128], strides = [1, 1]} : vector<8x512xf32> to vector<8x128xf32>
    %130 = arith.negf %129 : vector<8x128xf32>
    %131 = math.exp %130 : vector<8x128xf32>
    %cst_43 = arith.constant 1.000000e+00 : f32
    %132 = vector.broadcast %cst_43 : f32 to vector<8x128xf32>
    %133 = arith.addf %132, %131 : vector<8x128xf32>
    %134 = arith.divf %132, %133 : vector<8x128xf32>
    %135 = vector.extract_strided_slice %109 {offsets = [0, 256], sizes = [8, 128], strides = [1, 1]} : vector<8x512xf32> to vector<8x128xf32>
    %136 = math.tanh %135 : vector<8x128xf32>
    %137 = vector.extract_strided_slice %109 {offsets = [0, 384], sizes = [8, 128], strides = [1, 1]} : vector<8x512xf32> to vector<8x128xf32>
    %138 = arith.negf %137 : vector<8x128xf32>
    %139 = math.exp %138 : vector<8x128xf32>
    %cst_44 = arith.constant 1.000000e+00 : f32
    %140 = vector.broadcast %cst_44 : f32 to vector<8x128xf32>
    %141 = arith.addf %140, %139 : vector<8x128xf32>
    %142 = arith.divf %140, %141 : vector<8x128xf32>
    %143 = arith.mulf %134, %94 : vector<8x128xf32>
    %144 = arith.mulf %128, %136 : vector<8x128xf32>
    %145 = arith.addf %143, %144 : vector<8x128xf32>
    %146 = math.tanh %145 : vector<8x128xf32>
    %147 = arith.mulf %142, %146 : vector<8x128xf32>
    %148 = vector.extract_strided_slice %114 {offsets = [0, 0], sizes = [8, 128], strides = [1, 1]} : vector<8x512xf32> to vector<8x128xf32>
    %149 = arith.negf %148 : vector<8x128xf32>
    %150 = math.exp %149 : vector<8x128xf32>
    %cst_45 = arith.constant 1.000000e+00 : f32
    %151 = vector.broadcast %cst_45 : f32 to vector<8x128xf32>
    %152 = arith.addf %151, %150 : vector<8x128xf32>
    %153 = arith.divf %151, %152 : vector<8x128xf32>
    %154 = vector.extract_strided_slice %114 {offsets = [0, 128], sizes = [8, 128], strides = [1, 1]} : vector<8x512xf32> to vector<8x128xf32>
    %155 = arith.negf %154 : vector<8x128xf32>
    %156 = math.exp %155 : vector<8x128xf32>
    %cst_46 = arith.constant 1.000000e+00 : f32
    %157 = vector.broadcast %cst_46 : f32 to vector<8x128xf32>
    %158 = arith.addf %157, %156 : vector<8x128xf32>
    %159 = arith.divf %157, %158 : vector<8x128xf32>
    %160 = vector.extract_strided_slice %114 {offsets = [0, 256], sizes = [8, 128], strides = [1, 1]} : vector<8x512xf32> to vector<8x128xf32>
    %161 = math.tanh %160 : vector<8x128xf32>
    %162 = vector.extract_strided_slice %114 {offsets = [0, 384], sizes = [8, 128], strides = [1, 1]} : vector<8x512xf32> to vector<8x128xf32>
    %163 = arith.negf %162 : vector<8x128xf32>
    %164 = math.exp %163 : vector<8x128xf32>
    %cst_47 = arith.constant 1.000000e+00 : f32
    %165 = vector.broadcast %cst_47 : f32 to vector<8x128xf32>
    %166 = arith.addf %165, %164 : vector<8x128xf32>
    %167 = arith.divf %165, %166 : vector<8x128xf32>
    %168 = arith.mulf %159, %100 : vector<8x128xf32>
    %169 = arith.mulf %153, %161 : vector<8x128xf32>
    %170 = arith.addf %168, %169 : vector<8x128xf32>
    %171 = math.tanh %170 : vector<8x128xf32>
    %172 = arith.mulf %167, %171 : vector<8x128xf32>
    %cst_48 = arith.constant 0.000000e+00 : f32
    %173 = vector.shape_cast %118 : vector<8x1xi1> to vector<8x1xi1>
    %174 = vector.broadcast %173 : vector<8x1xi1> to vector<8x128xi1>
    %175 = vector.broadcast %cst_48 : f32 to vector<8x128xf32>
    %176 = arith.select %174, %147, %175 : vector<8x128xi1>, vector<8x128xf32>
    %177 = arith.truncf %176 : vector<8x128xf32> to vector<8x128xbf16>
    %c1_49 = arith.constant 1 : index
    %c0_50 = arith.constant 0 : index
    %c0_51 = arith.constant 0 : index
    %178 = vector.load %arg4[%c1_49, %c0_50, %c0_51] : memref<8x8x256xbf16, #tpu.memory_space<vmem>>, vector<1x8x128xbf16>
    %179 = vector.shape_cast %178 : vector<1x8x128xbf16> to vector<8x128xbf16>
    %180 = vector.shape_cast %177 : vector<8x128xbf16> to vector<1x8x128xbf16>
    tpu.vector_store %arg4[%c1_49, %c0_50, %c0_51], %180 {strides = array<i32>} : memref<8x8x256xbf16, #tpu.memory_space<vmem>>, vector<1x8x128xbf16>,
    %cst_52 = arith.constant 0.000000e+00 : f32
    %181 = vector.shape_cast %122 : vector<8x1xi1> to vector<8x1xi1>
    %182 = vector.broadcast %181 : vector<8x1xi1> to vector<8x128xi1>
    %183 = vector.broadcast %cst_52 : f32 to vector<8x128xf32>
    %184 = arith.select %182, %172, %183 : vector<8x128xi1>, vector<8x128xf32>
    %185 = arith.truncf %184 : vector<8x128xf32> to vector<8x128xbf16>
    %c6_53 = arith.constant 6 : index
    %c0_54 = arith.constant 0 : index
    %c128_55 = arith.constant 128 : index
    %186 = vector.load %arg4[%c6_53, %c0_54, %c128_55] : memref<8x8x256xbf16, #tpu.memory_space<vmem>>, vector<1x8x128xbf16>
    %187 = vector.shape_cast %186 : vector<1x8x128xbf16> to vector<8x128xbf16>
    %188 = vector.shape_cast %185 : vector<8x128xbf16> to vector<1x8x128xbf16>
    tpu.vector_store %arg4[%c6_53, %c0_54, %c128_55], %188 {strides = array<i32>} : memref<8x8x256xbf16, #tpu.memory_space<vmem>>, vector<1x8x128xbf16>,
    %189 = vector.shape_cast %118 : vector<8x1xi1> to vector<8x1xi1>
    %190 = vector.broadcast %189 : vector<8x1xi1> to vector<8x128xi1>
    %191 = arith.select %190, %147, %91 : vector<8x128xi1>, vector<8x128xf32>
    %192 = vector.shape_cast %118 : vector<8x1xi1> to vector<8x1xi1>
    %193 = vector.broadcast %192 : vector<8x1xi1> to vector<8x128xi1>
    %194 = arith.select %193, %145, %94 : vector<8x128xi1>, vector<8x128xf32>
    %195 = vector.shape_cast %122 : vector<8x1xi1> to vector<8x1xi1>
    %196 = vector.broadcast %195 : vector<8x1xi1> to vector<8x128xi1>
    %197 = arith.select %196, %172, %97 : vector<8x128xi1>, vector<8x128xf32>
    %198 = vector.shape_cast %122 : vector<8x1xi1> to vector<8x1xi1>
    %199 = vector.broadcast %198 : vector<8x1xi1> to vector<8x128xi1>
    %200 = arith.select %199, %170, %100 : vector<8x128xi1>, vector<8x128xf32>
    %201 = tpu.concatenate %191, %197 in 1 : vector<8x128xf32>, vector<8x128xf32> -> vector<8x256xf32>
    %202 = arith.truncf %201 : vector<8x256xf32> to vector<8x256xbf16>
    %c0_56 = arith.constant 0 : index
    %c0_57 = arith.constant 0 : index
    %203 = vector.load %arg3[%c0_56, %c0_57] : memref<256x1024xbf16, #tpu.memory_space<vmem>>, vector<256x1024xbf16>
    %cst_58 = arith.constant dense<0.000000e+00> : vector<8x1024xf32>
    %204 = tpu.matmul %202, %203, %cst_58 {dimension_numbers = #tpu.dot_dimension_numbers<[1], [0], [0], [1], [0, 0, 1, 1], [], []>} : vector<8x256xbf16>, vector<256x1024xbf16>, vector<8x1024xf32> -> vector<8x1024xf32>
    %c2 = arith.constant 2 : index
    %c0_59 = arith.constant 0 : index
    %c0_60 = arith.constant 0 : index
    %205 = vector.load %arg1[%c2, %c0_59, %c0_60] : memref<8x8x1024xbf16, #tpu.memory_space<vmem>>, vector<1x8x512xbf16>
    %206 = vector.shape_cast %205 : vector<1x8x512xbf16> to vector<8x512xbf16>
    %207 = arith.extf %206 : vector<8x512xbf16> to vector<8x512xf32>
    %208 = vector.extract_strided_slice %204 {offsets = [0, 0], sizes = [8, 512], strides = [1, 1]} : vector<8x1024xf32> to vector<8x512xf32>
    %209 = arith.addf %207, %208 : vector<8x512xf32>
    %c5 = arith.constant 5 : index
    %c0_61 = arith.constant 0 : index
    %c512_62 = arith.constant 512 : index
    %210 = vector.load %arg1[%c5, %c0_61, %c512_62] : memref<8x8x1024xbf16, #tpu.memory_space<vmem>>, vector<1x8x512xbf16>
    %211 = vector.shape_cast %210 : vector<1x8x512xbf16> to vector<8x512xbf16>
    %212 = arith.extf %211 : vector<8x512xbf16> to vector<8x512xf32>
    %213 = vector.extract_strided_slice %204 {offsets = [0, 512], sizes = [8, 512], strides = [1, 1]} : vector<8x1024xf32> to vector<8x512xf32>
    %214 = arith.addf %212, %213 : vector<8x512xf32>
    %c2_63 = arith.constant 2 : index
    %c0_64 = arith.constant 0 : index
    %c0_65 = arith.constant 0 : index
    %215 = vector.load %arg2[%c2_63, %c0_64, %c0_65] : memref<8x8x1xf32, #tpu.memory_space<vmem>>, vector<1x8x1xf32>
    %216 = vector.shape_cast %215 : vector<1x8x1xf32> to vector<8x1xf32>
    %cst_66 = arith.constant 0.000000e+00 : f32
    %217 = vector.broadcast %cst_66 : f32 to vector<8x1xf32>
    %218 = arith.cmpf one, %216, %217 : vector<8x1xf32>
    %c5_67 = arith.constant 5 : index
    %c0_68 = arith.constant 0 : index
    %c0_69 = arith.constant 0 : index
    %219 = vector.load %arg2[%c5_67, %c0_68, %c0_69] : memref<8x8x1xf32, #tpu.memory_space<vmem>>, vector<1x8x1xf32>
    %220 = vector.shape_cast %219 : vector<1x8x1xf32> to vector<8x1xf32>
    %cst_70 = arith.constant 0.000000e+00 : f32
    %221 = vector.broadcast %cst_70 : f32 to vector<8x1xf32>
    %222 = arith.cmpf one, %220, %221 : vector<8x1xf32>
    %223 = vector.extract_strided_slice %209 {offsets = [0, 0], sizes = [8, 128], strides = [1, 1]} : vector<8x512xf32> to vector<8x128xf32>
    %224 = arith.negf %223 : vector<8x128xf32>
    %225 = math.exp %224 : vector<8x128xf32>
    %cst_71 = arith.constant 1.000000e+00 : f32
    %226 = vector.broadcast %cst_71 : f32 to vector<8x128xf32>
    %227 = arith.addf %226, %225 : vector<8x128xf32>
    %228 = arith.divf %226, %227 : vector<8x128xf32>
    %229 = vector.extract_strided_slice %209 {offsets = [0, 128], sizes = [8, 128], strides = [1, 1]} : vector<8x512xf32> to vector<8x128xf32>
    %230 = arith.negf %229 : vector<8x128xf32>
    %231 = math.exp %230 : vector<8x128xf32>
    %cst_72 = arith.constant 1.000000e+00 : f32
    %232 = vector.broadcast %cst_72 : f32 to vector<8x128xf32>
    %233 = arith.addf %232, %231 : vector<8x128xf32>
    %234 = arith.divf %232, %233 : vector<8x128xf32>
    %235 = vector.extract_strided_slice %209 {offsets = [0, 256], sizes = [8, 128], strides = [1, 1]} : vector<8x512xf32> to vector<8x128xf32>
    %236 = math.tanh %235 : vector<8x128xf32>
    %237 = vector.extract_strided_slice %209 {offsets = [0, 384], sizes = [8, 128], strides = [1, 1]} : vector<8x512xf32> to vector<8x128xf32>
    %238 = arith.negf %237 : vector<8x128xf32>
    %239 = math.exp %238 : vector<8x128xf32>
    %cst_73 = arith.constant 1.000000e+00 : f32
    %240 = vector.broadcast %cst_73 : f32 to vector<8x128xf32>
    %241 = arith.addf %240, %239 : vector<8x128xf32>
    %242 = arith.divf %240, %241 : vector<8x128xf32>
    %243 = arith.mulf %234, %194 : vector<8x128xf32>
    %244 = arith.mulf %228, %236 : vector<8x128xf32>
    %245 = arith.addf %243, %244 : vector<8x128xf32>
    %246 = math.tanh %245 : vector<8x128xf32>
    %247 = arith.mulf %242, %246 : vector<8x128xf32>
    %248 = vector.extract_strided_slice %214 {offsets = [0, 0], sizes = [8, 128], strides = [1, 1]} : vector<8x512xf32> to vector<8x128xf32>
    %249 = arith.negf %248 : vector<8x128xf32>
    %250 = math.exp %249 : vector<8x128xf32>
    %cst_74 = arith.constant 1.000000e+00 : f32
    %251 = vector.broadcast %cst_74 : f32 to vector<8x128xf32>
    %252 = arith.addf %251, %250 : vector<8x128xf32>
    %253 = arith.divf %251, %252 : vector<8x128xf32>
    %254 = vector.extract_strided_slice %214 {offsets = [0, 128], sizes = [8, 128], strides = [1, 1]} : vector<8x512xf32> to vector<8x128xf32>
    %255 = arith.negf %254 : vector<8x128xf32>
    %256 = math.exp %255 : vector<8x128xf32>
    %cst_75 = arith.constant 1.000000e+00 : f32
    %257 = vector.broadcast %cst_75 : f32 to vector<8x128xf32>
    %258 = arith.addf %257, %256 : vector<8x128xf32>
    %259 = arith.divf %257, %258 : vector<8x128xf32>
    %260 = vector.extract_strided_slice %214 {offsets = [0, 256], sizes = [8, 128], strides = [1, 1]} : vector<8x512xf32> to vector<8x128xf32>
    %261 = math.tanh %260 : vector<8x128xf32>
    %262 = vector.extract_strided_slice %214 {offsets = [0, 384], sizes = [8, 128], strides = [1, 1]} : vector<8x512xf32> to vector<8x128xf32>
    %263 = arith.negf %262 : vector<8x128xf32>
    %264 = math.exp %263 : vector<8x128xf32>
    %cst_76 = arith.constant 1.000000e+00 : f32
    %265 = vector.broadcast %cst_76 : f32 to vector<8x128xf32>
    %266 = arith.addf %265, %264 : vector<8x128xf32>
    %267 = arith.divf %265, %266 : vector<8x128xf32>
    %268 = arith.mulf %259, %200 : vector<8x128xf32>
    %269 = arith.mulf %253, %261 : vector<8x128xf32>
    %270 = arith.addf %268, %269 : vector<8x128xf32>
    %271 = math.tanh %270 : vector<8x128xf32>
    %272 = arith.mulf %267, %271 : vector<8x128xf32>
    %cst_77 = arith.constant 0.000000e+00 : f32
    %273 = vector.shape_cast %218 : vector<8x1xi1> to vector<8x1xi1>
    %274 = vector.broadcast %273 : vector<8x1xi1> to vector<8x128xi1>
    %275 = vector.broadcast %cst_77 : f32 to vector<8x128xf32>
    %276 = arith.select %274, %247, %275 : vector<8x128xi1>, vector<8x128xf32>
    %277 = arith.truncf %276 : vector<8x128xf32> to vector<8x128xbf16>
    %c2_78 = arith.constant 2 : index
    %c0_79 = arith.constant 0 : index
    %c0_80 = arith.constant 0 : index
    %278 = vector.load %arg4[%c2_78, %c0_79, %c0_80] : memref<8x8x256xbf16, #tpu.memory_space<vmem>>, vector<1x8x128xbf16>
    %279 = vector.shape_cast %278 : vector<1x8x128xbf16> to vector<8x128xbf16>
    %280 = vector.shape_cast %277 : vector<8x128xbf16> to vector<1x8x128xbf16>
    tpu.vector_store %arg4[%c2_78, %c0_79, %c0_80], %280 {strides = array<i32>} : memref<8x8x256xbf16, #tpu.memory_space<vmem>>, vector<1x8x128xbf16>,
    %cst_81 = arith.constant 0.000000e+00 : f32
    %281 = vector.shape_cast %222 : vector<8x1xi1> to vector<8x1xi1>
    %282 = vector.broadcast %281 : vector<8x1xi1> to vector<8x128xi1>
    %283 = vector.broadcast %cst_81 : f32 to vector<8x128xf32>
    %284 = arith.select %282, %272, %283 : vector<8x128xi1>, vector<8x128xf32>
    %285 = arith.truncf %284 : vector<8x128xf32> to vector<8x128xbf16>
    %c5_82 = arith.constant 5 : index
    %c0_83 = arith.constant 0 : index
    %c128_84 = arith.constant 128 : index
    %286 = vector.load %arg4[%c5_82, %c0_83, %c128_84] : memref<8x8x256xbf16, #tpu.memory_space<vmem>>, vector<1x8x128xbf16>
    %287 = vector.shape_cast %286 : vector<1x8x128xbf16> to vector<8x128xbf16>
    %288 = vector.shape_cast %285 : vector<8x128xbf16> to vector<1x8x128xbf16>
    tpu.vector_store %arg4[%c5_82, %c0_83, %c128_84], %288 {strides = array<i32>} : memref<8x8x256xbf16, #tpu.memory_space<vmem>>, vector<1x8x128xbf16>,
    %289 = vector.shape_cast %218 : vector<8x1xi1> to vector<8x1xi1>
    %290 = vector.broadcast %289 : vector<8x1xi1> to vector<8x128xi1>
    %291 = arith.select %290, %247, %191 : vector<8x128xi1>, vector<8x128xf32>
    %292 = vector.shape_cast %218 : vector<8x1xi1> to vector<8x1xi1>
    %293 = vector.broadcast %292 : vector<8x1xi1> to vector<8x128xi1>
    %294 = arith.select %293, %245, %194 : vector<8x128xi1>, vector<8x128xf32>
    %295 = vector.shape_cast %222 : vector<8x1xi1> to vector<8x1xi1>
    %296 = vector.broadcast %295 : vector<8x1xi1> to vector<8x128xi1>
    %297 = arith.select %296, %272, %197 : vector<8x128xi1>, vector<8x128xf32>
    %298 = vector.shape_cast %222 : vector<8x1xi1> to vector<8x1xi1>
    %299 = vector.broadcast %298 : vector<8x1xi1> to vector<8x128xi1>
    %300 = arith.select %299, %270, %200 : vector<8x128xi1>, vector<8x128xf32>
    %301 = tpu.concatenate %291, %297 in 1 : vector<8x128xf32>, vector<8x128xf32> -> vector<8x256xf32>
    %302 = arith.truncf %301 : vector<8x256xf32> to vector<8x256xbf16>
    %c0_85 = arith.constant 0 : index
    %c0_86 = arith.constant 0 : index
    %303 = vector.load %arg3[%c0_85, %c0_86] : memref<256x1024xbf16, #tpu.memory_space<vmem>>, vector<256x1024xbf16>
    %cst_87 = arith.constant dense<0.000000e+00> : vector<8x1024xf32>
    %304 = tpu.matmul %302, %303, %cst_87 {dimension_numbers = #tpu.dot_dimension_numbers<[1], [0], [0], [1], [0, 0, 1, 1], [], []>} : vector<8x256xbf16>, vector<256x1024xbf16>, vector<8x1024xf32> -> vector<8x1024xf32>
    %c3 = arith.constant 3 : index
    %c0_88 = arith.constant 0 : index
    %c0_89 = arith.constant 0 : index
    %305 = vector.load %arg1[%c3, %c0_88, %c0_89] : memref<8x8x1024xbf16, #tpu.memory_space<vmem>>, vector<1x8x512xbf16>
    %306 = vector.shape_cast %305 : vector<1x8x512xbf16> to vector<8x512xbf16>
    %307 = arith.extf %306 : vector<8x512xbf16> to vector<8x512xf32>
    %308 = vector.extract_strided_slice %304 {offsets = [0, 0], sizes = [8, 512], strides = [1, 1]} : vector<8x1024xf32> to vector<8x512xf32>
    %309 = arith.addf %307, %308 : vector<8x512xf32>
    %c4 = arith.constant 4 : index
    %c0_90 = arith.constant 0 : index
    %c512_91 = arith.constant 512 : index
    %310 = vector.load %arg1[%c4, %c0_90, %c512_91] : memref<8x8x1024xbf16, #tpu.memory_space<vmem>>, vector<1x8x512xbf16>
    %311 = vector.shape_cast %310 : vector<1x8x512xbf16> to vector<8x512xbf16>
    %312 = arith.extf %311 : vector<8x512xbf16> to vector<8x512xf32>
    %313 = vector.extract_strided_slice %304 {offsets = [0, 512], sizes = [8, 512], strides = [1, 1]} : vector<8x1024xf32> to vector<8x512xf32>
    %314 = arith.addf %312, %313 : vector<8x512xf32>
    %c3_92 = arith.constant 3 : index
    %c0_93 = arith.constant 0 : index
    %c0_94 = arith.constant 0 : index
    %315 = vector.load %arg2[%c3_92, %c0_93, %c0_94] : memref<8x8x1xf32, #tpu.memory_space<vmem>>, vector<1x8x1xf32>
    %316 = vector.shape_cast %315 : vector<1x8x1xf32> to vector<8x1xf32>
    %cst_95 = arith.constant 0.000000e+00 : f32
    %317 = vector.broadcast %cst_95 : f32 to vector<8x1xf32>
    %318 = arith.cmpf one, %316, %317 : vector<8x1xf32>
    %c4_96 = arith.constant 4 : index
    %c0_97 = arith.constant 0 : index
    %c0_98 = arith.constant 0 : index
    %319 = vector.load %arg2[%c4_96, %c0_97, %c0_98] : memref<8x8x1xf32, #tpu.memory_space<vmem>>, vector<1x8x1xf32>
    %320 = vector.shape_cast %319 : vector<1x8x1xf32> to vector<8x1xf32>
    %cst_99 = arith.constant 0.000000e+00 : f32
    %321 = vector.broadcast %cst_99 : f32 to vector<8x1xf32>
    %322 = arith.cmpf one, %320, %321 : vector<8x1xf32>
    %323 = vector.extract_strided_slice %309 {offsets = [0, 0], sizes = [8, 128], strides = [1, 1]} : vector<8x512xf32> to vector<8x128xf32>
    %324 = arith.negf %323 : vector<8x128xf32>
    %325 = math.exp %324 : vector<8x128xf32>
    %cst_100 = arith.constant 1.000000e+00 : f32
    %326 = vector.broadcast %cst_100 : f32 to vector<8x128xf32>
    %327 = arith.addf %326, %325 : vector<8x128xf32>
    %328 = arith.divf %326, %327 : vector<8x128xf32>
    %329 = vector.extract_strided_slice %309 {offsets = [0, 128], sizes = [8, 128], strides = [1, 1]} : vector<8x512xf32> to vector<8x128xf32>
    %330 = arith.negf %329 : vector<8x128xf32>
    %331 = math.exp %330 : vector<8x128xf32>
    %cst_101 = arith.constant 1.000000e+00 : f32
    %332 = vector.broadcast %cst_101 : f32 to vector<8x128xf32>
    %333 = arith.addf %332, %331 : vector<8x128xf32>
    %334 = arith.divf %332, %333 : vector<8x128xf32>
    %335 = vector.extract_strided_slice %309 {offsets = [0, 256], sizes = [8, 128], strides = [1, 1]} : vector<8x512xf32> to vector<8x128xf32>
    %336 = math.tanh %335 : vector<8x128xf32>
    %337 = vector.extract_strided_slice %309 {offsets = [0, 384], sizes = [8, 128], strides = [1, 1]} : vector<8x512xf32> to vector<8x128xf32>
    %338 = arith.negf %337 : vector<8x128xf32>
    %339 = math.exp %338 : vector<8x128xf32>
    %cst_102 = arith.constant 1.000000e+00 : f32
    %340 = vector.broadcast %cst_102 : f32 to vector<8x128xf32>
    %341 = arith.addf %340, %339 : vector<8x128xf32>
    %342 = arith.divf %340, %341 : vector<8x128xf32>
    %343 = arith.mulf %334, %294 : vector<8x128xf32>
    %344 = arith.mulf %328, %336 : vector<8x128xf32>
    %345 = arith.addf %343, %344 : vector<8x128xf32>
    %346 = math.tanh %345 : vector<8x128xf32>
    %347 = arith.mulf %342, %346 : vector<8x128xf32>
    %348 = vector.extract_strided_slice %314 {offsets = [0, 0], sizes = [8, 128], strides = [1, 1]} : vector<8x512xf32> to vector<8x128xf32>
    %349 = arith.negf %348 : vector<8x128xf32>
    %350 = math.exp %349 : vector<8x128xf32>
    %cst_103 = arith.constant 1.000000e+00 : f32
    %351 = vector.broadcast %cst_103 : f32 to vector<8x128xf32>
    %352 = arith.addf %351, %350 : vector<8x128xf32>
    %353 = arith.divf %351, %352 : vector<8x128xf32>
    %354 = vector.extract_strided_slice %314 {offsets = [0, 128], sizes = [8, 128], strides = [1, 1]} : vector<8x512xf32> to vector<8x128xf32>
    %355 = arith.negf %354 : vector<8x128xf32>
    %356 = math.exp %355 : vector<8x128xf32>
    %cst_104 = arith.constant 1.000000e+00 : f32
    %357 = vector.broadcast %cst_104 : f32 to vector<8x128xf32>
    %358 = arith.addf %357, %356 : vector<8x128xf32>
    %359 = arith.divf %357, %358 : vector<8x128xf32>
    %360 = vector.extract_strided_slice %314 {offsets = [0, 256], sizes = [8, 128], strides = [1, 1]} : vector<8x512xf32> to vector<8x128xf32>
    %361 = math.tanh %360 : vector<8x128xf32>
    %362 = vector.extract_strided_slice %314 {offsets = [0, 384], sizes = [8, 128], strides = [1, 1]} : vector<8x512xf32> to vector<8x128xf32>
    %363 = arith.negf %362 : vector<8x128xf32>
    %364 = math.exp %363 : vector<8x128xf32>
    %cst_105 = arith.constant 1.000000e+00 : f32
    %365 = vector.broadcast %cst_105 : f32 to vector<8x128xf32>
    %366 = arith.addf %365, %364 : vector<8x128xf32>
    %367 = arith.divf %365, %366 : vector<8x128xf32>
    %368 = arith.mulf %359, %300 : vector<8x128xf32>
    %369 = arith.mulf %353, %361 : vector<8x128xf32>
    %370 = arith.addf %368, %369 : vector<8x128xf32>
    %371 = math.tanh %370 : vector<8x128xf32>
    %372 = arith.mulf %367, %371 : vector<8x128xf32>
    %cst_106 = arith.constant 0.000000e+00 : f32
    %373 = vector.shape_cast %318 : vector<8x1xi1> to vector<8x1xi1>
    %374 = vector.broadcast %373 : vector<8x1xi1> to vector<8x128xi1>
    %375 = vector.broadcast %cst_106 : f32 to vector<8x128xf32>
    %376 = arith.select %374, %347, %375 : vector<8x128xi1>, vector<8x128xf32>
    %377 = arith.truncf %376 : vector<8x128xf32> to vector<8x128xbf16>
    %c3_107 = arith.constant 3 : index
    %c0_108 = arith.constant 0 : index
    %c0_109 = arith.constant 0 : index
    %378 = vector.load %arg4[%c3_107, %c0_108, %c0_109] : memref<8x8x256xbf16, #tpu.memory_space<vmem>>, vector<1x8x128xbf16>
    %379 = vector.shape_cast %378 : vector<1x8x128xbf16> to vector<8x128xbf16>
    %380 = vector.shape_cast %377 : vector<8x128xbf16> to vector<1x8x128xbf16>
    tpu.vector_store %arg4[%c3_107, %c0_108, %c0_109], %380 {strides = array<i32>} : memref<8x8x256xbf16, #tpu.memory_space<vmem>>, vector<1x8x128xbf16>,
    %cst_110 = arith.constant 0.000000e+00 : f32
    %381 = vector.shape_cast %322 : vector<8x1xi1> to vector<8x1xi1>
    %382 = vector.broadcast %381 : vector<8x1xi1> to vector<8x128xi1>
    %383 = vector.broadcast %cst_110 : f32 to vector<8x128xf32>
    %384 = arith.select %382, %372, %383 : vector<8x128xi1>, vector<8x128xf32>
    %385 = arith.truncf %384 : vector<8x128xf32> to vector<8x128xbf16>
    %c4_111 = arith.constant 4 : index
    %c0_112 = arith.constant 0 : index
    %c128_113 = arith.constant 128 : index
    %386 = vector.load %arg4[%c4_111, %c0_112, %c128_113] : memref<8x8x256xbf16, #tpu.memory_space<vmem>>, vector<1x8x128xbf16>
    %387 = vector.shape_cast %386 : vector<1x8x128xbf16> to vector<8x128xbf16>
    %388 = vector.shape_cast %385 : vector<8x128xbf16> to vector<1x8x128xbf16>
    tpu.vector_store %arg4[%c4_111, %c0_112, %c128_113], %388 {strides = array<i32>} : memref<8x8x256xbf16, #tpu.memory_space<vmem>>, vector<1x8x128xbf16>,
    %389 = vector.shape_cast %318 : vector<8x1xi1> to vector<8x1xi1>
    %390 = vector.broadcast %389 : vector<8x1xi1> to vector<8x128xi1>
    %391 = arith.select %390, %347, %291 : vector<8x128xi1>, vector<8x128xf32>
    %392 = vector.shape_cast %318 : vector<8x1xi1> to vector<8x1xi1>
    %393 = vector.broadcast %392 : vector<8x1xi1> to vector<8x128xi1>
    %394 = arith.select %393, %345, %294 : vector<8x128xi1>, vector<8x128xf32>
    %395 = vector.shape_cast %322 : vector<8x1xi1> to vector<8x1xi1>
    %396 = vector.broadcast %395 : vector<8x1xi1> to vector<8x128xi1>
    %397 = arith.select %396, %372, %297 : vector<8x128xi1>, vector<8x128xf32>
    %398 = vector.shape_cast %322 : vector<8x1xi1> to vector<8x1xi1>
    %399 = vector.broadcast %398 : vector<8x1xi1> to vector<8x128xi1>
    %400 = arith.select %399, %370, %300 : vector<8x128xi1>, vector<8x128xf32>
    %401 = tpu.concatenate %391, %397 in 1 : vector<8x128xf32>, vector<8x128xf32> -> vector<8x256xf32>
    %402 = arith.truncf %401 : vector<8x256xf32> to vector<8x256xbf16>
    %c0_114 = arith.constant 0 : index
    %c0_115 = arith.constant 0 : index
    %403 = vector.load %arg3[%c0_114, %c0_115] : memref<256x1024xbf16, #tpu.memory_space<vmem>>, vector<256x1024xbf16>
    %cst_116 = arith.constant dense<0.000000e+00> : vector<8x1024xf32>
    %404 = tpu.matmul %402, %403, %cst_116 {dimension_numbers = #tpu.dot_dimension_numbers<[1], [0], [0], [1], [0, 0, 1, 1], [], []>} : vector<8x256xbf16>, vector<256x1024xbf16>, vector<8x1024xf32> -> vector<8x1024xf32>
    %c4_117 = arith.constant 4 : index
    %c0_118 = arith.constant 0 : index
    %c0_119 = arith.constant 0 : index
    %405 = vector.load %arg1[%c4_117, %c0_118, %c0_119] : memref<8x8x1024xbf16, #tpu.memory_space<vmem>>, vector<1x8x512xbf16>
    %406 = vector.shape_cast %405 : vector<1x8x512xbf16> to vector<8x512xbf16>
    %407 = arith.extf %406 : vector<8x512xbf16> to vector<8x512xf32>
    %408 = vector.extract_strided_slice %404 {offsets = [0, 0], sizes = [8, 512], strides = [1, 1]} : vector<8x1024xf32> to vector<8x512xf32>
    %409 = arith.addf %407, %408 : vector<8x512xf32>
    %c3_120 = arith.constant 3 : index
    %c0_121 = arith.constant 0 : index
    %c512_122 = arith.constant 512 : index
    %410 = vector.load %arg1[%c3_120, %c0_121, %c512_122] : memref<8x8x1024xbf16, #tpu.memory_space<vmem>>, vector<1x8x512xbf16>
    %411 = vector.shape_cast %410 : vector<1x8x512xbf16> to vector<8x512xbf16>
    %412 = arith.extf %411 : vector<8x512xbf16> to vector<8x512xf32>
    %413 = vector.extract_strided_slice %404 {offsets = [0, 512], sizes = [8, 512], strides = [1, 1]} : vector<8x1024xf32> to vector<8x512xf32>
    %414 = arith.addf %412, %413 : vector<8x512xf32>
    %c4_123 = arith.constant 4 : index
    %c0_124 = arith.constant 0 : index
    %c0_125 = arith.constant 0 : index
    %415 = vector.load %arg2[%c4_123, %c0_124, %c0_125] : memref<8x8x1xf32, #tpu.memory_space<vmem>>, vector<1x8x1xf32>
    %416 = vector.shape_cast %415 : vector<1x8x1xf32> to vector<8x1xf32>
    %cst_126 = arith.constant 0.000000e+00 : f32
    %417 = vector.broadcast %cst_126 : f32 to vector<8x1xf32>
    %418 = arith.cmpf one, %416, %417 : vector<8x1xf32>
    %c3_127 = arith.constant 3 : index
    %c0_128 = arith.constant 0 : index
    %c0_129 = arith.constant 0 : index
    %419 = vector.load %arg2[%c3_127, %c0_128, %c0_129] : memref<8x8x1xf32, #tpu.memory_space<vmem>>, vector<1x8x1xf32>
    %420 = vector.shape_cast %419 : vector<1x8x1xf32> to vector<8x1xf32>
    %cst_130 = arith.constant 0.000000e+00 : f32
    %421 = vector.broadcast %cst_130 : f32 to vector<8x1xf32>
    %422 = arith.cmpf one, %420, %421 : vector<8x1xf32>
    %423 = vector.extract_strided_slice %409 {offsets = [0, 0], sizes = [8, 128], strides = [1, 1]} : vector<8x512xf32> to vector<8x128xf32>
    %424 = arith.negf %423 : vector<8x128xf32>
    %425 = math.exp %424 : vector<8x128xf32>
    %cst_131 = arith.constant 1.000000e+00 : f32
    %426 = vector.broadcast %cst_131 : f32 to vector<8x128xf32>
    %427 = arith.addf %426, %425 : vector<8x128xf32>
    %428 = arith.divf %426, %427 : vector<8x128xf32>
    %429 = vector.extract_strided_slice %409 {offsets = [0, 128], sizes = [8, 128], strides = [1, 1]} : vector<8x512xf32> to vector<8x128xf32>
    %430 = arith.negf %429 : vector<8x128xf32>
    %431 = math.exp %430 : vector<8x128xf32>
    %cst_132 = arith.constant 1.000000e+00 : f32
    %432 = vector.broadcast %cst_132 : f32 to vector<8x128xf32>
    %433 = arith.addf %432, %431 : vector<8x128xf32>
    %434 = arith.divf %432, %433 : vector<8x128xf32>
    %435 = vector.extract_strided_slice %409 {offsets = [0, 256], sizes = [8, 128], strides = [1, 1]} : vector<8x512xf32> to vector<8x128xf32>
    %436 = math.tanh %435 : vector<8x128xf32>
    %437 = vector.extract_strided_slice %409 {offsets = [0, 384], sizes = [8, 128], strides = [1, 1]} : vector<8x512xf32> to vector<8x128xf32>
    %438 = arith.negf %437 : vector<8x128xf32>
    %439 = math.exp %438 : vector<8x128xf32>
    %cst_133 = arith.constant 1.000000e+00 : f32
    %440 = vector.broadcast %cst_133 : f32 to vector<8x128xf32>
    %441 = arith.addf %440, %439 : vector<8x128xf32>
    %442 = arith.divf %440, %441 : vector<8x128xf32>
    %443 = arith.mulf %434, %394 : vector<8x128xf32>
    %444 = arith.mulf %428, %436 : vector<8x128xf32>
    %445 = arith.addf %443, %444 : vector<8x128xf32>
    %446 = math.tanh %445 : vector<8x128xf32>
    %447 = arith.mulf %442, %446 : vector<8x128xf32>
    %448 = vector.extract_strided_slice %414 {offsets = [0, 0], sizes = [8, 128], strides = [1, 1]} : vector<8x512xf32> to vector<8x128xf32>
    %449 = arith.negf %448 : vector<8x128xf32>
    %450 = math.exp %449 : vector<8x128xf32>
    %cst_134 = arith.constant 1.000000e+00 : f32
    %451 = vector.broadcast %cst_134 : f32 to vector<8x128xf32>
    %452 = arith.addf %451, %450 : vector<8x128xf32>
    %453 = arith.divf %451, %452 : vector<8x128xf32>
    %454 = vector.extract_strided_slice %414 {offsets = [0, 128], sizes = [8, 128], strides = [1, 1]} : vector<8x512xf32> to vector<8x128xf32>
    %455 = arith.negf %454 : vector<8x128xf32>
    %456 = math.exp %455 : vector<8x128xf32>
    %cst_135 = arith.constant 1.000000e+00 : f32
    %457 = vector.broadcast %cst_135 : f32 to vector<8x128xf32>
    %458 = arith.addf %457, %456 : vector<8x128xf32>
    %459 = arith.divf %457, %458 : vector<8x128xf32>
    %460 = vector.extract_strided_slice %414 {offsets = [0, 256], sizes = [8, 128], strides = [1, 1]} : vector<8x512xf32> to vector<8x128xf32>
    %461 = math.tanh %460 : vector<8x128xf32>
    %462 = vector.extract_strided_slice %414 {offsets = [0, 384], sizes = [8, 128], strides = [1, 1]} : vector<8x512xf32> to vector<8x128xf32>
    %463 = arith.negf %462 : vector<8x128xf32>
    %464 = math.exp %463 : vector<8x128xf32>
    %cst_136 = arith.constant 1.000000e+00 : f32
    %465 = vector.broadcast %cst_136 : f32 to vector<8x128xf32>
    %466 = arith.addf %465, %464 : vector<8x128xf32>
    %467 = arith.divf %465, %466 : vector<8x128xf32>
    %468 = arith.mulf %459, %400 : vector<8x128xf32>
    %469 = arith.mulf %453, %461 : vector<8x128xf32>
    %470 = arith.addf %468, %469 : vector<8x128xf32>
    %471 = math.tanh %470 : vector<8x128xf32>
    %472 = arith.mulf %467, %471 : vector<8x128xf32>
    %cst_137 = arith.constant 0.000000e+00 : f32
    %473 = vector.shape_cast %418 : vector<8x1xi1> to vector<8x1xi1>
    %474 = vector.broadcast %473 : vector<8x1xi1> to vector<8x128xi1>
    %475 = vector.broadcast %cst_137 : f32 to vector<8x128xf32>
    %476 = arith.select %474, %447, %475 : vector<8x128xi1>, vector<8x128xf32>
    %477 = arith.truncf %476 : vector<8x128xf32> to vector<8x128xbf16>
    %c4_138 = arith.constant 4 : index
    %c0_139 = arith.constant 0 : index
    %c0_140 = arith.constant 0 : index
    %478 = vector.load %arg4[%c4_138, %c0_139, %c0_140] : memref<8x8x256xbf16, #tpu.memory_space<vmem>>, vector<1x8x128xbf16>
    %479 = vector.shape_cast %478 : vector<1x8x128xbf16> to vector<8x128xbf16>
    %480 = vector.shape_cast %477 : vector<8x128xbf16> to vector<1x8x128xbf16>
    tpu.vector_store %arg4[%c4_138, %c0_139, %c0_140], %480 {strides = array<i32>} : memref<8x8x256xbf16, #tpu.memory_space<vmem>>, vector<1x8x128xbf16>,
    %cst_141 = arith.constant 0.000000e+00 : f32
    %481 = vector.shape_cast %422 : vector<8x1xi1> to vector<8x1xi1>
    %482 = vector.broadcast %481 : vector<8x1xi1> to vector<8x128xi1>
    %483 = vector.broadcast %cst_141 : f32 to vector<8x128xf32>
    %484 = arith.select %482, %472, %483 : vector<8x128xi1>, vector<8x128xf32>
    %485 = arith.truncf %484 : vector<8x128xf32> to vector<8x128xbf16>
    %c3_142 = arith.constant 3 : index
    %c0_143 = arith.constant 0 : index
    %c128_144 = arith.constant 128 : index
    %486 = vector.load %arg4[%c3_142, %c0_143, %c128_144] : memref<8x8x256xbf16, #tpu.memory_space<vmem>>, vector<1x8x128xbf16>
    %487 = vector.shape_cast %486 : vector<1x8x128xbf16> to vector<8x128xbf16>
    %488 = vector.shape_cast %485 : vector<8x128xbf16> to vector<1x8x128xbf16>
    tpu.vector_store %arg4[%c3_142, %c0_143, %c128_144], %488 {strides = array<i32>} : memref<8x8x256xbf16, #tpu.memory_space<vmem>>, vector<1x8x128xbf16>,
    %489 = vector.shape_cast %418 : vector<8x1xi1> to vector<8x1xi1>
    %490 = vector.broadcast %489 : vector<8x1xi1> to vector<8x128xi1>
    %491 = arith.select %490, %447, %391 : vector<8x128xi1>, vector<8x128xf32>
    %492 = vector.shape_cast %418 : vector<8x1xi1> to vector<8x1xi1>
    %493 = vector.broadcast %492 : vector<8x1xi1> to vector<8x128xi1>
    %494 = arith.select %493, %445, %394 : vector<8x128xi1>, vector<8x128xf32>
    %495 = vector.shape_cast %422 : vector<8x1xi1> to vector<8x1xi1>
    %496 = vector.broadcast %495 : vector<8x1xi1> to vector<8x128xi1>
    %497 = arith.select %496, %472, %397 : vector<8x128xi1>, vector<8x128xf32>
    %498 = vector.shape_cast %422 : vector<8x1xi1> to vector<8x1xi1>
    %499 = vector.broadcast %498 : vector<8x1xi1> to vector<8x128xi1>
    %500 = arith.select %499, %470, %400 : vector<8x128xi1>, vector<8x128xf32>
    %501 = tpu.concatenate %491, %497 in 1 : vector<8x128xf32>, vector<8x128xf32> -> vector<8x256xf32>
    %502 = arith.truncf %501 : vector<8x256xf32> to vector<8x256xbf16>
    %c0_145 = arith.constant 0 : index
    %c0_146 = arith.constant 0 : index
    %503 = vector.load %arg3[%c0_145, %c0_146] : memref<256x1024xbf16, #tpu.memory_space<vmem>>, vector<256x1024xbf16>
    %cst_147 = arith.constant dense<0.000000e+00> : vector<8x1024xf32>
    %504 = tpu.matmul %502, %503, %cst_147 {dimension_numbers = #tpu.dot_dimension_numbers<[1], [0], [0], [1], [0, 0, 1, 1], [], []>} : vector<8x256xbf16>, vector<256x1024xbf16>, vector<8x1024xf32> -> vector<8x1024xf32>
    %c5_148 = arith.constant 5 : index
    %c0_149 = arith.constant 0 : index
    %c0_150 = arith.constant 0 : index
    %505 = vector.load %arg1[%c5_148, %c0_149, %c0_150] : memref<8x8x1024xbf16, #tpu.memory_space<vmem>>, vector<1x8x512xbf16>
    %506 = vector.shape_cast %505 : vector<1x8x512xbf16> to vector<8x512xbf16>
    %507 = arith.extf %506 : vector<8x512xbf16> to vector<8x512xf32>
    %508 = vector.extract_strided_slice %504 {offsets = [0, 0], sizes = [8, 512], strides = [1, 1]} : vector<8x1024xf32> to vector<8x512xf32>
    %509 = arith.addf %507, %508 : vector<8x512xf32>
    %c2_151 = arith.constant 2 : index
    %c0_152 = arith.constant 0 : index
    %c512_153 = arith.constant 512 : index
    %510 = vector.load %arg1[%c2_151, %c0_152, %c512_153] : memref<8x8x1024xbf16, #tpu.memory_space<vmem>>, vector<1x8x512xbf16>
    %511 = vector.shape_cast %510 : vector<1x8x512xbf16> to vector<8x512xbf16>
    %512 = arith.extf %511 : vector<8x512xbf16> to vector<8x512xf32>
    %513 = vector.extract_strided_slice %504 {offsets = [0, 512], sizes = [8, 512], strides = [1, 1]} : vector<8x1024xf32> to vector<8x512xf32>
    %514 = arith.addf %512, %513 : vector<8x512xf32>
    %c5_154 = arith.constant 5 : index
    %c0_155 = arith.constant 0 : index
    %c0_156 = arith.constant 0 : index
    %515 = vector.load %arg2[%c5_154, %c0_155, %c0_156] : memref<8x8x1xf32, #tpu.memory_space<vmem>>, vector<1x8x1xf32>
    %516 = vector.shape_cast %515 : vector<1x8x1xf32> to vector<8x1xf32>
    %cst_157 = arith.constant 0.000000e+00 : f32
    %517 = vector.broadcast %cst_157 : f32 to vector<8x1xf32>
    %518 = arith.cmpf one, %516, %517 : vector<8x1xf32>
    %c2_158 = arith.constant 2 : index
    %c0_159 = arith.constant 0 : index
    %c0_160 = arith.constant 0 : index
    %519 = vector.load %arg2[%c2_158, %c0_159, %c0_160] : memref<8x8x1xf32, #tpu.memory_space<vmem>>, vector<1x8x1xf32>
    %520 = vector.shape_cast %519 : vector<1x8x1xf32> to vector<8x1xf32>
    %cst_161 = arith.constant 0.000000e+00 : f32
    %521 = vector.broadcast %cst_161 : f32 to vector<8x1xf32>
    %522 = arith.cmpf one, %520, %521 : vector<8x1xf32>
    %523 = vector.extract_strided_slice %509 {offsets = [0, 0], sizes = [8, 128], strides = [1, 1]} : vector<8x512xf32> to vector<8x128xf32>
    %524 = arith.negf %523 : vector<8x128xf32>
    %525 = math.exp %524 : vector<8x128xf32>
    %cst_162 = arith.constant 1.000000e+00 : f32
    %526 = vector.broadcast %cst_162 : f32 to vector<8x128xf32>
    %527 = arith.addf %526, %525 : vector<8x128xf32>
    %528 = arith.divf %526, %527 : vector<8x128xf32>
    %529 = vector.extract_strided_slice %509 {offsets = [0, 128], sizes = [8, 128], strides = [1, 1]} : vector<8x512xf32> to vector<8x128xf32>
    %530 = arith.negf %529 : vector<8x128xf32>
    %531 = math.exp %530 : vector<8x128xf32>
    %cst_163 = arith.constant 1.000000e+00 : f32
    %532 = vector.broadcast %cst_163 : f32 to vector<8x128xf32>
    %533 = arith.addf %532, %531 : vector<8x128xf32>
    %534 = arith.divf %532, %533 : vector<8x128xf32>
    %535 = vector.extract_strided_slice %509 {offsets = [0, 256], sizes = [8, 128], strides = [1, 1]} : vector<8x512xf32> to vector<8x128xf32>
    %536 = math.tanh %535 : vector<8x128xf32>
    %537 = vector.extract_strided_slice %509 {offsets = [0, 384], sizes = [8, 128], strides = [1, 1]} : vector<8x512xf32> to vector<8x128xf32>
    %538 = arith.negf %537 : vector<8x128xf32>
    %539 = math.exp %538 : vector<8x128xf32>
    %cst_164 = arith.constant 1.000000e+00 : f32
    %540 = vector.broadcast %cst_164 : f32 to vector<8x128xf32>
    %541 = arith.addf %540, %539 : vector<8x128xf32>
    %542 = arith.divf %540, %541 : vector<8x128xf32>
    %543 = arith.mulf %534, %494 : vector<8x128xf32>
    %544 = arith.mulf %528, %536 : vector<8x128xf32>
    %545 = arith.addf %543, %544 : vector<8x128xf32>
    %546 = math.tanh %545 : vector<8x128xf32>
    %547 = arith.mulf %542, %546 : vector<8x128xf32>
    %548 = vector.extract_strided_slice %514 {offsets = [0, 0], sizes = [8, 128], strides = [1, 1]} : vector<8x512xf32> to vector<8x128xf32>
    %549 = arith.negf %548 : vector<8x128xf32>
    %550 = math.exp %549 : vector<8x128xf32>
    %cst_165 = arith.constant 1.000000e+00 : f32
    %551 = vector.broadcast %cst_165 : f32 to vector<8x128xf32>
    %552 = arith.addf %551, %550 : vector<8x128xf32>
    %553 = arith.divf %551, %552 : vector<8x128xf32>
    %554 = vector.extract_strided_slice %514 {offsets = [0, 128], sizes = [8, 128], strides = [1, 1]} : vector<8x512xf32> to vector<8x128xf32>
    %555 = arith.negf %554 : vector<8x128xf32>
    %556 = math.exp %555 : vector<8x128xf32>
    %cst_166 = arith.constant 1.000000e+00 : f32
    %557 = vector.broadcast %cst_166 : f32 to vector<8x128xf32>
    %558 = arith.addf %557, %556 : vector<8x128xf32>
    %559 = arith.divf %557, %558 : vector<8x128xf32>
    %560 = vector.extract_strided_slice %514 {offsets = [0, 256], sizes = [8, 128], strides = [1, 1]} : vector<8x512xf32> to vector<8x128xf32>
    %561 = math.tanh %560 : vector<8x128xf32>
    %562 = vector.extract_strided_slice %514 {offsets = [0, 384], sizes = [8, 128], strides = [1, 1]} : vector<8x512xf32> to vector<8x128xf32>
    %563 = arith.negf %562 : vector<8x128xf32>
    %564 = math.exp %563 : vector<8x128xf32>
    %cst_167 = arith.constant 1.000000e+00 : f32
    %565 = vector.broadcast %cst_167 : f32 to vector<8x128xf32>
    %566 = arith.addf %565, %564 : vector<8x128xf32>
    %567 = arith.divf %565, %566 : vector<8x128xf32>
    %568 = arith.mulf %559, %500 : vector<8x128xf32>
    %569 = arith.mulf %553, %561 : vector<8x128xf32>
    %570 = arith.addf %568, %569 : vector<8x128xf32>
    %571 = math.tanh %570 : vector<8x128xf32>
    %572 = arith.mulf %567, %571 : vector<8x128xf32>
    %cst_168 = arith.constant 0.000000e+00 : f32
    %573 = vector.shape_cast %518 : vector<8x1xi1> to vector<8x1xi1>
    %574 = vector.broadcast %573 : vector<8x1xi1> to vector<8x128xi1>
    %575 = vector.broadcast %cst_168 : f32 to vector<8x128xf32>
    %576 = arith.select %574, %547, %575 : vector<8x128xi1>, vector<8x128xf32>
    %577 = arith.truncf %576 : vector<8x128xf32> to vector<8x128xbf16>
    %c5_169 = arith.constant 5 : index
    %c0_170 = arith.constant 0 : index
    %c0_171 = arith.constant 0 : index
    %578 = vector.load %arg4[%c5_169, %c0_170, %c0_171] : memref<8x8x256xbf16, #tpu.memory_space<vmem>>, vector<1x8x128xbf16>
    %579 = vector.shape_cast %578 : vector<1x8x128xbf16> to vector<8x128xbf16>
    %580 = vector.shape_cast %577 : vector<8x128xbf16> to vector<1x8x128xbf16>
    tpu.vector_store %arg4[%c5_169, %c0_170, %c0_171], %580 {strides = array<i32>} : memref<8x8x256xbf16, #tpu.memory_space<vmem>>, vector<1x8x128xbf16>,
    %cst_172 = arith.constant 0.000000e+00 : f32
    %581 = vector.shape_cast %522 : vector<8x1xi1> to vector<8x1xi1>
    %582 = vector.broadcast %581 : vector<8x1xi1> to vector<8x128xi1>
    %583 = vector.broadcast %cst_172 : f32 to vector<8x128xf32>
    %584 = arith.select %582, %572, %583 : vector<8x128xi1>, vector<8x128xf32>
    %585 = arith.truncf %584 : vector<8x128xf32> to vector<8x128xbf16>
    %c2_173 = arith.constant 2 : index
    %c0_174 = arith.constant 0 : index
    %c128_175 = arith.constant 128 : index
    %586 = vector.load %arg4[%c2_173, %c0_174, %c128_175] : memref<8x8x256xbf16, #tpu.memory_space<vmem>>, vector<1x8x128xbf16>
    %587 = vector.shape_cast %586 : vector<1x8x128xbf16> to vector<8x128xbf16>
    %588 = vector.shape_cast %585 : vector<8x128xbf16> to vector<1x8x128xbf16>
    tpu.vector_store %arg4[%c2_173, %c0_174, %c128_175], %588 {strides = array<i32>} : memref<8x8x256xbf16, #tpu.memory_space<vmem>>, vector<1x8x128xbf16>,
    %589 = vector.shape_cast %518 : vector<8x1xi1> to vector<8x1xi1>
    %590 = vector.broadcast %589 : vector<8x1xi1> to vector<8x128xi1>
    %591 = arith.select %590, %547, %491 : vector<8x128xi1>, vector<8x128xf32>
    %592 = vector.shape_cast %518 : vector<8x1xi1> to vector<8x1xi1>
    %593 = vector.broadcast %592 : vector<8x1xi1> to vector<8x128xi1>
    %594 = arith.select %593, %545, %494 : vector<8x128xi1>, vector<8x128xf32>
    %595 = vector.shape_cast %522 : vector<8x1xi1> to vector<8x1xi1>
    %596 = vector.broadcast %595 : vector<8x1xi1> to vector<8x128xi1>
    %597 = arith.select %596, %572, %497 : vector<8x128xi1>, vector<8x128xf32>
    %598 = vector.shape_cast %522 : vector<8x1xi1> to vector<8x1xi1>
    %599 = vector.broadcast %598 : vector<8x1xi1> to vector<8x128xi1>
    %600 = arith.select %599, %570, %500 : vector<8x128xi1>, vector<8x128xf32>
    %601 = tpu.concatenate %591, %597 in 1 : vector<8x128xf32>, vector<8x128xf32> -> vector<8x256xf32>
    %602 = arith.truncf %601 : vector<8x256xf32> to vector<8x256xbf16>
    %c0_176 = arith.constant 0 : index
    %c0_177 = arith.constant 0 : index
    %603 = vector.load %arg3[%c0_176, %c0_177] : memref<256x1024xbf16, #tpu.memory_space<vmem>>, vector<256x1024xbf16>
    %cst_178 = arith.constant dense<0.000000e+00> : vector<8x1024xf32>
    %604 = tpu.matmul %602, %603, %cst_178 {dimension_numbers = #tpu.dot_dimension_numbers<[1], [0], [0], [1], [0, 0, 1, 1], [], []>} : vector<8x256xbf16>, vector<256x1024xbf16>, vector<8x1024xf32> -> vector<8x1024xf32>
    %c6_179 = arith.constant 6 : index
    %c0_180 = arith.constant 0 : index
    %c0_181 = arith.constant 0 : index
    %605 = vector.load %arg1[%c6_179, %c0_180, %c0_181] : memref<8x8x1024xbf16, #tpu.memory_space<vmem>>, vector<1x8x512xbf16>
    %606 = vector.shape_cast %605 : vector<1x8x512xbf16> to vector<8x512xbf16>
    %607 = arith.extf %606 : vector<8x512xbf16> to vector<8x512xf32>
    %608 = vector.extract_strided_slice %604 {offsets = [0, 0], sizes = [8, 512], strides = [1, 1]} : vector<8x1024xf32> to vector<8x512xf32>
    %609 = arith.addf %607, %608 : vector<8x512xf32>
    %c1_182 = arith.constant 1 : index
    %c0_183 = arith.constant 0 : index
    %c512_184 = arith.constant 512 : index
    %610 = vector.load %arg1[%c1_182, %c0_183, %c512_184] : memref<8x8x1024xbf16, #tpu.memory_space<vmem>>, vector<1x8x512xbf16>
    %611 = vector.shape_cast %610 : vector<1x8x512xbf16> to vector<8x512xbf16>
    %612 = arith.extf %611 : vector<8x512xbf16> to vector<8x512xf32>
    %613 = vector.extract_strided_slice %604 {offsets = [0, 512], sizes = [8, 512], strides = [1, 1]} : vector<8x1024xf32> to vector<8x512xf32>
    %614 = arith.addf %612, %613 : vector<8x512xf32>
    %c6_185 = arith.constant 6 : index
    %c0_186 = arith.constant 0 : index
    %c0_187 = arith.constant 0 : index
    %615 = vector.load %arg2[%c6_185, %c0_186, %c0_187] : memref<8x8x1xf32, #tpu.memory_space<vmem>>, vector<1x8x1xf32>
    %616 = vector.shape_cast %615 : vector<1x8x1xf32> to vector<8x1xf32>
    %cst_188 = arith.constant 0.000000e+00 : f32
    %617 = vector.broadcast %cst_188 : f32 to vector<8x1xf32>
    %618 = arith.cmpf one, %616, %617 : vector<8x1xf32>
    %c1_189 = arith.constant 1 : index
    %c0_190 = arith.constant 0 : index
    %c0_191 = arith.constant 0 : index
    %619 = vector.load %arg2[%c1_189, %c0_190, %c0_191] : memref<8x8x1xf32, #tpu.memory_space<vmem>>, vector<1x8x1xf32>
    %620 = vector.shape_cast %619 : vector<1x8x1xf32> to vector<8x1xf32>
    %cst_192 = arith.constant 0.000000e+00 : f32
    %621 = vector.broadcast %cst_192 : f32 to vector<8x1xf32>
    %622 = arith.cmpf one, %620, %621 : vector<8x1xf32>
    %623 = vector.extract_strided_slice %609 {offsets = [0, 0], sizes = [8, 128], strides = [1, 1]} : vector<8x512xf32> to vector<8x128xf32>
    %624 = arith.negf %623 : vector<8x128xf32>
    %625 = math.exp %624 : vector<8x128xf32>
    %cst_193 = arith.constant 1.000000e+00 : f32
    %626 = vector.broadcast %cst_193 : f32 to vector<8x128xf32>
    %627 = arith.addf %626, %625 : vector<8x128xf32>
    %628 = arith.divf %626, %627 : vector<8x128xf32>
    %629 = vector.extract_strided_slice %609 {offsets = [0, 128], sizes = [8, 128], strides = [1, 1]} : vector<8x512xf32> to vector<8x128xf32>
    %630 = arith.negf %629 : vector<8x128xf32>
    %631 = math.exp %630 : vector<8x128xf32>
    %cst_194 = arith.constant 1.000000e+00 : f32
    %632 = vector.broadcast %cst_194 : f32 to vector<8x128xf32>
    %633 = arith.addf %632, %631 : vector<8x128xf32>
    %634 = arith.divf %632, %633 : vector<8x128xf32>
    %635 = vector.extract_strided_slice %609 {offsets = [0, 256], sizes = [8, 128], strides = [1, 1]} : vector<8x512xf32> to vector<8x128xf32>
    %636 = math.tanh %635 : vector<8x128xf32>
    %637 = vector.extract_strided_slice %609 {offsets = [0, 384], sizes = [8, 128], strides = [1, 1]} : vector<8x512xf32> to vector<8x128xf32>
    %638 = arith.negf %637 : vector<8x128xf32>
    %639 = math.exp %638 : vector<8x128xf32>
    %cst_195 = arith.constant 1.000000e+00 : f32
    %640 = vector.broadcast %cst_195 : f32 to vector<8x128xf32>
    %641 = arith.addf %640, %639 : vector<8x128xf32>
    %642 = arith.divf %640, %641 : vector<8x128xf32>
    %643 = arith.mulf %634, %594 : vector<8x128xf32>
    %644 = arith.mulf %628, %636 : vector<8x128xf32>
    %645 = arith.addf %643, %644 : vector<8x128xf32>
    %646 = math.tanh %645 : vector<8x128xf32>
    %647 = arith.mulf %642, %646 : vector<8x128xf32>
    %648 = vector.extract_strided_slice %614 {offsets = [0, 0], sizes = [8, 128], strides = [1, 1]} : vector<8x512xf32> to vector<8x128xf32>
    %649 = arith.negf %648 : vector<8x128xf32>
    %650 = math.exp %649 : vector<8x128xf32>
    %cst_196 = arith.constant 1.000000e+00 : f32
    %651 = vector.broadcast %cst_196 : f32 to vector<8x128xf32>
    %652 = arith.addf %651, %650 : vector<8x128xf32>
    %653 = arith.divf %651, %652 : vector<8x128xf32>
    %654 = vector.extract_strided_slice %614 {offsets = [0, 128], sizes = [8, 128], strides = [1, 1]} : vector<8x512xf32> to vector<8x128xf32>
    %655 = arith.negf %654 : vector<8x128xf32>
    %656 = math.exp %655 : vector<8x128xf32>
    %cst_197 = arith.constant 1.000000e+00 : f32
    %657 = vector.broadcast %cst_197 : f32 to vector<8x128xf32>
    %658 = arith.addf %657, %656 : vector<8x128xf32>
    %659 = arith.divf %657, %658 : vector<8x128xf32>
    %660 = vector.extract_strided_slice %614 {offsets = [0, 256], sizes = [8, 128], strides = [1, 1]} : vector<8x512xf32> to vector<8x128xf32>
    %661 = math.tanh %660 : vector<8x128xf32>
    %662 = vector.extract_strided_slice %614 {offsets = [0, 384], sizes = [8, 128], strides = [1, 1]} : vector<8x512xf32> to vector<8x128xf32>
    %663 = arith.negf %662 : vector<8x128xf32>
    %664 = math.exp %663 : vector<8x128xf32>
    %cst_198 = arith.constant 1.000000e+00 : f32
    %665 = vector.broadcast %cst_198 : f32 to vector<8x128xf32>
    %666 = arith.addf %665, %664 : vector<8x128xf32>
    %667 = arith.divf %665, %666 : vector<8x128xf32>
    %668 = arith.mulf %659, %600 : vector<8x128xf32>
    %669 = arith.mulf %653, %661 : vector<8x128xf32>
    %670 = arith.addf %668, %669 : vector<8x128xf32>
    %671 = math.tanh %670 : vector<8x128xf32>
    %672 = arith.mulf %667, %671 : vector<8x128xf32>
    %cst_199 = arith.constant 0.000000e+00 : f32
    %673 = vector.shape_cast %618 : vector<8x1xi1> to vector<8x1xi1>
    %674 = vector.broadcast %673 : vector<8x1xi1> to vector<8x128xi1>
    %675 = vector.broadcast %cst_199 : f32 to vector<8x128xf32>
    %676 = arith.select %674, %647, %675 : vector<8x128xi1>, vector<8x128xf32>
    %677 = arith.truncf %676 : vector<8x128xf32> to vector<8x128xbf16>
    %c6_200 = arith.constant 6 : index
    %c0_201 = arith.constant 0 : index
    %c0_202 = arith.constant 0 : index
    %678 = vector.load %arg4[%c6_200, %c0_201, %c0_202] : memref<8x8x256xbf16, #tpu.memory_space<vmem>>, vector<1x8x128xbf16>
    %679 = vector.shape_cast %678 : vector<1x8x128xbf16> to vector<8x128xbf16>
    %680 = vector.shape_cast %677 : vector<8x128xbf16> to vector<1x8x128xbf16>
    tpu.vector_store %arg4[%c6_200, %c0_201, %c0_202], %680 {strides = array<i32>} : memref<8x8x256xbf16, #tpu.memory_space<vmem>>, vector<1x8x128xbf16>,
    %cst_203 = arith.constant 0.000000e+00 : f32
    %681 = vector.shape_cast %622 : vector<8x1xi1> to vector<8x1xi1>
    %682 = vector.broadcast %681 : vector<8x1xi1> to vector<8x128xi1>
    %683 = vector.broadcast %cst_203 : f32 to vector<8x128xf32>
    %684 = arith.select %682, %672, %683 : vector<8x128xi1>, vector<8x128xf32>
    %685 = arith.truncf %684 : vector<8x128xf32> to vector<8x128xbf16>
    %c1_204 = arith.constant 1 : index
    %c0_205 = arith.constant 0 : index
    %c128_206 = arith.constant 128 : index
    %686 = vector.load %arg4[%c1_204, %c0_205, %c128_206] : memref<8x8x256xbf16, #tpu.memory_space<vmem>>, vector<1x8x128xbf16>
    %687 = vector.shape_cast %686 : vector<1x8x128xbf16> to vector<8x128xbf16>
    %688 = vector.shape_cast %685 : vector<8x128xbf16> to vector<1x8x128xbf16>
    tpu.vector_store %arg4[%c1_204, %c0_205, %c128_206], %688 {strides = array<i32>} : memref<8x8x256xbf16, #tpu.memory_space<vmem>>, vector<1x8x128xbf16>,
    %689 = vector.shape_cast %618 : vector<8x1xi1> to vector<8x1xi1>
    %690 = vector.broadcast %689 : vector<8x1xi1> to vector<8x128xi1>
    %691 = arith.select %690, %647, %591 : vector<8x128xi1>, vector<8x128xf32>
    %692 = vector.shape_cast %618 : vector<8x1xi1> to vector<8x1xi1>
    %693 = vector.broadcast %692 : vector<8x1xi1> to vector<8x128xi1>
    %694 = arith.select %693, %645, %594 : vector<8x128xi1>, vector<8x128xf32>
    %695 = vector.shape_cast %622 : vector<8x1xi1> to vector<8x1xi1>
    %696 = vector.broadcast %695 : vector<8x1xi1> to vector<8x128xi1>
    %697 = arith.select %696, %672, %597 : vector<8x128xi1>, vector<8x128xf32>
    %698 = vector.shape_cast %622 : vector<8x1xi1> to vector<8x1xi1>
    %699 = vector.broadcast %698 : vector<8x1xi1> to vector<8x128xi1>
    %700 = arith.select %699, %670, %600 : vector<8x128xi1>, vector<8x128xf32>
    %701 = tpu.concatenate %691, %697 in 1 : vector<8x128xf32>, vector<8x128xf32> -> vector<8x256xf32>
    %702 = arith.truncf %701 : vector<8x256xf32> to vector<8x256xbf16>
    %c0_207 = arith.constant 0 : index
    %c0_208 = arith.constant 0 : index
    %703 = vector.load %arg3[%c0_207, %c0_208] : memref<256x1024xbf16, #tpu.memory_space<vmem>>, vector<256x1024xbf16>
    %cst_209 = arith.constant dense<0.000000e+00> : vector<8x1024xf32>
    %704 = tpu.matmul %702, %703, %cst_209 {dimension_numbers = #tpu.dot_dimension_numbers<[1], [0], [0], [1], [0, 0, 1, 1], [], []>} : vector<8x256xbf16>, vector<256x1024xbf16>, vector<8x1024xf32> -> vector<8x1024xf32>
    %c7_210 = arith.constant 7 : index
    %c0_211 = arith.constant 0 : index
    %c0_212 = arith.constant 0 : index
    %705 = vector.load %arg1[%c7_210, %c0_211, %c0_212] : memref<8x8x1024xbf16, #tpu.memory_space<vmem>>, vector<1x8x512xbf16>
    %706 = vector.shape_cast %705 : vector<1x8x512xbf16> to vector<8x512xbf16>
    %707 = arith.extf %706 : vector<8x512xbf16> to vector<8x512xf32>
    %708 = vector.extract_strided_slice %704 {offsets = [0, 0], sizes = [8, 512], strides = [1, 1]} : vector<8x1024xf32> to vector<8x512xf32>
    %709 = arith.addf %707, %708 : vector<8x512xf32>
    %c0_213 = arith.constant 0 : index
    %c0_214 = arith.constant 0 : index
    %c512_215 = arith.constant 512 : index
    %710 = vector.load %arg1[%c0_213, %c0_214, %c512_215] : memref<8x8x1024xbf16, #tpu.memory_space<vmem>>, vector<1x8x512xbf16>
    %711 = vector.shape_cast %710 : vector<1x8x512xbf16> to vector<8x512xbf16>
    %712 = arith.extf %711 : vector<8x512xbf16> to vector<8x512xf32>
    %713 = vector.extract_strided_slice %704 {offsets = [0, 512], sizes = [8, 512], strides = [1, 1]} : vector<8x1024xf32> to vector<8x512xf32>
    %714 = arith.addf %712, %713 : vector<8x512xf32>
    %c7_216 = arith.constant 7 : index
    %c0_217 = arith.constant 0 : index
    %c0_218 = arith.constant 0 : index
    %715 = vector.load %arg2[%c7_216, %c0_217, %c0_218] : memref<8x8x1xf32, #tpu.memory_space<vmem>>, vector<1x8x1xf32>
    %716 = vector.shape_cast %715 : vector<1x8x1xf32> to vector<8x1xf32>
    %cst_219 = arith.constant 0.000000e+00 : f32
    %717 = vector.broadcast %cst_219 : f32 to vector<8x1xf32>
    %718 = arith.cmpf one, %716, %717 : vector<8x1xf32>
    %c0_220 = arith.constant 0 : index
    %c0_221 = arith.constant 0 : index
    %c0_222 = arith.constant 0 : index
    %719 = vector.load %arg2[%c0_220, %c0_221, %c0_222] : memref<8x8x1xf32, #tpu.memory_space<vmem>>, vector<1x8x1xf32>
    %720 = vector.shape_cast %719 : vector<1x8x1xf32> to vector<8x1xf32>
    %cst_223 = arith.constant 0.000000e+00 : f32
    %721 = vector.broadcast %cst_223 : f32 to vector<8x1xf32>
    %722 = arith.cmpf one, %720, %721 : vector<8x1xf32>
    %723 = vector.extract_strided_slice %709 {offsets = [0, 0], sizes = [8, 128], strides = [1, 1]} : vector<8x512xf32> to vector<8x128xf32>
    %724 = arith.negf %723 : vector<8x128xf32>
    %725 = math.exp %724 : vector<8x128xf32>
    %cst_224 = arith.constant 1.000000e+00 : f32
    %726 = vector.broadcast %cst_224 : f32 to vector<8x128xf32>
    %727 = arith.addf %726, %725 : vector<8x128xf32>
    %728 = arith.divf %726, %727 : vector<8x128xf32>
    %729 = vector.extract_strided_slice %709 {offsets = [0, 128], sizes = [8, 128], strides = [1, 1]} : vector<8x512xf32> to vector<8x128xf32>
    %730 = arith.negf %729 : vector<8x128xf32>
    %731 = math.exp %730 : vector<8x128xf32>
    %cst_225 = arith.constant 1.000000e+00 : f32
    %732 = vector.broadcast %cst_225 : f32 to vector<8x128xf32>
    %733 = arith.addf %732, %731 : vector<8x128xf32>
    %734 = arith.divf %732, %733 : vector<8x128xf32>
    %735 = vector.extract_strided_slice %709 {offsets = [0, 256], sizes = [8, 128], strides = [1, 1]} : vector<8x512xf32> to vector<8x128xf32>
    %736 = math.tanh %735 : vector<8x128xf32>
    %737 = vector.extract_strided_slice %709 {offsets = [0, 384], sizes = [8, 128], strides = [1, 1]} : vector<8x512xf32> to vector<8x128xf32>
    %738 = arith.negf %737 : vector<8x128xf32>
    %739 = math.exp %738 : vector<8x128xf32>
    %cst_226 = arith.constant 1.000000e+00 : f32
    %740 = vector.broadcast %cst_226 : f32 to vector<8x128xf32>
    %741 = arith.addf %740, %739 : vector<8x128xf32>
    %742 = arith.divf %740, %741 : vector<8x128xf32>
    %743 = arith.mulf %734, %694 : vector<8x128xf32>
    %744 = arith.mulf %728, %736 : vector<8x128xf32>
    %745 = arith.addf %743, %744 : vector<8x128xf32>
    %746 = math.tanh %745 : vector<8x128xf32>
    %747 = arith.mulf %742, %746 : vector<8x128xf32>
    %748 = vector.extract_strided_slice %714 {offsets = [0, 0], sizes = [8, 128], strides = [1, 1]} : vector<8x512xf32> to vector<8x128xf32>
    %749 = arith.negf %748 : vector<8x128xf32>
    %750 = math.exp %749 : vector<8x128xf32>
    %cst_227 = arith.constant 1.000000e+00 : f32
    %751 = vector.broadcast %cst_227 : f32 to vector<8x128xf32>
    %752 = arith.addf %751, %750 : vector<8x128xf32>
    %753 = arith.divf %751, %752 : vector<8x128xf32>
    %754 = vector.extract_strided_slice %714 {offsets = [0, 128], sizes = [8, 128], strides = [1, 1]} : vector<8x512xf32> to vector<8x128xf32>
    %755 = arith.negf %754 : vector<8x128xf32>
    %756 = math.exp %755 : vector<8x128xf32>
    %cst_228 = arith.constant 1.000000e+00 : f32
    %757 = vector.broadcast %cst_228 : f32 to vector<8x128xf32>
    %758 = arith.addf %757, %756 : vector<8x128xf32>
    %759 = arith.divf %757, %758 : vector<8x128xf32>
    %760 = vector.extract_strided_slice %714 {offsets = [0, 256], sizes = [8, 128], strides = [1, 1]} : vector<8x512xf32> to vector<8x128xf32>
    %761 = math.tanh %760 : vector<8x128xf32>
    %762 = vector.extract_strided_slice %714 {offsets = [0, 384], sizes = [8, 128], strides = [1, 1]} : vector<8x512xf32> to vector<8x128xf32>
    %763 = arith.negf %762 : vector<8x128xf32>
    %764 = math.exp %763 : vector<8x128xf32>
    %cst_229 = arith.constant 1.000000e+00 : f32
    %765 = vector.broadcast %cst_229 : f32 to vector<8x128xf32>
    %766 = arith.addf %765, %764 : vector<8x128xf32>
    %767 = arith.divf %765, %766 : vector<8x128xf32>
    %768 = arith.mulf %759, %700 : vector<8x128xf32>
    %769 = arith.mulf %753, %761 : vector<8x128xf32>
    %770 = arith.addf %768, %769 : vector<8x128xf32>
    %771 = math.tanh %770 : vector<8x128xf32>
    %772 = arith.mulf %767, %771 : vector<8x128xf32>
    %cst_230 = arith.constant 0.000000e+00 : f32
    %773 = vector.shape_cast %718 : vector<8x1xi1> to vector<8x1xi1>
    %774 = vector.broadcast %773 : vector<8x1xi1> to vector<8x128xi1>
    %775 = vector.broadcast %cst_230 : f32 to vector<8x128xf32>
    %776 = arith.select %774, %747, %775 : vector<8x128xi1>, vector<8x128xf32>
    %777 = arith.truncf %776 : vector<8x128xf32> to vector<8x128xbf16>
    %c7_231 = arith.constant 7 : index
    %c0_232 = arith.constant 0 : index
    %c0_233 = arith.constant 0 : index
    %778 = vector.load %arg4[%c7_231, %c0_232, %c0_233] : memref<8x8x256xbf16, #tpu.memory_space<vmem>>, vector<1x8x128xbf16>
    %779 = vector.shape_cast %778 : vector<1x8x128xbf16> to vector<8x128xbf16>
    %780 = vector.shape_cast %777 : vector<8x128xbf16> to vector<1x8x128xbf16>
    tpu.vector_store %arg4[%c7_231, %c0_232, %c0_233], %780 {strides = array<i32>} : memref<8x8x256xbf16, #tpu.memory_space<vmem>>, vector<1x8x128xbf16>,
    %cst_234 = arith.constant 0.000000e+00 : f32
    %781 = vector.shape_cast %722 : vector<8x1xi1> to vector<8x1xi1>
    %782 = vector.broadcast %781 : vector<8x1xi1> to vector<8x128xi1>
    %783 = vector.broadcast %cst_234 : f32 to vector<8x128xf32>
    %784 = arith.select %782, %772, %783 : vector<8x128xi1>, vector<8x128xf32>
    %785 = arith.truncf %784 : vector<8x128xf32> to vector<8x128xbf16>
    %c0_235 = arith.constant 0 : index
    %c0_236 = arith.constant 0 : index
    %c128_237 = arith.constant 128 : index
    %786 = vector.load %arg4[%c0_235, %c0_236, %c128_237] : memref<8x8x256xbf16, #tpu.memory_space<vmem>>, vector<1x8x128xbf16>
    %787 = vector.shape_cast %786 : vector<1x8x128xbf16> to vector<8x128xbf16>
    %788 = vector.shape_cast %785 : vector<8x128xbf16> to vector<1x8x128xbf16>
    tpu.vector_store %arg4[%c0_235, %c0_236, %c128_237], %788 {strides = array<i32>} : memref<8x8x256xbf16, #tpu.memory_space<vmem>>, vector<1x8x128xbf16>,
    return
  }
  func.func @transform_0(%arg0: i32) -> (i32, i32, i32) {
    %c0_i32 = arith.constant 0 : i32
    %c0_i32_0 = arith.constant 0 : i32
    %c0_i32_1 = arith.constant 0 : i32
    return %c0_i32, %arg0, %c0_i32_0 : i32, i32, i32
  }
  func.func @transform_1(%arg0: i32) -> (i32, i32, i32) {
    %c0_i32 = arith.constant 0 : i32
    %c0_i32_0 = arith.constant 0 : i32
    %c0_i32_1 = arith.constant 0 : i32
    return %c0_i32, %arg0, %c0_i32_0 : i32, i32, i32
  }
  func.func @transform_2(%arg0: i32) -> (i32, i32) {
    %c0_i32 = arith.constant 0 : i32
    %c0_i32_0 = arith.constant 0 : i32
    %c0_i32_1 = arith.constant 0 : i32
    return %c0_i32, %c0_i32_0 : i32, i32
  }
  func.func @transform_3(%arg0: i32) -> (i32, i32, i32) {
    %c0_i32 = arith.constant 0 : i32
    %c0_i32_0 = arith.constant 0 : i32
    %c0_i32_1 = arith.constant 0 : i32
    return %c0_i32, %arg0, %c0_i32_0 : i32, i32, i32
  }
}

</mosaic_0001>

<bundles_post_ra>
// kernel: task_learner_forward.9
= control target key start
LH: loop header
LB: loop body
LE: loop exit
PB: predicated region body
PF: predicated region fallthrough
CT: control target
= control target key end

     0   :  { %s647_s1 = inlined_call_operand.vmem [shape: bf16[256,128], index: 1, kind: input, shape index: {}]   ;;  %s648_s0 = inlined_call_operand.vmem [shape: bf16[64,256], index: 0, kind: input, shape index: {}]   ;;  %s649_s2 = inlined_call_operand.vmem [shape: f32[1,128], index: 2, kind: input, shape index: {}]   ;;  %s650_s3 = inlined_call_operand.vmem [shape: f32[64,128], index: 3, kind: output, shape index: {}]  }
   0x1   :  { %v436_v0 = vld [vmem:[%s647_s1 + $0x40] sm:$0xff]   ;;  %v438_v2 = vld [vmem:[%s647_s1 + $0x48] sm:$0xff]   ;;  %v440_v4 = vld [vmem:[%s647_s1 + $0x50] sm:$0xff]  }
   0x2   :  { %v437_v1 = vld [vmem:[%s647_s1] sm:$0xff]   ;;  %380 = vmatprep.subr.bf16.mxu0 %v436_v0  ;;  %420 = vmatprep.subr.bf16.mxu1 %v436_v0  ;;  %v439_v3 = vld [vmem:[%s647_s1 + $0x8] sm:$0xff]   ;;  %v441_v5 = vld [vmem:[%s647_s1 + $0x10] sm:$0xff]  }
   0x3   :  { %381 = vmatpush3.bf16.msra.mxu0 %v437_v1  ;;  %428 = vmatpush3.bf16.msra.mxu1 %v437_v1  ;;  %v442_v6 = vld [vmem:[%s647_s1 + $0x58] sm:$0xff]   ;;  %v444_v8 = vld [vmem:[%s647_s1 + $0x60] sm:$0xff]   ;;  %v446_v10 = vld [vmem:[%s647_s1 + $0x68] sm:$0xff]  }
   0x4   :  { %382 = vmatprep.subr.bf16.mxu0 %v438_v2  ;;  %421 = vmatprep.subr.bf16.mxu1 %v438_v2  ;;  %v443_v7 = vld [vmem:[%s647_s1 + $0x18] sm:$0xff]   ;;  %v445_v9 = vld [vmem:[%s647_s1 + $0x20] sm:$0xff]   ;;  %v447_v13 = vld [vmem:[%s647_s1 + $0x28] sm:$0xff]  }
   0x5   :  { %v454_v11 = vld [vmem:[%s648_s0 + $0x4] ss:$8 sps:$4 sm:$0xff]   ;;  %v448_v14 = vld [vmem:[%s647_s1 + $0x70] sm:$0xff]   ;;  %v450_v16 = vld [vmem:[%s647_s1 + $0x78] sm:$0xff]  }
   0x6   :  { %v457_v12 = vld [vmem:[%s648_s0 + $0x24] ss:$8 sps:$4 sm:$0xff]   ;;  %230 = vmatprep.mubr.bf16.mxu0 %v454_v11  ;;  %v449_v15 = vld [vmem:[%s647_s1 + $0x30] sm:$0xff]   ;;  %v451_v17 = vld [vmem:[%s647_s1 + $0x38] sm:$0xff]  }
   0x7   :  { %383 = vmatpush3.bf16.msra.mxu0 %v439_v3  ;;  %429 = vmatpush3.bf16.msra.mxu1 %v439_v3  ;;  %v452_v18 = vld [vmem:[%s648_s0] ss:$8 sps:$4 sm:$0xff]   ;;  %v458_v20 = vld [vmem:[%s648_s0 + $0x14] ss:$8 sps:$4 sm:$0xff]   ;;  %v460_v22 = vld [vmem:[%s648_s0 + $0x10] ss:$8 sps:$4 sm:$0xff]  }
   0x8   :  { %384 = vmatprep.subr.bf16.mxu0 %v440_v4  ;;  %422 = vmatprep.subr.bf16.mxu1 %v440_v4  ;;  %v455_v19 = vld [vmem:[%s648_s0 + $0x20] ss:$8 sps:$4 sm:$0xff]   ;;  %v461_v21 = vld [vmem:[%s648_s0 + $0x34] ss:$8 sps:$4 sm:$0xff]   ;;  %v463_v23 = vld [vmem:[%s648_s0 + $0x30] ss:$8 sps:$4 sm:$0xff]  }
   0x9   :  { %246 = vmatprep.mubr.bf16.mxu1 %v457_v12  ;;  %v355_v28 = vld [vmem:[%s649_s2] ss:$0 sm:$0xff] }
   0xb   :  { %385 = vmatpush3.bf16.msra.mxu0 %v441_v5  ;;  %430 = vmatpush3.bf16.msra.mxu1 %v441_v5 }
   0xc   :  { %386 = vmatprep.subr.bf16.mxu0 %v442_v6  ;;  %423 = vmatprep.subr.bf16.mxu1 %v442_v6 }
   0xf   :  { %387 = vmatpush3.bf16.msra.mxu0 %v443_v7  ;;  %431 = vmatpush3.bf16.msra.mxu1 %v443_v7 }
  0x10   :  { %388 = vmatprep.subr.bf16.mxu0 %v444_v8  ;;  %424 = vmatprep.subr.bf16.mxu1 %v444_v8 }
  0x13   :  { %389 = vmatpush3.bf16.msra.mxu0 %v445_v9  ;;  %432 = vmatpush3.bf16.msra.mxu1 %v445_v9 }
  0x14   :  { %390 = vmatprep.subr.bf16.mxu0 %v446_v10  ;;  %425 = vmatprep.subr.bf16.mxu1 %v446_v10 }
  0x17   :  { %391 = vmatpush3.bf16.msra.mxu0 %v447_v13  ;;  %433 = vmatpush3.bf16.msra.mxu1 %v447_v13 }
  0x18   :  { %392 = vmatprep.subr.bf16.mxu0 %v448_v14  ;;  %426 = vmatprep.subr.bf16.mxu1 %v448_v14 }
  0x1b   :  { %393 = vmatpush3.bf16.msra.mxu0 %v449_v15  ;;  %434 = vmatpush3.bf16.msra.mxu1 %v449_v15 }
  0x1c   :  { %394 = vmatprep.subr.bf16.mxu0 %v450_v16  ;;  %427 = vmatprep.subr.bf16.mxu1 %v450_v16 }
  0x1f   :  { %395 = vmatpush3.bf16.msra.mxu0 %v451_v17  ;;  %435 = vmatpush3.bf16.msra.mxu1 %v451_v17 }
  0x22   :  { %231 = vmatmul.mubr.bf16.vlgmr.msra.gmra.mrb[0].mxu0 %v452_v18  ;;  %247 = vmatmul.mubr.bf16.vlgmr.msra.gmra.mrb[0].mxu1 %v455_v19 }
  0x23   :  { %238 = vmatprep.mubr.bf16.mxu0 %v458_v20  ;;  %254 = vmatprep.mubr.bf16.mxu1 %v461_v21 }
  0x2a   :  { %239 = vmatmul.mubr.bf16.gmra.mrb[4].mxu0 %v460_v22  ;;  %255 = vmatmul.mubr.bf16.gmra.mrb[4].mxu1 %v463_v23 }
  0xf5   :  { %v396_v24 = vpop.f32.mrb[0].mxu0  ;;  %v408_v25 = vpop.f32.mrb[0].mxu1 }
  0xf6   :  { %v397_v26 = vpop.f32.mrb[1].mxu0  ;;  %v409_v27 = vpop.f32.mrb[1].mxu1 }
  0xf7   :  { %v398_v29 = vadd.f32 %v397_v26, %v396_v24  ;;  %v410_v30 = vadd.f32 %v409_v27, %v408_v25  ;;  %v399_v31 = vpop.f32.mrb[2].mxu0  ;;  %v411_v32 = vpop.f32.mrb[2].mxu1 }
  0xf8   :  { %v400_v33 = vpop.f32.mrb[3].mxu0  ;;  %v412_v34 = vpop.f32.mrb[3].mxu1 }
  0xf9   :  { %v401_v35 = vadd.f32 %v400_v33, %v399_v31  ;;  %v413_v36 = vadd.f32 %v412_v34, %v411_v32  ;;  %v233_v37 = vadd.f32 %v398_v29, %v355_v28  ;;  %v249_v39 = vadd.f32 %v410_v30, %v355_v28 }
  0xfb   :  { %263 = vmax.xlane.f32.xlu0 %v233_v37  ;;  %v252_v38 = vadd.f32 %v413_v36, %v355_v28  ;;  %v236_v52 = vadd.f32 %v401_v35, %v355_v28 }
  0xfd   :  { %273 = vmax.xlane.f32.xlu1 %v252_v38  ;;  %v402_v40 = vpop.f32.mrb[4].mxu0  ;;  %v414_v41 = vpop.f32.mrb[4].mxu1 }
  0xfe   :  { %v403_v42 = vpop.f32.mrb[5].mxu0  ;;  %v415_v43 = vpop.f32.mrb[5].mxu1 }
  0xff   :  { %v404_v44 = vadd.f32 %v403_v42, %v402_v40  ;;  %271 = vmax.xlane.f32.xlu0 %v249_v39  ;;  %v405_v45 = vpop.f32.mrb[6].mxu0  ;;  %v416_v46 = vadd.f32 %v415_v43, %v414_v41  ;;  %v417_v47 = vpop.f32.mrb[6].mxu1 }
 0x100   :  { %v406_v48 = vpop.f32.mrb[7].mxu0  ;;  %v418_v49 = vpop.f32.mrb[7].mxu1 }
 0x101   :  { %v407_v50 = vadd.f32 %v406_v48, %v405_v45  ;;  %v241_v51 = vadd.f32 %v404_v44, %v355_v28  ;;  %v419_v53 = vadd.f32 %v418_v49, %v417_v47  ;;  %v257_v55 = vadd.f32 %v416_v46, %v355_v28 }
 0x103   :  { %267 = vmax.xlane.f32.xlu1 %v241_v51  ;;  %265 = vmax.xlane.f32.xlu0 %v236_v52  ;;  %v244_v54 = vadd.f32 %v407_v50, %v355_v28  ;;  %v260_v56 = vadd.f32 %v419_v53, %v355_v28 }
 0x107   :  { %269 = vmax.xlane.f32.xlu1 %v244_v54  ;;  %275 = vmax.xlane.f32.xlu0 %v257_v55 }
 0x10b   :  { %277 = vmax.xlane.f32.xlu1 %v260_v56 }
 0x188   :  { %v264_v57 = vpop.xlane.xlu0 %263 }
 0x189   :  { %v591_v58 = vsub.f32 %v233_v37, %v264_v57 }
 0x18a   :  { %v274_v60 = vpop.xlane.xlu1 %273 }
 0x18b   :  { %v287_v59 = vmul.f32 1.442695, %v591_v58  ;;  %v597_v2 = vsub.f32 %v252_v38, %v274_v60 }
 0x18c   :  { %v272_v61 = vpop.xlane.xlu0 %271 }
 0x18d   :  { %464 = vpow2.f32 %v287_v59  ;;  %v594_v62 = vsub.f32 %v249_v39, %v272_v61  ;;  %v297_v9 = vmul.f32 1.442695, %v597_v2 }
 0x18f   :  { %v295_v63 = vmul.f32 1.442695, %v594_v62 }
 0x190   :  { %v268_v0 = vpop.xlane.xlu1 %267  ;;  %v266_v1 = vpop.xlane.xlu0 %265 }
 0x191   :  { %466 = vpow2.f32 %v295_v63  ;;  %v599_v3 = vsub.f32 %v241_v51, %v268_v0  ;;  %v601_v4 = vsub.f32 %v236_v52, %v266_v1 }
 0x193   :  { %v291_v5 = vmul.f32 1.442695, %v599_v3  ;;  %v289_v6 = vmul.f32 1.442695, %v601_v4 }
 0x194   :  { %v270_v7 = vpop.xlane.xlu1 %269  ;;  %v276_v8 = vpop.xlane.xlu0 %275 }
 0x195   :  { %468 = vpow2.f32 %v291_v5  ;;  %v606_v10 = vsub.f32 %v257_v55, %v276_v8  ;;  %v608_v11 = vsub.f32 %v244_v54, %v270_v7 }
 0x196   :  { %470 = vpow2.f32 %v289_v6 }
 0x197   :  { %v465_v12 = vpop.eup %464  ;;  %v299_v13 = vmul.f32 1.442695, %v606_v10  ;;  %472 = vpow2.f32 %v297_v9  ;;  %v293_v15 = vmul.f32 1.442695, %v608_v11 }
 0x198   :  { %v278_v14 = vpop.xlane.xlu1 %277  ;;  %303 = vadd.xlane.f32.xlu0 %v465_v12 }
 0x199   :  { %474 = vpow2.f32 %v299_v13  ;;  %v612_v16 = vsub.f32 %v260_v56, %v278_v14 }
 0x19a   :  { %476 = vpow2.f32 %v293_v15 }
 0x19b   :  { %v467_v17 = vpop.eup %466  ;;  %v301_v18 = vmul.f32 1.442695, %v612_v16 }
 0x19c   :  { %311 = vadd.xlane.f32.xlu0 %v467_v17 }
 0x19d   :  { %478 = vpow2.f32 %v301_v18 }
 0x19f   :  { %v469_v19 = vpop.eup %468 }
 0x1a0   :  { %v471_v20 = vpop.eup %470  ;;  %307 = vadd.xlane.f32.xlu0 %v469_v19 }
 0x1a1   :  { %305 = vadd.xlane.f32.xlu1 %v471_v20  ;;  %v473_v21 = vpop.eup %472 }
 0x1a3   :  { %v475_v22 = vpop.eup %474 }
 0x1a4   :  { %315 = vadd.xlane.f32.xlu0 %v475_v22  ;;  %v477_v23 = vpop.eup %476 }
 0x1a5   :  { %313 = vadd.xlane.f32.xlu1 %v473_v21 }
 0x1a7   :  { %v479_v24 = vpop.eup %478 }
 0x1a9   :  { %309 = vadd.xlane.f32.xlu1 %v477_v23 }
 0x1ad   :  { %317 = vadd.xlane.f32.xlu1 %v479_v24 }
 0x225   :  { %v304_v25 = vpop.xlane.xlu0 %303 }
 0x226   :  { %480 = vlog2.f32 %v304_v25 }
 0x229   :  { %v312_v26 = vpop.xlane.xlu0 %311 }
 0x22a   :  { %482 = vlog2.f32 %v312_v26 }
 0x22d   :  { %v308_v27 = vpop.xlane.xlu0 %307 }
 0x22e   :  { %v306_v28 = vpop.xlane.xlu1 %305  ;;  %484 = vlog2.f32 %v308_v27 }
 0x22f   :  { %486 = vlog2.f32 %v306_v28 }
 0x230   :  { %v481_v29 = vpop.eup %480 }
 0x231   :  { %v320_v30 = vmul.f32 0.6931472, %v481_v29  ;;  %v316_v32 = vpop.xlane.xlu0 %315 }
 0x232   :  { %v314_v31 = vpop.xlane.xlu1 %313 }
 0x233   :  { %v335_v33 = vsub.f32 %v591_v58, %v320_v30  ;;  %488 = vlog2.f32 %v314_v31 }
 0x234   :  { %v483_v34 = vpop.eup %482  ;;  %490 = vlog2.f32 %v316_v32 }
 0x235   :  { %343 = vst [vmem:[%s650_s3] sm:$0xff] %v335_v33  ;;  %v328_v35 = vmul.f32 0.6931472, %v483_v34 }
 0x236   :  { %v310_v36 = vpop.xlane.xlu1 %309 }
 0x237   :  { %v339_v37 = vsub.f32 %v594_v62, %v328_v35  ;;  %492 = vlog2.f32 %v310_v36 }
 0x238   :  { %v485_v38 = vpop.eup %484 }
 0x239   :  { %v487_v39 = vpop.eup %486  ;;  %347 = vst [vmem:[%s650_s3 + $0x20] sm:$0xff] %v339_v37  ;;  %v324_v40 = vmul.f32 0.6931472, %v485_v38 }
 0x23a   :  { %v322_v41 = vmul.f32 0.6931472, %v487_v39  ;;  %v318_v42 = vpop.xlane.xlu1 %317 }
 0x23b   :  { %v337_v43 = vsub.f32 %v599_v3, %v324_v40  ;;  %494 = vlog2.f32 %v318_v42 }
 0x23c   :  { %v336_v44 = vsub.f32 %v601_v4, %v322_v41 }
 0x23d   :  { %v489_v45 = vpop.eup %488  ;;  %345 = vst [vmem:[%s650_s3 + $0x10] sm:$0xff] %v337_v43 }
 0x23e   :  { %v491_v46 = vpop.eup %490  ;;  %344 = vst [vmem:[%s650_s3 + $0x8] sm:$0xff] %v336_v44  ;;  %v330_v47 = vmul.f32 0.6931472, %v489_v45 }
 0x23f   :  { %v332_v48 = vmul.f32 0.6931472, %v491_v46 }
 0x240   :  { %v340_v49 = vsub.f32 %v597_v2, %v330_v47 }
 0x241   :  { %v493_v50 = vpop.eup %492  ;;  %v341_v51 = vsub.f32 %v606_v10, %v332_v48 }
 0x242   :  { %348 = vst [vmem:[%s650_s3 + $0x28] sm:$0xff] %v340_v49  ;;  %v326_v52 = vmul.f32 0.6931472, %v493_v50 }
 0x243   :  { %349 = vst [vmem:[%s650_s3 + $0x30] sm:$0xff] %v341_v51 }
 0x244   :  { %v338_v53 = vsub.f32 %v608_v11, %v326_v52 }
 0x245   :  { %v495_v54 = vpop.eup %494 }
 0x246   :  { %346 = vst [vmem:[%s650_s3 + $0x18] sm:$0xff] %v338_v53  ;;  %v334_v55 = vmul.f32 0.6931472, %v495_v54 }
 0x248   :  { %v342_v56 = vsub.f32 %v612_v16, %v334_v55 }
 0x24a   :  { %350 = vst [vmem:[%s650_s3 + $0x38] sm:$0xff] %v342_v56 }

// kernel: task_learner_forward.5
= control target key start
LH: loop header
LB: loop body
LE: loop exit
PB: predicated region body
PF: predicated region fallthrough
CT: control target
= control target key end

     0   :  { %8 = vsyncpa [#allocation3], 0  ;;  %s1495_s0 = inlined_call_operand.vmem [shape: bf16[64,128], index: 0, kind: input, shape index: {}]   ;;  %s1496_s1 = inlined_call_operand.hbm [shape: bf16[128,1024], index: 1, kind: input, shape index: {}]   ;;  %s1497_s2 = inlined_call_operand.hbm [shape: f32[1,1024], index: 2, kind: input, shape index: {}]   ;;  %s1498_s3 = inlined_call_operand.vmem [shape: bf16[64,1024], index: 3, kind: output, shape index: {}]  }
   0x1   :  { %9 = vsyncpa [#allocation5], 0  ;;  %s1210_s12 = smov [#allocation2]   ;;  %s1162_s16 = scalar_lea.hbm %s1496_s1, 8192 }
   0x2   :  { %s17_s13 = sshll.u32 %s1210_s12, 4  ;;  %p1163_p0 = scmp.ne.s32.totalorder %s1496_s1, %s1162_s16  ;;  %s18_s13 = int_to_ptr.vmem [resolvable:$true] %s17_s13 }
   0x3   :  { %p1166_p1 = scmp.lt.u32.totalorder %s1162_s16, %s1496_s1 }
   0x5   :  { %p1168_p2 = pnand %p1166_p1, %p1163_p0 }
   0x7   :  { %1171 = shalt.err (!%p1168_p2)
}
   0x8   :  { %s1172_s21 = scalar_lea.vmem %s18_s13, 8192  ;;  %p1177_p4 = scmp.lt.s32.totalorder %s18_s13, %s18_s13 }
   0x9   :  { %p1173_p3 = scmp.ne.s32.totalorder %s18_s13, %s1172_s21  ;;  %p1178_p5 = scmp.lt.s32.totalorder %s1172_s21, %s1172_s21 }
   0xb   :  { %p1179_p6 = por %p1178_p5, %p1177_p4 }
   0xd   :  { %p1180_p7 = pnand %p1179_p6, %p1173_p3 }
   0xf   :  { %1183 = shalt.err (!%p1180_p7)
}
  0x10   :  { %s1211_s22 = smov 512   ;;  %s1212_s23 = smov 32  }
  0x11   :  { %23 = dma.hbm_to_vmem [thread:$0]  %s1496_s1, 8192, %s18_s13, [#allocation3], %s1211_s22, %s1211_s22, %s1212_s23  }
  0x12   :  { %s1213_s26 = smov [#allocation4]   ;;  %s1184_s30 = scalar_lea.hbm %s1497_s2, 128 }
  0x13   :  { %s30_s27 = sshll.u32 %s1213_s26, 4  ;;  %p1185_p8 = scmp.ne.s32.totalorder %s1497_s2, %s1184_s30  ;;  %s31_s27 = int_to_ptr.vmem [resolvable:$true] %s30_s27 }
  0x14   :  { %p1188_p9 = scmp.lt.u32.totalorder %s1184_s30, %s1497_s2 }
  0x16   :  { %p1190_p10 = pnand %p1188_p9, %p1185_p8 }
  0x18   :  { %1193 = shalt.err (!%p1190_p10)
}
  0x19   :  { %s1194_s8 = scalar_lea.vmem %s31_s27, 128  ;;  %p1199_p12 = scmp.lt.s32.totalorder %s31_s27, %s31_s27 }
  0x1a   :  { %p1195_p11 = scmp.ne.s32.totalorder %s31_s27, %s1194_s8  ;;  %p1200_p13 = scmp.lt.s32.totalorder %s1194_s8, %s1194_s8 }
  0x1c   :  { %p1201_p0 = por %p1200_p13, %p1199_p12 }
  0x1e   :  { %p1202_p1 = pnand %p1201_p0, %p1195_p11 }
  0x20   :  { %1205 = shalt.err (!%p1202_p1)
}
  0x21   :  { %33 = dma.hbm_to_vmem [thread:$0]  %s1497_s2, 128, %s31_s27, [#allocation5]  }
  0x22   :  { %1206 = dma.done.wait [#allocation3], 8192  }
  0x23   :  { %1207 = vsyncadd [#allocation3], 4294959104 }
  0x24   :  { %1208 = dma.done.wait [#allocation5], 128  }
  0x25   :  { %1209 = vsyncadd [#allocation5], 4294967168  ;;  %v1214_v0 = vmov 0   ;;  %v49_v1 = vld [vmem:[#allocation2] sm:$0xff]  ;;  %v50_v3 = vld [vmem:[#allocation2 + $0x8] sm:$0xff] }
  0x26   :  { %531 = vmatprep.mubr.bf16.mxu0 %v1214_v0  ;;  %604 = vmatprep.mubr.bf16.mxu1 %v1214_v0  ;;  %v53_v2 = vld [vmem:[#allocation2 + $0x20] sm:$0xff]  ;;  %v54_v5 = vld [vmem:[#allocation2 + $0x28] sm:$0xff]  ;;  %v51_v63 = vld [vmem:[#allocation2 + $0x10] sm:$0xff] }
  0x27   :  { %v1026_v4 = vcombine.high %v49_v1, %v53_v2  ;;  %v1025_v6 = vcombine.low %v49_v1, %v53_v2  ;;  %v57_v7 = vld [vmem:[#allocation2 + $0x40] sm:$0xff]  ;;  %v1028_v9 = vcombine.high %v50_v3, %v54_v5  ;;  %v1027_v10 = vcombine.low %v50_v3, %v54_v5  ;;  %v58_v12 = vld [vmem:[#allocation2 + $0x48] sm:$0xff]  ;;  %v55_v1 = vld [vmem:[#allocation2 + $0x30] sm:$0xff] }
  0x28   :  { %v61_v8 = vld [vmem:[#allocation2 + $0x60] sm:$0xff]  ;;  %v62_v13 = vld [vmem:[#allocation2 + $0x68] sm:$0xff]  ;;  %v52_v2 = vld [vmem:[#allocation2 + $0x18] sm:$0xff] }
  0x29   :  { %v1034_v11 = vcombine.high %v57_v7, %v61_v8  ;;  %v65_v14 = vld [vmem:[#allocation2 + $0x80] sm:$0xff]  ;;  %499 = vmatprep.subr.bf16.mxu0 %v1026_v4  ;;  %v1036_v15 = vcombine.high %v58_v12, %v62_v13  ;;  %v66_v17 = vld [vmem:[#allocation2 + $0x88] sm:$0xff]  ;;  %572 = vmatprep.subr.bf16.mxu1 %v1028_v9  ;;  %v1033_v19 = vcombine.low %v57_v7, %v61_v8  ;;  %v56_v3 = vld [vmem:[#allocation2 + $0x38] sm:$0xff] }
  0x2a   :  { %v69_v16 = vld [vmem:[#allocation2 + $0xa0] sm:$0xff]  ;;  %v70_v18 = vld [vmem:[#allocation2 + $0xa8] sm:$0xff]  ;;  %500 = vmatpush1.bf16.msra.mxu0 %v1025_v6  ;;  %573 = vmatpush1.bf16.msra.mxu1 %v1027_v10  ;;  %v1035_v20 = vcombine.low %v58_v12, %v62_v13  ;;  %v1030_v6 = vcombine.high %v51_v63, %v55_v1  ;;  %v1032_v7 = vcombine.high %v52_v2, %v56_v3  ;;  %v59_v8 = vld [vmem:[#allocation2 + $0x50] sm:$0xff] }
  0x2b   :  { %501 = vmatprep.subr.bf16.mxu0 %v1034_v11  ;;  %v1042_v21 = vcombine.high %v65_v14, %v69_v16  ;;  %574 = vmatprep.subr.bf16.mxu1 %v1036_v15  ;;  %v1044_v22 = vcombine.high %v66_v17, %v70_v18  ;;  %v73_v23 = vld [vmem:[#allocation2 + $0xc0] sm:$0xff]  ;;  %v74_v25 = vld [vmem:[#allocation2 + $0xc8] sm:$0xff]  ;;  %v1041_v27 = vcombine.low %v65_v14, %v69_v16  ;;  %v63_v9 = vld [vmem:[#allocation2 + $0x70] sm:$0xff] }
  0x2c   :  { %v77_v24 = vld [vmem:[#allocation2 + $0xe0] sm:$0xff]  ;;  %v78_v26 = vld [vmem:[#allocation2 + $0xe8] sm:$0xff]  ;;  %v1043_v28 = vcombine.low %v66_v17, %v70_v18  ;;  %v60_v11 = vld [vmem:[#allocation2 + $0x58] sm:$0xff]  ;;  %v1029_v13 = vcombine.low %v51_v63, %v55_v1  ;;  %v1031_v14 = vcombine.low %v52_v2, %v56_v3  ;;  %v1038_v15 = vcombine.high %v59_v8, %v63_v9 }
  0x2d   :  { %v1050_v29 = vcombine.high %v73_v23, %v77_v24  ;;  %v1052_v30 = vcombine.high %v74_v25, %v78_v26  ;;  %v81_v31 = vld [vmem:[#allocation2 + $0x100] sm:$0xff]  ;;  %v82_v33 = vld [vmem:[#allocation2 + $0x108] sm:$0xff]  ;;  %v1049_v35 = vcombine.low %v73_v23, %v77_v24  ;;  %v1051_v36 = vcombine.low %v74_v25, %v78_v26  ;;  %v64_v12 = vld [vmem:[#allocation2 + $0x78] sm:$0xff] }
  0x2e   :  { %502 = vmatpush1.bf16.msra.mxu0 %v1033_v19  ;;  %575 = vmatpush1.bf16.msra.mxu1 %v1035_v20  ;;  %v85_v32 = vld [vmem:[#allocation2 + $0x120] sm:$0xff]  ;;  %v86_v34 = vld [vmem:[#allocation2 + $0x128] sm:$0xff]  ;;  %v1040_v16 = vcombine.high %v60_v11, %v64_v12  ;;  %v67_v17 = vld [vmem:[#allocation2 + $0x90] sm:$0xff] }
  0x2f   :  { %503 = vmatprep.subr.bf16.mxu0 %v1042_v21  ;;  %576 = vmatprep.subr.bf16.mxu1 %v1044_v22  ;;  %v1058_v37 = vcombine.high %v81_v31, %v85_v32  ;;  %v89_v38 = vld [vmem:[#allocation2 + $0x140] sm:$0xff]  ;;  %v1060_v39 = vcombine.high %v82_v33, %v86_v34  ;;  %v90_v41 = vld [vmem:[#allocation2 + $0x148] sm:$0xff]  ;;  %v1057_v43 = vcombine.low %v81_v31, %v85_v32  ;;  %v71_v18 = vld [vmem:[#allocation2 + $0xb0] sm:$0xff] }
  0x30   :  { %v93_v40 = vld [vmem:[#allocation2 + $0x160] sm:$0xff]  ;;  %v94_v42 = vld [vmem:[#allocation2 + $0x168] sm:$0xff]  ;;  %v1059_v44 = vcombine.low %v82_v33, %v86_v34  ;;  %v68_v19 = vld [vmem:[#allocation2 + $0x98] sm:$0xff]  ;;  %v1037_v21 = vcombine.low %v59_v8, %v63_v9  ;;  %v1039_v22 = vcombine.low %v60_v11, %v64_v12  ;;  %v1046_v23 = vcombine.high %v67_v17, %v71_v18 }
  0x31   :  { %v1066_v45 = vcombine.high %v89_v38, %v93_v40  ;;  %v97_v46 = vld [vmem:[#allocation2 + $0x180] sm:$0xff]  ;;  %v1068_v47 = vcombine.high %v90_v41, %v94_v42  ;;  %v98_v49 = vld [vmem:[#allocation2 + $0x188] sm:$0xff]  ;;  %v1065_v51 = vcombine.low %v89_v38, %v93_v40  ;;  %v1067_v52 = vcombine.low %v90_v41, %v94_v42  ;;  %v72_v20 = vld [vmem:[#allocation2 + $0xb8] sm:$0xff] }
  0x32   :  { %504 = vmatpush1.bf16.msra.mxu0 %v1041_v27  ;;  %577 = vmatpush1.bf16.msra.mxu1 %v1043_v28  ;;  %v101_v48 = vld [vmem:[#allocation2 + $0x1a0] sm:$0xff]  ;;  %v102_v50 = vld [vmem:[#allocation2 + $0x1a8] sm:$0xff]  ;;  %v1048_v24 = vcombine.high %v68_v19, %v72_v20  ;;  %v75_v25 = vld [vmem:[#allocation2 + $0xd0] sm:$0xff]  ;;  %v1047_v31 = vcombine.low %v68_v19, %v72_v20 }
  0x33   :  { %505 = vmatprep.subr.bf16.mxu0 %v1050_v29  ;;  %578 = vmatprep.subr.bf16.mxu1 %v1052_v30  ;;  %v1074_v53 = vcombine.high %v97_v46, %v101_v48  ;;  %v1076_v54 = vcombine.high %v98_v49, %v102_v50  ;;  %v105_v55 = vld [vmem:[#allocation2 + $0x1c0] sm:$0xff]  ;;  %v106_v57 = vld [vmem:[#allocation2 + $0x1c8] sm:$0xff]  ;;  %v1073_v59 = vcombine.low %v97_v46, %v101_v48  ;;  %v79_v26 = vld [vmem:[#allocation2 + $0xf0] sm:$0xff] }
  0x34   :  { %v109_v56 = vld [vmem:[#allocation2 + $0x1e0] sm:$0xff]  ;;  %v110_v58 = vld [vmem:[#allocation2 + $0x1e8] sm:$0xff]  ;;  %v1075_v60 = vcombine.low %v98_v49, %v102_v50  ;;  %v76_v28 = vld [vmem:[#allocation2 + $0xd8] sm:$0xff]  ;;  %v1045_v30 = vcombine.low %v67_v17, %v71_v18  ;;  %v1054_v32 = vcombine.high %v75_v25, %v79_v26  ;;  %v1053_v38 = vcombine.low %v75_v25, %v79_v26 }
  0x35   :  { %v1082_v61 = vcombine.high %v105_v55, %v109_v56  ;;  %v1084_v62 = vcombine.high %v106_v57, %v110_v58  ;;  %v1081_v4 = vcombine.low %v105_v55, %v109_v56  ;;  %v1083_v5 = vcombine.low %v106_v57, %v110_v58  ;;  %v1264_v10 = vld [vmem:[%s1495_s0] sm:$0xff]   ;;  %v1273_v27 = vld [vmem:[%s1495_s0 + $0x8] sm:$0xff]   ;;  %v80_v29 = vld [vmem:[#allocation2 + $0xf8] sm:$0xff] }
  0x36   :  { %506 = vmatpush1.bf16.msra.mxu0 %v1049_v35  ;;  %579 = vmatpush1.bf16.msra.mxu1 %v1051_v36  ;;  %v1056_v33 = vcombine.high %v76_v28, %v80_v29  ;;  %v83_v34 = vld [vmem:[#allocation2 + $0x110] sm:$0xff]  ;;  %v84_v36 = vld [vmem:[#allocation2 + $0x118] sm:$0xff] }
  0x37   :  { %507 = vmatprep.subr.bf16.mxu0 %v1058_v37  ;;  %580 = vmatprep.subr.bf16.mxu1 %v1060_v39  ;;  %v87_v35 = vld [vmem:[#allocation2 + $0x130] sm:$0xff]  ;;  %v88_v37 = vld [vmem:[#allocation2 + $0x138] sm:$0xff]  ;;  %v1055_v39 = vcombine.low %v76_v28, %v80_v29 }
  0x38   :  { %v1062_v40 = vcombine.high %v83_v34, %v87_v35  ;;  %v1064_v41 = vcombine.high %v84_v36, %v88_v37  ;;  %v91_v42 = vld [vmem:[#allocation2 + $0x150] sm:$0xff]  ;;  %v96_v46 = vld [vmem:[#allocation2 + $0x178] sm:$0xff]  ;;  %v1063_v48 = vcombine.low %v84_v36, %v88_v37 }
  0x39   :  { %v112_v63 = vld [vmem:[#allocation2 + $0x1f8] sm:$0xff] }
  0x3a   :  { %508 = vmatpush1.bf16.msra.mxu0 %v1057_v43  ;;  %581 = vmatpush1.bf16.msra.mxu1 %v1059_v44  ;;  %v95_v43 = vld [vmem:[#allocation2 + $0x170] sm:$0xff] }
  0x3b   :  { %509 = vmatprep.subr.bf16.mxu0 %v1066_v45  ;;  %582 = vmatprep.subr.bf16.mxu1 %v1068_v47  ;;  %v1160_v44 = vld [vmem:[%s1495_s0 + $0x10] sm:$0xff]   ;;  %v92_v45 = vld [vmem:[#allocation2 + $0x158] sm:$0xff]  ;;  %v1061_v47 = vcombine.low %v83_v34, %v87_v35  ;;  %v1070_v49 = vcombine.high %v91_v42, %v95_v43  ;;  %v1069_v55 = vcombine.low %v91_v42, %v95_v43 }
  0x3c   :  { %v1072_v50 = vcombine.high %v92_v45, %v96_v46  ;;  %v1071_v56 = vcombine.low %v92_v45, %v96_v46 }
  0x3e   :  { %510 = vmatpush1.bf16.msra.mxu0 %v1065_v51  ;;  %583 = vmatpush1.bf16.msra.mxu1 %v1067_v52  ;;  %v99_v51 = vld [vmem:[#allocation2 + $0x190] sm:$0xff] }
  0x3f   :  { %511 = vmatprep.subr.bf16.mxu0 %v1074_v53  ;;  %584 = vmatprep.subr.bf16.mxu1 %v1076_v54  ;;  %v103_v52 = vld [vmem:[#allocation2 + $0x1b0] sm:$0xff]  ;;  %v100_v53 = vld [vmem:[#allocation2 + $0x198] sm:$0xff] }
  0x40   :  { %v104_v54 = vld [vmem:[#allocation2 + $0x1b8] sm:$0xff]  ;;  %v1078_v57 = vcombine.high %v99_v51, %v103_v52  ;;  %v1077_v1 = vcombine.low %v99_v51, %v103_v52 }
  0x41   :  { %v1080_v58 = vcombine.high %v100_v53, %v104_v54  ;;  %v1079_v2 = vcombine.low %v100_v53, %v104_v54 }
  0x42   :  { %512 = vmatpush1.bf16.msra.mxu0 %v1073_v59  ;;  %585 = vmatpush1.bf16.msra.mxu1 %v1075_v60  ;;  %v107_v59 = vld [vmem:[#allocation2 + $0x1d0] sm:$0xff] }
  0x43   :  { %513 = vmatprep.subr.bf16.mxu0 %v1082_v61  ;;  %586 = vmatprep.subr.bf16.mxu1 %v1084_v62  ;;  %v111_v60 = vld [vmem:[#allocation2 + $0x1f0] sm:$0xff]  ;;  %v1161_v61 = vld [vmem:[%s1495_s0 + $0x18] sm:$0xff]  }
  0x44   :  { %v108_v62 = vld [vmem:[#allocation2 + $0x1d8] sm:$0xff]  ;;  %v1086_v3 = vcombine.high %v107_v59, %v111_v60 }
  0x46   :  { %514 = vmatpush1.bf16.msra.mxu0 %v1081_v4  ;;  %587 = vmatpush1.bf16.msra.mxu1 %v1083_v5  ;;  %v1088_v4 = vcombine.high %v108_v62, %v112_v63  ;;  %v1085_v5 = vcombine.low %v107_v59, %v111_v60 }
  0x47   :  { %645 = vmatprep.subr.bf16.mxu0 %v1030_v6  ;;  %718 = vmatprep.subr.bf16.mxu1 %v1032_v7  ;;  %v1087_v6 = vcombine.low %v108_v62, %v112_v63  ;;  %v115_v7 = vlaneseq }
  0x49   :  { %532 = vmatmul.mubr.bf16.vlgmr.msra.gmra.mrb[0].mxu0 %v1264_v10  ;;  %605 = vmatmul.mubr.bf16.vlgmr.msra.gmra.mrb[0].mxu1 %v1264_v10  ;;  %v1299_v8 = vshrl.u32 %v115_v7, 7 }
  0x4a   :  { %646 = vmatpush1.bf16.msra.mxu0 %v1029_v13  ;;  %719 = vmatpush1.bf16.msra.mxu1 %v1031_v14 }
  0x4b   :  { %647 = vmatprep.subr.bf16.mxu0 %v1038_v15  ;;  %720 = vmatprep.subr.bf16.mxu1 %v1040_v16  ;;  %v117_v9 = vsub.s32 0, %v1299_v8  ;;  %v125_v11 = vsub.s32 2, %v1299_v8  ;;  %v121_v12 = vsub.s32 1, %v1299_v8  ;;  %v129_v13 = vsub.s32 3, %v1299_v8 }
  0x4c   :  { %541 = vmatprep.mubr.bf16.mxu0 %v1214_v0  ;;  %614 = vmatprep.mubr.bf16.mxu1 %v1214_v0 }
  0x4e   :  { %648 = vmatpush1.bf16.msra.mxu0 %v1037_v21  ;;  %721 = vmatpush1.bf16.msra.mxu1 %v1039_v22 }
  0x4f   :  { %649 = vmatprep.subr.bf16.mxu0 %v1046_v23  ;;  %722 = vmatprep.subr.bf16.mxu1 %v1048_v24 }
  0x51   :  { %542 = vmatmul.mubr.bf16.gmra.mrb[4].mxu0 %v1273_v27  ;;  %615 = vmatmul.mubr.bf16.gmra.mrb[4].mxu1 %v1273_v27 }
  0x52   :  { %650 = vmatpush1.bf16.msra.mxu0 %v1045_v30  ;;  %723 = vmatpush1.bf16.msra.mxu1 %v1047_v31 }
  0x53   :  { %651 = vmatprep.subr.bf16.mxu0 %v1054_v32  ;;  %724 = vmatprep.subr.bf16.mxu1 %v1056_v33 }
  0x54   :  { %551 = vmatprep.mubr.bf16.mxu0 %v1214_v0  ;;  %624 = vmatprep.mubr.bf16.mxu1 %v1214_v0 }
  0x56   :  { %652 = vmatpush1.bf16.msra.mxu0 %v1053_v38  ;;  %725 = vmatpush1.bf16.msra.mxu1 %v1055_v39 }
  0x57   :  { %653 = vmatprep.subr.bf16.mxu0 %v1062_v40  ;;  %726 = vmatprep.subr.bf16.mxu1 %v1064_v41 }
  0x59   :  { %552 = vmatmul.mubr.bf16.gmra.mrb[8].mxu0 %v1160_v44  ;;  %625 = vmatmul.mubr.bf16.gmra.mrb[8].mxu1 %v1160_v44 }
  0x5a   :  { %654 = vmatpush1.bf16.msra.mxu0 %v1061_v47  ;;  %727 = vmatpush1.bf16.msra.mxu1 %v1063_v48 }
  0x5b   :  { %655 = vmatprep.subr.bf16.mxu0 %v1070_v49  ;;  %728 = vmatprep.subr.bf16.mxu1 %v1072_v50 }
  0x5c   :  { %561 = vmatprep.mubr.bf16.mxu0 %v1214_v0  ;;  %634 = vmatprep.mubr.bf16.mxu1 %v1214_v0 }
  0x5e   :  { %656 = vmatpush1.bf16.msra.mxu0 %v1069_v55  ;;  %729 = vmatpush1.bf16.msra.mxu1 %v1071_v56 }
  0x5f   :  { %657 = vmatprep.subr.bf16.mxu0 %v1078_v57  ;;  %730 = vmatprep.subr.bf16.mxu1 %v1080_v58 }
  0x61   :  { %562 = vmatmul.mubr.bf16.gmra.mrb[12].mxu0 %v1161_v61  ;;  %635 = vmatmul.mubr.bf16.gmra.mrb[12].mxu1 %v1161_v61 }
  0x62   :  { %658 = vmatpush1.bf16.msra.mxu0 %v1077_v1  ;;  %731 = vmatpush1.bf16.msra.mxu1 %v1079_v2 }
  0x63   :  { %659 = vmatprep.subr.bf16.mxu0 %v1086_v3  ;;  %732 = vmatprep.subr.bf16.mxu1 %v1088_v4 }
  0x64   :  { %677 = vmatprep.mubr.bf16.mxu0 %v1214_v0  ;;  %750 = vmatprep.mubr.bf16.mxu1 %v1214_v0 }
  0x66   :  { %660 = vmatpush1.bf16.msra.mxu0 %v1085_v5  ;;  %733 = vmatpush1.bf16.msra.mxu1 %v1087_v6 }
  0x69   :  { %678 = vmatmul.mubr.bf16.vlgmr.msra.gmra.mrb[16].mxu0 %v1264_v10  ;;  %751 = vmatmul.mubr.bf16.vlgmr.msra.gmra.mrb[16].mxu1 %v1264_v10  ;;  %v1302_v10 = vld [vmem:[#allocation4] sm:$0xff] }
  0x6a   :  { %687 = vmatprep.mubr.bf16.mxu0 %v1214_v0  ;;  %760 = vmatprep.mubr.bf16.mxu1 %v1214_v0  ;;  %v1308_v14 = vrot.slane %v1302_v10, %v117_v9  ;;  %v1314_v15 = vrot.slane %v1302_v10, %v121_v12  ;;  %v1317_v16 = vrot.slane %v1302_v10, %v129_v13 }
  0x71   :  { %688 = vmatmul.mubr.bf16.gmra.mrb[20].mxu0 %v1273_v27  ;;  %761 = vmatmul.mubr.bf16.gmra.mrb[20].mxu1 %v1273_v27 }
  0x72   :  { %697 = vmatprep.mubr.bf16.mxu0 %v1214_v0  ;;  %770 = vmatprep.mubr.bf16.mxu1 %v1214_v0 }
  0x79   :  { %698 = vmatmul.mubr.bf16.gmra.mrb[24].mxu0 %v1160_v44  ;;  %771 = vmatmul.mubr.bf16.gmra.mrb[24].mxu1 %v1160_v44 }
  0x7a   :  { %707 = vmatprep.mubr.bf16.mxu0 %v1214_v0  ;;  %780 = vmatprep.mubr.bf16.mxu1 %v1214_v0  ;;  %v1311_v0 = vrot.slane %v1302_v10, %v125_v11 }
  0x81   :  { %708 = vmatmul.mubr.bf16.gmra.mrb[28].mxu0 %v1161_v61  ;;  %781 = vmatmul.mubr.bf16.gmra.mrb[28].mxu1 %v1161_v61 }
 0x11c   :  { %v533_v17 = vpop.f32.mrb[0].mxu0  ;;  %v606_v19 = vpop.f32.mrb[0].mxu1 }
 0x11d   :  { %v534_v18 = vadd.f32 %v533_v17, %v1308_v14  ;;  %v535_v20 = vpop.f32.mrb[1].mxu0  ;;  %v607_v21 = vadd.f32 %v606_v19, %v1311_v0  ;;  %v608_v23 = vpop.f32.mrb[1].mxu1 }
 0x11e   :  { %v536_v22 = vadd.f32 %v535_v20, %v1314_v15  ;;  %v537_v24 = vpop.f32.mrb[2].mxu0  ;;  %v609_v25 = vadd.f32 %v608_v23, %v1317_v16  ;;  %v610_v27 = vpop.f32.mrb[2].mxu1  ;;  %v133_v23 = vsub.s32 4, %v1299_v8 }
 0x11f   :  { %v538_v26 = vadd.f32 %v537_v24, %v1308_v14  ;;  %v539_v28 = vpop.f32.mrb[3].mxu0  ;;  %v611_v30 = vadd.f32 %v610_v27, %v1311_v0  ;;  %v612_v32 = vpop.f32.mrb[3].mxu1 }
 0x120   :  { %v1121_v29 = vpack.c.bf16 %v536_v22, %v534_v18  ;;  %v540_v31 = vadd.f32 %v539_v28, %v1314_v15  ;;  %v1122_v33 = vpack.c.bf16 %v609_v25, %v607_v21  ;;  %v613_v34 = vadd.f32 %v612_v32, %v1317_v16 }
 0x121   :  { %v141_v28 = vsub.s32 6, %v1299_v8 }
 0x122   :  { %983 = vst [vmem:[%s1498_s3] sm:$0xff] %v1121_v29  ;;  %v1125_v35 = vpack.c.bf16 %v540_v31, %v538_v26  ;;  %984 = vst [vmem:[%s1498_s3 + $0x8] sm:$0xff] %v1122_v33  ;;  %v1126_v36 = vpack.c.bf16 %v613_v34, %v611_v30  ;;  %v137_v29 = vsub.s32 5, %v1299_v8  ;;  %v145_v34 = vsub.s32 7, %v1299_v8 }
 0x124   :  { %987 = vst [vmem:[%s1498_s3 + $0x20] sm:$0xff] %v1125_v35  ;;  %v543_v37 = vpop.f32.mrb[4].mxu0  ;;  %988 = vst [vmem:[%s1498_s3 + $0x28] sm:$0xff] %v1126_v36  ;;  %v616_v39 = vpop.f32.mrb[4].mxu1  ;;  %v1401_v8 = vrot.slane %v1302_v10, %v137_v29 }
 0x125   :  { %v544_v38 = vadd.f32 %v543_v37, %v1308_v14  ;;  %v545_v40 = vpop.f32.mrb[5].mxu0  ;;  %v617_v41 = vadd.f32 %v616_v39, %v1311_v0  ;;  %v618_v43 = vpop.f32.mrb[5].mxu1 }
 0x126   :  { %v546_v42 = vadd.f32 %v545_v40, %v1314_v15  ;;  %v547_v44 = vpop.f32.mrb[6].mxu0  ;;  %v619_v45 = vadd.f32 %v618_v43, %v1317_v16  ;;  %v620_v47 = vpop.f32.mrb[6].mxu1 }
 0x127   :  { %v548_v46 = vadd.f32 %v547_v44, %v1308_v14  ;;  %v549_v48 = vpop.f32.mrb[7].mxu0  ;;  %v621_v50 = vadd.f32 %v620_v47, %v1311_v0  ;;  %v622_v52 = vpop.f32.mrb[7].mxu1 }
 0x128   :  { %v1129_v49 = vpack.c.bf16 %v546_v42, %v544_v38  ;;  %v550_v51 = vadd.f32 %v549_v48, %v1314_v15  ;;  %v1130_v53 = vpack.c.bf16 %v619_v45, %v617_v41  ;;  %v623_v54 = vadd.f32 %v622_v52, %v1317_v16 }
 0x129   :  { %v1392_v41 = vrot.slane %v1302_v10, %v133_v23  ;;  %v1398_v42 = vrot.slane %v1302_v10, %v141_v28 }
 0x12a   :  { %991 = vst [vmem:[%s1498_s3 + $0x40] sm:$0xff] %v1129_v49  ;;  %v1133_v55 = vpack.c.bf16 %v550_v51, %v548_v46  ;;  %992 = vst [vmem:[%s1498_s3 + $0x48] sm:$0xff] %v1130_v53  ;;  %v1134_v56 = vpack.c.bf16 %v623_v54, %v621_v50 }
 0x12c   :  { %995 = vst [vmem:[%s1498_s3 + $0x60] sm:$0xff] %v1133_v55  ;;  %v553_v57 = vpop.f32.mrb[8].mxu0  ;;  %996 = vst [vmem:[%s1498_s3 + $0x68] sm:$0xff] %v1134_v56  ;;  %v626_v59 = vpop.f32.mrb[8].mxu1 }
 0x12d   :  { %v554_v58 = vadd.f32 %v553_v57, %v1308_v14  ;;  %v555_v60 = vpop.f32.mrb[9].mxu0  ;;  %v627_v61 = vadd.f32 %v626_v59, %v1311_v0  ;;  %v628_v63 = vpop.f32.mrb[9].mxu1 }
 0x12e   :  { %v556_v62 = vadd.f32 %v555_v60, %v1314_v15  ;;  %v557_v1 = vpop.f32.mrb[10].mxu0  ;;  %v629_v2 = vadd.f32 %v628_v63, %v1317_v16  ;;  %v630_v4 = vpop.f32.mrb[10].mxu1 }
 0x12f   :  { %v558_v3 = vadd.f32 %v557_v1, %v1308_v14  ;;  %v559_v5 = vpop.f32.mrb[11].mxu0  ;;  %v631_v7 = vadd.f32 %v630_v4, %v1311_v0  ;;  %v632_v11 = vpop.f32.mrb[11].mxu1 }
 0x130   :  { %v1137_v6 = vpack.c.bf16 %v556_v62, %v554_v58  ;;  %v560_v9 = vadd.f32 %v559_v5, %v1314_v15  ;;  %v1138_v12 = vpack.c.bf16 %v629_v2, %v627_v61  ;;  %v633_v13 = vadd.f32 %v632_v11, %v1317_v16 }
 0x132   :  { %999 = vst [vmem:[%s1498_s3 + $0x80] sm:$0xff] %v1137_v6  ;;  %v1141_v17 = vpack.c.bf16 %v560_v9, %v558_v3  ;;  %1000 = vst [vmem:[%s1498_s3 + $0x88] sm:$0xff] %v1138_v12  ;;  %v1142_v18 = vpack.c.bf16 %v633_v13, %v631_v7 }
 0x134   :  { %1003 = vst [vmem:[%s1498_s3 + $0xa0] sm:$0xff] %v1141_v17  ;;  %v563_v19 = vpop.f32.mrb[12].mxu0  ;;  %1004 = vst [vmem:[%s1498_s3 + $0xa8] sm:$0xff] %v1142_v18  ;;  %v636_v21 = vpop.f32.mrb[12].mxu1 }
 0x135   :  { %v564_v20 = vadd.f32 %v563_v19, %v1308_v14  ;;  %v565_v22 = vpop.f32.mrb[13].mxu0  ;;  %v637_v24 = vadd.f32 %v636_v21, %v1311_v0  ;;  %v638_v26 = vpop.f32.mrb[13].mxu1 }
 0x136   :  { %v566_v25 = vadd.f32 %v565_v22, %v1314_v15  ;;  %v567_v27 = vpop.f32.mrb[14].mxu0  ;;  %v639_v30 = vadd.f32 %v638_v26, %v1317_v16  ;;  %v640_v32 = vpop.f32.mrb[14].mxu1 }
 0x137   :  { %v568_v31 = vadd.f32 %v567_v27, %v1308_v14  ;;  %v569_v33 = vpop.f32.mrb[15].mxu0  ;;  %v641_v36 = vadd.f32 %v640_v32, %v1311_v0  ;;  %v642_v38 = vpop.f32.mrb[15].mxu1 }
 0x138   :  { %v1145_v35 = vpack.c.bf16 %v566_v25, %v564_v20  ;;  %v570_v37 = vadd.f32 %v569_v33, %v1314_v15  ;;  %v1146_v39 = vpack.c.bf16 %v639_v30, %v637_v24  ;;  %v643_v40 = vadd.f32 %v642_v38, %v1317_v16 }
 0x139   :  { %v1407_v15 = vrot.slane %v1302_v10, %v145_v34 }
 0x13a   :  { %1007 = vst [vmem:[%s1498_s3 + $0xc0] sm:$0xff] %v1145_v35  ;;  %v1149_v14 = vpack.c.bf16 %v570_v37, %v568_v31  ;;  %1008 = vst [vmem:[%s1498_s3 + $0xc8] sm:$0xff] %v1146_v39  ;;  %v1150_v0 = vpack.c.bf16 %v643_v40, %v641_v36 }
 0x13c   :  { %1011 = vst [vmem:[%s1498_s3 + $0xe0] sm:$0xff] %v1149_v14  ;;  %v679_v16 = vpop.f32.mrb[16].mxu0  ;;  %1012 = vst [vmem:[%s1498_s3 + $0xe8] sm:$0xff] %v1150_v0  ;;  %v752_v44 = vpop.f32.mrb[16].mxu1 }
 0x13d   :  { %v680_v43 = vadd.f32 %v679_v16, %v1392_v41  ;;  %v681_v45 = vpop.f32.mrb[17].mxu0  ;;  %v753_v46 = vadd.f32 %v752_v44, %v1398_v42  ;;  %v754_v48 = vpop.f32.mrb[17].mxu1 }
 0x13e   :  { %v682_v47 = vadd.f32 %v681_v45, %v1401_v8  ;;  %v683_v10 = vpop.f32.mrb[18].mxu0  ;;  %v755_v49 = vadd.f32 %v754_v48, %v1407_v15  ;;  %v756_v51 = vpop.f32.mrb[18].mxu1 }
 0x13f   :  { %v684_v50 = vadd.f32 %v683_v10, %v1392_v41  ;;  %v685_v52 = vpop.f32.mrb[19].mxu0  ;;  %v757_v54 = vadd.f32 %v756_v51, %v1398_v42  ;;  %v758_v56 = vpop.f32.mrb[19].mxu1 }
 0x140   :  { %v1123_v53 = vpack.c.bf16 %v682_v47, %v680_v43  ;;  %v686_v55 = vadd.f32 %v685_v52, %v1401_v8  ;;  %v1124_v57 = vpack.c.bf16 %v755_v49, %v753_v46  ;;  %v759_v58 = vadd.f32 %v758_v56, %v1407_v15 }
 0x142   :  { %985 = vst [vmem:[%s1498_s3 + $0x10] sm:$0xff] %v1123_v53  ;;  %v1127_v59 = vpack.c.bf16 %v686_v55, %v684_v50  ;;  %986 = vst [vmem:[%s1498_s3 + $0x18] sm:$0xff] %v1124_v57  ;;  %v1128_v60 = vpack.c.bf16 %v759_v58, %v757_v54 }
 0x144   :  { %989 = vst [vmem:[%s1498_s3 + $0x30] sm:$0xff] %v1127_v59  ;;  %v689_v61 = vpop.f32.mrb[20].mxu0  ;;  %990 = vst [vmem:[%s1498_s3 + $0x38] sm:$0xff] %v1128_v60  ;;  %v762_v63 = vpop.f32.mrb[20].mxu1 }
 0x145   :  { %v690_v62 = vadd.f32 %v689_v61, %v1392_v41  ;;  %v691_v1 = vpop.f32.mrb[21].mxu0  ;;  %v763_v2 = vadd.f32 %v762_v63, %v1398_v42  ;;  %v764_v4 = vpop.f32.mrb[21].mxu1 }
 0x146   :  { %v692_v3 = vadd.f32 %v691_v1, %v1401_v8  ;;  %v693_v5 = vpop.f32.mrb[22].mxu0  ;;  %v765_v6 = vadd.f32 %v764_v4, %v1407_v15  ;;  %v766_v9 = vpop.f32.mrb[22].mxu1 }
 0x147   :  { %v694_v7 = vadd.f32 %v693_v5, %v1392_v41  ;;  %v695_v11 = vpop.f32.mrb[23].mxu0  ;;  %v767_v13 = vadd.f32 %v766_v9, %v1398_v42  ;;  %v768_v18 = vpop.f32.mrb[23].mxu1 }
 0x148   :  { %v1131_v12 = vpack.c.bf16 %v692_v3, %v690_v62  ;;  %v696_v17 = vadd.f32 %v695_v11, %v1401_v8  ;;  %v1132_v19 = vpack.c.bf16 %v765_v6, %v763_v2  ;;  %v769_v20 = vadd.f32 %v768_v18, %v1407_v15 }
 0x14a   :  { %993 = vst [vmem:[%s1498_s3 + $0x50] sm:$0xff] %v1131_v12  ;;  %v1135_v21 = vpack.c.bf16 %v696_v17, %v694_v7  ;;  %994 = vst [vmem:[%s1498_s3 + $0x58] sm:$0xff] %v1132_v19  ;;  %v1136_v22 = vpack.c.bf16 %v769_v20, %v767_v13 }
 0x14c   :  { %997 = vst [vmem:[%s1498_s3 + $0x70] sm:$0xff] %v1135_v21  ;;  %v699_v23 = vpop.f32.mrb[24].mxu0  ;;  %998 = vst [vmem:[%s1498_s3 + $0x78] sm:$0xff] %v1136_v22  ;;  %v772_v25 = vpop.f32.mrb[24].mxu1 }
 0x14d   :  { %v700_v24 = vadd.f32 %v699_v23, %v1392_v41  ;;  %v701_v26 = vpop.f32.mrb[25].mxu0  ;;  %v773_v27 = vadd.f32 %v772_v25, %v1398_v42  ;;  %v774_v29 = vpop.f32.mrb[25].mxu1 }
 0x14e   :  { %v702_v28 = vadd.f32 %v701_v26, %v1401_v8  ;;  %v703_v30 = vpop.f32.mrb[26].mxu0  ;;  %v775_v31 = vadd.f32 %v774_v29, %v1407_v15  ;;  %v776_v33 = vpop.f32.mrb[26].mxu1 }
 0x14f   :  { %v704_v32 = vadd.f32 %v703_v30, %v1392_v41  ;;  %v705_v34 = vpop.f32.mrb[27].mxu0  ;;  %v777_v36 = vadd.f32 %v776_v33, %v1398_v42  ;;  %v778_v38 = vpop.f32.mrb[27].mxu1 }
 0x150   :  { %v1139_v35 = vpack.c.bf16 %v702_v28, %v700_v24  ;;  %v706_v37 = vadd.f32 %v705_v34, %v1401_v8  ;;  %v1140_v39 = vpack.c.bf16 %v775_v31, %v773_v27  ;;  %v779_v40 = vadd.f32 %v778_v38, %v1407_v15 }
 0x152   :  { %1001 = vst [vmem:[%s1498_s3 + $0x90] sm:$0xff] %v1139_v35  ;;  %v1143_v14 = vpack.c.bf16 %v706_v37, %v704_v32  ;;  %1002 = vst [vmem:[%s1498_s3 + $0x98] sm:$0xff] %v1140_v39  ;;  %v1144_v0 = vpack.c.bf16 %v779_v40, %v777_v36 }
 0x154   :  { %1005 = vst [vmem:[%s1498_s3 + $0xb0] sm:$0xff] %v1143_v14  ;;  %v709_v16 = vpop.f32.mrb[28].mxu0  ;;  %1006 = vst [vmem:[%s1498_s3 + $0xb8] sm:$0xff] %v1144_v0  ;;  %v782_v44 = vpop.f32.mrb[28].mxu1 }
 0x155   :  { %v710_v43 = vadd.f32 %v709_v16, %v1392_v41  ;;  %v711_v45 = vpop.f32.mrb[29].mxu0  ;;  %v783_v46 = vadd.f32 %v782_v44, %v1398_v42  ;;  %v784_v48 = vpop.f32.mrb[29].mxu1 }
 0x156   :  { %v712_v47 = vadd.f32 %v711_v45, %v1401_v8  ;;  %v713_v10 = vpop.f32.mrb[30].mxu0  ;;  %v785_v49 = vadd.f32 %v784_v48, %v1407_v15  ;;  %v786_v51 = vpop.f32.mrb[30].mxu1 }
 0x157   :  { %v714_v50 = vadd.f32 %v713_v10, %v1392_v41  ;;  %v715_v52 = vpop.f32.mrb[31].mxu0  ;;  %v787_v54 = vadd.f32 %v786_v51, %v1398_v42  ;;  %v788_v56 = vpop.f32.mrb[31].mxu1 }
 0x158   :  { %v1147_v53 = vpack.c.bf16 %v712_v47, %v710_v43  ;;  %v716_v55 = vadd.f32 %v715_v52, %v1401_v8  ;;  %v1148_v57 = vpack.c.bf16 %v785_v49, %v783_v46  ;;  %v789_v58 = vadd.f32 %v788_v56, %v1407_v15 }
 0x15a   :  { %1009 = vst [vmem:[%s1498_s3 + $0xd0] sm:$0xff] %v1147_v53  ;;  %v1151_v59 = vpack.c.bf16 %v716_v55, %v714_v50  ;;  %1010 = vst [vmem:[%s1498_s3 + $0xd8] sm:$0xff] %v1148_v57  ;;  %v1152_v41 = vpack.c.bf16 %v789_v58, %v787_v54 }
 0x15c   :  { %1013 = vst [vmem:[%s1498_s3 + $0xf0] sm:$0xff] %v1151_v59  ;;  %1014 = vst [vmem:[%s1498_s3 + $0xf8] sm:$0xff] %v1152_v41 }
 0x15d   :  { %1019 = vsyncpa [#allocation3], 1 }
 0x15e   :  { %1020 = vsyncpa [#allocation5], 1 }

// kernel: task_learner_forward.7
= control target key start
LH: loop header
LB: loop body
LE: loop exit
PB: predicated region body
PF: predicated region fallthrough
CT: control target
= control target key end

     0   :  { %s2279_s1 = inlined_call_operand.vmem [shape: bf16[256,1024], index: 1, kind: input, shape index: {}]   ;;  %s2280_s0 = inlined_call_operand.vmem [shape: bf16[64,256], index: 0, kind: input, shape index: {}]   ;;  %s2281_s2 = inlined_call_operand.vmem [shape: f32[1,1024], index: 2, kind: input, shape index: {}]   ;;  %s2282_s3 = inlined_call_operand.vmem [shape: bf16[64,1024], index: 3, kind: output, shape index: {}]  }
   0x1   :  { %v22_v0 = vld [vmem:[%s2279_s1] sm:$0xff]  ;;  %v23_v2 = vld [vmem:[%s2279_s1 + $0x8] sm:$0xff] }
   0x2   :  { %v26_v1 = vld [vmem:[%s2279_s1 + $0x20] sm:$0xff]  ;;  %v27_v4 = vld [vmem:[%s2279_s1 + $0x28] sm:$0xff] }
   0x3   :  { %v1401_v3 = vcombine.high %v22_v0, %v26_v1  ;;  %v1400_v5 = vcombine.low %v22_v0, %v26_v1  ;;  %v30_v6 = vld [vmem:[%s2279_s1 + $0x40] sm:$0xff]  ;;  %v1403_v8 = vcombine.high %v23_v2, %v27_v4  ;;  %v1402_v9 = vcombine.low %v23_v2, %v27_v4  ;;  %v31_v11 = vld [vmem:[%s2279_s1 + $0x48] sm:$0xff] }
   0x4   :  { %v34_v7 = vld [vmem:[%s2279_s1 + $0x60] sm:$0xff]  ;;  %v35_v12 = vld [vmem:[%s2279_s1 + $0x68] sm:$0xff] }
   0x5   :  { %v1409_v10 = vcombine.high %v30_v6, %v34_v7  ;;  %v38_v13 = vld [vmem:[%s2279_s1 + $0x80] sm:$0xff]  ;;  %872 = vmatprep.subr.bf16.mxu0 %v1401_v3  ;;  %v1411_v14 = vcombine.high %v31_v11, %v35_v12  ;;  %v39_v16 = vld [vmem:[%s2279_s1 + $0x88] sm:$0xff]  ;;  %945 = vmatprep.subr.bf16.mxu1 %v1403_v8  ;;  %v1408_v18 = vcombine.low %v30_v6, %v34_v7 }
   0x6   :  { %v42_v15 = vld [vmem:[%s2279_s1 + $0xa0] sm:$0xff]  ;;  %v43_v17 = vld [vmem:[%s2279_s1 + $0xa8] sm:$0xff]  ;;  %873 = vmatpush1.bf16.msra.mxu0 %v1400_v5  ;;  %946 = vmatpush1.bf16.msra.mxu1 %v1402_v9  ;;  %v1410_v19 = vcombine.low %v31_v11, %v35_v12 }
   0x7   :  { %874 = vmatprep.subr.bf16.mxu0 %v1409_v10  ;;  %v1417_v20 = vcombine.high %v38_v13, %v42_v15  ;;  %947 = vmatprep.subr.bf16.mxu1 %v1411_v14  ;;  %v1419_v21 = vcombine.high %v39_v16, %v43_v17  ;;  %v46_v22 = vld [vmem:[%s2279_s1 + $0xc0] sm:$0xff]  ;;  %v47_v24 = vld [vmem:[%s2279_s1 + $0xc8] sm:$0xff]  ;;  %v1416_v26 = vcombine.low %v38_v13, %v42_v15 }
   0x8   :  { %v50_v23 = vld [vmem:[%s2279_s1 + $0xe0] sm:$0xff]  ;;  %v51_v25 = vld [vmem:[%s2279_s1 + $0xe8] sm:$0xff]  ;;  %v1418_v27 = vcombine.low %v39_v16, %v43_v17 }
   0x9   :  { %v1425_v28 = vcombine.high %v46_v22, %v50_v23  ;;  %v1427_v29 = vcombine.high %v47_v24, %v51_v25  ;;  %v54_v30 = vld [vmem:[%s2279_s1 + $0x100] sm:$0xff]  ;;  %v55_v32 = vld [vmem:[%s2279_s1 + $0x108] sm:$0xff]  ;;  %v1424_v34 = vcombine.low %v46_v22, %v50_v23  ;;  %v1426_v35 = vcombine.low %v47_v24, %v51_v25 }
   0xa   :  { %875 = vmatpush1.bf16.msra.mxu0 %v1408_v18  ;;  %948 = vmatpush1.bf16.msra.mxu1 %v1410_v19  ;;  %v58_v31 = vld [vmem:[%s2279_s1 + $0x120] sm:$0xff]  ;;  %v59_v33 = vld [vmem:[%s2279_s1 + $0x128] sm:$0xff] }
   0xb   :  { %876 = vmatprep.subr.bf16.mxu0 %v1417_v20  ;;  %949 = vmatprep.subr.bf16.mxu1 %v1419_v21  ;;  %v1433_v36 = vcombine.high %v54_v30, %v58_v31  ;;  %v1435_v37 = vcombine.high %v55_v32, %v59_v33  ;;  %v62_v38 = vld [vmem:[%s2279_s1 + $0x140] sm:$0xff]  ;;  %v63_v40 = vld [vmem:[%s2279_s1 + $0x148] sm:$0xff]  ;;  %v1432_v42 = vcombine.low %v54_v30, %v58_v31 }
   0xc   :  { %v66_v39 = vld [vmem:[%s2279_s1 + $0x160] sm:$0xff]  ;;  %v67_v41 = vld [vmem:[%s2279_s1 + $0x168] sm:$0xff]  ;;  %v1434_v43 = vcombine.low %v55_v32, %v59_v33 }
   0xd   :  { %v1441_v44 = vcombine.high %v62_v38, %v66_v39  ;;  %v1443_v45 = vcombine.high %v63_v40, %v67_v41  ;;  %v70_v46 = vld [vmem:[%s2279_s1 + $0x180] sm:$0xff]  ;;  %v71_v48 = vld [vmem:[%s2279_s1 + $0x188] sm:$0xff]  ;;  %v1440_v50 = vcombine.low %v62_v38, %v66_v39  ;;  %v1442_v51 = vcombine.low %v63_v40, %v67_v41 }
   0xe   :  { %877 = vmatpush1.bf16.msra.mxu0 %v1416_v26  ;;  %950 = vmatpush1.bf16.msra.mxu1 %v1418_v27  ;;  %v74_v47 = vld [vmem:[%s2279_s1 + $0x1a0] sm:$0xff]  ;;  %v75_v49 = vld [vmem:[%s2279_s1 + $0x1a8] sm:$0xff] }
   0xf   :  { %878 = vmatprep.subr.bf16.mxu0 %v1425_v28  ;;  %951 = vmatprep.subr.bf16.mxu1 %v1427_v29  ;;  %v1449_v52 = vcombine.high %v70_v46, %v74_v47  ;;  %v1451_v53 = vcombine.high %v71_v48, %v75_v49  ;;  %v78_v54 = vld [vmem:[%s2279_s1 + $0x1c0] sm:$0xff]  ;;  %v79_v57 = vld [vmem:[%s2279_s1 + $0x1c8] sm:$0xff]  ;;  %v1448_v59 = vcombine.low %v70_v46, %v74_v47 }
  0x10   :  { %v82_v55 = vld [vmem:[%s2279_s1 + $0x1e0] sm:$0xff]  ;;  %v83_v58 = vld [vmem:[%s2279_s1 + $0x1e8] sm:$0xff]  ;;  %v1450_v60 = vcombine.low %v71_v48, %v75_v49 }
  0x11   :  { %v1717_v56 = vld [vmem:[%s2280_s0 + $0x4] ss:$8 sps:$4 sm:$0xff]   ;;  %v1457_v61 = vcombine.high %v78_v54, %v82_v55  ;;  %v1459_v62 = vcombine.high %v79_v57, %v83_v58  ;;  %v1456_v3 = vcombine.low %v78_v54, %v82_v55  ;;  %v1458_v4 = vcombine.low %v79_v57, %v83_v58 }
  0x12   :  { %879 = vmatpush1.bf16.msra.mxu0 %v1424_v34  ;;  %952 = vmatpush1.bf16.msra.mxu1 %v1426_v35  ;;  %v86_v63 = vld [vmem:[%s2279_s1 + $0x200] sm:$0xff]  ;;  %v87_v1 = vld [vmem:[%s2279_s1 + $0x208] sm:$0xff] }
  0x13   :  { %880 = vmatprep.subr.bf16.mxu0 %v1433_v36  ;;  %953 = vmatprep.subr.bf16.mxu1 %v1435_v37  ;;  %v90_v0 = vld [vmem:[%s2279_s1 + $0x220] sm:$0xff]  ;;  %v91_v2 = vld [vmem:[%s2279_s1 + $0x228] sm:$0xff] }
  0x14   :  { %904 = vmatprep.mubr.bf16.mxu0 %v1717_v56  ;;  %977 = vmatprep.mubr.bf16.mxu1 %v1717_v56  ;;  %v1465_v5 = vcombine.high %v86_v63, %v90_v0  ;;  %v1467_v6 = vcombine.high %v87_v1, %v91_v2  ;;  %v94_v7 = vld [vmem:[%s2279_s1 + $0x240] sm:$0xff]  ;;  %v95_v9 = vld [vmem:[%s2279_s1 + $0x248] sm:$0xff]  ;;  %v1464_v11 = vcombine.low %v86_v63, %v90_v0  ;;  %v24_v0 = vld [vmem:[%s2279_s1 + $0x10] sm:$0xff] }
  0x15   :  { %v98_v8 = vld [vmem:[%s2279_s1 + $0x260] sm:$0xff]  ;;  %v99_v10 = vld [vmem:[%s2279_s1 + $0x268] sm:$0xff]  ;;  %v1466_v12 = vcombine.low %v87_v1, %v91_v2  ;;  %v28_v1 = vld [vmem:[%s2279_s1 + $0x30] sm:$0xff] }
  0x16   :  { %881 = vmatpush1.bf16.msra.mxu0 %v1432_v42  ;;  %954 = vmatpush1.bf16.msra.mxu1 %v1434_v43  ;;  %v1473_v13 = vcombine.high %v94_v7, %v98_v8  ;;  %v1475_v14 = vcombine.high %v95_v9, %v99_v10  ;;  %v102_v15 = vld [vmem:[%s2279_s1 + $0x280] sm:$0xff]  ;;  %v103_v17 = vld [vmem:[%s2279_s1 + $0x288] sm:$0xff]  ;;  %v1472_v19 = vcombine.low %v94_v7, %v98_v8  ;;  %v25_v2 = vld [vmem:[%s2279_s1 + $0x18] sm:$0xff] }
  0x17   :  { %882 = vmatprep.subr.bf16.mxu0 %v1441_v44  ;;  %955 = vmatprep.subr.bf16.mxu1 %v1443_v45  ;;  %v106_v16 = vld [vmem:[%s2279_s1 + $0x2a0] sm:$0xff]  ;;  %v107_v18 = vld [vmem:[%s2279_s1 + $0x2a8] sm:$0xff]  ;;  %v1474_v20 = vcombine.low %v95_v9, %v99_v10  ;;  %v32_v8 = vld [vmem:[%s2279_s1 + $0x50] sm:$0xff] }
  0x18   :  { %v1481_v21 = vcombine.high %v102_v15, %v106_v16  ;;  %v1483_v22 = vcombine.high %v103_v17, %v107_v18  ;;  %v110_v23 = vld [vmem:[%s2279_s1 + $0x2c0] sm:$0xff]  ;;  %v111_v25 = vld [vmem:[%s2279_s1 + $0x2c8] sm:$0xff]  ;;  %v1480_v27 = vcombine.low %v102_v15, %v106_v16  ;;  %v1482_v28 = vcombine.low %v103_v17, %v107_v18  ;;  %v36_v9 = vld [vmem:[%s2279_s1 + $0x70] sm:$0xff] }
  0x19   :  { %v114_v24 = vld [vmem:[%s2279_s1 + $0x2e0] sm:$0xff]  ;;  %v115_v26 = vld [vmem:[%s2279_s1 + $0x2e8] sm:$0xff]  ;;  %v1413_v15 = vcombine.high %v32_v8, %v36_v9  ;;  %v40_v17 = vld [vmem:[%s2279_s1 + $0x90] sm:$0xff] }
  0x1a   :  { %883 = vmatpush1.bf16.msra.mxu0 %v1440_v50  ;;  %956 = vmatpush1.bf16.msra.mxu1 %v1442_v51  ;;  %v1489_v29 = vcombine.high %v110_v23, %v114_v24  ;;  %v1491_v30 = vcombine.high %v111_v25, %v115_v26  ;;  %v118_v31 = vld [vmem:[%s2279_s1 + $0x300] sm:$0xff]  ;;  %v119_v33 = vld [vmem:[%s2279_s1 + $0x308] sm:$0xff]  ;;  %v1488_v35 = vcombine.low %v110_v23, %v114_v24  ;;  %v44_v18 = vld [vmem:[%s2279_s1 + $0xb0] sm:$0xff] }
  0x1b   :  { %884 = vmatprep.subr.bf16.mxu0 %v1449_v52  ;;  %957 = vmatprep.subr.bf16.mxu1 %v1451_v53  ;;  %v122_v32 = vld [vmem:[%s2279_s1 + $0x320] sm:$0xff]  ;;  %v123_v34 = vld [vmem:[%s2279_s1 + $0x328] sm:$0xff]  ;;  %v1490_v36 = vcombine.low %v111_v25, %v115_v26  ;;  %v1421_v24 = vcombine.high %v40_v17, %v44_v18  ;;  %v48_v26 = vld [vmem:[%s2279_s1 + $0xd0] sm:$0xff] }
  0x1c   :  { %v1497_v37 = vcombine.high %v118_v31, %v122_v32  ;;  %v1499_v38 = vcombine.high %v119_v33, %v123_v34  ;;  %v126_v39 = vld [vmem:[%s2279_s1 + $0x340] sm:$0xff]  ;;  %v127_v41 = vld [vmem:[%s2279_s1 + $0x348] sm:$0xff]  ;;  %v1496_v43 = vcombine.low %v118_v31, %v122_v32  ;;  %v1498_v44 = vcombine.low %v119_v33, %v123_v34 }
  0x1d   :  { %v130_v40 = vld [vmem:[%s2279_s1 + $0x360] sm:$0xff]  ;;  %v131_v42 = vld [vmem:[%s2279_s1 + $0x368] sm:$0xff]  ;;  %v1420_v31 = vcombine.low %v40_v17, %v44_v18  ;;  %v96_v17 = vld [vmem:[%s2279_s1 + $0x250] sm:$0xff] }
  0x1e   :  { %885 = vmatpush1.bf16.msra.mxu0 %v1448_v59  ;;  %958 = vmatpush1.bf16.msra.mxu1 %v1450_v60  ;;  %v1505_v45 = vcombine.high %v126_v39, %v130_v40  ;;  %v1507_v46 = vcombine.high %v127_v41, %v131_v42  ;;  %v134_v47 = vld [vmem:[%s2279_s1 + $0x380] sm:$0xff]  ;;  %v135_v49 = vld [vmem:[%s2279_s1 + $0x388] sm:$0xff]  ;;  %v1504_v51 = vcombine.low %v126_v39, %v130_v40  ;;  %v61_v39 = vld [vmem:[%s2279_s1 + $0x138] sm:$0xff] }
  0x1f   :  { %886 = vmatprep.subr.bf16.mxu0 %v1457_v61  ;;  %959 = vmatprep.subr.bf16.mxu1 %v1459_v62  ;;  %v138_v48 = vld [vmem:[%s2279_s1 + $0x3a0] sm:$0xff]  ;;  %v139_v50 = vld [vmem:[%s2279_s1 + $0x3a8] sm:$0xff]  ;;  %v1506_v52 = vcombine.low %v127_v41, %v131_v42  ;;  %v100_v18 = vld [vmem:[%s2279_s1 + $0x270] sm:$0xff] }
  0x20   :  { %v1513_v53 = vcombine.high %v134_v47, %v138_v48  ;;  %v1515_v54 = vcombine.high %v135_v49, %v139_v50  ;;  %v142_v55 = vld [vmem:[%s2279_s1 + $0x3c0] sm:$0xff]  ;;  %v143_v58 = vld [vmem:[%s2279_s1 + $0x3c8] sm:$0xff]  ;;  %v1512_v60 = vcombine.low %v134_v47, %v138_v48  ;;  %v1514_v61 = vcombine.low %v135_v49, %v139_v50  ;;  %v69_v47 = vld [vmem:[%s2279_s1 + $0x178] sm:$0xff] }
  0x21   :  { %v146_v57 = vld [vmem:[%s2279_s1 + $0x3e0] sm:$0xff]  ;;  %v147_v59 = vld [vmem:[%s2279_s1 + $0x3e8] sm:$0xff] }
  0x22   :  { %887 = vmatpush1.bf16.msra.mxu0 %v1456_v3  ;;  %960 = vmatpush1.bf16.msra.mxu1 %v1458_v4  ;;  %v1521_v62 = vcombine.high %v142_v55, %v146_v57  ;;  %v1523_v63 = vcombine.high %v143_v58, %v147_v59  ;;  %v29_v3 = vld [vmem:[%s2279_s1 + $0x38] sm:$0xff]  ;;  %v1520_v4 = vcombine.low %v142_v55, %v146_v57  ;;  %v1844_v10 = vld [vmem:[%s2280_s0] ss:$8 sps:$4 sm:$0xff]  }
  0x23   :  { %888 = vmatprep.subr.bf16.mxu0 %v1465_v5  ;;  %961 = vmatprep.subr.bf16.mxu1 %v1467_v6  ;;  %v1522_v5 = vcombine.low %v143_v58, %v147_v59  ;;  %v1405_v6 = vcombine.high %v24_v0, %v28_v1  ;;  %v1407_v7 = vcombine.high %v25_v2, %v29_v3  ;;  %v1926_v48 = vld [vmem:[%s2280_s0 + $0x20] ss:$8 sps:$4 sm:$0xff]   ;;  %v1937_v55 = vld [vmem:[%s2280_s0 + $0x34] ss:$8 sps:$4 sm:$0xff]  }
  0x24   :  { %v73_v57 = vld [vmem:[%s2279_s1 + $0x198] sm:$0xff] }
  0x25   :  { %v77_v58 = vld [vmem:[%s2279_s1 + $0x1b8] sm:$0xff] }
  0x26   :  { %889 = vmatpush1.bf16.msra.mxu0 %v1464_v11  ;;  %962 = vmatpush1.bf16.msra.mxu1 %v1466_v12  ;;  %v33_v11 = vld [vmem:[%s2279_s1 + $0x58] sm:$0xff] }
  0x27   :  { %890 = vmatprep.subr.bf16.mxu0 %v1473_v13  ;;  %963 = vmatprep.subr.bf16.mxu1 %v1475_v14  ;;  %v37_v12 = vld [vmem:[%s2279_s1 + $0x78] sm:$0xff]  ;;  %v1404_v13 = vcombine.low %v24_v0, %v28_v1  ;;  %v1406_v14 = vcombine.low %v25_v2, %v29_v3  ;;  %v84_v0 = vld [vmem:[%s2279_s1 + $0x1f0] sm:$0xff] }
  0x28   :  { %v1415_v16 = vcombine.high %v33_v11, %v37_v12  ;;  %v1414_v23 = vcombine.low %v33_v11, %v37_v12  ;;  %v81_v1 = vld [vmem:[%s2279_s1 + $0x1d8] sm:$0xff] }
  0x29   :  { %v85_v2 = vld [vmem:[%s2279_s1 + $0x1f8] sm:$0xff] }
  0x2a   :  { %891 = vmatpush1.bf16.msra.mxu0 %v1472_v19  ;;  %964 = vmatpush1.bf16.msra.mxu1 %v1474_v20  ;;  %v1861_v19 = vld [vmem:[%s2280_s0 + $0x14] ss:$8 sps:$4 sm:$0xff]   ;;  %v1964_v3 = vld [vmem:[%s2280_s0 + $0x30] ss:$8 sps:$4 sm:$0xff]  }
  0x2b   :  { %892 = vmatprep.subr.bf16.mxu0 %v1481_v21  ;;  %965 = vmatprep.subr.bf16.mxu1 %v1483_v22  ;;  %v41_v20 = vld [vmem:[%s2279_s1 + $0x98] sm:$0xff]  ;;  %v1412_v22 = vcombine.low %v32_v8, %v36_v9  ;;  %v88_v8 = vld [vmem:[%s2279_s1 + $0x210] sm:$0xff] }
  0x2c   :  { %v45_v21 = vld [vmem:[%s2279_s1 + $0xb8] sm:$0xff]  ;;  %v92_v9 = vld [vmem:[%s2279_s1 + $0x230] sm:$0xff] }
  0x2d   :  { %v1423_v25 = vcombine.high %v41_v20, %v45_v21  ;;  %v1422_v32 = vcombine.low %v41_v20, %v45_v21  ;;  %v89_v11 = vld [vmem:[%s2279_s1 + $0x218] sm:$0xff] }
  0x2e   :  { %893 = vmatpush1.bf16.msra.mxu0 %v1480_v27  ;;  %966 = vmatpush1.bf16.msra.mxu1 %v1482_v28  ;;  %v52_v27 = vld [vmem:[%s2279_s1 + $0xf0] sm:$0xff]  ;;  %v49_v28 = vld [vmem:[%s2279_s1 + $0xd8] sm:$0xff] }
  0x2f   :  { %894 = vmatprep.subr.bf16.mxu0 %v1489_v29  ;;  %967 = vmatprep.subr.bf16.mxu1 %v1491_v30  ;;  %v53_v29 = vld [vmem:[%s2279_s1 + $0xf8] sm:$0xff]  ;;  %v1429_v33 = vcombine.high %v48_v26, %v52_v27  ;;  %v1428_v40 = vcombine.low %v48_v26, %v52_v27  ;;  %v104_v26 = vld [vmem:[%s2279_s1 + $0x290] sm:$0xff] }
  0x30   :  { %v1888_v30 = vld [vmem:[%s2280_s0 + $0x10] ss:$8 sps:$4 sm:$0xff]   ;;  %v1431_v34 = vcombine.high %v49_v28, %v53_v29  ;;  %v1430_v41 = vcombine.low %v49_v28, %v53_v29  ;;  %v1476_v29 = vcombine.low %v96_v17, %v100_v18 }
  0x31   :  { %v93_v12 = vld [vmem:[%s2279_s1 + $0x238] sm:$0xff]  ;;  %v108_v27 = vld [vmem:[%s2279_s1 + $0x2b0] sm:$0xff] }
  0x32   :  { %895 = vmatpush1.bf16.msra.mxu0 %v1488_v35  ;;  %968 = vmatpush1.bf16.msra.mxu1 %v1490_v36  ;;  %v56_v35 = vld [vmem:[%s2279_s1 + $0x110] sm:$0xff]  ;;  %v97_v20 = vld [vmem:[%s2279_s1 + $0x258] sm:$0xff] }
  0x33   :  { %896 = vmatprep.subr.bf16.mxu0 %v1497_v37  ;;  %969 = vmatprep.subr.bf16.mxu1 %v1499_v38  ;;  %v60_v36 = vld [vmem:[%s2279_s1 + $0x130] sm:$0xff]  ;;  %v1899_v37 = vld [vmem:[%s2280_s0 + $0x24] ss:$8 sps:$4 sm:$0xff]   ;;  %v57_v38 = vld [vmem:[%s2279_s1 + $0x118] sm:$0xff] }
  0x34   :  { %v1437_v42 = vcombine.high %v56_v35, %v60_v36  ;;  %v1436_v49 = vcombine.low %v56_v35, %v60_v36  ;;  %v1438_v50 = vcombine.low %v57_v38, %v61_v39  ;;  %v101_v21 = vld [vmem:[%s2279_s1 + $0x278] sm:$0xff]  ;;  %v116_v35 = vld [vmem:[%s2279_s1 + $0x2f0] sm:$0xff] }
  0x35   :  { %v109_v28 = vld [vmem:[%s2279_s1 + $0x2b8] sm:$0xff] }
  0x36   :  { %897 = vmatpush1.bf16.msra.mxu0 %v1496_v43  ;;  %970 = vmatpush1.bf16.msra.mxu1 %v1498_v44  ;;  %v1439_v43 = vcombine.high %v57_v38, %v61_v39  ;;  %v64_v44 = vld [vmem:[%s2279_s1 + $0x150] sm:$0xff]  ;;  %v113_v36 = vld [vmem:[%s2279_s1 + $0x2d8] sm:$0xff]  ;;  %v1484_v39 = vcombine.low %v104_v26, %v108_v27 }
  0x37   :  { %898 = vmatprep.subr.bf16.mxu0 %v1505_v45  ;;  %971 = vmatprep.subr.bf16.mxu1 %v1507_v46  ;;  %v68_v45 = vld [vmem:[%s2279_s1 + $0x170] sm:$0xff]  ;;  %v65_v46 = vld [vmem:[%s2279_s1 + $0x158] sm:$0xff] }
  0x38   :  { %v1444_v59 = vcombine.low %v64_v44, %v68_v45  ;;  %v117_v38 = vld [vmem:[%s2279_s1 + $0x2f8] sm:$0xff] }
  0x3a   :  { %899 = vmatpush1.bf16.msra.mxu0 %v1504_v51  ;;  %972 = vmatpush1.bf16.msra.mxu1 %v1506_v52  ;;  %v1445_v51 = vcombine.high %v64_v44, %v68_v45  ;;  %v1447_v52 = vcombine.high %v65_v46, %v69_v47  ;;  %v124_v44 = vld [vmem:[%s2279_s1 + $0x330] sm:$0xff]  ;;  %v121_v45 = vld [vmem:[%s2279_s1 + $0x318] sm:$0xff] }
  0x3b   :  { %900 = vmatprep.subr.bf16.mxu0 %v1513_v53  ;;  %973 = vmatprep.subr.bf16.mxu1 %v1515_v54  ;;  %v72_v53 = vld [vmem:[%s2279_s1 + $0x190] sm:$0xff] }
  0x3c   :  { %v76_v54 = vld [vmem:[%s2279_s1 + $0x1b0] sm:$0xff] }
  0x3e   :  { %901 = vmatpush1.bf16.msra.mxu0 %v1512_v60  ;;  %974 = vmatpush1.bf16.msra.mxu1 %v1514_v61  ;;  %v1446_v60 = vcombine.low %v65_v46, %v69_v47  ;;  %v1453_v61 = vcombine.high %v72_v53, %v76_v54  ;;  %v125_v46 = vld [vmem:[%s2279_s1 + $0x338] sm:$0xff] }
  0x3f   :  { %902 = vmatprep.subr.bf16.mxu0 %v1521_v62  ;;  %975 = vmatprep.subr.bf16.mxu1 %v1523_v63  ;;  %v1455_v62 = vcombine.high %v73_v57, %v77_v58  ;;  %v80_v63 = vld [vmem:[%s2279_s1 + $0x1d0] sm:$0xff] }
  0x42   :  { %903 = vmatpush1.bf16.msra.mxu0 %v1520_v4  ;;  %976 = vmatpush1.bf16.msra.mxu1 %v1522_v5  ;;  %v1452_v4 = vcombine.low %v72_v53, %v76_v54  ;;  %v1454_v5 = vcombine.low %v73_v57, %v77_v58  ;;  %v132_v53 = vld [vmem:[%s2279_s1 + $0x370] sm:$0xff]  ;;  %v129_v54 = vld [vmem:[%s2279_s1 + $0x358] sm:$0xff] }
  0x43   :  { %1018 = vmatprep.subr.bf16.mxu0 %v1405_v6  ;;  %1091 = vmatprep.subr.bf16.mxu1 %v1407_v7  ;;  %v1461_v6 = vcombine.high %v80_v63, %v84_v0  ;;  %v1463_v7 = vcombine.high %v81_v1, %v85_v2  ;;  %v133_v57 = vld [vmem:[%s2279_s1 + $0x378] sm:$0xff] }
  0x45   :  { %905 = vmatmul.mubr.bf16.vlgmr.msra.gmra.mrb[0].mxu0 %v1844_v10  ;;  %978 = vmatmul.mubr.bf16.vlgmr.msra.gmra.mrb[0].mxu1 %v1844_v10 }
  0x46   :  { %1019 = vmatpush1.bf16.msra.mxu0 %v1404_v13  ;;  %1092 = vmatpush1.bf16.msra.mxu1 %v1406_v14  ;;  %v1460_v13 = vcombine.low %v80_v63, %v84_v0  ;;  %v1462_v14 = vcombine.low %v81_v1, %v85_v2  ;;  %v140_v63 = vld [vmem:[%s2279_s1 + $0x3b0] sm:$0xff]  ;;  %v137_v0 = vld [vmem:[%s2279_s1 + $0x398] sm:$0xff] }
  0x47   :  { %1020 = vmatprep.subr.bf16.mxu0 %v1413_v15  ;;  %1093 = vmatprep.subr.bf16.mxu1 %v1415_v16  ;;  %v1469_v15 = vcombine.high %v88_v8, %v92_v9  ;;  %v1471_v16 = vcombine.high %v89_v11, %v93_v12  ;;  %v141_v1 = vld [vmem:[%s2279_s1 + $0x3b8] sm:$0xff] }
  0x48   :  { %914 = vmatprep.mubr.bf16.mxu0 %v1861_v19  ;;  %987 = vmatprep.mubr.bf16.mxu1 %v1861_v19 }
  0x4a   :  { %1021 = vmatpush1.bf16.msra.mxu0 %v1412_v22  ;;  %1094 = vmatpush1.bf16.msra.mxu1 %v1414_v23  ;;  %v1468_v22 = vcombine.low %v88_v8, %v92_v9  ;;  %v1470_v23 = vcombine.low %v89_v11, %v93_v12  ;;  %v148_v8 = vld [vmem:[%s2279_s1 + $0x3f0] sm:$0xff]  ;;  %v145_v9 = vld [vmem:[%s2279_s1 + $0x3d8] sm:$0xff] }
  0x4b   :  { %1022 = vmatprep.subr.bf16.mxu0 %v1421_v24  ;;  %1095 = vmatprep.subr.bf16.mxu1 %v1423_v25  ;;  %v1477_v24 = vcombine.high %v96_v17, %v100_v18  ;;  %v1479_v25 = vcombine.high %v97_v20, %v101_v21  ;;  %v149_v11 = vld [vmem:[%s2279_s1 + $0x3f8] sm:$0xff] }
  0x4c   :  { %v1526_v17 = vcombine.low %v145_v9, %v149_v11 }
  0x4d   :  { %915 = vmatmul.mubr.bf16.gmra.mrb[4].mxu0 %v1888_v30  ;;  %988 = vmatmul.mubr.bf16.gmra.mrb[4].mxu1 %v1888_v30 }
  0x4e   :  { %1023 = vmatpush1.bf16.msra.mxu0 %v1420_v31  ;;  %1096 = vmatpush1.bf16.msra.mxu1 %v1422_v32  ;;  %v1478_v31 = vcombine.low %v97_v20, %v101_v21  ;;  %v1485_v32 = vcombine.high %v104_v26, %v108_v27 }
  0x4f   :  { %1024 = vmatprep.subr.bf16.mxu0 %v1429_v33  ;;  %1097 = vmatprep.subr.bf16.mxu1 %v1431_v34  ;;  %v112_v34 = vld [vmem:[%s2279_s1 + $0x2d0] sm:$0xff] }
  0x50   :  { %924 = vmatprep.mubr.bf16.mxu0 %v1899_v37  ;;  %997 = vmatprep.mubr.bf16.mxu1 %v1899_v37  ;;  %v1492_v47 = vcombine.low %v112_v34, %v116_v35 }
  0x52   :  { %1025 = vmatpush1.bf16.msra.mxu0 %v1428_v40  ;;  %1098 = vmatpush1.bf16.msra.mxu1 %v1430_v41  ;;  %v1493_v41 = vcombine.high %v112_v34, %v116_v35 }
  0x53   :  { %1026 = vmatprep.subr.bf16.mxu0 %v1437_v42  ;;  %1099 = vmatprep.subr.bf16.mxu1 %v1439_v43  ;;  %v1495_v42 = vcombine.high %v113_v36, %v117_v38  ;;  %v120_v43 = vld [vmem:[%s2279_s1 + $0x310] sm:$0xff] }
  0x54   :  { %v1500_v58 = vcombine.low %v120_v43, %v124_v44 }
  0x55   :  { %925 = vmatmul.mubr.bf16.gmra.mrb[8].mxu0 %v1926_v48  ;;  %998 = vmatmul.mubr.bf16.gmra.mrb[8].mxu1 %v1926_v48 }
  0x56   :  { %1027 = vmatpush1.bf16.msra.mxu0 %v1436_v49  ;;  %1100 = vmatpush1.bf16.msra.mxu1 %v1438_v50  ;;  %v1494_v49 = vcombine.low %v113_v36, %v117_v38  ;;  %v1501_v50 = vcombine.high %v120_v43, %v124_v44 }
  0x57   :  { %1028 = vmatprep.subr.bf16.mxu0 %v1445_v51  ;;  %1101 = vmatprep.subr.bf16.mxu1 %v1447_v52  ;;  %v1503_v51 = vcombine.high %v121_v45, %v125_v46  ;;  %v128_v52 = vld [vmem:[%s2279_s1 + $0x350] sm:$0xff] }
  0x58   :  { %934 = vmatprep.mubr.bf16.mxu0 %v1937_v55  ;;  %1007 = vmatprep.mubr.bf16.mxu1 %v1937_v55  ;;  %v1508_v2 = vcombine.low %v128_v52, %v132_v53 }
  0x5a   :  { %1029 = vmatpush1.bf16.msra.mxu0 %v1444_v59  ;;  %1102 = vmatpush1.bf16.msra.mxu1 %v1446_v60  ;;  %v1502_v59 = vcombine.low %v121_v45, %v125_v46  ;;  %v1509_v60 = vcombine.high %v128_v52, %v132_v53 }
  0x5b   :  { %1030 = vmatprep.subr.bf16.mxu0 %v1453_v61  ;;  %1103 = vmatprep.subr.bf16.mxu1 %v1455_v62  ;;  %v1511_v61 = vcombine.high %v129_v54, %v133_v57  ;;  %v136_v62 = vld [vmem:[%s2279_s1 + $0x390] sm:$0xff] }
  0x5c   :  { %v1516_v12 = vcombine.low %v136_v62, %v140_v63 }
  0x5d   :  { %935 = vmatmul.mubr.bf16.gmra.mrb[12].mxu0 %v1964_v3  ;;  %1008 = vmatmul.mubr.bf16.gmra.mrb[12].mxu1 %v1964_v3 }
  0x5e   :  { %1031 = vmatpush1.bf16.msra.mxu0 %v1452_v4  ;;  %1104 = vmatpush1.bf16.msra.mxu1 %v1454_v5  ;;  %v1510_v4 = vcombine.low %v129_v54, %v133_v57  ;;  %v1517_v5 = vcombine.high %v136_v62, %v140_v63 }
  0x5f   :  { %1032 = vmatprep.subr.bf16.mxu0 %v1461_v6  ;;  %1105 = vmatprep.subr.bf16.mxu1 %v1463_v7  ;;  %v1519_v6 = vcombine.high %v137_v0, %v141_v1  ;;  %v144_v7 = vld [vmem:[%s2279_s1 + $0x3d0] sm:$0xff] }
  0x60   :  { %1050 = vmatprep.mubr.bf16.mxu0 %v1717_v56  ;;  %1123 = vmatprep.mubr.bf16.mxu1 %v1717_v56  ;;  %v105_v56 = vld [vmem:[%s2279_s1 + $0x298] sm:$0xff] }
  0x61   :  { %v1487_v33 = vcombine.high %v105_v56, %v109_v28  ;;  %v1486_v40 = vcombine.low %v105_v56, %v109_v28 }
  0x62   :  { %1033 = vmatpush1.bf16.msra.mxu0 %v1460_v13  ;;  %1106 = vmatpush1.bf16.msra.mxu1 %v1462_v14  ;;  %v1518_v13 = vcombine.low %v137_v0, %v141_v1  ;;  %v1525_v14 = vcombine.high %v144_v7, %v148_v8 }
  0x63   :  { %1034 = vmatprep.subr.bf16.mxu0 %v1469_v15  ;;  %1107 = vmatprep.subr.bf16.mxu1 %v1471_v16  ;;  %v1527_v15 = vcombine.high %v145_v9, %v149_v11  ;;  %v1524_v16 = vcombine.low %v144_v7, %v148_v8 }
  0x66   :  { %1035 = vmatpush1.bf16.msra.mxu0 %v1468_v22  ;;  %1108 = vmatpush1.bf16.msra.mxu1 %v1470_v23 }
  0x67   :  { %1036 = vmatprep.subr.bf16.mxu0 %v1477_v24  ;;  %1109 = vmatprep.subr.bf16.mxu1 %v1479_v25 }
  0x6a   :  { %1037 = vmatpush1.bf16.msra.mxu0 %v1476_v29  ;;  %1110 = vmatpush1.bf16.msra.mxu1 %v1478_v31 }
  0x6b   :  { %1038 = vmatprep.subr.bf16.mxu0 %v1485_v32  ;;  %1111 = vmatprep.subr.bf16.mxu1 %v1487_v33 }
  0x6e   :  { %1039 = vmatpush1.bf16.msra.mxu0 %v1484_v39  ;;  %1112 = vmatpush1.bf16.msra.mxu1 %v1486_v40 }
  0x6f   :  { %1040 = vmatprep.subr.bf16.mxu0 %v1493_v41  ;;  %1113 = vmatprep.subr.bf16.mxu1 %v1495_v42 }
  0x72   :  { %1041 = vmatpush1.bf16.msra.mxu0 %v1492_v47  ;;  %1114 = vmatpush1.bf16.msra.mxu1 %v1494_v49 }
  0x73   :  { %1042 = vmatprep.subr.bf16.mxu0 %v1501_v50  ;;  %1115 = vmatprep.subr.bf16.mxu1 %v1503_v51 }
  0x76   :  { %1043 = vmatpush1.bf16.msra.mxu0 %v1500_v58  ;;  %1116 = vmatpush1.bf16.msra.mxu1 %v1502_v59 }
  0x77   :  { %1044 = vmatprep.subr.bf16.mxu0 %v1509_v60  ;;  %1117 = vmatprep.subr.bf16.mxu1 %v1511_v61 }
  0x7a   :  { %1045 = vmatpush1.bf16.msra.mxu0 %v1508_v2  ;;  %1118 = vmatpush1.bf16.msra.mxu1 %v1510_v4 }
  0x7b   :  { %1046 = vmatprep.subr.bf16.mxu0 %v1517_v5  ;;  %1119 = vmatprep.subr.bf16.mxu1 %v1519_v6 }
  0x7e   :  { %1047 = vmatpush1.bf16.msra.mxu0 %v1516_v12  ;;  %1120 = vmatpush1.bf16.msra.mxu1 %v1518_v13 }
  0x7f   :  { %1048 = vmatprep.subr.bf16.mxu0 %v1525_v14  ;;  %1121 = vmatprep.subr.bf16.mxu1 %v1527_v15 }
  0x82   :  { %1049 = vmatpush1.bf16.msra.mxu0 %v1524_v16  ;;  %1122 = vmatpush1.bf16.msra.mxu1 %v1526_v17 }
  0x85   :  { %1051 = vmatmul.mubr.bf16.vlgmr.msra.gmra.mrb[16].mxu0 %v1844_v10  ;;  %1124 = vmatmul.mubr.bf16.vlgmr.msra.gmra.mrb[16].mxu1 %v1844_v10  ;;  %v152_v10 = vlaneseq }
  0x86   :  { %1060 = vmatprep.mubr.bf16.mxu0 %v1861_v19  ;;  %1133 = vmatprep.mubr.bf16.mxu1 %v1861_v19 }
  0x87   :  { %v2080_v19 = vshrl.u32 %v152_v10, 7 }
  0x89   :  { %v158_v18 = vsub.s32 1, %v2080_v19 }
  0x8d   :  { %1061 = vmatmul.mubr.bf16.gmra.mrb[20].mxu0 %v1888_v30  ;;  %1134 = vmatmul.mubr.bf16.gmra.mrb[20].mxu1 %v1888_v30  ;;  %v154_v30 = vsub.s32 0, %v2080_v19 }
  0x8e   :  { %1070 = vmatprep.mubr.bf16.mxu0 %v1899_v37  ;;  %1143 = vmatprep.mubr.bf16.mxu1 %v1899_v37  ;;  %v2086_v37 = vld [vmem:[%s2281_s2] sm:$0xff] }
  0x8f   :  { %v2092_v20 = vrot.slane %v2086_v37, %v154_v30  ;;  %v2098_v21 = vrot.slane %v2086_v37, %v158_v18 }
  0x95   :  { %1071 = vmatmul.mubr.bf16.gmra.mrb[24].mxu0 %v1926_v48  ;;  %1144 = vmatmul.mubr.bf16.gmra.mrb[24].mxu1 %v1926_v48  ;;  %v162_v48 = vsub.s32 2, %v2080_v19 }
  0x96   :  { %1080 = vmatprep.mubr.bf16.mxu0 %v1937_v55  ;;  %1153 = vmatprep.mubr.bf16.mxu1 %v1937_v55  ;;  %v166_v55 = vsub.s32 3, %v2080_v19 }
  0x98   :  { %v2101_v22 = vrot.slane %v2086_v37, %v166_v55 }
  0x9d   :  { %1081 = vmatmul.mubr.bf16.gmra.mrb[28].mxu0 %v1964_v3  ;;  %1154 = vmatmul.mubr.bf16.gmra.mrb[28].mxu1 %v1964_v3  ;;  %v2095_v3 = vrot.slane %v2086_v37, %v162_v48 }
 0x118   :  { %v906_v23 = vpop.f32.mrb[0].mxu0  ;;  %v979_v25 = vpop.f32.mrb[0].mxu1 }
 0x119   :  { %v907_v24 = vadd.f32 %v906_v23, %v2092_v20  ;;  %v908_v26 = vpop.f32.mrb[1].mxu0  ;;  %v980_v27 = vadd.f32 %v979_v25, %v2095_v3  ;;  %v981_v28 = vpop.f32.mrb[1].mxu1 }
 0x11a   :  { %v909_v56 = vadd.f32 %v908_v26, %v2098_v21  ;;  %v910_v29 = vpop.f32.mrb[2].mxu0  ;;  %v982_v31 = vadd.f32 %v981_v28, %v2101_v22  ;;  %v983_v33 = vpop.f32.mrb[2].mxu1 }
 0x11b   :  { %v911_v32 = vadd.f32 %v910_v29, %v2092_v20  ;;  %v912_v34 = vpop.f32.mrb[3].mxu0  ;;  %v984_v36 = vadd.f32 %v983_v33, %v2095_v3  ;;  %v985_v39 = vpop.f32.mrb[3].mxu1 }
 0x11c   :  { %v1560_v35 = vpack.c.bf16 %v909_v56, %v907_v24  ;;  %v913_v38 = vadd.f32 %v912_v34, %v2098_v21  ;;  %v1561_v40 = vpack.c.bf16 %v982_v31, %v980_v27  ;;  %v986_v41 = vadd.f32 %v985_v39, %v2101_v22 }
 0x11e   :  { %1356 = vst [vmem:[%s2282_s3] sm:$0xff] %v1560_v35  ;;  %v1564_v42 = vpack.c.bf16 %v913_v38, %v911_v32  ;;  %1357 = vst [vmem:[%s2282_s3 + $0x8] sm:$0xff] %v1561_v40  ;;  %v1565_v43 = vpack.c.bf16 %v986_v41, %v984_v36 }
 0x120   :  { %1360 = vst [vmem:[%s2282_s3 + $0x20] sm:$0xff] %v1564_v42  ;;  %v916_v44 = vpop.f32.mrb[4].mxu0  ;;  %1361 = vst [vmem:[%s2282_s3 + $0x28] sm:$0xff] %v1565_v43  ;;  %v989_v46 = vpop.f32.mrb[4].mxu1 }
 0x121   :  { %v917_v45 = vadd.f32 %v916_v44, %v2092_v20  ;;  %v918_v47 = vpop.f32.mrb[5].mxu0  ;;  %v990_v49 = vadd.f32 %v989_v46, %v2095_v3  ;;  %v991_v51 = vpop.f32.mrb[5].mxu1 }
 0x122   :  { %v919_v50 = vadd.f32 %v918_v47, %v2098_v21  ;;  %v920_v52 = vpop.f32.mrb[6].mxu0  ;;  %v992_v53 = vadd.f32 %v991_v51, %v2101_v22  ;;  %v993_v57 = vpop.f32.mrb[6].mxu1 }
 0x123   :  { %v921_v54 = vadd.f32 %v920_v52, %v2092_v20  ;;  %v922_v58 = vpop.f32.mrb[7].mxu0  ;;  %v994_v60 = vadd.f32 %v993_v57, %v2095_v3  ;;  %v995_v62 = vpop.f32.mrb[7].mxu1 }
 0x124   :  { %v1568_v59 = vpack.c.bf16 %v919_v50, %v917_v45  ;;  %v923_v61 = vadd.f32 %v922_v58, %v2098_v21  ;;  %v1569_v63 = vpack.c.bf16 %v992_v53, %v990_v49  ;;  %v996_v0 = vadd.f32 %v995_v62, %v2101_v22 }
 0x125   :  { %v182_v45 = vsub.s32 7, %v2080_v19 }
 0x126   :  { %1364 = vst [vmem:[%s2282_s3 + $0x40] sm:$0xff] %v1568_v59  ;;  %v1572_v1 = vpack.c.bf16 %v923_v61, %v921_v54  ;;  %1365 = vst [vmem:[%s2282_s3 + $0x48] sm:$0xff] %v1569_v63  ;;  %v1573_v2 = vpack.c.bf16 %v996_v0, %v994_v60 }
 0x127   :  { %v2197_v50 = vrot.slane %v2086_v37, %v182_v45 }
 0x128   :  { %1368 = vst [vmem:[%s2282_s3 + $0x60] sm:$0xff] %v1572_v1  ;;  %v926_v4 = vpop.f32.mrb[8].mxu0  ;;  %1369 = vst [vmem:[%s2282_s3 + $0x68] sm:$0xff] %v1573_v2  ;;  %v999_v6 = vpop.f32.mrb[8].mxu1 }
 0x129   :  { %v927_v5 = vadd.f32 %v926_v4, %v2092_v20  ;;  %v928_v7 = vpop.f32.mrb[9].mxu0  ;;  %v1000_v8 = vadd.f32 %v999_v6, %v2095_v3  ;;  %v1001_v11 = vpop.f32.mrb[9].mxu1 }
 0x12a   :  { %v929_v9 = vadd.f32 %v928_v7, %v2098_v21  ;;  %v930_v12 = vpop.f32.mrb[10].mxu0  ;;  %v1002_v13 = vadd.f32 %v1001_v11, %v2101_v22  ;;  %v1003_v15 = vpop.f32.mrb[10].mxu1 }
 0x12b   :  { %v931_v14 = vadd.f32 %v930_v12, %v2092_v20  ;;  %v932_v16 = vpop.f32.mrb[11].mxu0  ;;  %v1004_v10 = vadd.f32 %v1003_v15, %v2095_v3  ;;  %v1005_v48 = vpop.f32.mrb[11].mxu1 }
 0x12c   :  { %v1576_v17 = vpack.c.bf16 %v929_v9, %v927_v5  ;;  %v933_v30 = vadd.f32 %v932_v16, %v2098_v21  ;;  %v1577_v18 = vpack.c.bf16 %v1002_v13, %v1000_v8  ;;  %v1006_v55 = vadd.f32 %v1005_v48, %v2101_v22 }
 0x12e   :  { %1372 = vst [vmem:[%s2282_s3 + $0x80] sm:$0xff] %v1576_v17  ;;  %v1580_v23 = vpack.c.bf16 %v933_v30, %v931_v14  ;;  %1373 = vst [vmem:[%s2282_s3 + $0x88] sm:$0xff] %v1577_v18  ;;  %v1581_v24 = vpack.c.bf16 %v1006_v55, %v1004_v10 }
 0x130   :  { %1376 = vst [vmem:[%s2282_s3 + $0xa0] sm:$0xff] %v1580_v23  ;;  %v936_v25 = vpop.f32.mrb[12].mxu0  ;;  %1377 = vst [vmem:[%s2282_s3 + $0xa8] sm:$0xff] %v1581_v24  ;;  %v1009_v27 = vpop.f32.mrb[12].mxu1 }
 0x131   :  { %v937_v26 = vadd.f32 %v936_v25, %v2092_v20  ;;  %v938_v56 = vpop.f32.mrb[13].mxu0  ;;  %v1010_v28 = vadd.f32 %v1009_v27, %v2095_v3  ;;  %v1011_v31 = vpop.f32.mrb[13].mxu1 }
 0x132   :  { %v939_v29 = vadd.f32 %v938_v56, %v2098_v21  ;;  %v940_v32 = vpop.f32.mrb[14].mxu0  ;;  %v1012_v33 = vadd.f32 %v1011_v31, %v2101_v22  ;;  %v1013_v35 = vpop.f32.mrb[14].mxu1 }
 0x133   :  { %v941_v34 = vadd.f32 %v940_v32, %v2092_v20  ;;  %v942_v36 = vpop.f32.mrb[15].mxu0  ;;  %v1014_v39 = vadd.f32 %v1013_v35, %v2095_v3  ;;  %v1015_v41 = vpop.f32.mrb[15].mxu1  ;;  %v170_v3 = vsub.s32 4, %v2080_v19 }
 0x134   :  { %v1584_v38 = vpack.c.bf16 %v939_v29, %v937_v26  ;;  %v943_v40 = vadd.f32 %v942_v36, %v2098_v21  ;;  %v1585_v42 = vpack.c.bf16 %v1012_v33, %v1010_v28  ;;  %v1016_v43 = vadd.f32 %v1015_v41, %v2101_v22 }
 0x135   :  { %v178_v21 = vsub.s32 6, %v2080_v19  ;;  %v174_v22 = vsub.s32 5, %v2080_v19  ;;  %v2188_v46 = vrot.slane %v2086_v37, %v170_v3 }
 0x136   :  { %1380 = vst [vmem:[%s2282_s3 + $0xc0] sm:$0xff] %v1584_v38  ;;  %v1588_v44 = vpack.c.bf16 %v943_v40, %v941_v34  ;;  %1381 = vst [vmem:[%s2282_s3 + $0xc8] sm:$0xff] %v1585_v42  ;;  %v1589_v20 = vpack.c.bf16 %v1016_v43, %v1014_v39 }
 0x137   :  { %v2191_v47 = vrot.slane %v2086_v37, %v178_v21  ;;  %v2194_v49 = vrot.slane %v2086_v37, %v174_v22 }
 0x138   :  { %1384 = vst [vmem:[%s2282_s3 + $0xe0] sm:$0xff] %v1588_v44  ;;  %1385 = vst [vmem:[%s2282_s3 + $0xe8] sm:$0xff] %v1589_v20 }
 0x158   :  { %v1052_v51 = vpop.f32.mrb[16].mxu0  ;;  %v1125_v53 = vpop.f32.mrb[16].mxu1 }
 0x159   :  { %v1053_v52 = vadd.f32 %v1052_v51, %v2188_v46  ;;  %v1054_v54 = vpop.f32.mrb[17].mxu0  ;;  %v1126_v57 = vadd.f32 %v1125_v53, %v2191_v47  ;;  %v1127_v58 = vpop.f32.mrb[17].mxu1 }
 0x15a   :  { %v1055_v19 = vadd.f32 %v1054_v54, %v2194_v49  ;;  %v1056_v59 = vpop.f32.mrb[18].mxu0  ;;  %v1128_v60 = vadd.f32 %v1127_v58, %v2197_v50  ;;  %v1129_v62 = vpop.f32.mrb[18].mxu1 }
 0x15b   :  { %v1057_v61 = vadd.f32 %v1056_v59, %v2188_v46  ;;  %v1058_v63 = vpop.f32.mrb[19].mxu0  ;;  %v1130_v37 = vadd.f32 %v1129_v62, %v2191_v47  ;;  %v1131_v2 = vpop.f32.mrb[19].mxu1 }
 0x15c   :  { %v1562_v0 = vpack.c.bf16 %v1055_v19, %v1053_v52  ;;  %v1059_v1 = vadd.f32 %v1058_v63, %v2194_v49  ;;  %v1563_v4 = vpack.c.bf16 %v1128_v60, %v1126_v57  ;;  %v1132_v5 = vadd.f32 %v1131_v2, %v2197_v50 }
 0x15e   :  { %1358 = vst [vmem:[%s2282_s3 + $0x10] sm:$0xff] %v1562_v0  ;;  %v1566_v6 = vpack.c.bf16 %v1059_v1, %v1057_v61  ;;  %1359 = vst [vmem:[%s2282_s3 + $0x18] sm:$0xff] %v1563_v4  ;;  %v1567_v7 = vpack.c.bf16 %v1132_v5, %v1130_v37 }
 0x160   :  { %1362 = vst [vmem:[%s2282_s3 + $0x30] sm:$0xff] %v1566_v6  ;;  %v1062_v8 = vpop.f32.mrb[20].mxu0  ;;  %1363 = vst [vmem:[%s2282_s3 + $0x38] sm:$0xff] %v1567_v7  ;;  %v1135_v11 = vpop.f32.mrb[20].mxu1 }
 0x161   :  { %v1063_v9 = vadd.f32 %v1062_v8, %v2188_v46  ;;  %v1064_v12 = vpop.f32.mrb[21].mxu0  ;;  %v1136_v13 = vadd.f32 %v1135_v11, %v2191_v47  ;;  %v1137_v15 = vpop.f32.mrb[21].mxu1 }
 0x162   :  { %v1065_v14 = vadd.f32 %v1064_v12, %v2194_v49  ;;  %v1066_v16 = vpop.f32.mrb[22].mxu0  ;;  %v1138_v17 = vadd.f32 %v1137_v15, %v2197_v50  ;;  %v1139_v30 = vpop.f32.mrb[22].mxu1 }
 0x163   :  { %v1067_v10 = vadd.f32 %v1066_v16, %v2188_v46  ;;  %v1068_v48 = vpop.f32.mrb[23].mxu0  ;;  %v1140_v55 = vadd.f32 %v1139_v30, %v2191_v47  ;;  %v1141_v24 = vpop.f32.mrb[23].mxu1 }
 0x164   :  { %v1570_v18 = vpack.c.bf16 %v1065_v14, %v1063_v9  ;;  %v1069_v23 = vadd.f32 %v1068_v48, %v2194_v49  ;;  %v1571_v25 = vpack.c.bf16 %v1138_v17, %v1136_v13  ;;  %v1142_v26 = vadd.f32 %v1141_v24, %v2197_v50 }
 0x166   :  { %1366 = vst [vmem:[%s2282_s3 + $0x50] sm:$0xff] %v1570_v18  ;;  %v1574_v27 = vpack.c.bf16 %v1069_v23, %v1067_v10  ;;  %1367 = vst [vmem:[%s2282_s3 + $0x58] sm:$0xff] %v1571_v25  ;;  %v1575_v56 = vpack.c.bf16 %v1142_v26, %v1140_v55 }
 0x168   :  { %1370 = vst [vmem:[%s2282_s3 + $0x70] sm:$0xff] %v1574_v27  ;;  %v1072_v28 = vpop.f32.mrb[24].mxu0  ;;  %1371 = vst [vmem:[%s2282_s3 + $0x78] sm:$0xff] %v1575_v56  ;;  %v1145_v31 = vpop.f32.mrb[24].mxu1 }
 0x169   :  { %v1073_v29 = vadd.f32 %v1072_v28, %v2188_v46  ;;  %v1074_v32 = vpop.f32.mrb[25].mxu0  ;;  %v1146_v33 = vadd.f32 %v1145_v31, %v2191_v47  ;;  %v1147_v35 = vpop.f32.mrb[25].mxu1 }
 0x16a   :  { %v1075_v34 = vadd.f32 %v1074_v32, %v2194_v49  ;;  %v1076_v36 = vpop.f32.mrb[26].mxu0  ;;  %v1148_v38 = vadd.f32 %v1147_v35, %v2197_v50  ;;  %v1149_v40 = vpop.f32.mrb[26].mxu1 }
 0x16b   :  { %v1077_v39 = vadd.f32 %v1076_v36, %v2188_v46  ;;  %v1078_v41 = vpop.f32.mrb[27].mxu0  ;;  %v1150_v43 = vadd.f32 %v1149_v40, %v2191_v47  ;;  %v1151_v20 = vpop.f32.mrb[27].mxu1 }
 0x16c   :  { %v1578_v42 = vpack.c.bf16 %v1075_v34, %v1073_v29  ;;  %v1079_v44 = vadd.f32 %v1078_v41, %v2194_v49  ;;  %v1579_v3 = vpack.c.bf16 %v1148_v38, %v1146_v33  ;;  %v1152_v21 = vadd.f32 %v1151_v20, %v2197_v50 }
 0x16e   :  { %1374 = vst [vmem:[%s2282_s3 + $0x90] sm:$0xff] %v1578_v42  ;;  %v1582_v22 = vpack.c.bf16 %v1079_v44, %v1077_v39  ;;  %1375 = vst [vmem:[%s2282_s3 + $0x98] sm:$0xff] %v1579_v3  ;;  %v1583_v45 = vpack.c.bf16 %v1152_v21, %v1150_v43 }
 0x170   :  { %1378 = vst [vmem:[%s2282_s3 + $0xb0] sm:$0xff] %v1582_v22  ;;  %v1082_v51 = vpop.f32.mrb[28].mxu0  ;;  %1379 = vst [vmem:[%s2282_s3 + $0xb8] sm:$0xff] %v1583_v45  ;;  %v1155_v53 = vpop.f32.mrb[28].mxu1 }
 0x171   :  { %v1083_v52 = vadd.f32 %v1082_v51, %v2188_v46  ;;  %v1084_v54 = vpop.f32.mrb[29].mxu0  ;;  %v1156_v57 = vadd.f32 %v1155_v53, %v2191_v47  ;;  %v1157_v58 = vpop.f32.mrb[29].mxu1 }
 0x172   :  { %v1085_v19 = vadd.f32 %v1084_v54, %v2194_v49  ;;  %v1086_v59 = vpop.f32.mrb[30].mxu0  ;;  %v1158_v60 = vadd.f32 %v1157_v58, %v2197_v50  ;;  %v1159_v62 = vpop.f32.mrb[30].mxu1 }
 0x173   :  { %v1087_v61 = vadd.f32 %v1086_v59, %v2188_v46  ;;  %v1088_v63 = vpop.f32.mrb[31].mxu0  ;;  %v1160_v37 = vadd.f32 %v1159_v62, %v2191_v47  ;;  %v1161_v2 = vpop.f32.mrb[31].mxu1 }
 0x174   :  { %v1586_v0 = vpack.c.bf16 %v1085_v19, %v1083_v52  ;;  %v1089_v1 = vadd.f32 %v1088_v63, %v2194_v49  ;;  %v1587_v4 = vpack.c.bf16 %v1158_v60, %v1156_v57  ;;  %v1162_v5 = vadd.f32 %v1161_v2, %v2197_v50 }
 0x176   :  { %1382 = vst [vmem:[%s2282_s3 + $0xd0] sm:$0xff] %v1586_v0  ;;  %v1590_v6 = vpack.c.bf16 %v1089_v1, %v1087_v61  ;;  %1383 = vst [vmem:[%s2282_s3 + $0xd8] sm:$0xff] %v1587_v4  ;;  %v1591_v46 = vpack.c.bf16 %v1162_v5, %v1160_v37 }
 0x178   :  { %1386 = vst [vmem:[%s2282_s3 + $0xf0] sm:$0xff] %v1590_v6  ;;  %1387 = vst [vmem:[%s2282_s3 + $0xf8] sm:$0xff] %v1591_v46 }

// kernel: task_learner_forward.6
= control target key start
LH: loop header
LB: loop body
LE: loop exit
PB: predicated region body
PF: predicated region fallthrough
CT: control target
= control target key end

     0   :  { %v13636_v3 = vmov 0.0|0.0   ;;  %v13633_v29 = vmov 0   ;;  %s13629_s2 = inlined_call_operand.vmem [shape: bf16[256,1024], index: 2, kind: input, shape index: {}]   ;;  %s13630_s1 = inlined_call_operand.vmem [shape: f32[8,8,1], index: 1, kind: input, shape index: {}]   ;;  %s13631_s0 = inlined_call_operand.vmem [shape: bf16[8,8,1024], index: 0, kind: input, shape index: {}]   ;;  %s13632_s3 = inlined_call_operand.vmem [shape: bf16[8,8,256], index: 3, kind: output, shape index: {}]  }
   0x1   :  { %v15_v0 = vld [vmem:[%s13629_s2] sm:$0xff]  ;;  %815 = vmatprep.mubr.bf16.mxu0 %v13636_v3  ;;  %856 = vmatprep.mubr.bf16.mxu1 %v13636_v3  ;;  %v16_v10 = vld [vmem:[%s13629_s2 + $0x8] sm:$0xff] }
   0x2   :  { %v19_v1 = vld [vmem:[%s13629_s2 + $0x20] sm:$0xff]  ;;  %v20_v11 = vld [vmem:[%s13629_s2 + $0x28] sm:$0xff]  ;;  %9392 = vset.pattern.permute.xlu0 %v13633_v29  ;;  %9393 = vset.pattern.permute.xlu1 %v13633_v29 }
   0x3   :  { %v23_v2 = vld [vmem:[%s13629_s2 + $0x40] sm:$0xff]  ;;  %v9683_v4 = vcombine.high %v15_v0, %v19_v1  ;;  %v9685_v5 = vcombine.low %v15_v0, %v19_v1  ;;  %v9708_v13 = vcombine.high %v16_v10, %v20_v11  ;;  %v9710_v14 = vcombine.low %v16_v10, %v20_v11  ;;  %v24_v15 = vld [vmem:[%s13629_s2 + $0x48] sm:$0xff] }
   0x4   :  { %v27_v6 = vld [vmem:[%s13629_s2 + $0x60] sm:$0xff]  ;;  %v28_v16 = vld [vmem:[%s13629_s2 + $0x68] sm:$0xff] }
   0x5   :  { %v9690_v7 = vcombine.high %v23_v2, %v27_v6  ;;  %v31_v8 = vld [vmem:[%s13629_s2 + $0x80] sm:$0xff]  ;;  %783 = vmatprep.subr.bf16.mxu0 %v9683_v4  ;;  %v9706_v12 = vcombine.low %v23_v2, %v27_v6  ;;  %v9721_v18 = vcombine.high %v24_v15, %v28_v16  ;;  %v32_v19 = vld [vmem:[%s13629_s2 + $0x88] sm:$0xff]  ;;  %824 = vmatprep.subr.bf16.mxu1 %v9708_v13 }
   0x6   :  { %v35_v9 = vld [vmem:[%s13629_s2 + $0xa0] sm:$0xff]  ;;  %784 = vmatpush1.bf16.msra.mxu0 %v9685_v5  ;;  %v36_v20 = vld [vmem:[%s13629_s2 + $0xa8] sm:$0xff]  ;;  %825 = vmatpush1.bf16.msra.mxu1 %v9710_v14  ;;  %v9737_v23 = vcombine.low %v24_v15, %v28_v16 }
   0x7   :  { %785 = vmatprep.subr.bf16.mxu0 %v9690_v7  ;;  %v9719_v17 = vcombine.high %v31_v8, %v35_v9  ;;  %v39_v21 = vld [vmem:[%s13629_s2 + $0xc0] sm:$0xff]  ;;  %v9740_v24 = vcombine.low %v31_v8, %v35_v9  ;;  %826 = vmatprep.subr.bf16.mxu1 %v9721_v18  ;;  %v9743_v25 = vcombine.high %v32_v19, %v36_v20  ;;  %v40_v27 = vld [vmem:[%s13629_s2 + $0xc8] sm:$0xff] }
   0x8   :  { %v43_v22 = vld [vmem:[%s13629_s2 + $0xe0] sm:$0xff]  ;;  %v44_v28 = vld [vmem:[%s13629_s2 + $0xe8] sm:$0xff]  ;;  %v9763_v32 = vcombine.low %v32_v19, %v36_v20 }
   0x9   :  { %v9746_v26 = vcombine.high %v39_v21, %v43_v22  ;;  %v47_v30 = vld [vmem:[%s13629_s2 + $0x100] sm:$0xff]  ;;  %v9766_v33 = vcombine.low %v39_v21, %v43_v22  ;;  %v9769_v34 = vcombine.high %v40_v27, %v44_v28  ;;  %v48_v36 = vld [vmem:[%s13629_s2 + $0x108] sm:$0xff]  ;;  %v9787_v40 = vcombine.low %v40_v27, %v44_v28 }
   0xa   :  { %786 = vmatpush1.bf16.msra.mxu0 %v9706_v12  ;;  %v51_v31 = vld [vmem:[%s13629_s2 + $0x120] sm:$0xff]  ;;  %827 = vmatpush1.bf16.msra.mxu1 %v9737_v23  ;;  %v52_v37 = vld [vmem:[%s13629_s2 + $0x128] sm:$0xff] }
   0xb   :  { %787 = vmatprep.subr.bf16.mxu0 %v9719_v17  ;;  %828 = vmatprep.subr.bf16.mxu1 %v9743_v25  ;;  %v9772_v35 = vcombine.high %v47_v30, %v51_v31  ;;  %v55_v38 = vld [vmem:[%s13629_s2 + $0x140] sm:$0xff]  ;;  %v9790_v41 = vcombine.low %v47_v30, %v51_v31  ;;  %v9793_v42 = vcombine.high %v48_v36, %v52_v37  ;;  %v56_v44 = vld [vmem:[%s13629_s2 + $0x148] sm:$0xff] }
   0xc   :  { %v59_v39 = vld [vmem:[%s13629_s2 + $0x160] sm:$0xff]  ;;  %v60_v45 = vld [vmem:[%s13629_s2 + $0x168] sm:$0xff]  ;;  %v9809_v48 = vcombine.low %v48_v36, %v52_v37 }
   0xd   :  { %v8279_v43 = vcombine.high %v55_v38, %v59_v39  ;;  %v63_v46 = vld [vmem:[%s13629_s2 + $0x180] sm:$0xff]  ;;  %v8278_v49 = vcombine.low %v55_v38, %v59_v39  ;;  %v9813_v50 = vcombine.high %v56_v44, %v60_v45  ;;  %v64_v52 = vld [vmem:[%s13629_s2 + $0x188] sm:$0xff]  ;;  %v9828_v56 = vcombine.low %v56_v44, %v60_v45 }
   0xe   :  { %788 = vmatpush1.bf16.msra.mxu0 %v9740_v24  ;;  %829 = vmatpush1.bf16.msra.mxu1 %v9763_v32  ;;  %v67_v47 = vld [vmem:[%s13629_s2 + $0x1a0] sm:$0xff]  ;;  %v68_v53 = vld [vmem:[%s13629_s2 + $0x1a8] sm:$0xff] }
   0xf   :  { %789 = vmatprep.subr.bf16.mxu0 %v9746_v26  ;;  %830 = vmatprep.subr.bf16.mxu1 %v9769_v34  ;;  %v8287_v51 = vcombine.high %v63_v46, %v67_v47  ;;  %v71_v54 = vld [vmem:[%s13629_s2 + $0x1c0] sm:$0xff]  ;;  %v8286_v57 = vcombine.low %v63_v46, %v67_v47  ;;  %v9831_v58 = vcombine.high %v64_v52, %v68_v53  ;;  %v72_v60 = vld [vmem:[%s13629_s2 + $0x1c8] sm:$0xff] }
  0x10   :  { %v75_v55 = vld [vmem:[%s13629_s2 + $0x1e0] sm:$0xff]  ;;  %v76_v61 = vld [vmem:[%s13629_s2 + $0x1e8] sm:$0xff]  ;;  %v9846_v0 = vcombine.low %v64_v52, %v68_v53 }
  0x11   :  { %v8295_v59 = vcombine.high %v71_v54, %v75_v55  ;;  %v79_v62 = vld [vmem:[%s13629_s2 + $0x200] sm:$0xff]  ;;  %v8294_v1 = vcombine.low %v71_v54, %v75_v55  ;;  %v9849_v2 = vcombine.high %v72_v60, %v76_v61  ;;  %v80_v8 = vld [vmem:[%s13629_s2 + $0x208] sm:$0xff]  ;;  %v9864_v15 = vcombine.low %v72_v60, %v76_v61  ;;  %v8368_v55 = vld [vmem:[%s13630_s1 + $0x38] sm:$0xff] }
  0x12   :  { %790 = vmatpush1.bf16.msra.mxu0 %v9766_v33  ;;  %831 = vmatpush1.bf16.msra.mxu1 %v9787_v40  ;;  %v83_v63 = vld [vmem:[%s13629_s2 + $0x220] sm:$0xff]  ;;  %v84_v9 = vld [vmem:[%s13629_s2 + $0x228] sm:$0xff]  ;;  %vm972_vm0 = vcmp.ne.f32.partialorder %v8368_v55, 0.0 }
  0x13   :  { %791 = vmatprep.subr.bf16.mxu0 %v9772_v35  ;;  %832 = vmatprep.subr.bf16.mxu1 %v9793_v42  ;;  %v8303_v6 = vcombine.high %v79_v62, %v83_v63  ;;  %v87_v10 = vld [vmem:[%s13629_s2 + $0x240] sm:$0xff]  ;;  %v8302_v16 = vcombine.low %v79_v62, %v83_v63  ;;  %v9867_v19 = vcombine.high %v80_v8, %v84_v9  ;;  %v88_v21 = vld [vmem:[%s13629_s2 + $0x248] sm:$0xff]  ;;  %v9930_v62 = vsel %vm972_vm0, 1, %v13633_v29 }
  0x14   :  { %v91_v11 = vld [vmem:[%s13629_s2 + $0x260] sm:$0xff]  ;;  %v92_v22 = vld [vmem:[%s13629_s2 + $0x268] sm:$0xff]  ;;  %v9882_v30 = vcombine.low %v80_v8, %v84_v9  ;;  %1031 = vperm.xlu0 %9392, %v9930_v62  }
  0x15   :  { %v8311_v20 = vcombine.high %v87_v10, %v91_v11  ;;  %v95_v27 = vld [vmem:[%s13629_s2 + $0x280] sm:$0xff]  ;;  %v8310_v31 = vcombine.low %v87_v10, %v91_v11  ;;  %v9885_v36 = vcombine.high %v88_v21, %v92_v22  ;;  %v96_v38 = vld [vmem:[%s13629_s2 + $0x288] sm:$0xff]  ;;  %v9900_v45 = vcombine.low %v88_v21, %v92_v22 }
  0x16   :  { %792 = vmatpush1.bf16.msra.mxu0 %v9790_v41  ;;  %833 = vmatpush1.bf16.msra.mxu1 %v9809_v48  ;;  %v99_v28 = vld [vmem:[%s13629_s2 + $0x2a0] sm:$0xff]  ;;  %v100_v39 = vld [vmem:[%s13629_s2 + $0x2a8] sm:$0xff] }
  0x17   :  { %793 = vmatprep.subr.bf16.mxu0 %v8279_v43  ;;  %834 = vmatprep.subr.bf16.mxu1 %v9813_v50  ;;  %v8319_v37 = vcombine.high %v95_v27, %v99_v28  ;;  %v103_v43 = vld [vmem:[%s13629_s2 + $0x2c0] sm:$0xff]  ;;  %v8318_v46 = vcombine.low %v95_v27, %v99_v28  ;;  %v9903_v47 = vcombine.high %v96_v38, %v100_v39  ;;  %v108_v52 = vld [vmem:[%s13629_s2 + $0x2e8] sm:$0xff] }
  0x18   :  { %v107_v44 = vld [vmem:[%s13629_s2 + $0x2e0] sm:$0xff]  ;;  %v8675_v63 = vld [vmem:[%s13630_s1 + $0x28] sm:$0xff] }
  0x19   :  { %v111_v53 = vld [vmem:[%s13629_s2 + $0x300] sm:$0xff]  ;;  %v8326_v60 = vcombine.low %v103_v43, %v107_v44  ;;  %v116_v8 = vld [vmem:[%s13629_s2 + $0x328] sm:$0xff]  ;;  %vm3031_vm2 = vcmp.ne.f32.partialorder %v8675_v63, 0.0 }
  0x1a   :  { %794 = vmatpush1.bf16.msra.mxu0 %v8278_v49  ;;  %835 = vmatpush1.bf16.msra.mxu1 %v9828_v56  ;;  %v8327_v49 = vcombine.high %v103_v43, %v107_v44  ;;  %v115_v54 = vld [vmem:[%s13629_s2 + $0x320] sm:$0xff]  ;;  %v120_v28 = vld [vmem:[%s13629_s2 + $0x348] sm:$0xff] }
  0x1b   :  { %795 = vmatprep.subr.bf16.mxu0 %v8287_v51  ;;  %836 = vmatprep.subr.bf16.mxu1 %v9831_v58  ;;  %v104_v51 = vld [vmem:[%s13629_s2 + $0x2c8] sm:$0xff]  ;;  %v119_v9 = vld [vmem:[%s13629_s2 + $0x340] sm:$0xff] }
  0x1c   :  { %v9927_v61 = vcombine.high %v104_v51, %v108_v52  ;;  %v123_v10 = vld [vmem:[%s13629_s2 + $0x360] sm:$0xff] }
  0x1d   :  { %v8817_v22 = vld [vmem:[%s13630_s1 + $0x20] sm:$0xff]  ;;  %v8343_v27 = vcombine.high %v119_v9, %v123_v10  ;;  %v8342_v44 = vcombine.low %v119_v9, %v123_v10  ;;  %v136_v9 = vld [vmem:[%s13629_s2 + $0x3c8] sm:$0xff] }
  0x1e   :  { %796 = vmatpush1.bf16.msra.mxu0 %v8286_v57  ;;  %837 = vmatpush1.bf16.msra.mxu1 %v9846_v0  ;;  %v9921_v57 = vcombine.low %v96_v38, %v100_v39  ;;  %v131_v38 = vld [vmem:[%s13629_s2 + $0x3a0] sm:$0xff]  ;;  %v3089_v39 = vsel %vm3031_vm2, 1, %v13633_v29  ;;  %vm4063_vm3 = vcmp.ne.f32.partialorder %v8817_v22, 0.0  ;;  %v140_v10 = vld [vmem:[%s13629_s2 + $0x3e8] sm:$0xff] }
  0x1f   :  { %797 = vmatprep.subr.bf16.mxu0 %v8295_v59  ;;  %838 = vmatprep.subr.bf16.mxu1 %v9849_v2  ;;  %v968_v59 = vld [vmem:[%s13630_s1] sm:$0xff] }
  0x20   :  { %vm969_vm1 = vcmp.ne.f32.partialorder %v968_v59, 0.0  ;;  %v139_v55 = vld [vmem:[%s13629_s2 + $0x3e0] sm:$0xff]  ;;  %v4121_v59 = vsel %vm4063_vm3, 1, %v13633_v29 }
  0x21   :  { %v1021_v11 = vsel %vm969_vm1, 1, %v13633_v29 }
  0x22   :  { %798 = vmatpush1.bf16.msra.mxu0 %v8294_v1  ;;  %839 = vmatpush1.bf16.msra.mxu1 %v9864_v15  ;;  %v8335_v1 = vcombine.high %v111_v53, %v115_v54 }
  0x23   :  { %799 = vmatprep.subr.bf16.mxu0 %v8303_v6  ;;  %840 = vmatprep.subr.bf16.mxu1 %v9867_v19  ;;  %v112_v6 = vld [vmem:[%s13629_s2 + $0x308] sm:$0xff] }
  0x24   :  { %v9953_v21 = vcombine.high %v112_v6, %v116_v8  ;;  %1023 = vperm.xlu0 %9392, %v1021_v11   ;;  %v9972_v43 = vcombine.low %v112_v6, %v116_v8  ;;  %v9101_v6 = vld [vmem:[%s13630_s1 + $0x10] sm:$0xff] }
  0x25   :  { %v17_v11 = vld [vmem:[%s13629_s2 + $0x10] sm:$0xff]  ;;  %vm6117_vm5 = vcmp.ne.f32.partialorder %v9101_v6, 0.0  ;;  %v30_v6 = vld [vmem:[%s13629_s2 + $0x78] sm:$0xff] }
  0x26   :  { %800 = vmatpush1.bf16.msra.mxu0 %v8302_v16  ;;  %841 = vmatpush1.bf16.msra.mxu1 %v9882_v30  ;;  %v9950_v16 = vcombine.low %v104_v51, %v108_v52  ;;  %v128_v52 = vld [vmem:[%s13629_s2 + $0x388] sm:$0xff] }
  0x27   :  { %801 = vmatprep.subr.bf16.mxu0 %v8311_v20  ;;  %842 = vmatprep.subr.bf16.mxu1 %v9885_v36  ;;  %v8334_v20 = vcombine.low %v111_v53, %v115_v54  ;;  %v132_v53 = vld [vmem:[%s13629_s2 + $0x3a8] sm:$0xff]  ;;  %v135_v54 = vld [vmem:[%s13629_s2 + $0x3c0] sm:$0xff] }
  0x28   :  { %3091 = vperm.xlu0 %9392, %v3089_v39   ;;  %v8359_v8 = vcombine.high %v135_v54, %v139_v55  ;;  %v22_v39 = vld [vmem:[%s13629_s2 + $0x38] sm:$0xff] }
  0x2a   :  { %802 = vmatpush1.bf16.msra.mxu0 %v8310_v31  ;;  %843 = vmatpush1.bf16.msra.mxu1 %v9900_v45  ;;  %v124_v31 = vld [vmem:[%s13629_s2 + $0x368] sm:$0xff] }
  0x2b   :  { %803 = vmatprep.subr.bf16.mxu0 %v8319_v37  ;;  %844 = vmatprep.subr.bf16.mxu1 %v9903_v47  ;;  %v127_v37 = vld [vmem:[%s13629_s2 + $0x380] sm:$0xff] }
  0x2c   :  { %v8351_v51 = vcombine.high %v127_v37, %v131_v38  ;;  %v8350_v63 = vcombine.low %v127_v37, %v131_v38  ;;  %4123 = vperm.xlu0 %9392, %v4121_v59   ;;  %v18_v38 = vld [vmem:[%s13629_s2 + $0x18] sm:$0xff] }
  0x2e   :  { %804 = vmatpush1.bf16.msra.mxu0 %v8318_v46  ;;  %845 = vmatpush1.bf16.msra.mxu1 %v9921_v57  ;;  %v9975_v46 = vcombine.high %v120_v28, %v124_v31 }
  0x2f   :  { %805 = vmatprep.subr.bf16.mxu0 %v8327_v49  ;;  %846 = vmatprep.subr.bf16.mxu1 %v9927_v61  ;;  %v8959_v49 = vld [vmem:[%s13630_s1 + $0x18] sm:$0xff] }
  0x30   :  { %vm5091_vm4 = vcmp.ne.f32.partialorder %v8959_v49, 0.0  ;;  %v25_v49 = vld [vmem:[%s13629_s2 + $0x50] sm:$0xff] }
  0x31   :  { %v5148_v22 = vsel %vm5091_vm4, 1, %v13633_v29 }
  0x32   :  { %806 = vmatpush1.bf16.msra.mxu0 %v8326_v60  ;;  %847 = vmatpush1.bf16.msra.mxu1 %v9950_v16  ;;  %v9994_v60 = vcombine.low %v120_v28, %v124_v31  ;;  %v8358_v28 = vcombine.low %v135_v54, %v139_v55  ;;  %v10019_v31 = vcombine.high %v136_v9, %v140_v10 }
  0x33   :  { %807 = vmatprep.subr.bf16.mxu0 %v8335_v1  ;;  %848 = vmatprep.subr.bf16.mxu1 %v9953_v21  ;;  %v9997_v1 = vcombine.high %v128_v52, %v132_v53  ;;  %v10043_v55 = vcombine.high %v18_v38, %v22_v39 }
  0x34   :  { %5150 = vperm.xlu0 %9392, %v5148_v22  }
  0x36   :  { %808 = vmatpush1.bf16.msra.mxu0 %v8334_v20  ;;  %849 = vmatpush1.bf16.msra.mxu1 %v9972_v43  ;;  %v21_v20 = vld [vmem:[%s13629_s2 + $0x30] sm:$0xff] }
  0x37   :  { %809 = vmatprep.subr.bf16.mxu0 %v8343_v27  ;;  %850 = vmatprep.subr.bf16.mxu1 %v9975_v46  ;;  %v10016_v27 = vcombine.low %v128_v52, %v132_v53  ;;  %v8243_v37 = vcombine.high %v17_v11, %v21_v20  ;;  %v10037_v52 = vsel %vm6117_vm5, 1, %v13633_v29  ;;  %v10040_v53 = vcombine.low %v136_v9, %v140_v10  ;;  %v37_v9 = vld [vmem:[%s13629_s2 + $0xb0] sm:$0xff] }
  0x38   :  { %13893 = vst [vmem:[#allocation2_spill] sm:$0xff] %v10037_v52  ;;  %v8242_v54 = vcombine.low %v17_v11, %v21_v20  ;;  %6176 = vperm.xlu0 %9392, %v10037_v52   ;;  %v10060_v10 = vcombine.low %v18_v38, %v22_v39  ;;  %v38_v38 = vld [vmem:[%s13629_s2 + $0xb8] sm:$0xff]  ;;  %v41_v39 = vld [vmem:[%s13629_s2 + $0xd0] sm:$0xff] }
  0x3a   :  { %810 = vmatpush1.bf16.msra.mxu0 %v8342_v44  ;;  %851 = vmatpush1.bf16.msra.mxu1 %v9994_v60  ;;  %v9243_v44 = vld [vmem:[%s13630_s1 + $0x8] sm:$0xff]  ;;  %13894 = vst [vmem:[#allocation3_spill] sm:$0xff] %v10060_v10 }
  0x3b   :  { %811 = vmatprep.subr.bf16.mxu0 %v8351_v51  ;;  %852 = vmatprep.subr.bf16.mxu1 %v9997_v1  ;;  %v29_v51 = vld [vmem:[%s13629_s2 + $0x70] sm:$0xff]  ;;  %vm7143_vm6 = vcmp.ne.f32.partialorder %v9243_v44, 0.0 }
  0x3c   :  { %v8251_v59 = vcombine.high %v25_v49, %v29_v51  ;;  %v10063_v11 = vsel %vm7143_vm6, 1, %v13633_v29  ;;  %v8250_v20 = vcombine.low %v25_v49, %v29_v51  ;;  %v45_v44 = vld [vmem:[%s13629_s2 + $0xf0] sm:$0xff]  ;;  %v42_v29 = vld [vmem:[%s13629_s2 + $0xd8] sm:$0xff] }
  0x3d   :  { %7202 = vperm.xlu0 %9392, %v10063_v11  }
  0x3e   :  { %812 = vmatpush1.bf16.msra.mxu0 %v8350_v63  ;;  %853 = vmatpush1.bf16.msra.mxu1 %v10016_v27  ;;  %v26_v63 = vld [vmem:[%s13629_s2 + $0x58] sm:$0xff] }
  0x3f   :  { %813 = vmatprep.subr.bf16.mxu0 %v8359_v8  ;;  %854 = vmatprep.subr.bf16.mxu1 %v10019_v31  ;;  %v33_v8 = vld [vmem:[%s13629_s2 + $0x90] sm:$0xff]  ;;  %v10066_v22 = vcombine.high %v26_v63, %v30_v6  ;;  %v10084_v49 = vcombine.low %v26_v63, %v30_v6 }
  0x40   :  { %v8258_v51 = vcombine.low %v33_v8, %v37_v9  ;;  %v49_v63 = vld [vmem:[%s13629_s2 + $0x110] sm:$0xff] }
  0x41   :  { %13895 = vst [vmem:[#allocation4_spill] sm:$0xff] %v10066_v22  ;;  %13896 = vst [vmem:[#allocation5_spill] sm:$0xff] %v10084_v49  ;;  %v53_v6 = vld [vmem:[%s13629_s2 + $0x130] sm:$0xff]  ;;  %8220 = vperm.xlu0 %9392, %v9930_v62   ;;  %v54_v62 = vld [vmem:[%s13629_s2 + $0x138] sm:$0xff] }
  0x42   :  { %814 = vmatpush1.bf16.msra.mxu0 %v8358_v28  ;;  %855 = vmatpush1.bf16.msra.mxu1 %v10040_v53  ;;  %v8259_v28 = vcombine.high %v33_v8, %v37_v9  ;;  %v8266_v9 = vcombine.low %v41_v39, %v45_v44 }
  0x43   :  { %865 = vmatprep.subr.bf16.mxu0 %v8243_v37  ;;  %906 = vmatprep.subr.bf16.mxu1 %v10043_v55  ;;  %v34_v37 = vld [vmem:[%s13629_s2 + $0x98] sm:$0xff] }
  0x44   :  { %v10104_v8 = vcombine.low %v34_v37, %v38_v38 }
  0x45   :  { %816 = vmatmul.mubr.bf16.vlgmr.msra.gmra.mrb[0].mxu0 %v13636_v3  ;;  %857 = vmatmul.mubr.bf16.vlgmr.msra.gmra.mrb[0].mxu1 %v13636_v3 }
  0x46   :  { %866 = vmatpush1.bf16.msra.mxu0 %v8242_v54  ;;  %897 = vmatprep.mubr.bf16.mxu0 %v13636_v3  ;;  %v10088_v54 = vcombine.high %v34_v37, %v38_v38  ;;  %13898 = vst [vmem:[#allocation7_spill] sm:$0xff] %v10104_v8  ;;  %v57_v37 = vld [vmem:[%s13629_s2 + $0x150] sm:$0xff] }
  0x47   :  { %867 = vmatprep.subr.bf16.mxu0 %v8251_v59  ;;  %907 = vmatpush1.bf16.msra.mxu1 %v10060_v10  ;;  %v8267_v59 = vcombine.high %v41_v39, %v45_v44  ;;  %v46_v10 = vld [vmem:[%s13629_s2 + $0xf8] sm:$0xff]  ;;  %v61_v38 = vld [vmem:[%s13629_s2 + $0x170] sm:$0xff]  ;;  %v8274_v44 = vcombine.low %v49_v63, %v53_v6 }
  0x48   :  { %938 = vmatprep.mubr.bf16.mxu1 %v13636_v3  ;;  %908 = vmatprep.subr.bf16.mxu1 %v10066_v22  ;;  %13897 = vst [vmem:[#allocation6_spill] sm:$0xff] %v10088_v54  ;;  %v50_v3 = vld [vmem:[%s13629_s2 + $0x118] sm:$0xff]  ;;  %v10122_v39 = vcombine.low %v42_v29, %v46_v10 }
  0x4a   :  { %868 = vmatpush1.bf16.msra.mxu0 %v8250_v20  ;;  %v10107_v20 = vcombine.high %v42_v29, %v46_v10  ;;  %13900 = vst [vmem:[#allocation9_spill] sm:$0xff] %v10122_v39  ;;  %v65_v29 = vld [vmem:[%s13629_s2 + $0x190] sm:$0xff] }
  0x4b   :  { %869 = vmatprep.subr.bf16.mxu0 %v8259_v28  ;;  %909 = vmatpush1.bf16.msra.mxu1 %v10084_v49  ;;  %v8275_v28 = vcombine.high %v49_v63, %v53_v6  ;;  %v62_v49 = vld [vmem:[%s13629_s2 + $0x178] sm:$0xff]  ;;  %v69_v10 = vld [vmem:[%s13629_s2 + $0x1b0] sm:$0xff]  ;;  %v10140_v63 = vcombine.low %v50_v3, %v54_v62  ;;  %v8282_v6 = vcombine.low %v57_v37, %v61_v38 }
  0x4c   :  { %910 = vmatprep.subr.bf16.mxu1 %v10088_v54  ;;  %13899 = vst [vmem:[#allocation8_spill] sm:$0xff] %v10107_v20  ;;  %v58_v54 = vld [vmem:[%s13629_s2 + $0x158] sm:$0xff] }
  0x4d   :  { %13902 = vst [vmem:[#allocation11_spill] sm:$0xff] %v10140_v63 }
  0x4e   :  { %870 = vmatpush1.bf16.msra.mxu0 %v8258_v51  ;;  %v10125_v51 = vcombine.high %v50_v3, %v54_v62  ;;  %v73_v3 = vld [vmem:[%s13629_s2 + $0x1d0] sm:$0xff] }
  0x4f   :  { %871 = vmatprep.subr.bf16.mxu0 %v8267_v59  ;;  %911 = vmatpush1.bf16.msra.mxu1 %v10104_v8  ;;  %v8283_v59 = vcombine.high %v57_v37, %v61_v38  ;;  %v70_v8 = vld [vmem:[%s13629_s2 + $0x1b8] sm:$0xff]  ;;  %v77_v62 = vld [vmem:[%s13629_s2 + $0x1f0] sm:$0xff]  ;;  %v10158_v37 = vcombine.low %v58_v54, %v62_v49  ;;  %v8290_v38 = vcombine.low %v65_v29, %v69_v10 }
  0x50   :  { %912 = vmatprep.subr.bf16.mxu1 %v10107_v20  ;;  %13901 = vst [vmem:[#allocation10_spill] sm:$0xff] %v10125_v51  ;;  %v66_v20 = vld [vmem:[%s13629_s2 + $0x198] sm:$0xff] }
  0x51   :  { %13904 = vst [vmem:[#allocation13_spill] sm:$0xff] %v10158_v37 }
  0x52   :  { %872 = vmatpush1.bf16.msra.mxu0 %v8266_v9  ;;  %v10143_v9 = vcombine.high %v58_v54, %v62_v49  ;;  %v81_v49 = vld [vmem:[%s13629_s2 + $0x210] sm:$0xff] }
  0x53   :  { %873 = vmatprep.subr.bf16.mxu0 %v8275_v28  ;;  %913 = vmatpush1.bf16.msra.mxu1 %v10122_v39  ;;  %v8291_v28 = vcombine.high %v65_v29, %v69_v10  ;;  %v78_v39 = vld [vmem:[%s13629_s2 + $0x1f8] sm:$0xff]  ;;  %v85_v54 = vld [vmem:[%s13629_s2 + $0x230] sm:$0xff]  ;;  %v10176_v29 = vcombine.low %v66_v20, %v70_v8  ;;  %v8298_v10 = vcombine.low %v73_v3, %v77_v62 }
  0x54   :  { %914 = vmatprep.subr.bf16.mxu1 %v10125_v51  ;;  %13903 = vst [vmem:[#allocation12_spill] sm:$0xff] %v10143_v9  ;;  %v74_v51 = vld [vmem:[%s13629_s2 + $0x1d8] sm:$0xff] }
  0x55   :  { %13906 = vst [vmem:[#allocation15_spill] sm:$0xff] %v10176_v29 }
  0x56   :  { %874 = vmatpush1.bf16.msra.mxu0 %v8274_v44  ;;  %v10161_v44 = vcombine.high %v66_v20, %v70_v8  ;;  %v89_v8 = vld [vmem:[%s13629_s2 + $0x250] sm:$0xff] }
  0x57   :  { %875 = vmatprep.subr.bf16.mxu0 %v8283_v59  ;;  %915 = vmatpush1.bf16.msra.mxu1 %v10140_v63  ;;  %v8299_v59 = vcombine.high %v73_v3, %v77_v62  ;;  %v86_v63 = vld [vmem:[%s13629_s2 + $0x238] sm:$0xff]  ;;  %v93_v20 = vld [vmem:[%s13629_s2 + $0x270] sm:$0xff]  ;;  %v10194_v3 = vcombine.low %v74_v51, %v78_v39  ;;  %v8306_v62 = vcombine.low %v81_v49, %v85_v54 }
  0x58   :  { %916 = vmatprep.subr.bf16.mxu1 %v10143_v9  ;;  %13905 = vst [vmem:[#allocation14_spill] sm:$0xff] %v10161_v44  ;;  %v82_v9 = vld [vmem:[%s13629_s2 + $0x218] sm:$0xff] }
  0x59   :  { %13908 = vst [vmem:[#allocation17_spill] sm:$0xff] %v10194_v3 }
  0x5a   :  { %876 = vmatpush1.bf16.msra.mxu0 %v8282_v6  ;;  %v10179_v6 = vcombine.high %v74_v51, %v78_v39  ;;  %v97_v39 = vld [vmem:[%s13629_s2 + $0x290] sm:$0xff] }
  0x5b   :  { %877 = vmatprep.subr.bf16.mxu0 %v8291_v28  ;;  %917 = vmatpush1.bf16.msra.mxu1 %v10158_v37  ;;  %v8307_v28 = vcombine.high %v81_v49, %v85_v54  ;;  %v94_v37 = vld [vmem:[%s13629_s2 + $0x278] sm:$0xff]  ;;  %v101_v51 = vld [vmem:[%s13629_s2 + $0x2b0] sm:$0xff]  ;;  %v10212_v49 = vcombine.low %v82_v9, %v86_v63  ;;  %v8314_v54 = vcombine.low %v89_v8, %v93_v20 }
  0x5c   :  { %918 = vmatprep.subr.bf16.mxu1 %v10161_v44  ;;  %13907 = vst [vmem:[#allocation16_spill] sm:$0xff] %v10179_v6  ;;  %v90_v44 = vld [vmem:[%s13629_s2 + $0x258] sm:$0xff] }
  0x5d   :  { %13910 = vst [vmem:[#allocation19_spill] sm:$0xff] %v10212_v49 }
  0x5e   :  { %878 = vmatpush1.bf16.msra.mxu0 %v8290_v38  ;;  %v10197_v38 = vcombine.high %v82_v9, %v86_v63  ;;  %v105_v63 = vld [vmem:[%s13629_s2 + $0x2d0] sm:$0xff] }
  0x5f   :  { %879 = vmatprep.subr.bf16.mxu0 %v8299_v59  ;;  %919 = vmatpush1.bf16.msra.mxu1 %v10176_v29  ;;  %v8315_v59 = vcombine.high %v89_v8, %v93_v20  ;;  %v102_v29 = vld [vmem:[%s13629_s2 + $0x2b8] sm:$0xff]  ;;  %v109_v9 = vld [vmem:[%s13629_s2 + $0x2f0] sm:$0xff]  ;;  %v10230_v8 = vcombine.low %v90_v44, %v94_v37  ;;  %v8322_v20 = vcombine.low %v97_v39, %v101_v51 }
  0x60   :  { %920 = vmatprep.subr.bf16.mxu1 %v10179_v6  ;;  %13909 = vst [vmem:[#allocation18_spill] sm:$0xff] %v10197_v38  ;;  %v98_v6 = vld [vmem:[%s13629_s2 + $0x298] sm:$0xff] }
  0x61   :  { %13912 = vst [vmem:[#allocation21_spill] sm:$0xff] %v10230_v8 }
  0x62   :  { %880 = vmatpush1.bf16.msra.mxu0 %v8298_v10  ;;  %v10215_v10 = vcombine.high %v90_v44, %v94_v37  ;;  %v113_v37 = vld [vmem:[%s13629_s2 + $0x310] sm:$0xff] }
  0x63   :  { %881 = vmatprep.subr.bf16.mxu0 %v8307_v28  ;;  %921 = vmatpush1.bf16.msra.mxu1 %v10194_v3  ;;  %v8323_v28 = vcombine.high %v97_v39, %v101_v51  ;;  %v110_v3 = vld [vmem:[%s13629_s2 + $0x2f8] sm:$0xff]  ;;  %v117_v44 = vld [vmem:[%s13629_s2 + $0x330] sm:$0xff]  ;;  %v10248_v39 = vcombine.low %v98_v6, %v102_v29  ;;  %v8330_v51 = vcombine.low %v105_v63, %v109_v9 }
  0x64   :  { %922 = vmatprep.subr.bf16.mxu1 %v10197_v38  ;;  %13911 = vst [vmem:[#allocation20_spill] sm:$0xff] %v10215_v10  ;;  %v106_v38 = vld [vmem:[%s13629_s2 + $0x2d8] sm:$0xff] }
  0x65   :  { %13914 = vst [vmem:[#allocation23_spill] sm:$0xff] %v10248_v39 }
  0x66   :  { %882 = vmatpush1.bf16.msra.mxu0 %v8306_v62  ;;  %v10233_v62 = vcombine.high %v98_v6, %v102_v29  ;;  %v121_v29 = vld [vmem:[%s13629_s2 + $0x350] sm:$0xff] }
  0x67   :  { %883 = vmatprep.subr.bf16.mxu0 %v8315_v59  ;;  %923 = vmatpush1.bf16.msra.mxu1 %v10212_v49  ;;  %v8331_v59 = vcombine.high %v105_v63, %v109_v9  ;;  %v118_v49 = vld [vmem:[%s13629_s2 + $0x338] sm:$0xff]  ;;  %v125_v6 = vld [vmem:[%s13629_s2 + $0x370] sm:$0xff]  ;;  %v10266_v63 = vcombine.low %v106_v38, %v110_v3  ;;  %v8338_v9 = vcombine.low %v113_v37, %v117_v44 }
  0x68   :  { %924 = vmatprep.subr.bf16.mxu1 %v10215_v10  ;;  %13913 = vst [vmem:[#allocation22_spill] sm:$0xff] %v10233_v62  ;;  %v114_v10 = vld [vmem:[%s13629_s2 + $0x318] sm:$0xff] }
  0x69   :  { %13916 = vst [vmem:[#allocation25_spill] sm:$0xff] %v10266_v63 }
  0x6a   :  { %884 = vmatpush1.bf16.msra.mxu0 %v8314_v54  ;;  %v10251_v54 = vcombine.high %v106_v38, %v110_v3  ;;  %v129_v3 = vld [vmem:[%s13629_s2 + $0x390] sm:$0xff] }
  0x6b   :  { %885 = vmatprep.subr.bf16.mxu0 %v8323_v28  ;;  %925 = vmatpush1.bf16.msra.mxu1 %v10230_v8  ;;  %v8339_v28 = vcombine.high %v113_v37, %v117_v44  ;;  %v126_v8 = vld [vmem:[%s13629_s2 + $0x378] sm:$0xff]  ;;  %v133_v38 = vld [vmem:[%s13629_s2 + $0x3b0] sm:$0xff]  ;;  %v10284_v37 = vcombine.low %v114_v10, %v118_v49  ;;  %v8346_v44 = vcombine.low %v121_v29, %v125_v6 }
  0x6c   :  { %926 = vmatprep.subr.bf16.mxu1 %v10233_v62  ;;  %13915 = vst [vmem:[#allocation24_spill] sm:$0xff] %v10251_v54  ;;  %v122_v62 = vld [vmem:[%s13629_s2 + $0x358] sm:$0xff] }
  0x6e   :  { %886 = vmatpush1.bf16.msra.mxu0 %v8322_v20  ;;  %v10269_v20 = vcombine.high %v114_v10, %v118_v49  ;;  %v137_v49 = vld [vmem:[%s13629_s2 + $0x3d0] sm:$0xff] }
  0x6f   :  { %887 = vmatprep.subr.bf16.mxu0 %v8331_v59  ;;  %927 = vmatpush1.bf16.msra.mxu1 %v10248_v39  ;;  %v8347_v59 = vcombine.high %v121_v29, %v125_v6  ;;  %v134_v39 = vld [vmem:[%s13629_s2 + $0x3b8] sm:$0xff]  ;;  %v141_v10 = vld [vmem:[%s13629_s2 + $0x3f0] sm:$0xff]  ;;  %v8348_v29 = vcombine.low %v122_v62, %v126_v8  ;;  %v8354_v6 = vcombine.low %v129_v3, %v133_v38 }
  0x70   :  { %928 = vmatprep.subr.bf16.mxu1 %v10251_v54  ;;  %13917 = vst [vmem:[#allocation26_spill] sm:$0xff] %v10269_v20  ;;  %v130_v54 = vld [vmem:[%s13629_s2 + $0x398] sm:$0xff]  ;;  %v8362_v52 = vcombine.low %v137_v49, %v141_v10 }
  0x71   :  { %v8356_v22 = vcombine.low %v130_v54, %v134_v39 }
  0x72   :  { %888 = vmatpush1.bf16.msra.mxu0 %v8330_v51  ;;  %v8349_v51 = vcombine.high %v122_v62, %v126_v8 }
  0x73   :  { %889 = vmatprep.subr.bf16.mxu0 %v8339_v28  ;;  %929 = vmatpush1.bf16.msra.mxu1 %v10266_v63  ;;  %v8355_v28 = vcombine.high %v129_v3, %v133_v38  ;;  %v142_v63 = vld [vmem:[%s13629_s2 + $0x3f8] sm:$0xff]  ;;  %v13918_v3 = vmov 0.0|0.0  }
  0x74   :  { %930 = vmatprep.subr.bf16.mxu1 %v10269_v20  ;;  %v138_v20 = vld [vmem:[%s13629_s2 + $0x3d8] sm:$0xff] }
  0x75   :  { %v8365_v8 = vcombine.high %v138_v20, %v142_v63  ;;  %v8364_v62 = vcombine.low %v138_v20, %v142_v63  ;;  %v947_v20 = vld [vmem:[%s13631_s0] sm:$0xff] }
  0x76   :  { %890 = vmatpush1.bf16.msra.mxu0 %v8338_v9  ;;  %v8357_v9 = vcombine.high %v130_v54, %v134_v39  ;;  %v10425_v39 = vld [vmem:[%s13629_s2 + $0x30] sm:$0xff]  ;;  %v949_v38 = vunpack.c.l.bf16 %v947_v20 }
  0x77   :  { %891 = vmatprep.subr.bf16.mxu0 %v8347_v59  ;;  %931 = vmatpush1.bf16.msra.mxu1 %v10284_v37  ;;  %v8363_v59 = vcombine.high %v137_v49, %v141_v10 }
  0x78   :  { %932 = vmatprep.subr.bf16.mxu1 %v8349_v51 }
  0x7a   :  { %892 = vmatpush1.bf16.msra.mxu0 %v8346_v44  ;;  %v950_v44 = vunpack.c.h.bf16 %v947_v20 }
  0x7b   :  { %893 = vmatprep.subr.bf16.mxu0 %v8355_v28  ;;  %933 = vmatpush1.bf16.msra.mxu1 %v8348_v29  ;;  %v948_v28 = vld [vmem:[%s13631_s0 + $0x8] sm:$0xff] }
  0x7c   :  { %934 = vmatprep.subr.bf16.mxu1 %v8357_v9 }
  0x7e   :  { %894 = vmatpush1.bf16.msra.mxu0 %v8354_v6 }
  0x7f   :  { %895 = vmatprep.subr.bf16.mxu0 %v8363_v59  ;;  %935 = vmatpush1.bf16.msra.mxu1 %v8356_v22  ;;  %v10420_v22 = vld [vmem:[%s13629_s2 + $0x10] sm:$0xff] }
  0x80   :  { %936 = vmatprep.subr.bf16.mxu1 %v8365_v8  ;;  %v8381_v54 = vcombine.high %v10420_v22, %v10425_v39  ;;  %v8380_v63 = vcombine.low %v10420_v22, %v10425_v39  ;;  %v1070_v22 = vld [vmem:[%s13629_s2 + $0xf0] sm:$0xff]  ;;  %v13927_v39 = vld [vmem:[#allocation5_spill] sm:$0xff] }
  0x82   :  { %896 = vmatpush1.bf16.msra.mxu0 %v8362_v52 }
  0x83   :  { %1808 = vmatprep.subr.bf16.mxu0 %v9683_v4  ;;  %937 = vmatpush1.bf16.msra.mxu1 %v8364_v62  ;;  %v1080_v4 = vld [vmem:[%s13629_s2 + $0x140] sm:$0xff]  ;;  %v952_v62 = vunpack.c.h.bf16 %v948_v28 }
  0x84   :  { %1849 = vmatprep.subr.bf16.mxu1 %v9708_v13  ;;  %v1088_v13 = vld [vmem:[%s13629_s2 + $0x180] sm:$0xff] }
  0x85   :  { %898 = vmatmul.mubr.bf16.vlgmr.msra.gmra.mrb[4].mxu0 %v13918_v3 }
  0x86   :  { %1809 = vmatpush1.bf16.msra.mxu0 %v9685_v5  ;;  %939 = vmatmul.mubr.bf16.vlgmr.msra.gmra.mrb[4].mxu1 %v13918_v3  ;;  %v1084_v5 = vld [vmem:[%s13629_s2 + $0x160] sm:$0xff] }
  0x87   :  { %1810 = vmatprep.subr.bf16.mxu0 %v9690_v7  ;;  %1850 = vmatpush1.bf16.msra.mxu1 %v9710_v14  ;;  %v8417_v7 = vcombine.high %v1080_v4, %v1084_v5  ;;  %v1092_v14 = vld [vmem:[%s13629_s2 + $0x1a0] sm:$0xff] }
  0x88   :  { %1851 = vmatprep.subr.bf16.mxu1 %v9721_v18  ;;  %v8424_v18 = vcombine.low %v1088_v13, %v1092_v14 }
  0x8a   :  { %1811 = vmatpush1.bf16.msra.mxu0 %v9706_v12  ;;  %v8416_v12 = vcombine.low %v1080_v4, %v1084_v5 }
  0x8b   :  { %1812 = vmatprep.subr.bf16.mxu0 %v9719_v17  ;;  %1852 = vmatpush1.bf16.msra.mxu1 %v9737_v23  ;;  %v8425_v17 = vcombine.high %v1088_v13, %v1092_v14  ;;  %v1096_v23 = vld [vmem:[%s13629_s2 + $0x1c0] sm:$0xff]  ;;  %v951_v13 = vunpack.c.l.bf16 %v948_v28 }
  0x8c   :  { %1853 = vmatprep.subr.bf16.mxu1 %v9743_v25 }
  0x8e   :  { %1813 = vmatpush1.bf16.msra.mxu0 %v9740_v24  ;;  %v1100_v24 = vld [vmem:[%s13629_s2 + $0x1e0] sm:$0xff] }
  0x8f   :  { %1814 = vmatprep.subr.bf16.mxu0 %v9746_v26  ;;  %1854 = vmatpush1.bf16.msra.mxu1 %v9763_v32  ;;  %v8433_v25 = vcombine.high %v1096_v23, %v1100_v24  ;;  %v8432_v26 = vcombine.low %v1096_v23, %v1100_v24  ;;  %v1104_v32 = vld [vmem:[%s13629_s2 + $0x200] sm:$0xff] }
  0x90   :  { %1855 = vmatprep.subr.bf16.mxu1 %v9769_v34 }
  0x92   :  { %1815 = vmatpush1.bf16.msra.mxu0 %v9766_v33  ;;  %v1108_v33 = vld [vmem:[%s13629_s2 + $0x220] sm:$0xff] }
  0x93   :  { %1816 = vmatprep.subr.bf16.mxu0 %v9772_v35  ;;  %1856 = vmatpush1.bf16.msra.mxu1 %v9787_v40  ;;  %v8441_v34 = vcombine.high %v1104_v32, %v1108_v33  ;;  %v8440_v35 = vcombine.low %v1104_v32, %v1108_v33  ;;  %v1112_v40 = vld [vmem:[%s13629_s2 + $0x240] sm:$0xff] }
  0x94   :  { %1857 = vmatprep.subr.bf16.mxu1 %v9793_v42 }
  0x96   :  { %1817 = vmatpush1.bf16.msra.mxu0 %v9790_v41  ;;  %v1116_v41 = vld [vmem:[%s13629_s2 + $0x260] sm:$0xff] }
  0x97   :  { %1858 = vmatpush1.bf16.msra.mxu1 %v9809_v48  ;;  %1818 = vmatprep.subr.bf16.mxu0 %v8417_v7  ;;  %v8449_v42 = vcombine.high %v1112_v40, %v1116_v41  ;;  %v8448_v48 = vcombine.low %v1112_v40, %v1116_v41 }
  0x98   :  { %1859 = vmatprep.subr.bf16.mxu1 %v9813_v50  ;;  %v1120_v50 = vld [vmem:[%s13629_s2 + $0x280] sm:$0xff] }
  0x9a   :  { %1819 = vmatpush1.bf16.msra.mxu0 %v8416_v12 }
  0x9b   :  { %1860 = vmatpush1.bf16.msra.mxu1 %v9828_v56  ;;  %1820 = vmatprep.subr.bf16.mxu0 %v8425_v17  ;;  %v1124_v56 = vld [vmem:[%s13629_s2 + $0x2a0] sm:$0xff] }
  0x9c   :  { %1861 = vmatprep.subr.bf16.mxu1 %v9831_v58  ;;  %v8457_v58 = vcombine.high %v1120_v50, %v1124_v56 }
  0x9e   :  { %1821 = vmatpush1.bf16.msra.mxu0 %v8424_v18 }
  0x9f   :  { %1862 = vmatpush1.bf16.msra.mxu1 %v9846_v0  ;;  %1822 = vmatprep.subr.bf16.mxu0 %v8433_v25  ;;  %v8456_v0 = vcombine.low %v1120_v50, %v1124_v56 }
  0xa0   :  { %1863 = vmatprep.subr.bf16.mxu1 %v9849_v2  ;;  %v1128_v2 = vld [vmem:[%s13629_s2 + $0x2c0] sm:$0xff] }
  0xa2   :  { %1823 = vmatpush1.bf16.msra.mxu0 %v8432_v26 }
  0xa3   :  { %1864 = vmatpush1.bf16.msra.mxu1 %v9864_v15  ;;  %1824 = vmatprep.subr.bf16.mxu0 %v8441_v34  ;;  %v1132_v15 = vld [vmem:[%s13629_s2 + $0x2e0] sm:$0xff] }
  0xa4   :  { %1865 = vmatprep.subr.bf16.mxu1 %v9867_v19  ;;  %v8465_v19 = vcombine.high %v1128_v2, %v1132_v15 }
  0xa6   :  { %1825 = vmatpush1.bf16.msra.mxu0 %v8440_v35 }
  0xa7   :  { %1866 = vmatpush1.bf16.msra.mxu1 %v9882_v30  ;;  %1826 = vmatprep.subr.bf16.mxu0 %v8449_v42  ;;  %v8464_v30 = vcombine.low %v1128_v2, %v1132_v15 }
  0xa8   :  { %1867 = vmatprep.subr.bf16.mxu1 %v9885_v36  ;;  %v1136_v36 = vld [vmem:[%s13629_s2 + $0x300] sm:$0xff] }
  0xaa   :  { %1827 = vmatpush1.bf16.msra.mxu0 %v8448_v48  ;;  %v10440_v48 = vpop.permute.xlu0 %1031 }
  0xab   :  { %1868 = vmatpush1.bf16.msra.mxu1 %v9900_v45  ;;  %1828 = vmatprep.subr.bf16.mxu0 %v8457_v58  ;;  %v1140_v45 = vld [vmem:[%s13629_s2 + $0x320] sm:$0xff]  ;;  %vm1033_vm13 = vcmp.eq.s32.totalorder %v10440_v48, 1 }
  0xac   :  { %1869 = vmatprep.subr.bf16.mxu1 %v9903_v47  ;;  %v8473_v47 = vcombine.high %v1136_v36, %v1140_v45  ;;  %vm10502_vm14 = vmpackc.low %vm1033_vm13, %vm1033_vm13 }
  0xae   :  { %1829 = vmatpush1.bf16.msra.mxu0 %v8456_v0  ;;  %v10442_v56 = vpop.permute.xlu0 %1023 }
  0xaf   :  { %1870 = vmatpush1.bf16.msra.mxu1 %v9921_v57  ;;  %1830 = vmatprep.subr.bf16.mxu0 %v8465_v19  ;;  %v8472_v57 = vcombine.low %v1136_v36, %v1140_v45  ;;  %vm1025_vm7 = vcmp.eq.s32.totalorder %v10442_v56, 1  ;;  %v8533_v19 = vld [vmem:[%s13630_s1 + $0x30] sm:$0xff]  ;;  %v8816_v45 = vld [vmem:[%s13630_s1 + $0x18] sm:$0xff] }
  0xb0   :  { %1871 = vmatprep.subr.bf16.mxu1 %v9927_v61  ;;  %v1144_v61 = vld [vmem:[%s13629_s2 + $0x340] sm:$0xff]  ;;  %vm1999_vm8 = vcmp.ne.f32.partialorder %v8533_v19, 0.0  ;;  %vm4060_vm9 = vcmp.ne.f32.partialorder %v8816_v45, 0.0  ;;  %vm10515_vm15 = vmpackc.low %vm1025_vm7, %vm1025_vm7  ;;  %v13925_v45 = vld [vmem:[#allocation3_spill] sm:$0xff] }
  0xb2   :  { %1831 = vmatpush1.bf16.msra.mxu0 %v8464_v30  ;;  %v13919_v30 = vmov 0  }
  0xb3   :  { %1872 = vmatpush1.bf16.msra.mxu1 %v9950_v16  ;;  %1832 = vmatprep.subr.bf16.mxu0 %v8473_v47  ;;  %v1148_v16 = vld [vmem:[%s13629_s2 + $0x360] sm:$0xff]  ;;  %v2057_v36 = vsel %vm1999_vm8, 1, %v13919_v30  ;;  %v8366_v47 = vld [vmem:[%s13631_s0 + $0xf0] sm:$0xff] }
  0xb4   :  { %1873 = vmatprep.subr.bf16.mxu1 %v9953_v21  ;;  %v1152_v21 = vld [vmem:[%s13629_s2 + $0x380] sm:$0xff]  ;;  %2059 = vperm.xlu1 %9393, %v2057_v36  }
  0xb6   :  { %1833 = vmatpush1.bf16.msra.mxu0 %v8472_v57  ;;  %v8958_v57 = vld [vmem:[%s13630_s1 + $0x20] sm:$0xff] }
  0xb7   :  { %1874 = vmatpush1.bf16.msra.mxu1 %v9972_v43  ;;  %v8480_v43 = vcombine.low %v1144_v61, %v1148_v16  ;;  %vm5089_vm10 = vcmp.ne.f32.partialorder %v8958_v57, 0.0 }
  0xb8   :  { %1875 = vmatprep.subr.bf16.mxu1 %v9975_v46  ;;  %v8481_v46 = vcombine.high %v1144_v61, %v1148_v16  ;;  %2050 = vperm.xlu1 %9393, %v10063_v11   ;;  %v960_v61 = vunpack.c.l.bf16 %v8366_v47  ;;  %v13920_v16 = vld [vmem:[#allocation2_spill] sm:$0xff]  ;;  %v8367_v11 = vld [vmem:[%s13631_s0 + $0xf8] sm:$0xff] }
  0xba   :  { %1834 = vmatprep.subr.bf16.mxu0 %v8481_v46 }
  0xbb   :  { %1876 = vmatpush1.bf16.msra.mxu1 %v9994_v60  ;;  %v1156_v60 = vld [vmem:[%s13629_s2 + $0x3a0] sm:$0xff]  ;;  %1835 = vmatpush1.bf16.msra.mxu0 %v8480_v43  ;;  %v4112_v43 = vsel %vm4060_vm9, 1, %v13919_v30 }
  0xbc   :  { %1877 = vmatprep.subr.bf16.mxu1 %v9997_v1  ;;  %v8489_v1 = vcombine.high %v1152_v21, %v1156_v60  ;;  %v8488_v52 = vcombine.low %v1152_v21, %v1156_v60  ;;  %3082 = vperm.xlu1 %9393, %v13920_v16   ;;  %v961_v21 = vunpack.c.h.bf16 %v8366_v47  ;;  %v9100_v60 = vld [vmem:[%s13630_s1 + $0x28] sm:$0xff]  ;;  %v1066_v16 = vld [vmem:[%s13629_s2 + $0xd0] sm:$0xff] }
  0xbd   :  { %vm6115_vm11 = vcmp.ne.f32.partialorder %v9100_v60, 0.0  ;;  %v13929_v60 = vld [vmem:[#allocation7_spill] sm:$0xff] }
  0xbe   :  { %1836 = vmatprep.subr.bf16.mxu0 %v8489_v1 }
  0xbf   :  { %1878 = vmatpush1.bf16.msra.mxu1 %v10016_v27  ;;  %v1160_v27 = vld [vmem:[%s13629_s2 + $0x3c0] sm:$0xff]  ;;  %1837 = vmatpush1.bf16.msra.mxu0 %v8488_v52 }
  0xc0   :  { %1879 = vmatprep.subr.bf16.mxu1 %v10019_v31  ;;  %v1164_v31 = vld [vmem:[%s13629_s2 + $0x3e0] sm:$0xff]  ;;  %4114 = vperm.xlu1 %9393, %v4112_v43   ;;  %v8405_v43 = vcombine.high %v1066_v16, %v1070_v22 }
  0xc3   :  { %1880 = vmatpush1.bf16.msra.mxu1 %v10040_v53  ;;  %v8497_v53 = vcombine.high %v1160_v27, %v1164_v31 }
  0xc4   :  { %1931 = vmatprep.subr.bf16.mxu1 %v10043_v55  ;;  %v8496_v55 = vcombine.low %v1160_v27, %v1164_v31 }
  0xc5   :  { %1838 = vmatprep.subr.bf16.mxu0 %v8497_v53  ;;  %v5140_v53 = vsel %vm5089_vm10, 1, %v13919_v30 }
  0xc6   :  { %1839 = vmatpush1.bf16.msra.mxu0 %v8496_v55  ;;  %5142 = vperm.xlu1 %9393, %v5140_v53   ;;  %v1086_v53 = vld [vmem:[%s13629_s2 + $0x170] sm:$0xff] }
  0xc7   :  { %1890 = vmatprep.subr.bf16.mxu0 %v8381_v54 }
 0x118   :  { %v817_v51 = vpop.f32.mrb[0].mxu0  ;;  %v858_v8 = vpop.f32.mrb[0].mxu1 }
 0x119   :  { %v953_v49 = vadd.f32 %v949_v38, %v817_v51  ;;  %v819_v10 = vpop.f32.mrb[1].mxu0  ;;  %v860_v4 = vpop.f32.mrb[1].mxu1  ;;  %v955_v17 = vadd.f32 %v951_v13, %v858_v8  ;;  %v963_v38 = vunpack.c.h.bf16 %v8367_v11 }
 0x11a   :  { %v954_v29 = vadd.f32 %v950_v44, %v819_v10  ;;  %v821_v6 = vpop.f32.mrb[2].mxu0  ;;  %v862_v5 = vpop.f32.mrb[2].mxu1  ;;  %v956_v12 = vadd.f32 %v952_v62, %v860_v4  ;;  %v6166_v10 = vsel %vm6115_vm11, 1, %v13919_v30 }
 0x11b   :  { %v8369_v9 = vmul.f32 -1.442695, %v953_v49  ;;  %v822_v59 = vpop.f32.mrb[3].mxu0  ;;  %v863_v7 = vpop.f32.mrb[3].mxu1  ;;  %v962_v6 = vunpack.c.l.bf16 %v8367_v11  ;;  %6168 = vperm.xlu1 %9393, %v6166_v10   ;;  %v1078_v11 = vld [vmem:[%s13629_s2 + $0x130] sm:$0xff] }
 0x11c   :  { %v8370_v3 = vmul.f32 -1.442695, %v954_v29  ;;  %v8371_v14 = vmul.f32 -1.442695, %v956_v12  ;;  %v13934_v10 = vld [vmem:[#allocation12_spill] sm:$0xff] }
 0x11d   :  { %9394 = vpow2.f32 %v8369_v9  ;;  %v8168_v9 = vld [vmem:[%s13630_s1] sm:$0xff] }
 0x11e   :  { %9396 = vpow2.f32 %v8370_v3  ;;  %vm8169_vm12 = vcmp.ne.f32.partialorder %v8168_v9, 0.0  ;;  %v1102_v9 = vld [vmem:[%s13629_s2 + $0x1f0] sm:$0xff] }
 0x11f   :  { %9398 = vpow2.f32 %v8371_v14  ;;  %7194 = vperm.xlu1 %9393, %v2057_v36   ;;  %v8226_v62 = vsel %vm8169_vm12, 1, %v13919_v30  ;;  %v1062_v36 = vld [vmem:[%s13629_s2 + $0xb0] sm:$0xff] }
 0x120   :  { %9400 = vtanh.f32 %v955_v17 }
 0x123   :  { %8228 = vperm.xlu1 %9393, %v8226_v62   ;;  %v13936_v62 = vld [vmem:[#allocation14_spill] sm:$0xff] }
 0x127   :  { %v9395_v18 = vpop.eup %9394 }
 0x128   :  { %v9397_v23 = vpop.eup %9396  ;;  %v976_v24 = vadd.f32 1.0, %v9395_v18 }
 0x129   :  { %v982_v25 = vadd.f32 1.0, %v9397_v23  ;;  %v9399_v26 = vpop.eup %9398 }
 0x12a   :  { %9402 = vrcp.f32 %v976_v24  ;;  %v9401_v32 = vpop.eup %9400  ;;  %v989_v34 = vadd.f32 1.0, %v9399_v26 }
 0x12b   :  { %9404 = vrcp.f32 %v982_v25 }
 0x12c   :  { %9406 = vrcp.f32 %v989_v34  ;;  %v1050_v34 = vld [vmem:[%s13629_s2 + $0x50] sm:$0xff] }
 0x134   :  { %v9403_v33 = vpop.eup %9402 }
 0x135   :  { %v9405_v35 = vpop.eup %9404  ;;  %v993_v40 = vmul.f32 %v9403_v33, %v9401_v32 }
 0x136   :  { %v992_v41 = vmul.f32 0.0, %v9405_v35  ;;  %v9407_v50 = vpop.eup %9406  ;;  %v1054_v35 = vld [vmem:[%s13629_s2 + $0x70] sm:$0xff] }
 0x137   :  { %v8389_v30 = vcombine.high %v1050_v34, %v1054_v35  ;;  %v8388_v47 = vcombine.low %v1050_v34, %v1054_v35  ;;  %v1126_v34 = vld [vmem:[%s13629_s2 + $0x2b0] sm:$0xff]  ;;  %v13941_v35 = vld [vmem:[#allocation19_spill] sm:$0xff] }
 0x138   :  { %v10437_v42 = vadd.f32 %v993_v40, %v992_v41 }
 0x13a   :  { %9408 = vtanh.f32 %v10437_v42 }
 0x144   :  { %v9409_v58 = vpop.eup %9408 }
 0x145   :  { %v10444_v0 = vmul.f32 %v9409_v58, %v9407_v50  ;;  %v13942_v50 = vld [vmem:[#allocation20_spill] sm:$0xff] }
 0x147   :  { %v10450_v2 = vsel %vm1025_vm7, %v10444_v0, 0.0  ;;  %v10508_v58 = vpack.c.bf16 %v10444_v0, %v10444_v0  ;;  %v1058_v0 = vld [vmem:[%s13629_s2 + $0x90] sm:$0xff] }
 0x148   :  { %v1027_v15 = vpack.c.bf16 %v10450_v2, %v10450_v2  ;;  %v8397_v57 = vcombine.high %v1058_v0, %v1062_v36 }
 0x14a   :  { %1028 = vst [vmem:[%s13632_s3] sm:$0xf] %v1027_v15 }
 0x158   :  { %v899_v46 = vpop.f32.mrb[4].mxu0 }
 0x159   :  { %v964_v1 = vadd.f32 %v960_v61, %v899_v46  ;;  %v901_v27 = vpop.f32.mrb[5].mxu0  ;;  %v940_v20 = vpop.f32.mrb[4].mxu1  ;;  %v13926_v61 = vld [vmem:[#allocation4_spill] sm:$0xff] }
 0x15a   :  { %v965_v31 = vadd.f32 %v961_v21, %v901_v27  ;;  %v903_v52 = vpop.f32.mrb[6].mxu0  ;;  %v942_v51 = vpop.f32.mrb[5].mxu1  ;;  %v966_v8 = vadd.f32 %v962_v6, %v940_v20  ;;  %v13928_v21 = vld [vmem:[#allocation6_spill] sm:$0xff]  ;;  %v1074_v46 = vld [vmem:[%s13629_s2 + $0x110] sm:$0xff] }
 0x15b   :  { %v8372_v55 = vmul.f32 -1.442695, %v964_v1  ;;  %v904_v54 = vpop.f32.mrb[7].mxu0  ;;  %v944_v28 = vpop.f32.mrb[6].mxu1  ;;  %v967_v29 = vadd.f32 %v963_v38, %v942_v51  ;;  %v8404_v1 = vcombine.low %v1066_v16, %v1070_v22  ;;  %v13930_v27 = vld [vmem:[#allocation8_spill] sm:$0xff]  ;;  %v13932_v20 = vld [vmem:[#allocation10_spill] sm:$0xff] }
 0x15c   :  { %v8373_v44 = vmul.f32 -1.442695, %v965_v31  ;;  %v945_v49 = vpop.f32.mrb[7].mxu1  ;;  %v8413_v31 = vcombine.high %v1074_v46, %v1078_v11  ;;  %v1082_v52 = vld [vmem:[%s13629_s2 + $0x150] sm:$0xff]  ;;  %v8412_v54 = vcombine.low %v1074_v46, %v1078_v11  ;;  %v13933_v28 = vld [vmem:[#allocation11_spill] sm:$0xff]  ;;  %v1147_v11 = vld [vmem:[%s13629_s2 + $0x358] sm:$0xff] }
 0x15d   :  { %9410 = vpow2.f32 %v8372_v55  ;;  %v8374_v59 = vmul.f32 -1.442695, %v967_v29  ;;  %v13931_v55 = vld [vmem:[#allocation9_spill] sm:$0xff]  ;;  %v8421_v38 = vcombine.high %v1082_v52, %v1086_v53  ;;  %v1094_v51 = vld [vmem:[%s13629_s2 + $0x1b0] sm:$0xff]  ;;  %v8420_v49 = vcombine.low %v1082_v52, %v1086_v53  ;;  %v13945_v22 = vld [vmem:[#allocation23_spill] sm:$0xff] }
 0x15e   :  { %9412 = vpow2.f32 %v8373_v44  ;;  %v1090_v44 = vld [vmem:[%s13629_s2 + $0x190] sm:$0xff] }
 0x15f   :  { %9414 = vpow2.f32 %v8374_v59  ;;  %v8429_v29 = vcombine.high %v1090_v44, %v1094_v51  ;;  %v1098_v6 = vld [vmem:[%s13629_s2 + $0x1d0] sm:$0xff]  ;;  %v13935_v59 = vld [vmem:[#allocation13_spill] sm:$0xff] }
 0x160   :  { %9416 = vtanh.f32 %v966_v8  ;;  %v8428_v8 = vcombine.low %v1090_v44, %v1094_v51  ;;  %v1142_v16 = vld [vmem:[%s13629_s2 + $0x330] sm:$0xff] }
 0x161   :  { %v1150_v46 = vld [vmem:[%s13629_s2 + $0x370] sm:$0xff] }
 0x167   :  { %v9411_v3 = vpop.eup %9410 }
 0x168   :  { %v9413_v4 = vpop.eup %9412  ;;  %v1000_v5 = vadd.f32 1.0, %v9411_v3  ;;  %v8437_v3 = vcombine.high %v1098_v6, %v1102_v9 }
 0x169   :  { %v1006_v7 = vadd.f32 1.0, %v9413_v4  ;;  %v9415_v12 = vpop.eup %9414  ;;  %v1106_v4 = vld [vmem:[%s13629_s2 + $0x210] sm:$0xff] }
 0x16a   :  { %9418 = vrcp.f32 %v1000_v5  ;;  %v9417_v13 = vpop.eup %9416  ;;  %v1013_v17 = vadd.f32 1.0, %v9415_v12  ;;  %v1110_v5 = vld [vmem:[%s13629_s2 + $0x230] sm:$0xff]  ;;  %v8436_v12 = vcombine.low %v1098_v6, %v1102_v9  ;;  %v1163_v6 = vld [vmem:[%s13629_s2 + $0x3d8] sm:$0xff] }
 0x16b   :  { %9420 = vrcp.f32 %v1006_v7  ;;  %v13937_v7 = vld [vmem:[#allocation15_spill] sm:$0xff] }
 0x16c   :  { %9422 = vrcp.f32 %v1013_v17  ;;  %v1114_v17 = vld [vmem:[%s13629_s2 + $0x250] sm:$0xff] }
 0x174   :  { %v9419_v14 = vpop.eup %9418 }
 0x175   :  { %v9421_v18 = vpop.eup %9420  ;;  %v1017_v23 = vmul.f32 %v9419_v14, %v9417_v13  ;;  %v13938_v13 = vld [vmem:[#allocation16_spill] sm:$0xff]  ;;  %v8445_v14 = vcombine.high %v1106_v4, %v1110_v5 }
 0x176   :  { %v1016_v24 = vmul.f32 0.0, %v9421_v18  ;;  %v9423_v26 = vpop.eup %9422  ;;  %v1118_v18 = vld [vmem:[%s13629_s2 + $0x270] sm:$0xff] }
 0x178   :  { %v10485_v25 = vadd.f32 %v1017_v23, %v1016_v24  ;;  %v13939_v23 = vld [vmem:[#allocation17_spill] sm:$0xff]  ;;  %v8444_v24 = vcombine.low %v1106_v4, %v1110_v5  ;;  %v2072_v5 = vld [vmem:[%s13629_s2] sm:$0xff] }
 0x17a   :  { %9424 = vtanh.f32 %v10485_v25 }
 0x184   :  { %v9425_v32 = vpop.eup %9424 }
 0x185   :  { %v1020_v33 = vmul.f32 %v9425_v32, %v9423_v26  ;;  %v13940_v26 = vld [vmem:[#allocation18_spill] sm:$0xff]  ;;  %v8453_v32 = vcombine.high %v1114_v17, %v1118_v18 }
 0x187   :  { %v8505_v40 = vpack.c.bf16 %v1020_v33, %v1020_v33  ;;  %v10497_v41 = vsel %vm1033_vm13, %v1020_v33, 0.0  ;;  %v1122_v33 = vld [vmem:[%s13629_s2 + $0x290] sm:$0xff] }
 0x188   :  { %v1035_v15 = vpack.c.bf16 %v10497_v41, %v10497_v41 }
 0x189   :  { %8506 = vmatprep.mubr.msk.bf16.mxu0 %vm10502_vm14, %v8505_v40  ;;  %8512 = vmatprep.mubr.msk.bf16.mxu1 %vm10502_vm14, %v8505_v40 }
 0x18a   :  { %8509 = vmatmul.mubr.msk.bf16.vlgmr.msra.gmra.mrb[8].mxu0 %vm10515_vm15, %v10508_v58  ;;  %8515 = vmatmul.mubr.msk.bf16.vlgmr.msra.gmra.mrb[8].mxu1 %vm10515_vm15, %v10508_v58  ;;  %8375 = vst [vmem:[%s13632_s3 + $0x3c] sm:$0xf] %v1035_v15  ;;  %v8461_v15 = vcombine.high %v1122_v33, %v1126_v34 }
 0x18b   :  { %1891 = vmatpush1.bf16.msra.mxu0 %v8380_v63  ;;  %1932 = vmatpush1.bf16.msra.mxu1 %v13925_v45  ;;  %v8396_v63 = vcombine.low %v1058_v0, %v1062_v36  ;;  %v1134_v0 = vld [vmem:[%s13629_s2 + $0x2f0] sm:$0xff]  ;;  %v13943_v36 = vld [vmem:[#allocation21_spill] sm:$0xff]  ;;  %v8460_v45 = vcombine.low %v1122_v33, %v1126_v34  ;;  %v2085_v33 = vld [vmem:[%s13629_s2 + $0x68] sm:$0xff] }
 0x18c   :  { %8518 = vmatprep.mubr.msk.bf16.mxu0 %vm10502_vm14, %v8505_v40  ;;  %8524 = vmatprep.mubr.msk.bf16.mxu1 %vm10502_vm14, %v8505_v40  ;;  %v8452_v40 = vcombine.low %v1114_v17, %v1118_v18  ;;  %v2080_v18 = vld [vmem:[%s13629_s2 + $0x40] sm:$0xff] }
 0x18d   :  { %1892 = vmatprep.subr.bf16.mxu0 %v8389_v30  ;;  %1933 = vmatprep.subr.bf16.mxu1 %v13926_v61  ;;  %v1130_v30 = vld [vmem:[%s13629_s2 + $0x2d0] sm:$0xff]  ;;  %v2088_v34 = vld [vmem:[%s13629_s2 + $0x80] sm:$0xff] }
 0x18e   :  { %v1138_v61 = vld [vmem:[%s13629_s2 + $0x310] sm:$0xff] }
 0x18f   :  { %1893 = vmatpush1.bf16.msra.mxu0 %v8388_v47  ;;  %1934 = vmatpush1.bf16.msra.mxu1 %v13927_v39  ;;  %v13944_v47 = vld [vmem:[#allocation22_spill] sm:$0xff]  ;;  %v8468_v39 = vcombine.low %v1130_v30, %v1134_v0 }
 0x190   :  { %1894 = vmatprep.subr.bf16.mxu0 %v8397_v57  ;;  %1935 = vmatprep.subr.bf16.mxu1 %v13928_v21  ;;  %v8469_v57 = vcombine.high %v1130_v30, %v1134_v0  ;;  %v8477_v21 = vcombine.high %v1138_v61, %v1142_v16  ;;  %v2089_v30 = vld [vmem:[%s13629_s2 + $0x88] sm:$0xff] }
 0x191   :  { %v2093_v0 = vld [vmem:[%s13629_s2 + $0xa8] sm:$0xff] }
 0x193   :  { %1895 = vmatpush1.bf16.msra.mxu0 %v8396_v63  ;;  %1936 = vmatpush1.bf16.msra.mxu1 %v13929_v60  ;;  %v13946_v63 = vld [vmem:[#allocation24_spill] sm:$0xff]  ;;  %v1151_v60 = vld [vmem:[%s13629_s2 + $0x378] sm:$0xff] }
 0x194   :  { %1896 = vmatprep.subr.bf16.mxu0 %v8405_v43  ;;  %1937 = vmatprep.subr.bf16.mxu1 %v13930_v27  ;;  %v1146_v43 = vld [vmem:[%s13629_s2 + $0x350] sm:$0xff]  ;;  %v8476_v27 = vcombine.low %v1138_v61, %v1142_v16  ;;  %v8487_v53 = vcombine.high %v1147_v11, %v1151_v60  ;;  %v8486_v51 = vcombine.low %v1147_v11, %v1151_v60  ;;  %v2101_v61 = vld [vmem:[%s13629_s2 + $0xe8] sm:$0xff]  ;;  %v2108_v11 = vld [vmem:[%s13629_s2 + $0x120] sm:$0xff] }
 0x195   :  { %v8485_v52 = vcombine.high %v1146_v43, %v1150_v46  ;;  %v8484_v44 = vcombine.low %v1146_v43, %v1150_v46  ;;  %v2104_v46 = vld [vmem:[%s13629_s2 + $0x100] sm:$0xff]  ;;  %v2105_v60 = vld [vmem:[%s13629_s2 + $0x108] sm:$0xff] }
 0x197   :  { %1897 = vmatpush1.bf16.msra.mxu0 %v8404_v1  ;;  %1938 = vmatpush1.bf16.msra.mxu1 %v13931_v55  ;;  %v13947_v1 = vld [vmem:[#allocation25_spill] sm:$0xff]  ;;  %v1154_v55 = vld [vmem:[%s13629_s2 + $0x390] sm:$0xff] }
 0x198   :  { %1898 = vmatprep.subr.bf16.mxu0 %v8413_v31  ;;  %1939 = vmatprep.subr.bf16.mxu1 %v13932_v20  ;;  %v13948_v31 = vld [vmem:[#allocation26_spill] sm:$0xff]  ;;  %v1155_v20 = vld [vmem:[%s13629_s2 + $0x398] sm:$0xff] }
 0x19b   :  { %1899 = vmatpush1.bf16.msra.mxu0 %v8412_v54  ;;  %1940 = vmatpush1.bf16.msra.mxu1 %v13933_v28  ;;  %v1158_v54 = vld [vmem:[%s13629_s2 + $0x3b0] sm:$0xff] }
 0x19c   :  { %1900 = vmatprep.subr.bf16.mxu0 %v8421_v38  ;;  %1941 = vmatprep.subr.bf16.mxu1 %v13934_v10  ;;  %v1159_v38 = vld [vmem:[%s13629_s2 + $0x3b8] sm:$0xff]  ;;  %v8493_v28 = vcombine.high %v1154_v55, %v1158_v54  ;;  %v1162_v10 = vld [vmem:[%s13629_s2 + $0x3d0] sm:$0xff]  ;;  %v8492_v9 = vcombine.low %v1154_v55, %v1158_v54  ;;  %v2112_v55 = vld [vmem:[%s13629_s2 + $0x140] sm:$0xff] }
 0x19d   :  { %v2116_v54 = vld [vmem:[%s13629_s2 + $0x160] sm:$0xff] }
 0x19f   :  { %1901 = vmatpush1.bf16.msra.mxu0 %v8420_v49  ;;  %1942 = vmatpush1.bf16.msra.mxu1 %v13935_v59  ;;  %v8495_v49 = vcombine.high %v1155_v20, %v1159_v38  ;;  %v8494_v59 = vcombine.low %v1155_v20, %v1159_v38  ;;  %v2113_v20 = vld [vmem:[%s13629_s2 + $0x148] sm:$0xff]  ;;  %v10801_v38 = vcombine.high %v2112_v55, %v2116_v54 }
 0x1a0   :  { %1902 = vmatprep.subr.bf16.mxu0 %v8429_v29  ;;  %1943 = vmatprep.subr.bf16.mxu1 %v13936_v62  ;;  %v1166_v29 = vld [vmem:[%s13629_s2 + $0x3f0] sm:$0xff] }
 0x1a3   :  { %1903 = vmatpush1.bf16.msra.mxu0 %v8428_v8  ;;  %1944 = vmatpush1.bf16.msra.mxu1 %v13937_v7  ;;  %v8501_v8 = vcombine.high %v1162_v10, %v1166_v29  ;;  %v2076_v7 = vld [vmem:[%s13629_s2 + $0x20] sm:$0xff] }
 0x1a4   :  { %1904 = vmatprep.subr.bf16.mxu0 %v8437_v3  ;;  %1945 = vmatprep.subr.bf16.mxu1 %v13938_v13  ;;  %v8500_v3 = vcombine.low %v1162_v10, %v1166_v29  ;;  %v10681_v13 = vcombine.high %v2072_v5, %v2076_v7  ;;  %v10686_v19 = vcombine.low %v2072_v5, %v2076_v7  ;;  %v2120_v10 = vld [vmem:[%s13629_s2 + $0x180] sm:$0xff]  ;;  %v2129_v5 = vld [vmem:[%s13629_s2 + $0x1c8] sm:$0xff] }
 0x1a5   :  { %v2124_v29 = vld [vmem:[%s13629_s2 + $0x1a0] sm:$0xff] }
 0x1a7   :  { %1905 = vmatpush1.bf16.msra.mxu0 %v8436_v12  ;;  %1946 = vmatpush1.bf16.msra.mxu1 %v13939_v23  ;;  %v2073_v12 = vld [vmem:[%s13629_s2 + $0x8] sm:$0xff]  ;;  %v2084_v23 = vld [vmem:[%s13629_s2 + $0x60] sm:$0xff] }
 0x1a8   :  { %1906 = vmatprep.subr.bf16.mxu0 %v8445_v14  ;;  %1947 = vmatprep.subr.bf16.mxu1 %v13940_v26  ;;  %v2077_v14 = vld [vmem:[%s13629_s2 + $0x28] sm:$0xff]  ;;  %v10704_v26 = vcombine.low %v2080_v18, %v2084_v23 }
 0x1a9   :  { %v10690_v17 = vcombine.high %v2073_v12, %v2077_v14 }
 0x1ab   :  { %1907 = vmatpush1.bf16.msra.mxu0 %v8444_v24  ;;  %1948 = vmatpush1.bf16.msra.mxu1 %v13941_v35  ;;  %v2081_v24 = vld [vmem:[%s13629_s2 + $0x48] sm:$0xff]  ;;  %v2092_v35 = vld [vmem:[%s13629_s2 + $0xa0] sm:$0xff] }
 0x1ac   :  { %1908 = vmatprep.subr.bf16.mxu0 %v8453_v32  ;;  %1949 = vmatprep.subr.bf16.mxu1 %v13942_v50  ;;  %v10706_v32 = vcombine.high %v2080_v18, %v2084_v23  ;;  %v10720_v50 = vcombine.high %v2081_v24, %v2085_v33  ;;  %v10747_v16 = vcombine.low %v2088_v34, %v2092_v35 }
 0x1af   :  { %1909 = vmatpush1.bf16.msra.mxu0 %v8452_v40  ;;  %1950 = vmatpush1.bf16.msra.mxu1 %v13943_v36  ;;  %v10718_v40 = vcombine.low %v2081_v24, %v2085_v33  ;;  %v10731_v36 = vcombine.high %v2089_v30, %v2093_v0  ;;  %v2136_v24 = vld [vmem:[%s13629_s2 + $0x200] sm:$0xff] }
 0x1b0   :  { %1910 = vmatprep.subr.bf16.mxu0 %v8461_v15  ;;  %1951 = vmatprep.subr.bf16.mxu1 %v13944_v47  ;;  %v10722_v15 = vcombine.high %v2088_v34, %v2092_v35  ;;  %v2100_v47 = vld [vmem:[%s13629_s2 + $0xe0] sm:$0xff]  ;;  %v2137_v34 = vld [vmem:[%s13629_s2 + $0x208] sm:$0xff] }
 0x1b1   :  { %v2140_v33 = vld [vmem:[%s13629_s2 + $0x220] sm:$0xff] }
 0x1b2   :  { %v10873_v35 = vcombine.high %v2136_v24, %v2140_v33 }
 0x1b3   :  { %1911 = vmatpush1.bf16.msra.mxu0 %v8460_v45  ;;  %1952 = vmatpush1.bf16.msra.mxu1 %v13945_v22  ;;  %v2096_v45 = vld [vmem:[%s13629_s2 + $0xc0] sm:$0xff]  ;;  %v10751_v22 = vcombine.low %v2089_v30, %v2093_v0  ;;  %v2141_v30 = vld [vmem:[%s13629_s2 + $0x228] sm:$0xff]  ;;  %v10878_v0 = vcombine.low %v2136_v24, %v2140_v33 }
 0x1b4   :  { %1912 = vmatprep.subr.bf16.mxu0 %v8469_v57  ;;  %1953 = vmatprep.subr.bf16.mxu1 %v13946_v63  ;;  %v2097_v57 = vld [vmem:[%s13629_s2 + $0xc8] sm:$0xff] }
 0x1b5   :  { %v10756_v63 = vcombine.high %v2097_v57, %v2101_v61  ;;  %v10763_v43 = vcombine.low %v2097_v57, %v2101_v61  ;;  %13949 = vst [vmem:[#allocation2_spill] sm:$0xff] %v10878_v0  ;;  %v2144_v57 = vld [vmem:[%s13629_s2 + $0x240] sm:$0xff]  ;;  %v2161_v24 = vld [vmem:[%s13629_s2 + $0x2c8] sm:$0xff] }
 0x1b6   :  { %v2148_v61 = vld [vmem:[%s13629_s2 + $0x260] sm:$0xff] }
 0x1b7   :  { %1913 = vmatpush1.bf16.msra.mxu0 %v8468_v39  ;;  %1954 = vmatpush1.bf16.msra.mxu1 %v13947_v1  ;;  %v10753_v39 = vcombine.high %v2096_v45, %v2100_v47  ;;  %v10777_v1 = vcombine.high %v2104_v46, %v2108_v11 }
 0x1b8   :  { %1914 = vmatprep.subr.bf16.mxu0 %v8477_v21  ;;  %1955 = vmatprep.subr.bf16.mxu1 %v13948_v31  ;;  %v10759_v21 = vcombine.low %v2096_v45, %v2100_v47  ;;  %v10782_v31 = vcombine.low %v2104_v46, %v2108_v11  ;;  %v10880_v45 = vcombine.low %v2137_v34, %v2141_v30  ;;  %v2145_v46 = vld [vmem:[%s13629_s2 + $0x248] sm:$0xff] }
 0x1b9   :  { %v10882_v47 = vcombine.high %v2137_v34, %v2141_v30  ;;  %v10897_v11 = vcombine.high %v2144_v57, %v2148_v61  ;;  %v2165_v34 = vld [vmem:[%s13629_s2 + $0x2e8] sm:$0xff] }
 0x1ba   :  { %13950 = vst [vmem:[#allocation3_spill] sm:$0xff] %v10880_v45 }
 0x1bb   :  { %1915 = vmatpush1.bf16.msra.mxu0 %v8476_v27  ;;  %1956 = vmatpush1.bf16.msra.mxu1 %v10284_v37  ;;  %v1167_v37 = vld [vmem:[%s13629_s2 + $0x3f8] sm:$0xff]  ;;  %v2109_v27 = vld [vmem:[%s13629_s2 + $0x128] sm:$0xff]  ;;  %13951 = vst [vmem:[#allocation4_spill] sm:$0xff] %v10897_v11 }
 0x1bc   :  { %1916 = vmatprep.subr.bf16.mxu0 %v8485_v52  ;;  %1957 = vmatprep.subr.bf16.mxu1 %v8487_v53  ;;  %v8503_v62 = vcombine.high %v1163_v6, %v1167_v37  ;;  %v8502_v4 = vcombine.low %v1163_v6, %v1167_v37  ;;  %v10784_v52 = vcombine.low %v2105_v60, %v2109_v27  ;;  %v2121_v6 = vld [vmem:[%s13629_s2 + $0x188] sm:$0xff] }
 0x1bd   :  { %v10786_v53 = vcombine.high %v2105_v60, %v2109_v27  ;;  %v10825_v37 = vcombine.high %v2120_v10, %v2124_v29  ;;  %v2149_v60 = vld [vmem:[%s13629_s2 + $0x268] sm:$0xff]  ;;  %v10902_v27 = vcombine.low %v2144_v57, %v2148_v61  ;;  %v10952_v57 = vcombine.low %v2161_v24, %v2165_v34 }
 0x1be   :  { %v10954_v61 = vcombine.high %v2161_v24, %v2165_v34  ;;  %v2177_v24 = vld [vmem:[%s13629_s2 + $0x348] sm:$0xff] }
 0x1bf   :  { %1917 = vmatpush1.bf16.msra.mxu0 %v8484_v44  ;;  %1958 = vmatpush1.bf16.msra.mxu1 %v8486_v51  ;;  %v2117_v44 = vld [vmem:[%s13629_s2 + $0x168] sm:$0xff]  ;;  %v10806_v51 = vcombine.low %v2112_v55, %v2116_v54  ;;  %13952 = vst [vmem:[#allocation5_spill] sm:$0xff] %v10902_v27  ;;  %v10904_v55 = vcombine.low %v2145_v46, %v2149_v60  ;;  %13961 = vst [vmem:[#allocation14_spill] sm:$0xff] %v10952_v57 }
 0x1c0   :  { %1918 = vmatprep.subr.bf16.mxu0 %v8493_v28  ;;  %1959 = vmatprep.subr.bf16.mxu1 %v8495_v49  ;;  %v10808_v28 = vcombine.low %v2113_v20, %v2117_v44  ;;  %v10810_v49 = vcombine.high %v2113_v20, %v2117_v44  ;;  %v10906_v54 = vcombine.high %v2145_v46, %v2149_v60  ;;  %v2152_v20 = vld [vmem:[%s13629_s2 + $0x280] sm:$0xff] }
 0x1c1   :  { %13953 = vst [vmem:[#allocation6_spill] sm:$0xff] %v10904_v55  ;;  %v2156_v44 = vld [vmem:[%s13629_s2 + $0x2a0] sm:$0xff]  ;;  %13962 = vst [vmem:[#allocation15_spill] sm:$0xff] %v10954_v61 }
 0x1c2   :  { %13954 = vst [vmem:[#allocation7_spill] sm:$0xff] %v10906_v54  ;;  %v2168_v46 = vld [vmem:[%s13629_s2 + $0x300] sm:$0xff] }
 0x1c3   :  { %1919 = vmatpush1.bf16.msra.mxu0 %v8492_v9  ;;  %1960 = vmatpush1.bf16.msra.mxu1 %v8494_v59  ;;  %v2125_v9 = vld [vmem:[%s13629_s2 + $0x1a8] sm:$0xff]  ;;  %v10830_v59 = vcombine.low %v2120_v10, %v2124_v29  ;;  %v10921_v29 = vcombine.high %v2152_v20, %v2156_v44  ;;  %v2172_v60 = vld [vmem:[%s13629_s2 + $0x320] sm:$0xff] }
 0x1c4   :  { %1920 = vmatprep.subr.bf16.mxu0 %v8501_v8  ;;  %1961 = vmatprep.subr.bf16.mxu1 %v8503_v62  ;;  %v10832_v8 = vcombine.low %v2121_v6, %v2125_v9  ;;  %v10834_v62 = vcombine.high %v2121_v6, %v2125_v9  ;;  %v2153_v10 = vld [vmem:[%s13629_s2 + $0x288] sm:$0xff]  ;;  %v10926_v9 = vcombine.low %v2152_v20, %v2156_v44 }
 0x1c5   :  { %13955 = vst [vmem:[#allocation8_spill] sm:$0xff] %v10921_v29  ;;  %v2157_v6 = vld [vmem:[%s13629_s2 + $0x2a8] sm:$0xff]  ;;  %v10969_v44 = vcombine.high %v2168_v46, %v2172_v60 }
 0x1c6   :  { %13956 = vst [vmem:[#allocation9_spill] sm:$0xff] %v10926_v9  ;;  %v2169_v20 = vld [vmem:[%s13629_s2 + $0x308] sm:$0xff] }
 0x1c7   :  { %1921 = vmatpush1.bf16.msra.mxu0 %v8500_v3  ;;  %1962 = vmatpush1.bf16.msra.mxu1 %v8502_v4  ;;  %v2128_v3 = vld [vmem:[%s13629_s2 + $0x1c0] sm:$0xff]  ;;  %13963 = vst [vmem:[#allocation16_spill] sm:$0xff] %v10969_v44 }
 0x1c8   :  { %2840 = vmatprep.subr.bf16.mxu0 %v10681_v13  ;;  %2881 = vmatprep.subr.bf16.mxu1 %v10690_v17  ;;  %v2132_v4 = vld [vmem:[%s13629_s2 + $0x1e0] sm:$0xff] }
 0x1c9   :  { %v10849_v7 = vcombine.high %v2128_v3, %v2132_v4 }
 0x1ca   :  { %8521 = vmatmul.mubr.msk.bf16.vlgmr.msra.gmra.mrb[12].mxu0 %vm10515_vm15, %v10508_v58  ;;  %8527 = vmatmul.mubr.msk.bf16.vlgmr.msra.gmra.mrb[12].mxu1 %vm10515_vm15, %v10508_v58  ;;  %v10688_v58 = vcombine.low %v2073_v12, %v2077_v14  ;;  %v2133_v12 = vld [vmem:[%s13629_s2 + $0x1e8] sm:$0xff]  ;;  %v10854_v14 = vcombine.low %v2128_v3, %v2132_v4  ;;  %v10928_v3 = vcombine.low %v2153_v10, %v2157_v6 }
 0x1cb   :  { %2841 = vmatpush1.bf16.msra.mxu0 %v10686_v19  ;;  %v10856_v18 = vcombine.low %v2129_v5, %v2133_v12  ;;  %v10858_v23 = vcombine.high %v2129_v5, %v2133_v12  ;;  %v10930_v4 = vcombine.high %v2153_v10, %v2157_v6  ;;  %v2160_v5 = vld [vmem:[%s13629_s2 + $0x2c0] sm:$0xff]  ;;  %v2173_v10 = vld [vmem:[%s13629_s2 + $0x328] sm:$0xff]  ;;  %v10974_v6 = vcombine.low %v2168_v46, %v2172_v60 }
 0x1cc   :  { %2882 = vmatpush1.bf16.msra.mxu1 %v10688_v58  ;;  %2842 = vmatprep.subr.bf16.mxu0 %v10706_v32  ;;  %13957 = vst [vmem:[#allocation10_spill] sm:$0xff] %v10928_v3  ;;  %v2164_v12 = vld [vmem:[%s13629_s2 + $0x2e0] sm:$0xff]  ;;  %v10986_v34 = vcombine.low %v2169_v20, %v2173_v10  ;;  %v2181_v60 = vld [vmem:[%s13629_s2 + $0x368] sm:$0xff] }
 0x1cd   :  { %2883 = vmatprep.subr.bf16.mxu1 %v10720_v50  ;;  %13958 = vst [vmem:[#allocation11_spill] sm:$0xff] %v10930_v4  ;;  %v10945_v33 = vcombine.high %v2160_v5, %v2164_v12  ;;  %v10950_v30 = vcombine.low %v2160_v5, %v2164_v12  ;;  %13964 = vst [vmem:[#allocation17_spill] sm:$0xff] %v10974_v6  ;;  %v2176_v5 = vld [vmem:[%s13629_s2 + $0x340] sm:$0xff] }
 0x1ce   :  { %v2180_v12 = vld [vmem:[%s13629_s2 + $0x360] sm:$0xff]  ;;  %13965 = vst [vmem:[#allocation18_spill] sm:$0xff] %v10986_v34 }
 0x1cf   :  { %2843 = vmatpush1.bf16.msra.mxu0 %v10704_v26  ;;  %13959 = vst [vmem:[#allocation12_spill] sm:$0xff] %v10945_v33  ;;  %13960 = vst [vmem:[#allocation13_spill] sm:$0xff] %v10950_v30  ;;  %v10990_v46 = vcombine.high %v2176_v5, %v2180_v12 }
 0x1d0   :  { %2884 = vmatpush1.bf16.msra.mxu1 %v10718_v40  ;;  %2844 = vmatprep.subr.bf16.mxu0 %v10722_v15 }
 0x1d1   :  { %2885 = vmatprep.subr.bf16.mxu1 %v10731_v36  ;;  %13967 = vst [vmem:[#allocation20_spill] sm:$0xff] %v10990_v46 }
 0x1d3   :  { %2845 = vmatpush1.bf16.msra.mxu0 %v10747_v16 }
 0x1d4   :  { %2886 = vmatpush1.bf16.msra.mxu1 %v10751_v22  ;;  %2846 = vmatprep.subr.bf16.mxu0 %v10753_v39 }
 0x1d5   :  { %2887 = vmatprep.subr.bf16.mxu1 %v10756_v63 }
 0x1d7   :  { %2847 = vmatpush1.bf16.msra.mxu0 %v10759_v21 }
 0x1d8   :  { %2888 = vmatpush1.bf16.msra.mxu1 %v10763_v43  ;;  %2848 = vmatprep.subr.bf16.mxu0 %v10777_v1 }
 0x1d9   :  { %2889 = vmatprep.subr.bf16.mxu1 %v10786_v53 }
 0x1db   :  { %2849 = vmatpush1.bf16.msra.mxu0 %v10782_v31 }
 0x1dc   :  { %2890 = vmatpush1.bf16.msra.mxu1 %v10784_v52  ;;  %2850 = vmatprep.subr.bf16.mxu0 %v10801_v38 }
 0x1dd   :  { %2891 = vmatprep.subr.bf16.mxu1 %v10810_v49 }
 0x1df   :  { %2851 = vmatpush1.bf16.msra.mxu0 %v10806_v51 }
 0x1e0   :  { %2892 = vmatpush1.bf16.msra.mxu1 %v10808_v28  ;;  %2852 = vmatprep.subr.bf16.mxu0 %v10825_v37 }
 0x1e1   :  { %2893 = vmatprep.subr.bf16.mxu1 %v10834_v62 }
 0x1e3   :  { %2853 = vmatpush1.bf16.msra.mxu0 %v10830_v59 }
 0x1e4   :  { %2894 = vmatpush1.bf16.msra.mxu1 %v10832_v8  ;;  %2854 = vmatprep.subr.bf16.mxu0 %v10849_v7 }
 0x1e5   :  { %2895 = vmatprep.subr.bf16.mxu1 %v10858_v23 }
 0x1e7   :  { %2855 = vmatpush1.bf16.msra.mxu0 %v10854_v14 }
 0x1e8   :  { %2896 = vmatpush1.bf16.msra.mxu1 %v10856_v18  ;;  %2856 = vmatprep.subr.bf16.mxu0 %v10873_v35 }
 0x1e9   :  { %2897 = vmatprep.subr.bf16.mxu1 %v10882_v47 }
 0x1eb   :  { %2857 = vmatpush1.bf16.msra.mxu0 %v10878_v0 }
 0x1ec   :  { %2898 = vmatpush1.bf16.msra.mxu1 %v10880_v45  ;;  %2858 = vmatprep.subr.bf16.mxu0 %v10897_v11 }
 0x1ed   :  { %2899 = vmatprep.subr.bf16.mxu1 %v10906_v54 }
 0x1ef   :  { %2859 = vmatpush1.bf16.msra.mxu0 %v10902_v27 }
 0x1f0   :  { %2900 = vmatpush1.bf16.msra.mxu1 %v10904_v55  ;;  %2860 = vmatprep.subr.bf16.mxu0 %v10921_v29 }
 0x1f1   :  { %2901 = vmatprep.subr.bf16.mxu1 %v10930_v4 }
 0x1f3   :  { %2861 = vmatpush1.bf16.msra.mxu0 %v10926_v9 }
 0x1f4   :  { %2902 = vmatpush1.bf16.msra.mxu1 %v10928_v3  ;;  %2862 = vmatprep.subr.bf16.mxu0 %v10945_v33  ;;  %v2189_v33 = vld [vmem:[%s13629_s2 + $0x3a8] sm:$0xff] }
 0x1f5   :  { %2903 = vmatprep.subr.bf16.mxu1 %v10954_v61  ;;  %v2188_v61 = vld [vmem:[%s13629_s2 + $0x3a0] sm:$0xff] }
 0x1f7   :  { %2863 = vmatpush1.bf16.msra.mxu0 %v10950_v30  ;;  %v2184_v30 = vld [vmem:[%s13629_s2 + $0x380] sm:$0xff] }
 0x1f8   :  { %2904 = vmatpush1.bf16.msra.mxu1 %v10952_v57  ;;  %2864 = vmatprep.subr.bf16.mxu0 %v10969_v44  ;;  %v10988_v57 = vcombine.high %v2169_v20, %v2173_v10  ;;  %v11002_v44 = vcombine.low %v2176_v5, %v2180_v12  ;;  %v11004_v20 = vcombine.high %v2177_v24, %v2181_v60  ;;  %v2185_v10 = vld [vmem:[%s13629_s2 + $0x388] sm:$0xff]  ;;  %v2192_v12 = vld [vmem:[%s13629_s2 + $0x3c0] sm:$0xff] }
 0x1f9   :  { %v11014_v3 = vcombine.high %v2184_v30, %v2188_v61  ;;  %v11017_v5 = vcombine.low %v2177_v24, %v2181_v60  ;;  %v11026_v9 = vcombine.high %v2185_v10, %v2189_v33  ;;  %v2193_v24 = vld [vmem:[%s13629_s2 + $0x3c8] sm:$0xff] }
 0x1fa   :  { %13966 = vst [vmem:[#allocation19_spill] sm:$0xff] %v10988_v57  ;;  %13968 = vst [vmem:[#allocation21_spill] sm:$0xff] %v11002_v44  ;;  %2905 = vmatprep.subr.bf16.mxu1 %v10988_v57  ;;  %v2197_v60 = vld [vmem:[%s13629_s2 + $0x3e8] sm:$0xff] }
 0x1fb   :  { %2865 = vmatpush1.bf16.msra.mxu0 %v10974_v6  ;;  %13969 = vst [vmem:[#allocation22_spill] sm:$0xff] %v11004_v20  ;;  %13970 = vst [vmem:[#allocation23_spill] sm:$0xff] %v11014_v3  ;;  %v2196_v6 = vld [vmem:[%s13629_s2 + $0x3e0] sm:$0xff] }
 0x1fc   :  { %2866 = vmatprep.subr.bf16.mxu0 %v10990_v46  ;;  %2906 = vmatpush1.bf16.msra.mxu1 %v10986_v34  ;;  %13971 = vst [vmem:[#allocation24_spill] sm:$0xff] %v11017_v5  ;;  %13972 = vst [vmem:[#allocation25_spill] sm:$0xff] %v11026_v9  ;;  %v11029_v46 = vcombine.low %v2184_v30, %v2188_v61  ;;  %v11038_v34 = vcombine.high %v2192_v12, %v2196_v6 }
 0x1fd   :  { %2907 = vmatprep.subr.bf16.mxu1 %v11004_v20  ;;  %v11041_v20 = vcombine.low %v2185_v10, %v2189_v33  ;;  %v11044_v30 = vcombine.high %v2193_v24, %v2197_v60  ;;  %v11047_v61 = vcombine.low %v2192_v12, %v2196_v6  ;;  %v2074_v33 = vld [vmem:[%s13629_s2 + $0x10] sm:$0xff]  ;;  %v2075_v6 = vld [vmem:[%s13629_s2 + $0x18] sm:$0xff] }
 0x1fe   :  { %13973 = vst [vmem:[#allocation26_spill] sm:$0xff] %v11029_v46  ;;  %13974 = vst [vmem:[#allocation27_spill] sm:$0xff] %v11038_v34  ;;  %v2078_v10 = vld [vmem:[%s13629_s2 + $0x30] sm:$0xff] }
 0x1ff   :  { %2867 = vmatpush1.bf16.msra.mxu0 %v11002_v44  ;;  %13975 = vst [vmem:[#allocation28_spill] sm:$0xff] %v11041_v20  ;;  %13976 = vst [vmem:[#allocation29_spill] sm:$0xff] %v11044_v30  ;;  %v11051_v44 = vcombine.low %v2193_v24, %v2197_v60  ;;  %v11064_v12 = vcombine.high %v2074_v33, %v2078_v10  ;;  %v2079_v24 = vld [vmem:[%s13629_s2 + $0x38] sm:$0xff]  ;;  %v11070_v60 = vcombine.low %v2074_v33, %v2078_v10  ;;  %v8529_v33 = vld [vmem:[%s13631_s0 + $0x28] sm:$0xff] }
 0x200   :  { %2868 = vmatprep.subr.bf16.mxu0 %v11014_v3  ;;  %2908 = vmatpush1.bf16.msra.mxu1 %v11017_v5  ;;  %13977 = vst [vmem:[#allocation30_spill] sm:$0xff] %v11047_v61  ;;  %v1978_v55 = vunpack.c.h.bf16 %v8529_v33  ;;  %v1977_v27 = vunpack.c.l.bf16 %v8529_v33 }
 0x201   :  { %2909 = vmatprep.subr.bf16.mxu1 %v11026_v9  ;;  %13978 = vst [vmem:[#allocation31_spill] sm:$0xff] %v11051_v44  ;;  %13979 = vst [vmem:[#allocation32_spill] sm:$0xff] %v11064_v12 }
 0x203   :  { %2869 = vmatpush1.bf16.msra.mxu0 %v11029_v46 }
 0x204   :  { %2870 = vmatprep.subr.bf16.mxu0 %v11038_v34  ;;  %2910 = vmatpush1.bf16.msra.mxu1 %v11041_v20  ;;  %v8528_v34 = vld [vmem:[%s13631_s0 + $0x20] sm:$0xff] }
 0x205   :  { %2911 = vmatprep.subr.bf16.mxu1 %v11044_v30  ;;  %v11074_v30 = vcombine.high %v2075_v6, %v2079_v24  ;;  %v1975_v20 = vunpack.c.l.bf16 %v8528_v34  ;;  %v1976_v46 = vunpack.c.h.bf16 %v8528_v34 }
 0x207   :  { %2871 = vmatpush1.bf16.msra.mxu0 %v11047_v61  ;;  %v11072_v61 = vcombine.low %v2075_v6, %v2079_v24  ;;  %13980 = vst [vmem:[#allocation33_spill] sm:$0xff] %v11074_v30 }
 0x208   :  { %2912 = vmatpush1.bf16.msra.mxu1 %v11051_v44  ;;  %2922 = vmatprep.subr.bf16.mxu0 %v11064_v12 }
 0x209   :  { %2963 = vmatprep.subr.bf16.mxu1 %v11074_v30 }
 0x25d   :  { %v1842_v9 = vpop.f32.mrb[8].mxu0  ;;  %v1883_v3 = vpop.f32.mrb[8].mxu1 }
 0x25e   :  { %v1979_v5 = vadd.f32 %v1975_v20, %v1842_v9  ;;  %v1844_v10 = vpop.f32.mrb[9].mxu0  ;;  %v1885_v6 = vpop.f32.mrb[9].mxu1  ;;  %v1981_v9 = vadd.f32 %v1977_v27, %v1883_v3 }
 0x25f   :  { %v1980_v24 = vadd.f32 %v1976_v46, %v1844_v10  ;;  %v1846_v44 = vpop.f32.mrb[10].mxu0  ;;  %v1887_v12 = vpop.f32.mrb[10].mxu1  ;;  %v1982_v34 = vadd.f32 %v1978_v55, %v1885_v6  ;;  %v1038_v55 = vsel %vm1025_vm7, %v10437_v42, 0.0  ;;  %v8530_v42 = vld [vmem:[%s13631_s0 + $0xd0] sm:$0xff] }
 0x260   :  { %v8534_v57 = vmul.f32 -1.442695, %v1979_v5  ;;  %v1847_v30 = vpop.f32.mrb[11].mxu0  ;;  %v1888_v4 = vpop.f32.mrb[11].mxu1  ;;  %v1986_v56 = vunpack.c.l.bf16 %v8530_v42 }
 0x261   :  { %v8535_v29 = vmul.f32 -1.442695, %v1980_v24  ;;  %v8536_v54 = vmul.f32 -1.442695, %v1982_v34  ;;  %v11084_v44 = vpop.permute.xlu1 %2059  ;;  %v1987_v24 = vunpack.c.h.bf16 %v8530_v42 }
 0x262   :  { %9426 = vpow2.f32 %v8534_v57  ;;  %vm2061_vm1 = vcmp.eq.s32.totalorder %v11084_v44, 1  ;;  %v2083_v44 = vld [vmem:[%s13629_s2 + $0x58] sm:$0xff] }
 0x263   :  { %9428 = vpow2.f32 %v8535_v29 }
 0x264   :  { %9430 = vpow2.f32 %v8536_v54 }
 0x265   :  { %9432 = vtanh.f32 %v1981_v9  ;;  %v2051_v30 = vpop.permute.xlu1 %2050 }
 0x266   :  { %vm2052_vm0 = vcmp.eq.s32.totalorder %v2051_v30, 1 }
 0x26c   :  { %v9427_v20 = vpop.eup %9426 }
 0x26d   :  { %v9429_v11 = vpop.eup %9428  ;;  %v2003_v45 = vadd.f32 1.0, %v9427_v20 }
 0x26e   :  { %v2009_v0 = vadd.f32 1.0, %v9429_v11  ;;  %v9431_v46 = vpop.eup %9430 }
 0x26f   :  { %9434 = vrcp.f32 %v2003_v45  ;;  %v9433_v4 = vpop.eup %9432  ;;  %v2016_v27 = vadd.f32 1.0, %v9431_v46  ;;  %v8531_v46 = vld [vmem:[%s13631_s0 + $0xd8] sm:$0xff] }
 0x270   :  { %9436 = vrcp.f32 %v2009_v0 }
 0x271   :  { %9438 = vrcp.f32 %v2016_v27 }
 0x279   :  { %v9435_v5 = vpop.eup %9434 }
 0x27a   :  { %v9437_v57 = vpop.eup %9436  ;;  %v2020_v29 = vmul.f32 %v9435_v5, %v9433_v4 }
 0x27b   :  { %v2019_v3 = vmul.f32 %v9437_v57, %v1038_v55  ;;  %v9439_v0 = vpop.eup %9438 }
 0x27d   :  { %v2021_v54 = vadd.f32 %v2020_v29, %v2019_v3 }
 0x27f   :  { %9440 = vtanh.f32 %v2021_v54  ;;  %v11089_v45 = vsel %vm2052_vm0, %v2021_v54, %v1038_v55  ;;  %v1989_v54 = vunpack.c.h.bf16 %v8531_v46 }
 0x289   :  { %v9441_v11 = vpop.eup %9440 }
 0x28a   :  { %v2023_v12 = vmul.f32 %v9441_v11, %v9439_v0  ;;  %v1988_v11 = vunpack.c.l.bf16 %v8531_v46 }
 0x28c   :  { %v2053_v33 = vsel %vm2052_vm0, %v2023_v12, 0.0  ;;  %v11092_v10 = vsel %vm2052_vm0, %v2023_v12, %v10450_v2 }
 0x28d   :  { %v2054_v6 = vpack.c.bf16 %v2053_v33, %v2053_v33 }
 0x28f   :  { %8540 = vst [vmem:[%s13632_s3 + $0x8] sm:$0xf] %v2054_v6 }
 0x29d   :  { %v1924_v34 = vpop.f32.mrb[12].mxu0  ;;  %v1965_v9 = vpop.f32.mrb[12].mxu1 }
 0x29e   :  { %v1990_v20 = vadd.f32 %v1986_v56, %v1924_v34  ;;  %v1926_v2 = vpop.f32.mrb[13].mxu0  ;;  %v1967_v4 = vpop.f32.mrb[13].mxu1  ;;  %v1992_v33 = vadd.f32 %v1988_v11, %v1965_v9  ;;  %v2087_v11 = vld [vmem:[%s13629_s2 + $0x78] sm:$0xff] }
 0x29f   :  { %v1991_v5 = vadd.f32 %v1987_v24, %v1926_v2  ;;  %v1928_v30 = vpop.f32.mrb[14].mxu0  ;;  %v1969_v57 = vpop.f32.mrb[14].mxu1  ;;  %v1993_v0 = vadd.f32 %v1989_v54, %v1967_v4  ;;  %v2082_v54 = vld [vmem:[%s13629_s2 + $0x50] sm:$0xff] }
 0x2a0   :  { %v8537_v55 = vmul.f32 -1.442695, %v1990_v20  ;;  %v1929_v27 = vpop.f32.mrb[15].mxu0  ;;  %v1970_v29 = vpop.f32.mrb[15].mxu1 }
 0x2a1   :  { %v8538_v3 = vmul.f32 -1.442695, %v1991_v5  ;;  %v8539_v12 = vmul.f32 -1.442695, %v1993_v0  ;;  %v1039_v5 = vsel %vm1033_vm13, %v10485_v25, 0.0  ;;  %v2086_v25 = vld [vmem:[%s13629_s2 + $0x70] sm:$0xff] }
 0x2a2   :  { %9442 = vpow2.f32 %v8537_v55 }
 0x2a3   :  { %9444 = vpow2.f32 %v8538_v3 }
 0x2a4   :  { %9446 = vpow2.f32 %v8539_v12 }
 0x2a5   :  { %9448 = vtanh.f32 %v1992_v33 }
 0x2ac   :  { %v9443_v6 = vpop.eup %9442 }
 0x2ad   :  { %v9445_v42 = vpop.eup %9444  ;;  %v2027_v56 = vadd.f32 1.0, %v9443_v6  ;;  %v2090_v6 = vld [vmem:[%s13629_s2 + $0x90] sm:$0xff] }
 0x2ae   :  { %v2033_v34 = vadd.f32 1.0, %v9445_v42  ;;  %v9447_v24 = vpop.eup %9446  ;;  %v11136_v42 = vcombine.high %v2082_v54, %v2086_v25 }
 0x2af   :  { %9450 = vrcp.f32 %v2027_v56  ;;  %v9449_v20 = vpop.eup %9448  ;;  %v2040_v46 = vadd.f32 1.0, %v9447_v24  ;;  %v11138_v56 = vcombine.high %v2083_v44, %v2087_v11  ;;  %v2091_v24 = vld [vmem:[%s13629_s2 + $0x98] sm:$0xff] }
 0x2b0   :  { %9452 = vrcp.f32 %v2033_v34  ;;  %v2094_v34 = vld [vmem:[%s13629_s2 + $0xb0] sm:$0xff] }
 0x2b1   :  { %9454 = vrcp.f32 %v2040_v46  ;;  %v2098_v46 = vld [vmem:[%s13629_s2 + $0xd0] sm:$0xff] }
 0x2b9   :  { %v9451_v2 = vpop.eup %9450 }
 0x2ba   :  { %v9453_v30 = vpop.eup %9452  ;;  %v2044_v4 = vmul.f32 %v9451_v2, %v9449_v20  ;;  %v2095_v20 = vld [vmem:[%s13629_s2 + $0xb8] sm:$0xff]  ;;  %v11153_v2 = vcombine.low %v2082_v54, %v2086_v25  ;;  %v2106_v25 = vld [vmem:[%s13629_s2 + $0x110] sm:$0xff] }
 0x2bb   :  { %v2043_v57 = vmul.f32 %v9453_v30, %v1039_v5  ;;  %v9455_v27 = vpop.eup %9454  ;;  %v11155_v30 = vcombine.low %v2083_v44, %v2087_v11  ;;  %v2110_v44 = vld [vmem:[%s13629_s2 + $0x130] sm:$0xff]  ;;  %v2107_v11 = vld [vmem:[%s13629_s2 + $0x118] sm:$0xff] }
 0x2bd   :  { %v2045_v9 = vadd.f32 %v2044_v4, %v2043_v57  ;;  %v11159_v4 = vcombine.high %v2091_v24, %v2095_v20  ;;  %v2102_v57 = vld [vmem:[%s13629_s2 + $0xf0] sm:$0xff] }
 0x2be   :  { %v11183_v54 = vcombine.high %v2098_v46, %v2102_v57 }
 0x2bf   :  { %9456 = vtanh.f32 %v2045_v9  ;;  %v11107_v55 = vsel %vm2061_vm1, %v2045_v9, %v1039_v5  ;;  %v11157_v5 = vcombine.high %v2090_v6, %v2094_v34  ;;  %v2099_v9 = vld [vmem:[%s13629_s2 + $0xd8] sm:$0xff] }
 0x2c0   :  { %13983 = vst [vmem:[#allocation36_spill] sm:$0xff] %v11183_v54 }
 0x2c9   :  { %v9457_v29 = vpop.eup %9456 }
 0x2ca   :  { %v2047_v3 = vmul.f32 %v9457_v29, %v9455_v27  ;;  %v2103_v27 = vld [vmem:[%s13629_s2 + $0xf8] sm:$0xff]  ;;  %v11177_v29 = vcombine.low %v2090_v6, %v2094_v34  ;;  %v11207_v34 = vcombine.high %v2106_v25, %v2110_v44 }
 0x2cb   :  { %v11203_v6 = vcombine.low %v2099_v9, %v2103_v27 }
 0x2cc   :  { %v2062_v0 = vsel %vm2061_vm1, %v2047_v3, 0.0  ;;  %v11113_v48 = vsel %vm2061_vm1, %v2047_v3, %v10497_v41  ;;  %v11128_v41 = vpack.c.bf16 %v11092_v10, %v11092_v10  ;;  %13981 = vst [vmem:[#allocation34_spill] sm:$0xff] %v11177_v29  ;;  %v11179_v3 = vcombine.low %v2091_v24, %v2095_v20  ;;  %13987 = vst [vmem:[#allocation40_spill] sm:$0xff] %v11207_v34  ;;  %v2114_v20 = vld [vmem:[%s13629_s2 + $0x150] sm:$0xff] }
 0x2cd   :  { %v2063_v12 = vpack.c.bf16 %v2062_v0, %v2062_v0  ;;  %v2071_v33 = vpack.c.bf16 %v11113_v48, %v11113_v48  ;;  %v11185_v0 = vcombine.high %v2099_v9, %v2103_v27  ;;  %13986 = vst [vmem:[#allocation39_spill] sm:$0xff] %v11203_v6  ;;  %v11225_v9 = vcombine.low %v2106_v25, %v2110_v44  ;;  %v2123_v25 = vld [vmem:[%s13629_s2 + $0x198] sm:$0xff] }
 0x2ce   :  { %13982 = vst [vmem:[#allocation35_spill] sm:$0xff] %v11179_v3  ;;  %v2127_v44 = vld [vmem:[%s13629_s2 + $0x1b8] sm:$0xff] }
 0x2cf   :  { %8541 = vst [vmem:[%s13632_s3 + $0x34] sm:$0xf] %v2063_v12  ;;  %2872 = vmatprep.mubr.bf16.mxu0 %v2071_v33  ;;  %2913 = vmatprep.mubr.bf16.mxu1 %v2071_v33  ;;  %13984 = vst [vmem:[#allocation37_spill] sm:$0xff] %v11185_v0  ;;  %v2111_v12 = vld [vmem:[%s13629_s2 + $0x138] sm:$0xff] }
 0x2d0   :  { %2873 = vmatmul.mubr.bf16.vlgmr.msra.gmra.mrb[16].mxu0 %v11128_v41  ;;  %2914 = vmatmul.mubr.bf16.vlgmr.msra.gmra.mrb[16].mxu1 %v11128_v41  ;;  %v11209_v24 = vcombine.high %v2107_v11, %v2111_v12  ;;  %13989 = vst [vmem:[#allocation42_spill] sm:$0xff] %v11225_v9  ;;  %v11227_v27 = vcombine.low %v2107_v11, %v2111_v12 }
 0x2d1   :  { %2923 = vmatpush1.bf16.msra.mxu0 %v11070_v60  ;;  %2964 = vmatpush1.bf16.msra.mxu1 %v11072_v61 }
 0x2d2   :  { %2954 = vmatprep.mubr.bf16.mxu0 %v2071_v33  ;;  %2995 = vmatprep.mubr.bf16.mxu1 %v2071_v33  ;;  %v11201_v33 = vcombine.low %v2098_v46, %v2102_v57  ;;  %13988 = vst [vmem:[#allocation41_spill] sm:$0xff] %v11209_v24  ;;  %v2115_v46 = vld [vmem:[%s13629_s2 + $0x158] sm:$0xff]  ;;  %13990 = vst [vmem:[#allocation43_spill] sm:$0xff] %v11227_v27 }
 0x2d3   :  { %2924 = vmatprep.subr.bf16.mxu0 %v11136_v42  ;;  %2965 = vmatprep.subr.bf16.mxu1 %v11138_v56  ;;  %v2119_v57 = vld [vmem:[%s13629_s2 + $0x178] sm:$0xff] }
 0x2d4   :  { %13985 = vst [vmem:[#allocation38_spill] sm:$0xff] %v11201_v33  ;;  %v11251_v12 = vcombine.low %v2115_v46, %v2119_v57 }
 0x2d5   :  { %2925 = vmatpush1.bf16.msra.mxu0 %v11153_v2  ;;  %2966 = vmatpush1.bf16.msra.mxu1 %v11155_v30 }
 0x2d6   :  { %2926 = vmatprep.subr.bf16.mxu0 %v11157_v5  ;;  %2967 = vmatprep.subr.bf16.mxu1 %v11159_v4  ;;  %13994 = vst [vmem:[#allocation47_spill] sm:$0xff] %v11251_v12 }
 0x2d9   :  { %2927 = vmatpush1.bf16.msra.mxu0 %v11177_v29  ;;  %2968 = vmatpush1.bf16.msra.mxu1 %v11179_v3  ;;  %v2118_v3 = vld [vmem:[%s13629_s2 + $0x170] sm:$0xff] }
 0x2da   :  { %2928 = vmatprep.subr.bf16.mxu0 %v11183_v54  ;;  %2969 = vmatprep.subr.bf16.mxu1 %v11185_v0  ;;  %v11231_v0 = vcombine.high %v2114_v20, %v2118_v3  ;;  %v11233_v54 = vcombine.high %v2115_v46, %v2119_v57  ;;  %v2122_v29 = vld [vmem:[%s13629_s2 + $0x190] sm:$0xff]  ;;  %v11249_v11 = vcombine.low %v2114_v20, %v2118_v3  ;;  %v2131_v3 = vld [vmem:[%s13629_s2 + $0x1d8] sm:$0xff] }
 0x2db   :  { %v2135_v20 = vld [vmem:[%s13629_s2 + $0x1f8] sm:$0xff]  ;;  %v11275_v57 = vcombine.low %v2123_v25, %v2127_v44 }
 0x2dc   :  { %13991 = vst [vmem:[#allocation44_spill] sm:$0xff] %v11231_v0  ;;  %13992 = vst [vmem:[#allocation45_spill] sm:$0xff] %v11233_v54 }
 0x2dd   :  { %2929 = vmatpush1.bf16.msra.mxu0 %v11201_v33  ;;  %2970 = vmatpush1.bf16.msra.mxu1 %v11203_v6  ;;  %v2126_v6 = vld [vmem:[%s13629_s2 + $0x1b0] sm:$0xff]  ;;  %13993 = vst [vmem:[#allocation46_spill] sm:$0xff] %v11249_v11  ;;  %13998 = vst [vmem:[#allocation51_spill] sm:$0xff] %v11275_v57 }
 0x2de   :  { %2930 = vmatprep.subr.bf16.mxu0 %v11207_v34  ;;  %2971 = vmatprep.subr.bf16.mxu1 %v11209_v24  ;;  %v11255_v24 = vcombine.high %v2122_v29, %v2126_v6  ;;  %v11257_v34 = vcombine.high %v2123_v25, %v2127_v44  ;;  %v2130_v33 = vld [vmem:[%s13629_s2 + $0x1d0] sm:$0xff]  ;;  %v11273_v46 = vcombine.low %v2122_v29, %v2126_v6  ;;  %v2139_v29 = vld [vmem:[%s13629_s2 + $0x218] sm:$0xff] }
 0x2df   :  { %v2143_v6 = vld [vmem:[%s13629_s2 + $0x238] sm:$0xff]  ;;  %v11299_v44 = vcombine.low %v2131_v3, %v2135_v20 }
 0x2e0   :  { %13995 = vst [vmem:[#allocation48_spill] sm:$0xff] %v11255_v24  ;;  %13996 = vst [vmem:[#allocation49_spill] sm:$0xff] %v11257_v34 }
 0x2e1   :  { %2931 = vmatpush1.bf16.msra.mxu0 %v11225_v9  ;;  %2972 = vmatpush1.bf16.msra.mxu1 %v11227_v27  ;;  %v2134_v27 = vld [vmem:[%s13629_s2 + $0x1f0] sm:$0xff]  ;;  %13997 = vst [vmem:[#allocation50_spill] sm:$0xff] %v11273_v46  ;;  %14002 = vst [vmem:[#allocation55_spill] sm:$0xff] %v11299_v44 }
 0x2e2   :  { %2932 = vmatprep.subr.bf16.mxu0 %v11231_v0  ;;  %2973 = vmatprep.subr.bf16.mxu1 %v11233_v54  ;;  %v11279_v54 = vcombine.high %v2130_v33, %v2134_v27  ;;  %v11281_v0 = vcombine.high %v2131_v3, %v2135_v20  ;;  %v2138_v9 = vld [vmem:[%s13629_s2 + $0x210] sm:$0xff]  ;;  %v11297_v25 = vcombine.low %v2130_v33, %v2134_v27  ;;  %v2147_v33 = vld [vmem:[%s13629_s2 + $0x258] sm:$0xff] }
 0x2e3   :  { %v2151_v27 = vld [vmem:[%s13629_s2 + $0x278] sm:$0xff]  ;;  %v11323_v20 = vcombine.low %v2139_v29, %v2143_v6 }
 0x2e4   :  { %13999 = vst [vmem:[#allocation52_spill] sm:$0xff] %v11279_v54  ;;  %14000 = vst [vmem:[#allocation53_spill] sm:$0xff] %v11281_v0 }
 0x2e5   :  { %2933 = vmatpush1.bf16.msra.mxu0 %v11249_v11  ;;  %2974 = vmatpush1.bf16.msra.mxu1 %v11251_v12  ;;  %v2142_v12 = vld [vmem:[%s13629_s2 + $0x230] sm:$0xff]  ;;  %14001 = vst [vmem:[#allocation54_spill] sm:$0xff] %v11297_v25  ;;  %14006 = vst [vmem:[#allocation59_spill] sm:$0xff] %v11323_v20 }
 0x2e6   :  { %2934 = vmatprep.subr.bf16.mxu0 %v11255_v24  ;;  %2975 = vmatprep.subr.bf16.mxu1 %v11257_v34  ;;  %v11303_v34 = vcombine.high %v2138_v9, %v2142_v12  ;;  %v11305_v24 = vcombine.high %v2139_v29, %v2143_v6  ;;  %v2146_v11 = vld [vmem:[%s13629_s2 + $0x250] sm:$0xff]  ;;  %v11321_v3 = vcombine.low %v2138_v9, %v2142_v12  ;;  %v2155_v9 = vld [vmem:[%s13629_s2 + $0x298] sm:$0xff] }
 0x2e7   :  { %v2159_v12 = vld [vmem:[%s13629_s2 + $0x2b8] sm:$0xff]  ;;  %v11347_v6 = vcombine.low %v2147_v33, %v2151_v27 }
 0x2e8   :  { %14003 = vst [vmem:[#allocation56_spill] sm:$0xff] %v11303_v34  ;;  %14004 = vst [vmem:[#allocation57_spill] sm:$0xff] %v11305_v24 }
 0x2e9   :  { %2935 = vmatpush1.bf16.msra.mxu0 %v11273_v46  ;;  %2976 = vmatpush1.bf16.msra.mxu1 %v11275_v57  ;;  %v2150_v57 = vld [vmem:[%s13629_s2 + $0x270] sm:$0xff]  ;;  %14005 = vst [vmem:[#allocation58_spill] sm:$0xff] %v11321_v3  ;;  %14010 = vst [vmem:[#allocation63_spill] sm:$0xff] %v11347_v6 }
 0x2ea   :  { %2936 = vmatprep.subr.bf16.mxu0 %v11279_v54  ;;  %2977 = vmatprep.subr.bf16.mxu1 %v11281_v0  ;;  %v11327_v0 = vcombine.high %v2146_v11, %v2150_v57  ;;  %v11329_v54 = vcombine.high %v2147_v33, %v2151_v27  ;;  %v2154_v46 = vld [vmem:[%s13629_s2 + $0x290] sm:$0xff]  ;;  %v11345_v29 = vcombine.low %v2146_v11, %v2150_v57  ;;  %v2163_v11 = vld [vmem:[%s13629_s2 + $0x2d8] sm:$0xff] }
 0x2eb   :  { %v2167_v57 = vld [vmem:[%s13629_s2 + $0x2f8] sm:$0xff]  ;;  %v11371_v27 = vcombine.low %v2155_v9, %v2159_v12 }
 0x2ec   :  { %14007 = vst [vmem:[#allocation60_spill] sm:$0xff] %v11327_v0  ;;  %14008 = vst [vmem:[#allocation61_spill] sm:$0xff] %v11329_v54 }
 0x2ed   :  { %2937 = vmatpush1.bf16.msra.mxu0 %v11297_v25  ;;  %2978 = vmatpush1.bf16.msra.mxu1 %v11299_v44  ;;  %v2158_v44 = vld [vmem:[%s13629_s2 + $0x2b0] sm:$0xff]  ;;  %14009 = vst [vmem:[#allocation62_spill] sm:$0xff] %v11345_v29  ;;  %14014 = vst [vmem:[#allocation67_spill] sm:$0xff] %v11371_v27 }
 0x2ee   :  { %2938 = vmatprep.subr.bf16.mxu0 %v11303_v34  ;;  %2979 = vmatprep.subr.bf16.mxu1 %v11305_v24  ;;  %v11351_v24 = vcombine.high %v2154_v46, %v2158_v44  ;;  %v11353_v34 = vcombine.high %v2155_v9, %v2159_v12  ;;  %v2162_v25 = vld [vmem:[%s13629_s2 + $0x2d0] sm:$0xff]  ;;  %v11369_v33 = vcombine.low %v2154_v46, %v2158_v44  ;;  %v2171_v46 = vld [vmem:[%s13629_s2 + $0x318] sm:$0xff] }
 0x2ef   :  { %v2175_v44 = vld [vmem:[%s13629_s2 + $0x338] sm:$0xff]  ;;  %v11395_v12 = vcombine.low %v2163_v11, %v2167_v57 }
 0x2f0   :  { %14011 = vst [vmem:[#allocation64_spill] sm:$0xff] %v11351_v24  ;;  %14012 = vst [vmem:[#allocation65_spill] sm:$0xff] %v11353_v34 }
 0x2f1   :  { %2939 = vmatpush1.bf16.msra.mxu0 %v11321_v3  ;;  %2980 = vmatpush1.bf16.msra.mxu1 %v11323_v20  ;;  %v2166_v20 = vld [vmem:[%s13629_s2 + $0x2f0] sm:$0xff]  ;;  %14013 = vst [vmem:[#allocation66_spill] sm:$0xff] %v11369_v33  ;;  %14018 = vst [vmem:[#allocation71_spill] sm:$0xff] %v11395_v12 }
 0x2f2   :  { %2940 = vmatprep.subr.bf16.mxu0 %v11327_v0  ;;  %2981 = vmatprep.subr.bf16.mxu1 %v11329_v54  ;;  %v11375_v54 = vcombine.high %v2162_v25, %v2166_v20  ;;  %v11377_v0 = vcombine.high %v2163_v11, %v2167_v57  ;;  %v2170_v3 = vld [vmem:[%s13629_s2 + $0x310] sm:$0xff]  ;;  %v11393_v9 = vcombine.low %v2162_v25, %v2166_v20  ;;  %v2179_v25 = vld [vmem:[%s13629_s2 + $0x358] sm:$0xff] }
 0x2f3   :  { %v2183_v20 = vld [vmem:[%s13629_s2 + $0x378] sm:$0xff]  ;;  %v11419_v57 = vcombine.low %v2171_v46, %v2175_v44 }
 0x2f4   :  { %14015 = vst [vmem:[#allocation68_spill] sm:$0xff] %v11375_v54  ;;  %14016 = vst [vmem:[#allocation69_spill] sm:$0xff] %v11377_v0 }
 0x2f5   :  { %2941 = vmatpush1.bf16.msra.mxu0 %v11345_v29  ;;  %2982 = vmatpush1.bf16.msra.mxu1 %v11347_v6  ;;  %v2174_v6 = vld [vmem:[%s13629_s2 + $0x330] sm:$0xff]  ;;  %14017 = vst [vmem:[#allocation70_spill] sm:$0xff] %v11393_v9  ;;  %14022 = vst [vmem:[#allocation75_spill] sm:$0xff] %v11419_v57 }
 0x2f6   :  { %2942 = vmatprep.subr.bf16.mxu0 %v11351_v24  ;;  %2983 = vmatprep.subr.bf16.mxu1 %v11353_v34  ;;  %v11399_v34 = vcombine.high %v2170_v3, %v2174_v6  ;;  %v11401_v24 = vcombine.high %v2171_v46, %v2175_v44  ;;  %v2178_v29 = vld [vmem:[%s13629_s2 + $0x350] sm:$0xff]  ;;  %v11417_v11 = vcombine.low %v2170_v3, %v2174_v6  ;;  %v2187_v3 = vld [vmem:[%s13629_s2 + $0x398] sm:$0xff] }
 0x2f7   :  { %v2191_v6 = vld [vmem:[%s13629_s2 + $0x3b8] sm:$0xff]  ;;  %v11443_v44 = vcombine.low %v2179_v25, %v2183_v20 }
 0x2f8   :  { %14019 = vst [vmem:[#allocation72_spill] sm:$0xff] %v11399_v34  ;;  %14020 = vst [vmem:[#allocation73_spill] sm:$0xff] %v11401_v24 }
 0x2f9   :  { %2943 = vmatpush1.bf16.msra.mxu0 %v11369_v33  ;;  %2984 = vmatpush1.bf16.msra.mxu1 %v11371_v27  ;;  %v2182_v27 = vld [vmem:[%s13629_s2 + $0x370] sm:$0xff]  ;;  %14021 = vst [vmem:[#allocation74_spill] sm:$0xff] %v11417_v11 }
 0x2fa   :  { %2944 = vmatprep.subr.bf16.mxu0 %v11375_v54  ;;  %2985 = vmatprep.subr.bf16.mxu1 %v11377_v0  ;;  %v11423_v0 = vcombine.high %v2178_v29, %v2182_v27  ;;  %v11425_v54 = vcombine.high %v2179_v25, %v2183_v20  ;;  %v2186_v33 = vld [vmem:[%s13629_s2 + $0x390] sm:$0xff]  ;;  %v11441_v46 = vcombine.low %v2178_v29, %v2182_v27  ;;  %v2195_v29 = vld [vmem:[%s13629_s2 + $0x3d8] sm:$0xff] }
 0x2fb   :  { %v2199_v27 = vld [vmem:[%s13629_s2 + $0x3f8] sm:$0xff]  ;;  %v11467_v20 = vcombine.low %v2187_v3, %v2191_v6 }
 0x2fc   :  { %14023 = vst [vmem:[#allocation76_spill] sm:$0xff] %v11423_v0  ;;  %14024 = vst [vmem:[#allocation77_spill] sm:$0xff] %v11425_v54 }
 0x2fd   :  { %2945 = vmatpush1.bf16.msra.mxu0 %v11393_v9  ;;  %2986 = vmatpush1.bf16.msra.mxu1 %v11395_v12  ;;  %v2190_v12 = vld [vmem:[%s13629_s2 + $0x3b0] sm:$0xff]  ;;  %14025 = vst [vmem:[#allocation78_spill] sm:$0xff] %v11441_v46 }
 0x2fe   :  { %2946 = vmatprep.subr.bf16.mxu0 %v11399_v34  ;;  %2987 = vmatprep.subr.bf16.mxu1 %v11401_v24  ;;  %v11447_v24 = vcombine.high %v2186_v33, %v2190_v12  ;;  %v11449_v34 = vcombine.high %v2187_v3, %v2191_v6  ;;  %v2194_v9 = vld [vmem:[%s13629_s2 + $0x3d0] sm:$0xff]  ;;  %v11465_v25 = vcombine.low %v2186_v33, %v2190_v12 }
 0x301   :  { %2947 = vmatpush1.bf16.msra.mxu0 %v11417_v11  ;;  %2988 = vmatpush1.bf16.msra.mxu1 %v11419_v57  ;;  %v2198_v57 = vld [vmem:[%s13629_s2 + $0x3f0] sm:$0xff] }
 0x302   :  { %2948 = vmatprep.subr.bf16.mxu0 %v11423_v0  ;;  %2989 = vmatprep.subr.bf16.mxu1 %v11425_v54  ;;  %v11471_v54 = vcombine.high %v2194_v9, %v2198_v57  ;;  %v11473_v0 = vcombine.high %v2195_v29, %v2199_v27  ;;  %v11477_v11 = vcombine.low %v2194_v9, %v2198_v57  ;;  %v8671_v57 = vld [vmem:[%s13631_s0 + $0x48] sm:$0xff] }
 0x305   :  { %2949 = vmatpush1.bf16.msra.mxu0 %v11441_v46  ;;  %2990 = vmatpush1.bf16.msra.mxu1 %v11443_v44  ;;  %v11479_v46 = vcombine.low %v2195_v29, %v2199_v27 }
 0x306   :  { %2950 = vmatprep.subr.bf16.mxu0 %v11447_v24  ;;  %2991 = vmatprep.subr.bf16.mxu1 %v11449_v34 }
 0x309   :  { %2951 = vmatpush1.bf16.msra.mxu0 %v11465_v25  ;;  %2992 = vmatpush1.bf16.msra.mxu1 %v11467_v20 }
 0x30a   :  { %2952 = vmatprep.subr.bf16.mxu0 %v11471_v54  ;;  %2993 = vmatprep.subr.bf16.mxu1 %v11473_v0 }
 0x30d   :  { %2953 = vmatpush1.bf16.msra.mxu0 %v11477_v11  ;;  %2994 = vmatpush1.bf16.msra.mxu1 %v11479_v46 }
 0x30e   :  { %3872 = vmatprep.subr.bf16.mxu0 %v10681_v13  ;;  %3913 = vmatprep.subr.bf16.mxu1 %v10690_v17  ;;  %v14026_v13 = vld [vmem:[#allocation2_spill] sm:$0xff]  ;;  %v14029_v17 = vld [vmem:[#allocation7_spill] sm:$0xff] }
 0x310   :  { %2955 = vmatmul.mubr.bf16.vlgmr.msra.gmra.mrb[20].mxu0 %v11128_v41  ;;  %2996 = vmatmul.mubr.bf16.vlgmr.msra.gmra.mrb[20].mxu1 %v11128_v41 }
 0x311   :  { %3873 = vmatpush1.bf16.msra.mxu0 %v10686_v19  ;;  %3914 = vmatpush1.bf16.msra.mxu1 %v10688_v58  ;;  %v14027_v19 = vld [vmem:[#allocation3_spill] sm:$0xff]  ;;  %v14028_v58 = vld [vmem:[#allocation4_spill] sm:$0xff] }
 0x312   :  { %3874 = vmatprep.subr.bf16.mxu0 %v10706_v32  ;;  %3915 = vmatprep.subr.bf16.mxu1 %v10720_v50  ;;  %v14031_v32 = vld [vmem:[#allocation6_spill] sm:$0xff]  ;;  %v14033_v50 = vld [vmem:[#allocation11_spill] sm:$0xff] }
 0x315   :  { %3875 = vmatpush1.bf16.msra.mxu0 %v10704_v26  ;;  %3916 = vmatpush1.bf16.msra.mxu1 %v10718_v40  ;;  %v14030_v26 = vld [vmem:[#allocation5_spill] sm:$0xff]  ;;  %v14032_v40 = vld [vmem:[#allocation8_spill] sm:$0xff] }
 0x316   :  { %3876 = vmatprep.subr.bf16.mxu0 %v10722_v15  ;;  %3917 = vmatprep.subr.bf16.mxu1 %v10731_v36  ;;  %v14034_v15 = vld [vmem:[#allocation9_spill] sm:$0xff]  ;;  %v14035_v36 = vld [vmem:[#allocation10_spill] sm:$0xff] }
 0x319   :  { %3877 = vmatpush1.bf16.msra.mxu0 %v10747_v16  ;;  %3918 = vmatpush1.bf16.msra.mxu1 %v10751_v22  ;;  %v14036_v16 = vld [vmem:[#allocation12_spill] sm:$0xff]  ;;  %v14037_v22 = vld [vmem:[#allocation15_spill] sm:$0xff] }
 0x31a   :  { %3878 = vmatprep.subr.bf16.mxu0 %v10753_v39  ;;  %3919 = vmatprep.subr.bf16.mxu1 %v10756_v63  ;;  %v14038_v39 = vld [vmem:[#allocation13_spill] sm:$0xff]  ;;  %v14039_v63 = vld [vmem:[#allocation14_spill] sm:$0xff] }
 0x31d   :  { %3879 = vmatpush1.bf16.msra.mxu0 %v10759_v21  ;;  %3920 = vmatpush1.bf16.msra.mxu1 %v10763_v43  ;;  %v14040_v21 = vld [vmem:[#allocation16_spill] sm:$0xff]  ;;  %v14041_v43 = vld [vmem:[#allocation19_spill] sm:$0xff] }
 0x31e   :  { %3880 = vmatprep.subr.bf16.mxu0 %v10777_v1  ;;  %3921 = vmatprep.subr.bf16.mxu1 %v10786_v53  ;;  %v14042_v1 = vld [vmem:[#allocation17_spill] sm:$0xff]  ;;  %v14045_v53 = vld [vmem:[#allocation22_spill] sm:$0xff] }
 0x321   :  { %3881 = vmatpush1.bf16.msra.mxu0 %v10782_v31  ;;  %3922 = vmatpush1.bf16.msra.mxu1 %v10784_v52  ;;  %v14043_v31 = vld [vmem:[#allocation18_spill] sm:$0xff]  ;;  %v14044_v52 = vld [vmem:[#allocation20_spill] sm:$0xff] }
 0x322   :  { %3882 = vmatprep.subr.bf16.mxu0 %v10801_v38  ;;  %3923 = vmatprep.subr.bf16.mxu1 %v10810_v49  ;;  %v14046_v38 = vld [vmem:[#allocation21_spill] sm:$0xff] }
 0x323   :  { %v14049_v49 = vld [vmem:[#allocation25_spill] sm:$0xff] }
 0x325   :  { %3883 = vmatpush1.bf16.msra.mxu0 %v10806_v51  ;;  %3924 = vmatpush1.bf16.msra.mxu1 %v10808_v28  ;;  %v14047_v51 = vld [vmem:[#allocation24_spill] sm:$0xff]  ;;  %v14048_v28 = vld [vmem:[#allocation23_spill] sm:$0xff] }
 0x326   :  { %3884 = vmatprep.subr.bf16.mxu0 %v10825_v37  ;;  %3925 = vmatprep.subr.bf16.mxu1 %v10834_v62  ;;  %v14050_v37 = vld [vmem:[#allocation26_spill] sm:$0xff]  ;;  %v14053_v62 = vld [vmem:[#allocation29_spill] sm:$0xff] }
 0x329   :  { %3885 = vmatpush1.bf16.msra.mxu0 %v10830_v59  ;;  %3926 = vmatpush1.bf16.msra.mxu1 %v10832_v8  ;;  %v14051_v59 = vld [vmem:[#allocation28_spill] sm:$0xff]  ;;  %v14052_v8 = vld [vmem:[#allocation27_spill] sm:$0xff] }
 0x32a   :  { %3886 = vmatprep.subr.bf16.mxu0 %v10849_v7  ;;  %3927 = vmatprep.subr.bf16.mxu1 %v10858_v23  ;;  %v14054_v7 = vld [vmem:[#allocation30_spill] sm:$0xff]  ;;  %v14057_v23 = vld [vmem:[#allocation33_spill] sm:$0xff] }
 0x32d   :  { %3887 = vmatpush1.bf16.msra.mxu0 %v10854_v14  ;;  %3928 = vmatpush1.bf16.msra.mxu1 %v10856_v18  ;;  %v14055_v14 = vld [vmem:[#allocation31_spill] sm:$0xff]  ;;  %v14056_v18 = vld [vmem:[#allocation32_spill] sm:$0xff] }
 0x32e   :  { %3888 = vmatprep.subr.bf16.mxu0 %v10873_v35  ;;  %3929 = vmatprep.subr.bf16.mxu1 %v10882_v47  ;;  %v8670_v35 = vld [vmem:[%s13631_s0 + $0x40] sm:$0xff] }
 0x32f   :  { %v3007_v47 = vunpack.c.l.bf16 %v8670_v35  ;;  %v3008_v41 = vunpack.c.h.bf16 %v8670_v35 }
 0x331   :  { %3889 = vmatpush1.bf16.msra.mxu0 %v14026_v13  ;;  %3930 = vmatpush1.bf16.msra.mxu1 %v14027_v19 }
 0x332   :  { %3890 = vmatprep.subr.bf16.mxu0 %v14028_v58  ;;  %3931 = vmatprep.subr.bf16.mxu1 %v14029_v17 }
 0x335   :  { %3891 = vmatpush1.bf16.msra.mxu0 %v14030_v26  ;;  %3932 = vmatpush1.bf16.msra.mxu1 %v14031_v32  ;;  %v3010_v32 = vunpack.c.h.bf16 %v8671_v57 }
 0x336   :  { %3892 = vmatprep.subr.bf16.mxu0 %v14032_v40  ;;  %3933 = vmatprep.subr.bf16.mxu1 %v14033_v50  ;;  %v3009_v50 = vunpack.c.l.bf16 %v8671_v57 }
 0x339   :  { %3893 = vmatpush1.bf16.msra.mxu0 %v14034_v15  ;;  %3934 = vmatpush1.bf16.msra.mxu1 %v14035_v36 }
 0x33a   :  { %3894 = vmatprep.subr.bf16.mxu0 %v14036_v16  ;;  %3935 = vmatprep.subr.bf16.mxu1 %v14037_v22 }
 0x33d   :  { %3895 = vmatpush1.bf16.msra.mxu0 %v14038_v39  ;;  %3936 = vmatpush1.bf16.msra.mxu1 %v14039_v63 }
 0x33e   :  { %3896 = vmatprep.subr.bf16.mxu0 %v14040_v21  ;;  %3937 = vmatprep.subr.bf16.mxu1 %v14041_v43 }
 0x341   :  { %3897 = vmatpush1.bf16.msra.mxu0 %v14042_v1  ;;  %3938 = vmatpush1.bf16.msra.mxu1 %v14043_v31 }
 0x342   :  { %3898 = vmatprep.subr.bf16.mxu0 %v14044_v52  ;;  %3939 = vmatprep.subr.bf16.mxu1 %v14045_v53 }
 0x345   :  { %3899 = vmatpush1.bf16.msra.mxu0 %v14046_v38  ;;  %3940 = vmatpush1.bf16.msra.mxu1 %v14047_v51  ;;  %v3083_v51 = vpop.permute.xlu1 %3082 }
 0x346   :  { %3900 = vmatprep.subr.bf16.mxu0 %v14048_v28  ;;  %3941 = vmatprep.subr.bf16.mxu1 %v14049_v49  ;;  %vm3084_vm2 = vcmp.eq.s32.totalorder %v3083_v51, 1 }
 0x349   :  { %3901 = vmatpush1.bf16.msra.mxu0 %v14050_v37  ;;  %3942 = vmatpush1.bf16.msra.mxu1 %v14051_v59 }
 0x34a   :  { %3902 = vmatprep.subr.bf16.mxu0 %v14052_v8  ;;  %3943 = vmatprep.subr.bf16.mxu1 %v14053_v62 }
 0x34d   :  { %3903 = vmatpush1.bf16.msra.mxu0 %v14054_v7  ;;  %3944 = vmatpush1.bf16.msra.mxu1 %v14055_v14 }
 0x34e   :  { %3954 = vmatprep.subr.bf16.mxu0 %v14056_v18  ;;  %3995 = vmatprep.subr.bf16.mxu1 %v14057_v23  ;;  %v8672_v18 = vld [vmem:[%s13631_s0 + $0xb0] sm:$0xff] }
 0x34f   :  { %v3018_v23 = vunpack.c.l.bf16 %v8672_v18  ;;  %v3019_v35 = vunpack.c.h.bf16 %v8672_v18  ;;  %v14062_v18 = vld [vmem:[#allocation38_spill] sm:$0xff] }
 0x3a3   :  { %v2874_v33 = vpop.f32.mrb[16].mxu0  ;;  %v2915_v9 = vpop.f32.mrb[16].mxu1 }
 0x3a4   :  { %v3011_v12 = vadd.f32 %v3007_v47, %v2874_v33  ;;  %v2876_v3 = vpop.f32.mrb[17].mxu0  ;;  %v2917_v6 = vpop.f32.mrb[17].mxu1  ;;  %v3013_v36 = vadd.f32 %v3009_v50, %v2915_v9  ;;  %v8673_v33 = vld [vmem:[%s13631_s0 + $0xb8] sm:$0xff] }
 0x3a5   :  { %v3012_v29 = vadd.f32 %v3008_v41, %v2876_v3  ;;  %v2878_v27 = vpop.f32.mrb[18].mxu0  ;;  %v2919_v13 = vpop.f32.mrb[18].mxu1  ;;  %v3014_v40 = vadd.f32 %v3010_v32, %v2917_v6 }
 0x3a6   :  { %v8676_v19 = vmul.f32 -1.442695, %v3011_v12  ;;  %v2879_v58 = vpop.f32.mrb[19].mxu0  ;;  %v2920_v17 = vpop.f32.mrb[19].mxu1 }
 0x3a7   :  { %v8677_v26 = vmul.f32 -1.442695, %v3012_v29  ;;  %v8678_v15 = vmul.f32 -1.442695, %v3014_v40  ;;  %v3020_v17 = vunpack.c.l.bf16 %v8673_v33 }
 0x3a8   :  { %9458 = vpow2.f32 %v8676_v19  ;;  %v3021_v19 = vunpack.c.h.bf16 %v8673_v33  ;;  %v14074_v33 = vld [vmem:[#allocation50_spill] sm:$0xff] }
 0x3a9   :  { %9460 = vpow2.f32 %v8677_v26 }
 0x3aa   :  { %9462 = vpow2.f32 %v8678_v15 }
 0x3ab   :  { %9464 = vtanh.f32 %v3013_v36 }
 0x3b2   :  { %v9459_v16 = vpop.eup %9458 }
 0x3b3   :  { %v9461_v22 = vpop.eup %9460  ;;  %v3035_v39 = vadd.f32 1.0, %v9459_v16 }
 0x3b4   :  { %v3041_v63 = vadd.f32 1.0, %v9461_v22  ;;  %v9463_v21 = vpop.eup %9462 }
 0x3b5   :  { %9466 = vrcp.f32 %v3035_v39  ;;  %v9465_v43 = vpop.eup %9464  ;;  %v3048_v53 = vadd.f32 1.0, %v9463_v21 }
 0x3b6   :  { %9468 = vrcp.f32 %v3041_v63 }
 0x3b7   :  { %9470 = vrcp.f32 %v3048_v53 }
 0x3bf   :  { %v9467_v1 = vpop.eup %9466 }
 0x3c0   :  { %v9469_v31 = vpop.eup %9468  ;;  %v3052_v52 = vmul.f32 %v9467_v1, %v9465_v43 }
 0x3c1   :  { %v3051_v38 = vmul.f32 %v9469_v31, %v11089_v45  ;;  %v9471_v37 = vpop.eup %9470  ;;  %v3092_v31 = vpop.permute.xlu0 %3091 }
 0x3c2   :  { %vm3093_vm3 = vcmp.eq.s32.totalorder %v3092_v31, 1  ;;  %v14100_v31 = vld [vmem:[#allocation76_spill] sm:$0xff] }
 0x3c3   :  { %v3053_v28 = vadd.f32 %v3052_v52, %v3051_v38 }
 0x3c5   :  { %9472 = vtanh.f32 %v3053_v28  ;;  %v11561_v49 = vsel %vm3084_vm2, %v3053_v28, %v11089_v45 }
 0x3cf   :  { %v9473_v59 = vpop.eup %9472 }
 0x3d0   :  { %v3055_v8 = vmul.f32 %v9473_v59, %v9471_v37 }
 0x3d2   :  { %v3085_v62 = vsel %vm3084_vm2, %v3055_v8, 0.0  ;;  %v11564_v7 = vsel %vm3084_vm2, %v3055_v8, %v11092_v10 }
 0x3d3   :  { %v3086_v14 = vpack.c.bf16 %v3085_v62, %v3085_v62 }
 0x3d5   :  { %8682 = vst [vmem:[%s13632_s3 + $0x10] sm:$0xf] %v3086_v14  ;;  %v11586_v14 = vpack.c.bf16 %v11564_v7, %v11564_v7 }
 0x3e3   :  { %v2956_v45 = vpop.f32.mrb[20].mxu0  ;;  %v2997_v47 = vpop.f32.mrb[20].mxu1 }
 0x3e4   :  { %v3022_v41 = vadd.f32 %v3018_v23, %v2956_v45  ;;  %v2958_v10 = vpop.f32.mrb[21].mxu0  ;;  %v2999_v9 = vpop.f32.mrb[21].mxu1  ;;  %v3024_v32 = vadd.f32 %v3020_v17, %v2997_v47  ;;  %v14069_v23 = vld [vmem:[#allocation45_spill] sm:$0xff]  ;;  %v14071_v45 = vld [vmem:[#allocation47_spill] sm:$0xff]  ;;  %v14072_v47 = vld [vmem:[#allocation48_spill] sm:$0xff] }
 0x3e5   :  { %v3023_v12 = vadd.f32 %v3019_v35, %v2958_v10  ;;  %v2960_v57 = vpop.f32.mrb[22].mxu0  ;;  %v3001_v3 = vpop.f32.mrb[22].mxu1  ;;  %v3025_v58 = vadd.f32 %v3021_v19, %v2999_v9  ;;  %v14070_v35 = vld [vmem:[#allocation46_spill] sm:$0xff]  ;;  %v14075_v10 = vld [vmem:[#allocation51_spill] sm:$0xff]  ;;  %v14076_v9 = vld [vmem:[#allocation52_spill] sm:$0xff] }
 0x3e6   :  { %v8679_v6 = vmul.f32 -1.442695, %v3022_v41  ;;  %v2961_v29 = vpop.f32.mrb[23].mxu0  ;;  %v3002_v27 = vpop.f32.mrb[23].mxu1  ;;  %v14073_v41 = vld [vmem:[#allocation49_spill] sm:$0xff]  ;;  %v14078_v57 = vld [vmem:[#allocation54_spill] sm:$0xff] }
 0x3e7   :  { %v8680_v13 = vmul.f32 -1.442695, %v3023_v12  ;;  %v8681_v26 = vmul.f32 -1.442695, %v3025_v58  ;;  %v14077_v12 = vld [vmem:[#allocation53_spill] sm:$0xff]  ;;  %v14079_v3 = vld [vmem:[#allocation55_spill] sm:$0xff] }
 0x3e8   :  { %9474 = vpow2.f32 %v8679_v6  ;;  %v14080_v6 = vld [vmem:[#allocation56_spill] sm:$0xff]  ;;  %v14081_v29 = vld [vmem:[#allocation57_spill] sm:$0xff]  ;;  %v14082_v27 = vld [vmem:[#allocation58_spill] sm:$0xff] }
 0x3e9   :  { %9476 = vpow2.f32 %v8680_v13  ;;  %v14083_v13 = vld [vmem:[#allocation59_spill] sm:$0xff]  ;;  %v14084_v19 = vld [vmem:[#allocation60_spill] sm:$0xff]  ;;  %v14085_v58 = vld [vmem:[#allocation61_spill] sm:$0xff] }
 0x3ea   :  { %9478 = vpow2.f32 %v8681_v26  ;;  %v14086_v17 = vld [vmem:[#allocation62_spill] sm:$0xff]  ;;  %v14087_v26 = vld [vmem:[#allocation63_spill] sm:$0xff] }
 0x3eb   :  { %9480 = vtanh.f32 %v3024_v32  ;;  %v14088_v32 = vld [vmem:[#allocation64_spill] sm:$0xff] }
 0x3f2   :  { %v9475_v40 = vpop.eup %9474 }
 0x3f3   :  { %v9477_v50 = vpop.eup %9476  ;;  %v3059_v15 = vadd.f32 1.0, %v9475_v40  ;;  %v14089_v40 = vld [vmem:[#allocation65_spill] sm:$0xff] }
 0x3f4   :  { %v3065_v36 = vadd.f32 1.0, %v9477_v50  ;;  %v9479_v16 = vpop.eup %9478  ;;  %v14090_v50 = vld [vmem:[#allocation66_spill] sm:$0xff] }
 0x3f5   :  { %9482 = vrcp.f32 %v3059_v15  ;;  %v9481_v22 = vpop.eup %9480  ;;  %v3072_v43 = vadd.f32 1.0, %v9479_v16  ;;  %v14091_v15 = vld [vmem:[#allocation67_spill] sm:$0xff]  ;;  %v14093_v16 = vld [vmem:[#allocation69_spill] sm:$0xff] }
 0x3f6   :  { %9484 = vrcp.f32 %v3065_v36  ;;  %v14092_v36 = vld [vmem:[#allocation68_spill] sm:$0xff] }
 0x3f7   :  { %9486 = vrcp.f32 %v3072_v43  ;;  %v14098_v43 = vld [vmem:[#allocation74_spill] sm:$0xff] }
 0x3ff   :  { %v9483_v39 = vpop.eup %9482 }
 0x400   :  { %v9485_v63 = vpop.eup %9484  ;;  %v3076_v21 = vmul.f32 %v9483_v39, %v9481_v22  ;;  %v14094_v22 = vld [vmem:[#allocation70_spill] sm:$0xff]  ;;  %v14095_v39 = vld [vmem:[#allocation71_spill] sm:$0xff] }
 0x401   :  { %v3075_v1 = vmul.f32 %v9485_v63, %v11107_v55  ;;  %v9487_v38 = vpop.eup %9486  ;;  %v14096_v63 = vld [vmem:[#allocation72_spill] sm:$0xff] }
 0x403   :  { %v3077_v52 = vadd.f32 %v3076_v21, %v3075_v1  ;;  %v14097_v21 = vld [vmem:[#allocation73_spill] sm:$0xff]  ;;  %v14099_v1 = vld [vmem:[#allocation75_spill] sm:$0xff] }
 0x405   :  { %9488 = vtanh.f32 %v3077_v52  ;;  %v11577_v53 = vsel %vm3093_vm3, %v3077_v52, %v11107_v55  ;;  %v14058_v55 = vld [vmem:[#allocation34_spill] sm:$0xff]  ;;  %v14101_v52 = vld [vmem:[#allocation77_spill] sm:$0xff] }
 0x40f   :  { %v9489_v51 = vpop.eup %9488 }
 0x410   :  { %v3079_v28 = vmul.f32 %v9489_v51, %v9487_v38  ;;  %v14102_v38 = vld [vmem:[#allocation78_spill] sm:$0xff] }
 0x412   :  { %v3094_v37 = vsel %vm3093_vm3, %v3079_v28, 0.0  ;;  %v11580_v59 = vsel %vm3093_vm3, %v3079_v28, %v11113_v48  ;;  %v14059_v48 = vld [vmem:[#allocation35_spill] sm:$0xff] }
 0x413   :  { %v3095_v8 = vpack.c.bf16 %v3094_v37, %v3094_v37  ;;  %v3103_v62 = vpack.c.bf16 %v11580_v59, %v11580_v59  ;;  %v4145_v37 = vld [vmem:[%s13629_s2 + $0x48] sm:$0xff] }
 0x415   :  { %8683 = vst [vmem:[%s13632_s3 + $0x2c] sm:$0xf] %v3095_v8  ;;  %3904 = vmatprep.mubr.bf16.mxu0 %v3103_v62  ;;  %3945 = vmatprep.mubr.bf16.mxu1 %v3103_v62  ;;  %v4149_v8 = vld [vmem:[%s13629_s2 + $0x68] sm:$0xff] }
 0x416   :  { %3905 = vmatmul.mubr.bf16.vlgmr.msra.gmra.mrb[24].mxu0 %v11586_v14  ;;  %3946 = vmatmul.mubr.bf16.vlgmr.msra.gmra.mrb[24].mxu1 %v11586_v14 }
 0x417   :  { %3955 = vmatpush1.bf16.msra.mxu0 %v11070_v60  ;;  %3996 = vmatpush1.bf16.msra.mxu1 %v11072_v61  ;;  %v14060_v60 = vld [vmem:[#allocation36_spill] sm:$0xff]  ;;  %v14061_v61 = vld [vmem:[#allocation37_spill] sm:$0xff] }
 0x418   :  { %3986 = vmatprep.mubr.bf16.mxu0 %v3103_v62  ;;  %4027 = vmatprep.mubr.bf16.mxu1 %v3103_v62  ;;  %v4152_v62 = vld [vmem:[%s13629_s2 + $0x80] sm:$0xff] }
 0x419   :  { %3956 = vmatprep.subr.bf16.mxu0 %v11136_v42  ;;  %3997 = vmatprep.subr.bf16.mxu1 %v11138_v56  ;;  %v14063_v42 = vld [vmem:[#allocation39_spill] sm:$0xff]  ;;  %v14064_v56 = vld [vmem:[#allocation40_spill] sm:$0xff] }
 0x41b   :  { %3957 = vmatpush1.bf16.msra.mxu0 %v11153_v2  ;;  %3998 = vmatpush1.bf16.msra.mxu1 %v11155_v30  ;;  %v14065_v2 = vld [vmem:[#allocation41_spill] sm:$0xff]  ;;  %v14066_v30 = vld [vmem:[#allocation42_spill] sm:$0xff] }
 0x41c   :  { %3958 = vmatprep.subr.bf16.mxu0 %v11157_v5  ;;  %3999 = vmatprep.subr.bf16.mxu1 %v11159_v4  ;;  %v14067_v5 = vld [vmem:[#allocation43_spill] sm:$0xff]  ;;  %v14068_v4 = vld [vmem:[#allocation44_spill] sm:$0xff] }
 0x41f   :  { %3959 = vmatpush1.bf16.msra.mxu0 %v14058_v55  ;;  %4000 = vmatpush1.bf16.msra.mxu1 %v14059_v48  ;;  %v4156_v55 = vld [vmem:[%s13629_s2 + $0xa0] sm:$0xff]  ;;  %v4153_v48 = vld [vmem:[%s13629_s2 + $0x88] sm:$0xff] }
 0x420   :  { %3960 = vmatprep.subr.bf16.mxu0 %v14060_v60  ;;  %4001 = vmatprep.subr.bf16.mxu1 %v14061_v61  ;;  %v4157_v60 = vld [vmem:[%s13629_s2 + $0xa8] sm:$0xff] }
 0x423   :  { %3961 = vmatpush1.bf16.msra.mxu0 %v14062_v18  ;;  %4002 = vmatpush1.bf16.msra.mxu1 %v14063_v42  ;;  %v11712_v18 = vcombine.low %v4145_v37, %v4149_v8  ;;  %v11714_v42 = vcombine.high %v4152_v62, %v4156_v55 }
 0x424   :  { %3962 = vmatprep.subr.bf16.mxu0 %v14064_v56  ;;  %4003 = vmatprep.subr.bf16.mxu1 %v14065_v2  ;;  %v11717_v56 = vcombine.high %v4153_v48, %v4157_v60  ;;  %v4160_v2 = vld [vmem:[%s13629_s2 + $0xc0] sm:$0xff] }
 0x427   :  { %3963 = vmatpush1.bf16.msra.mxu0 %v14066_v30  ;;  %4004 = vmatpush1.bf16.msra.mxu1 %v14067_v5  ;;  %v4164_v30 = vld [vmem:[%s13629_s2 + $0xe0] sm:$0xff]  ;;  %v4161_v5 = vld [vmem:[%s13629_s2 + $0xc8] sm:$0xff] }
 0x428   :  { %3964 = vmatprep.subr.bf16.mxu0 %v14068_v4  ;;  %4005 = vmatprep.subr.bf16.mxu1 %v14069_v23  ;;  %v4165_v4 = vld [vmem:[%s13629_s2 + $0xe8] sm:$0xff]  ;;  %v11732_v23 = vcombine.low %v4152_v62, %v4156_v55 }
 0x429   :  { %v4205_v62 = vld [vmem:[%s13629_s2 + $0x228] sm:$0xff] }
 0x42b   :  { %3965 = vmatpush1.bf16.msra.mxu0 %v14070_v35  ;;  %4006 = vmatpush1.bf16.msra.mxu1 %v14071_v45  ;;  %v11736_v35 = vcombine.low %v4153_v48, %v4157_v60  ;;  %v11738_v45 = vcombine.high %v4160_v2, %v4164_v30 }
 0x42c   :  { %3966 = vmatprep.subr.bf16.mxu0 %v14072_v47  ;;  %4007 = vmatprep.subr.bf16.mxu1 %v14073_v41  ;;  %v11741_v47 = vcombine.high %v4161_v5, %v4165_v4  ;;  %v11744_v41 = vcombine.low %v4160_v2, %v4164_v30  ;;  %v4208_v2 = vld [vmem:[%s13629_s2 + $0x240] sm:$0xff] }
 0x42d   :  { %v4212_v30 = vld [vmem:[%s13629_s2 + $0x260] sm:$0xff] }
 0x42f   :  { %3967 = vmatpush1.bf16.msra.mxu0 %v14074_v33  ;;  %4008 = vmatpush1.bf16.msra.mxu1 %v14075_v10  ;;  %v11748_v33 = vcombine.low %v4161_v5, %v4165_v4  ;;  %v4168_v10 = vld [vmem:[%s13629_s2 + $0x100] sm:$0xff]  ;;  %v4209_v5 = vld [vmem:[%s13629_s2 + $0x248] sm:$0xff]  ;;  %v11882_v4 = vcombine.high %v4208_v2, %v4212_v30 }
 0x430   :  { %3968 = vmatprep.subr.bf16.mxu0 %v14076_v9  ;;  %4009 = vmatprep.subr.bf16.mxu1 %v14077_v12  ;;  %v4172_v9 = vld [vmem:[%s13629_s2 + $0x120] sm:$0xff]  ;;  %v4169_v12 = vld [vmem:[%s13629_s2 + $0x108] sm:$0xff] }
 0x431   :  { %14103 = vst [vmem:[#allocation2_spill] sm:$0xff] %v11882_v4 }
 0x433   :  { %3969 = vmatpush1.bf16.msra.mxu0 %v14078_v57  ;;  %4010 = vmatpush1.bf16.msra.mxu1 %v14079_v3  ;;  %v11762_v57 = vcombine.high %v4168_v10, %v4172_v9  ;;  %v4173_v3 = vld [vmem:[%s13629_s2 + $0x128] sm:$0xff] }
 0x434   :  { %3970 = vmatprep.subr.bf16.mxu0 %v14080_v6  ;;  %4011 = vmatprep.subr.bf16.mxu1 %v14081_v29  ;;  %v11767_v6 = vcombine.low %v4168_v10, %v4172_v9  ;;  %v11769_v29 = vcombine.low %v4169_v12, %v4173_v3  ;;  %v4213_v10 = vld [vmem:[%s13629_s2 + $0x268] sm:$0xff]  ;;  %v11887_v9 = vcombine.low %v4208_v2, %v4212_v30  ;;  %v4232_v2 = vld [vmem:[%s13629_s2 + $0x300] sm:$0xff] }
 0x435   :  { %v4236_v30 = vld [vmem:[%s13629_s2 + $0x320] sm:$0xff] }
 0x436   :  { %14104 = vst [vmem:[#allocation3_spill] sm:$0xff] %v11887_v9 }
 0x437   :  { %3971 = vmatpush1.bf16.msra.mxu0 %v14082_v27  ;;  %4012 = vmatpush1.bf16.msra.mxu1 %v14083_v13  ;;  %v11771_v27 = vcombine.high %v4169_v12, %v4173_v3  ;;  %v4176_v13 = vld [vmem:[%s13629_s2 + $0x140] sm:$0xff]  ;;  %v11889_v12 = vcombine.low %v4209_v5, %v4213_v10  ;;  %v11891_v3 = vcombine.high %v4209_v5, %v4213_v10  ;;  %v4233_v5 = vld [vmem:[%s13629_s2 + $0x308] sm:$0xff] }
 0x438   :  { %3972 = vmatprep.subr.bf16.mxu0 %v14084_v19  ;;  %4013 = vmatprep.subr.bf16.mxu1 %v14085_v58  ;;  %v4180_v19 = vld [vmem:[%s13629_s2 + $0x160] sm:$0xff]  ;;  %v4177_v58 = vld [vmem:[%s13629_s2 + $0x148] sm:$0xff]  ;;  %v11954_v10 = vcombine.high %v4232_v2, %v4236_v30 }
 0x439   :  { %14105 = vst [vmem:[#allocation4_spill] sm:$0xff] %v11889_v12  ;;  %14106 = vst [vmem:[#allocation7_spill] sm:$0xff] %v11891_v3 }
 0x43a   :  { %14115 = vst [vmem:[#allocation13_spill] sm:$0xff] %v11954_v10 }
 0x43b   :  { %3973 = vmatpush1.bf16.msra.mxu0 %v14086_v17  ;;  %4014 = vmatpush1.bf16.msra.mxu1 %v14087_v26  ;;  %v11786_v17 = vcombine.high %v4176_v13, %v4180_v19  ;;  %v4181_v26 = vld [vmem:[%s13629_s2 + $0x168] sm:$0xff] }
 0x43c   :  { %3974 = vmatprep.subr.bf16.mxu0 %v14088_v32  ;;  %4015 = vmatprep.subr.bf16.mxu1 %v14089_v40  ;;  %v11791_v32 = vcombine.low %v4176_v13, %v4180_v19  ;;  %v11793_v40 = vcombine.low %v4177_v58, %v4181_v26  ;;  %v4216_v13 = vld [vmem:[%s13629_s2 + $0x280] sm:$0xff] }
 0x43d   :  { %v4220_v19 = vld [vmem:[%s13629_s2 + $0x2a0] sm:$0xff] }
 0x43f   :  { %3975 = vmatpush1.bf16.msra.mxu0 %v14090_v50  ;;  %4016 = vmatpush1.bf16.msra.mxu1 %v14091_v15  ;;  %v11795_v50 = vcombine.high %v4177_v58, %v4181_v26  ;;  %v4184_v15 = vld [vmem:[%s13629_s2 + $0x180] sm:$0xff]  ;;  %v4217_v58 = vld [vmem:[%s13629_s2 + $0x288] sm:$0xff]  ;;  %v11906_v26 = vcombine.high %v4216_v13, %v4220_v19 }
 0x440   :  { %3976 = vmatprep.subr.bf16.mxu0 %v14092_v36  ;;  %4017 = vmatprep.subr.bf16.mxu1 %v14093_v16  ;;  %v4188_v36 = vld [vmem:[%s13629_s2 + $0x1a0] sm:$0xff]  ;;  %v4185_v16 = vld [vmem:[%s13629_s2 + $0x188] sm:$0xff] }
 0x441   :  { %14107 = vst [vmem:[#allocation5_spill] sm:$0xff] %v11906_v26 }
 0x443   :  { %3977 = vmatpush1.bf16.msra.mxu0 %v14094_v22  ;;  %4018 = vmatpush1.bf16.msra.mxu1 %v14095_v39  ;;  %v11810_v22 = vcombine.high %v4184_v15, %v4188_v36  ;;  %v4189_v39 = vld [vmem:[%s13629_s2 + $0x1a8] sm:$0xff] }
 0x444   :  { %3978 = vmatprep.subr.bf16.mxu0 %v14096_v63  ;;  %4019 = vmatprep.subr.bf16.mxu1 %v14097_v21  ;;  %v11815_v63 = vcombine.low %v4184_v15, %v4188_v36  ;;  %v11817_v21 = vcombine.low %v4185_v16, %v4189_v39  ;;  %v4221_v15 = vld [vmem:[%s13629_s2 + $0x2a8] sm:$0xff]  ;;  %v11911_v36 = vcombine.low %v4216_v13, %v4220_v19 }
 0x445   :  { %v4237_v13 = vld [vmem:[%s13629_s2 + $0x328] sm:$0xff]  ;;  %v11959_v19 = vcombine.low %v4232_v2, %v4236_v30  ;;  %v4248_v30 = vld [vmem:[%s13629_s2 + $0x380] sm:$0xff] }
 0x446   :  { %14108 = vst [vmem:[#allocation6_spill] sm:$0xff] %v11911_v36  ;;  %v4245_v2 = vld [vmem:[%s13629_s2 + $0x368] sm:$0xff] }
 0x447   :  { %3979 = vmatpush1.bf16.msra.mxu0 %v14098_v43  ;;  %4020 = vmatpush1.bf16.msra.mxu1 %v14099_v1  ;;  %v11819_v43 = vcombine.high %v4185_v16, %v4189_v39  ;;  %v4192_v1 = vld [vmem:[%s13629_s2 + $0x1c0] sm:$0xff]  ;;  %v11913_v16 = vcombine.low %v4217_v58, %v4221_v15  ;;  %v11915_v39 = vcombine.high %v4217_v58, %v4221_v15 }
 0x448   :  { %3980 = vmatprep.subr.bf16.mxu0 %v14100_v31  ;;  %4021 = vmatprep.subr.bf16.mxu1 %v14101_v52  ;;  %v4196_v31 = vld [vmem:[%s13629_s2 + $0x1e0] sm:$0xff]  ;;  %v4193_v52 = vld [vmem:[%s13629_s2 + $0x1c8] sm:$0xff]  ;;  %14116 = vst [vmem:[#allocation14_spill] sm:$0xff] %v11959_v19  ;;  %v11961_v58 = vcombine.low %v4233_v5, %v4237_v13  ;;  %v11963_v15 = vcombine.high %v4233_v5, %v4237_v13 }
 0x449   :  { %14109 = vst [vmem:[#allocation8_spill] sm:$0xff] %v11913_v16  ;;  %14110 = vst [vmem:[#allocation11_spill] sm:$0xff] %v11915_v39  ;;  %v4252_v5 = vld [vmem:[%s13629_s2 + $0x3a0] sm:$0xff] }
 0x44a   :  { %14117 = vst [vmem:[#allocation16_spill] sm:$0xff] %v11961_v58  ;;  %14118 = vst [vmem:[#allocation19_spill] sm:$0xff] %v11963_v15 }
 0x44b   :  { %3981 = vmatpush1.bf16.msra.mxu0 %v14102_v38  ;;  %4022 = vmatpush1.bf16.msra.mxu1 %v11443_v44  ;;  %v4144_v44 = vld [vmem:[%s13629_s2 + $0x40] sm:$0xff]  ;;  %v11834_v38 = vcombine.high %v4192_v1, %v4196_v31 }
 0x44c   :  { %3982 = vmatprep.subr.bf16.mxu0 %v11447_v24  ;;  %4023 = vmatprep.subr.bf16.mxu1 %v11449_v34  ;;  %v4136_v34 = vld [vmem:[%s13629_s2] sm:$0xff] }
 0x44d   :  { %v4140_v24 = vld [vmem:[%s13629_s2 + $0x20] sm:$0xff] }
 0x44f   :  { %3983 = vmatpush1.bf16.msra.mxu0 %v11465_v25  ;;  %4024 = vmatpush1.bf16.msra.mxu1 %v11467_v20  ;;  %v4148_v25 = vld [vmem:[%s13629_s2 + $0x60] sm:$0xff] }
 0x450   :  { %3984 = vmatprep.subr.bf16.mxu0 %v11471_v54  ;;  %4025 = vmatprep.subr.bf16.mxu1 %v11473_v0  ;;  %v4137_v54 = vld [vmem:[%s13629_s2 + $0x8] sm:$0xff]  ;;  %v11666_v0 = vcombine.low %v4136_v34, %v4140_v24  ;;  %v11683_v28 = vcombine.high %v4144_v44, %v4148_v25  ;;  %v11708_v61 = vcombine.low %v4144_v44, %v4148_v25  ;;  %v4200_v44 = vld [vmem:[%s13629_s2 + $0x200] sm:$0xff] }
 0x451   :  { %v4204_v25 = vld [vmem:[%s13629_s2 + $0x220] sm:$0xff] }
 0x452   :  { %v11863_v55 = vcombine.low %v4200_v44, %v4204_v25 }
 0x453   :  { %3985 = vmatpush1.bf16.msra.mxu0 %v11477_v11  ;;  %4026 = vmatpush1.bf16.msra.mxu1 %v11479_v46  ;;  %v11668_v11 = vcombine.high %v4136_v34, %v4140_v24  ;;  %v4141_v46 = vld [vmem:[%s13629_s2 + $0x28] sm:$0xff]  ;;  %v11839_v24 = vcombine.low %v4192_v1, %v4196_v31  ;;  %v4224_v1 = vld [vmem:[%s13629_s2 + $0x2c0] sm:$0xff] }
 0x454   :  { %v11679_v20 = vcombine.low %v4137_v54, %v4141_v46  ;;  %v11681_v51 = vcombine.high %v4137_v54, %v4141_v46  ;;  %v4197_v34 = vld [vmem:[%s13629_s2 + $0x1e8] sm:$0xff]  ;;  %v4228_v31 = vld [vmem:[%s13629_s2 + $0x2e0] sm:$0xff] }
 0x455   :  { %4904 = vmatprep.subr.bf16.mxu0 %v11668_v11  ;;  %v11841_v54 = vcombine.low %v4193_v52, %v4197_v34  ;;  %v11843_v46 = vcombine.high %v4193_v52, %v4197_v34  ;;  %v4225_v52 = vld [vmem:[%s13629_s2 + $0x2c8] sm:$0xff]  ;;  %v11930_v34 = vcombine.high %v4224_v1, %v4228_v31 }
 0x456   :  { %3987 = vmatmul.mubr.bf16.vlgmr.msra.gmra.mrb[28].mxu0 %v11586_v14  ;;  %4028 = vmatmul.mubr.bf16.vlgmr.msra.gmra.mrb[28].mxu1 %v11586_v14  ;;  %v11695_v14 = vcombine.high %v4145_v37, %v4149_v8  ;;  %v4201_v37 = vld [vmem:[%s13629_s2 + $0x208] sm:$0xff]  ;;  %v11858_v8 = vcombine.high %v4200_v44, %v4204_v25  ;;  %v11935_v25 = vcombine.low %v4224_v1, %v4228_v31  ;;  %v4240_v1 = vld [vmem:[%s13629_s2 + $0x340] sm:$0xff] }
 0x457   :  { %4945 = vmatprep.subr.bf16.mxu1 %v11681_v51  ;;  %4905 = vmatpush1.bf16.msra.mxu0 %v11666_v0  ;;  %v11865_v48 = vcombine.low %v4201_v37, %v4205_v62  ;;  %v11867_v60 = vcombine.high %v4201_v37, %v4205_v62  ;;  %14111 = vst [vmem:[#allocation9_spill] sm:$0xff] %v11930_v34  ;;  %v4229_v44 = vld [vmem:[%s13629_s2 + $0x2e8] sm:$0xff]  ;;  %v4244_v31 = vld [vmem:[%s13629_s2 + $0x360] sm:$0xff] }
 0x458   :  { %4946 = vmatpush1.bf16.msra.mxu1 %v11679_v20  ;;  %4906 = vmatprep.subr.bf16.mxu0 %v11683_v28  ;;  %14112 = vst [vmem:[#allocation10_spill] sm:$0xff] %v11935_v25  ;;  %v11937_v37 = vcombine.low %v4225_v52, %v4229_v44  ;;  %v11939_v62 = vcombine.high %v4225_v52, %v4229_v44  ;;  %v4241_v52 = vld [vmem:[%s13629_s2 + $0x348] sm:$0xff] }
 0x459   :  { %4947 = vmatprep.subr.bf16.mxu1 %v11695_v14  ;;  %v11975_v44 = vcombine.high %v4240_v1, %v4244_v31  ;;  %v11988_v13 = vcombine.low %v4240_v1, %v4244_v31  ;;  %v4256_v31 = vld [vmem:[%s13629_s2 + $0x3c0] sm:$0xff] }
 0x45a   :  { %14113 = vst [vmem:[#allocation12_spill] sm:$0xff] %v11937_v37  ;;  %14114 = vst [vmem:[#allocation15_spill] sm:$0xff] %v11939_v62 }
 0x45b   :  { %4907 = vmatpush1.bf16.msra.mxu0 %v11708_v61  ;;  %14119 = vst [vmem:[#allocation17_spill] sm:$0xff] %v11975_v44  ;;  %14120 = vst [vmem:[#allocation18_spill] sm:$0xff] %v11988_v13 }
 0x45c   :  { %4948 = vmatpush1.bf16.msra.mxu1 %v11712_v18  ;;  %4908 = vmatprep.subr.bf16.mxu0 %v11714_v42 }
 0x45d   :  { %4949 = vmatprep.subr.bf16.mxu1 %v11717_v56 }
 0x45f   :  { %4909 = vmatpush1.bf16.msra.mxu0 %v11732_v23 }
 0x460   :  { %4950 = vmatpush1.bf16.msra.mxu1 %v11736_v35  ;;  %4910 = vmatprep.subr.bf16.mxu0 %v11738_v45 }
 0x461   :  { %4951 = vmatprep.subr.bf16.mxu1 %v11741_v47 }
 0x463   :  { %4911 = vmatpush1.bf16.msra.mxu0 %v11744_v41 }
 0x464   :  { %4952 = vmatpush1.bf16.msra.mxu1 %v11748_v33  ;;  %4912 = vmatprep.subr.bf16.mxu0 %v11762_v57 }
 0x465   :  { %4953 = vmatprep.subr.bf16.mxu1 %v11771_v27 }
 0x467   :  { %4913 = vmatpush1.bf16.msra.mxu0 %v11767_v6 }
 0x468   :  { %4954 = vmatpush1.bf16.msra.mxu1 %v11769_v29  ;;  %4914 = vmatprep.subr.bf16.mxu0 %v11786_v17 }
 0x469   :  { %4955 = vmatprep.subr.bf16.mxu1 %v11795_v50 }
 0x46b   :  { %4915 = vmatpush1.bf16.msra.mxu0 %v11791_v32 }
 0x46c   :  { %4956 = vmatpush1.bf16.msra.mxu1 %v11793_v40  ;;  %4916 = vmatprep.subr.bf16.mxu0 %v11810_v22 }
 0x46d   :  { %4957 = vmatprep.subr.bf16.mxu1 %v11819_v43 }
 0x46f   :  { %4917 = vmatpush1.bf16.msra.mxu0 %v11815_v63 }
 0x470   :  { %4958 = vmatpush1.bf16.msra.mxu1 %v11817_v21  ;;  %4918 = vmatprep.subr.bf16.mxu0 %v11834_v38 }
 0x471   :  { %4959 = vmatprep.subr.bf16.mxu1 %v11843_v46 }
 0x473   :  { %4919 = vmatpush1.bf16.msra.mxu0 %v11839_v24 }
 0x474   :  { %4960 = vmatpush1.bf16.msra.mxu1 %v11841_v54  ;;  %4920 = vmatprep.subr.bf16.mxu0 %v11858_v8 }
 0x475   :  { %4961 = vmatprep.subr.bf16.mxu1 %v11867_v60 }
 0x477   :  { %4921 = vmatpush1.bf16.msra.mxu0 %v11863_v55 }
 0x478   :  { %4962 = vmatpush1.bf16.msra.mxu1 %v11865_v48  ;;  %4922 = vmatprep.subr.bf16.mxu0 %v11882_v4 }
 0x479   :  { %4963 = vmatprep.subr.bf16.mxu1 %v11891_v3 }
 0x47b   :  { %4923 = vmatpush1.bf16.msra.mxu0 %v11887_v9 }
 0x47c   :  { %4964 = vmatpush1.bf16.msra.mxu1 %v11889_v12  ;;  %4924 = vmatprep.subr.bf16.mxu0 %v11906_v26 }
 0x47d   :  { %4965 = vmatprep.subr.bf16.mxu1 %v11915_v39 }
 0x47f   :  { %4925 = vmatpush1.bf16.msra.mxu0 %v11911_v36 }
 0x480   :  { %4966 = vmatpush1.bf16.msra.mxu1 %v11913_v16  ;;  %4926 = vmatprep.subr.bf16.mxu0 %v11930_v34 }
 0x481   :  { %4967 = vmatprep.subr.bf16.mxu1 %v11939_v62  ;;  %v12000_v62 = vcombine.low %v4241_v52, %v4245_v2 }
 0x483   :  { %4927 = vmatpush1.bf16.msra.mxu0 %v11935_v25  ;;  %v4253_v25 = vld [vmem:[%s13629_s2 + $0x3a8] sm:$0xff]  ;;  %14122 = vst [vmem:[#allocation22_spill] sm:$0xff] %v12000_v62 }
 0x484   :  { %4968 = vmatpush1.bf16.msra.mxu1 %v11937_v37  ;;  %4928 = vmatprep.subr.bf16.mxu0 %v11954_v10  ;;  %v11990_v10 = vcombine.high %v4241_v52, %v4245_v2  ;;  %v4249_v37 = vld [vmem:[%s13629_s2 + $0x388] sm:$0xff]  ;;  %v12020_v2 = vcombine.low %v4248_v30, %v4252_v5 }
 0x485   :  { %4969 = vmatprep.subr.bf16.mxu1 %v11963_v15  ;;  %v12002_v15 = vcombine.high %v4248_v30, %v4252_v5  ;;  %v12005_v1 = vcombine.high %v4249_v37, %v4253_v25  ;;  %v4261_v52 = vld [vmem:[%s13629_s2 + $0x3e8] sm:$0xff]  ;;  %v4143_v5 = vld [vmem:[%s13629_s2 + $0x38] sm:$0xff] }
 0x486   :  { %14121 = vst [vmem:[#allocation20_spill] sm:$0xff] %v11990_v10  ;;  %14125 = vst [vmem:[#allocation23_spill] sm:$0xff] %v12020_v2 }
 0x487   :  { %4929 = vmatpush1.bf16.msra.mxu0 %v11959_v19  ;;  %14123 = vst [vmem:[#allocation21_spill] sm:$0xff] %v12002_v15  ;;  %14124 = vst [vmem:[#allocation24_spill] sm:$0xff] %v12005_v1  ;;  %v4260_v19 = vld [vmem:[%s13629_s2 + $0x3e0] sm:$0xff] }
 0x488   :  { %4970 = vmatpush1.bf16.msra.mxu1 %v11961_v58  ;;  %4930 = vmatprep.subr.bf16.mxu0 %v11975_v44  ;;  %v4257_v44 = vld [vmem:[%s13629_s2 + $0x3c8] sm:$0xff]  ;;  %v12026_v58 = vcombine.high %v4256_v31, %v4260_v19  ;;  %v12032_v16 = vcombine.low %v4256_v31, %v4260_v19  ;;  %v4139_v19 = vld [vmem:[%s13629_s2 + $0x18] sm:$0xff] }
 0x489   :  { %4971 = vmatprep.subr.bf16.mxu1 %v11990_v10  ;;  %v12024_v10 = vcombine.low %v4249_v37, %v4253_v25  ;;  %v12029_v34 = vcombine.high %v4257_v44, %v4261_v52  ;;  %v12036_v30 = vcombine.low %v4257_v44, %v4261_v52  ;;  %v4138_v25 = vld [vmem:[%s13629_s2 + $0x10] sm:$0xff]  ;;  %v12057_v52 = vcombine.low %v4139_v19, %v4143_v5 }
 0x48a   :  { %14127 = vst [vmem:[#allocation26_spill] sm:$0xff] %v12026_v58  ;;  %14129 = vst [vmem:[#allocation27_spill] sm:$0xff] %v12032_v16  ;;  %v4142_v37 = vld [vmem:[%s13629_s2 + $0x30] sm:$0xff] }
 0x48b   :  { %4931 = vmatpush1.bf16.msra.mxu0 %v11988_v13  ;;  %14126 = vst [vmem:[#allocation25_spill] sm:$0xff] %v12024_v10  ;;  %14128 = vst [vmem:[#allocation28_spill] sm:$0xff] %v12029_v34  ;;  %v12050_v44 = vcombine.high %v4138_v25, %v4142_v37  ;;  %v12055_v31 = vcombine.low %v4138_v25, %v4142_v37  ;;  %v8813_v25 = vld [vmem:[%s13631_s0 + $0x68] sm:$0xff] }
 0x48c   :  { %4972 = vmatpush1.bf16.msra.mxu1 %v12000_v62  ;;  %4932 = vmatprep.subr.bf16.mxu0 %v12002_v15  ;;  %14130 = vst [vmem:[#allocation29_spill] sm:$0xff] %v12036_v30  ;;  %v4042_v39 = vunpack.c.h.bf16 %v8813_v25  ;;  %v4041_v26 = vunpack.c.l.bf16 %v8813_v25 }
 0x48d   :  { %4973 = vmatprep.subr.bf16.mxu1 %v12005_v1  ;;  %14131 = vst [vmem:[#allocation30_spill] sm:$0xff] %v12050_v44 }
 0x48f   :  { %4933 = vmatpush1.bf16.msra.mxu0 %v12020_v2 }
 0x490   :  { %4974 = vmatpush1.bf16.msra.mxu1 %v12024_v10  ;;  %4934 = vmatprep.subr.bf16.mxu0 %v12026_v58 }
 0x491   :  { %4975 = vmatprep.subr.bf16.mxu1 %v12029_v34 }
 0x493   :  { %4935 = vmatpush1.bf16.msra.mxu0 %v12032_v16  ;;  %v12059_v16 = vcombine.high %v4139_v19, %v4143_v5 }
 0x494   :  { %4976 = vmatpush1.bf16.msra.mxu1 %v12036_v30  ;;  %4986 = vmatprep.subr.bf16.mxu0 %v12050_v44  ;;  %v8812_v30 = vld [vmem:[%s13631_s0 + $0x60] sm:$0xff] }
 0x495   :  { %14132 = vst [vmem:[#allocation31_spill] sm:$0xff] %v12059_v16  ;;  %5027 = vmatprep.subr.bf16.mxu1 %v12059_v16  ;;  %v4039_v34 = vunpack.c.l.bf16 %v8812_v30  ;;  %v4040_v58 = vunpack.c.h.bf16 %v8812_v30 }
 0x4e9   :  { %v3906_v10 = vpop.f32.mrb[24].mxu0  ;;  %v3947_v2 = vpop.f32.mrb[24].mxu1 }
 0x4ea   :  { %v4043_v1 = vadd.f32 %v4039_v34, %v3906_v10  ;;  %v3908_v37 = vpop.f32.mrb[25].mxu0  ;;  %v3949_v19 = vpop.f32.mrb[25].mxu1  ;;  %v4045_v34 = vadd.f32 %v4041_v26, %v3947_v2 }
 0x4eb   :  { %v4044_v5 = vadd.f32 %v4040_v58, %v3908_v37  ;;  %v3910_v15 = vpop.f32.mrb[26].mxu0  ;;  %v3951_v44 = vpop.f32.mrb[26].mxu1  ;;  %v4046_v30 = vadd.f32 %v4042_v39, %v3949_v19  ;;  %v8814_v37 = vld [vmem:[%s13631_s0 + $0x90] sm:$0xff] }
 0x4ec   :  { %v8818_v62 = vmul.f32 -1.442695, %v4043_v1  ;;  %v3911_v16 = vpop.f32.mrb[27].mxu0  ;;  %v3952_v13 = vpop.f32.mrb[27].mxu1  ;;  %v4050_v19 = vunpack.c.l.bf16 %v8814_v37 }
 0x4ed   :  { %v8819_v36 = vmul.f32 -1.442695, %v4044_v5  ;;  %v8820_v12 = vmul.f32 -1.442695, %v4046_v30  ;;  %v4115_v39 = vpop.permute.xlu1 %4114  ;;  %v4051_v5 = vunpack.c.h.bf16 %v8814_v37 }
 0x4ee   :  { %9490 = vpow2.f32 %v8818_v62  ;;  %vm4116_vm4 = vcmp.eq.s32.totalorder %v4115_v39, 1 }
 0x4ef   :  { %9492 = vpow2.f32 %v8819_v36 }
 0x4f0   :  { %9494 = vpow2.f32 %v8820_v12 }
 0x4f1   :  { %9496 = vtanh.f32 %v4045_v34 }
 0x4f8   :  { %v9491_v10 = vpop.eup %9490 }
 0x4f9   :  { %v9493_v9 = vpop.eup %9492  ;;  %v4067_v3 = vadd.f32 1.0, %v9491_v10  ;;  %v8815_v10 = vld [vmem:[%s13631_s0 + $0x98] sm:$0xff] }
 0x4fa   :  { %v4073_v4 = vadd.f32 1.0, %v9493_v9  ;;  %v9495_v58 = vpop.eup %9494 }
 0x4fb   :  { %9498 = vrcp.f32 %v4067_v3  ;;  %v9497_v15 = vpop.eup %9496  ;;  %v4080_v44 = vadd.f32 1.0, %v9495_v58 }
 0x4fc   :  { %9500 = vrcp.f32 %v4073_v4 }
 0x4fd   :  { %9502 = vrcp.f32 %v4080_v44 }
 0x505   :  { %v9499_v16 = vpop.eup %9498 }
 0x506   :  { %v9501_v13 = vpop.eup %9500  ;;  %v4084_v1 = vmul.f32 %v9499_v16, %v9497_v15 }
 0x507   :  { %v4083_v36 = vmul.f32 %v9501_v13, %v11561_v49  ;;  %v9503_v12 = vpop.eup %9502 }
 0x509   :  { %v4085_v62 = vadd.f32 %v4084_v1, %v4083_v36 }
 0x50b   :  { %9504 = vtanh.f32 %v4085_v62  ;;  %v12071_v26 = vsel %vm4116_vm4, %v4085_v62, %v11561_v49  ;;  %v4053_v62 = vunpack.c.h.bf16 %v8815_v10 }
 0x515   :  { %v9505_v9 = vpop.eup %9504 }
 0x516   :  { %v4087_v3 = vmul.f32 %v9505_v9, %v9503_v12  ;;  %v4052_v9 = vunpack.c.l.bf16 %v8815_v10 }
 0x518   :  { %v4117_v4 = vsel %vm4116_vm4, %v4087_v3, 0.0  ;;  %v12074_v2 = vsel %vm4116_vm4, %v4087_v3, %v11564_v7 }
 0x519   :  { %v4118_v25 = vpack.c.bf16 %v4117_v4, %v4117_v4 }
 0x51b   :  { %8824 = vst [vmem:[%s13632_s3 + $0x18] sm:$0xf] %v4118_v25 }
 0x529   :  { %v3988_v49 = vpop.f32.mrb[28].mxu0  ;;  %v4029_v30 = vpop.f32.mrb[28].mxu1 }
 0x52a   :  { %v4054_v34 = vadd.f32 %v4050_v19, %v3988_v49  ;;  %v3990_v7 = vpop.f32.mrb[29].mxu0  ;;  %v4031_v58 = vpop.f32.mrb[29].mxu1  ;;  %v4056_v4 = vadd.f32 %v4052_v9, %v4029_v30 }
 0x52b   :  { %v4055_v15 = vadd.f32 %v4051_v5, %v3990_v7  ;;  %v3992_v16 = vpop.f32.mrb[30].mxu0  ;;  %v4033_v13 = vpop.f32.mrb[30].mxu1  ;;  %v4057_v12 = vadd.f32 %v4053_v62, %v4031_v58  ;;  %v4146_v62 = vld [vmem:[%s13629_s2 + $0x50] sm:$0xff] }
 0x52c   :  { %v8821_v1 = vmul.f32 -1.442695, %v4054_v34  ;;  %v3993_v44 = vpop.f32.mrb[31].mxu0  ;;  %v4034_v36 = vpop.f32.mrb[31].mxu1 }
 0x52d   :  { %v8822_v39 = vmul.f32 -1.442695, %v4055_v15  ;;  %v8823_v3 = vmul.f32 -1.442695, %v4057_v12  ;;  %v4124_v58 = vpop.permute.xlu0 %4123 }
 0x52e   :  { %9506 = vpow2.f32 %v8821_v1  ;;  %vm4125_vm5 = vcmp.eq.s32.totalorder %v4124_v58, 1 }
 0x52f   :  { %9508 = vpow2.f32 %v8822_v39 }
 0x530   :  { %9510 = vpow2.f32 %v8823_v3  ;;  %v4150_v3 = vld [vmem:[%s13629_s2 + $0x70] sm:$0xff] }
 0x531   :  { %9512 = vtanh.f32 %v4056_v4  ;;  %v4151_v4 = vld [vmem:[%s13629_s2 + $0x78] sm:$0xff] }
 0x538   :  { %v9507_v25 = vpop.eup %9506 }
 0x539   :  { %v9509_v37 = vpop.eup %9508  ;;  %v4091_v19 = vadd.f32 1.0, %v9507_v25 }
 0x53a   :  { %v4097_v49 = vadd.f32 1.0, %v9509_v37  ;;  %v9511_v5 = vpop.eup %9510 }
 0x53b   :  { %9514 = vrcp.f32 %v4091_v19  ;;  %v9513_v34 = vpop.eup %9512  ;;  %v4104_v13 = vadd.f32 1.0, %v9511_v5  ;;  %v4154_v19 = vld [vmem:[%s13629_s2 + $0x90] sm:$0xff] }
 0x53c   :  { %9516 = vrcp.f32 %v4097_v49  ;;  %v12116_v49 = vcombine.high %v4146_v62, %v4150_v3 }
 0x53d   :  { %9518 = vrcp.f32 %v4104_v13 }
 0x545   :  { %v9515_v7 = vpop.eup %9514 }
 0x546   :  { %v9517_v16 = vpop.eup %9516  ;;  %v4108_v15 = vmul.f32 %v9515_v7, %v9513_v34  ;;  %v4158_v34 = vld [vmem:[%s13629_s2 + $0xb0] sm:$0xff]  ;;  %v4155_v7 = vld [vmem:[%s13629_s2 + $0x98] sm:$0xff] }
 0x547   :  { %v4107_v1 = vmul.f32 %v9517_v16, %v11577_v53  ;;  %v9519_v44 = vpop.eup %9518  ;;  %v4159_v16 = vld [vmem:[%s13629_s2 + $0xb8] sm:$0xff] }
 0x548   :  { %v12139_v58 = vcombine.high %v4155_v7, %v4159_v16 }
 0x549   :  { %v4109_v10 = vadd.f32 %v4108_v15, %v4107_v1  ;;  %v12133_v15 = vcombine.low %v4146_v62, %v4150_v3  ;;  %v12137_v1 = vcombine.high %v4154_v19, %v4158_v34  ;;  %v12157_v62 = vcombine.low %v4154_v19, %v4158_v34  ;;  %v4175_v19 = vld [vmem:[%s13629_s2 + $0x138] sm:$0xff] }
 0x54a   :  { %14134 = vst [vmem:[#allocation33_spill] sm:$0xff] %v12139_v58 }
 0x54b   :  { %9520 = vtanh.f32 %v4109_v10  ;;  %v12087_v30 = vsel %vm4125_vm5, %v4109_v10, %v11577_v53  ;;  %v4147_v53 = vld [vmem:[%s13629_s2 + $0x58] sm:$0xff]  ;;  %14133 = vst [vmem:[#allocation32_spill] sm:$0xff] %v12137_v1  ;;  %v4162_v10 = vld [vmem:[%s13629_s2 + $0xd0] sm:$0xff]  ;;  %14135 = vst [vmem:[#allocation34_spill] sm:$0xff] %v12157_v62 }
 0x54c   :  { %v12118_v5 = vcombine.high %v4147_v53, %v4151_v4  ;;  %v12135_v13 = vcombine.low %v4147_v53, %v4151_v4  ;;  %v4170_v4 = vld [vmem:[%s13629_s2 + $0x110] sm:$0xff] }
 0x555   :  { %v9521_v36 = vpop.eup %9520 }
 0x556   :  { %v4111_v39 = vmul.f32 %v9521_v36, %v9519_v44  ;;  %v4166_v44 = vld [vmem:[%s13629_s2 + $0xf0] sm:$0xff]  ;;  %v4163_v36 = vld [vmem:[%s13629_s2 + $0xd8] sm:$0xff] }
 0x557   :  { %v12163_v3 = vcombine.high %v4162_v10, %v4166_v44  ;;  %v12181_v34 = vcombine.low %v4162_v10, %v4166_v44  ;;  %v4179_v10 = vld [vmem:[%s13629_s2 + $0x158] sm:$0xff] }
 0x558   :  { %v4126_v12 = vsel %vm4125_vm5, %v4111_v39, 0.0  ;;  %v12093_v9 = vsel %vm4125_vm5, %v4111_v39, %v11580_v59  ;;  %v12108_v59 = vpack.c.bf16 %v12074_v2, %v12074_v2  ;;  %v4167_v39 = vld [vmem:[%s13629_s2 + $0xf8] sm:$0xff] }
 0x559   :  { %v4127_v25 = vpack.c.bf16 %v4126_v12, %v4126_v12  ;;  %v4135_v37 = vpack.c.bf16 %v12093_v9, %v12093_v9  ;;  %v12159_v12 = vcombine.low %v4155_v7, %v4159_v16  ;;  %14137 = vst [vmem:[#allocation36_spill] sm:$0xff] %v12163_v3  ;;  %v12165_v53 = vcombine.high %v4163_v36, %v4167_v39  ;;  %v4183_v44 = vld [vmem:[%s13629_s2 + $0x178] sm:$0xff] }
 0x55a   :  { %14139 = vst [vmem:[#allocation38_spill] sm:$0xff] %v12181_v34  ;;  %v12183_v7 = vcombine.low %v4163_v36, %v4167_v39 }
 0x55b   :  { %8825 = vst [vmem:[%s13632_s3 + $0x24] sm:$0xf] %v4127_v25  ;;  %4936 = vmatprep.mubr.bf16.mxu0 %v4135_v37  ;;  %4977 = vmatprep.mubr.bf16.mxu1 %v4135_v37  ;;  %14136 = vst [vmem:[#allocation35_spill] sm:$0xff] %v12159_v12  ;;  %v4174_v25 = vld [vmem:[%s13629_s2 + $0x130] sm:$0xff] }
 0x55c   :  { %4937 = vmatmul.mubr.bf16.vlgmr.msra.gmra.mrb[32].mxu0 %v12108_v59  ;;  %4978 = vmatmul.mubr.bf16.vlgmr.msra.gmra.mrb[32].mxu1 %v12108_v59  ;;  %14138 = vst [vmem:[#allocation37_spill] sm:$0xff] %v12165_v53  ;;  %14140 = vst [vmem:[#allocation39_spill] sm:$0xff] %v12183_v7  ;;  %v12187_v16 = vcombine.high %v4170_v4, %v4174_v25  ;;  %v12205_v36 = vcombine.low %v4170_v4, %v4174_v25  ;;  %v4187_v4 = vld [vmem:[%s13629_s2 + $0x198] sm:$0xff] }
 0x55d   :  { %4987 = vmatpush1.bf16.msra.mxu0 %v12055_v31  ;;  %5028 = vmatpush1.bf16.msra.mxu1 %v12057_v52  ;;  %v4191_v25 = vld [vmem:[%s13629_s2 + $0x1b8] sm:$0xff] }
 0x55e   :  { %5018 = vmatprep.mubr.bf16.mxu0 %v4135_v37  ;;  %5059 = vmatprep.mubr.bf16.mxu1 %v4135_v37  ;;  %v4171_v37 = vld [vmem:[%s13629_s2 + $0x118] sm:$0xff]  ;;  %14141 = vst [vmem:[#allocation40_spill] sm:$0xff] %v12187_v16  ;;  %14143 = vst [vmem:[#allocation42_spill] sm:$0xff] %v12205_v36 }
 0x55f   :  { %4988 = vmatprep.subr.bf16.mxu0 %v12116_v49  ;;  %5029 = vmatprep.subr.bf16.mxu1 %v12118_v5  ;;  %v12207_v39 = vcombine.low %v4171_v37, %v4175_v19 }
 0x561   :  { %4989 = vmatpush1.bf16.msra.mxu0 %v12133_v15  ;;  %5030 = vmatpush1.bf16.msra.mxu1 %v12135_v13  ;;  %14144 = vst [vmem:[#allocation43_spill] sm:$0xff] %v12207_v39 }
 0x562   :  { %4990 = vmatprep.subr.bf16.mxu0 %v12137_v1  ;;  %5031 = vmatprep.subr.bf16.mxu1 %v12139_v58  ;;  %v12189_v58 = vcombine.high %v4171_v37, %v4175_v19  ;;  %v4178_v1 = vld [vmem:[%s13629_s2 + $0x150] sm:$0xff]  ;;  %v12231_v19 = vcombine.low %v4179_v10, %v4183_v44 }
 0x564   :  { %14142 = vst [vmem:[#allocation41_spill] sm:$0xff] %v12189_v58  ;;  %14148 = vst [vmem:[#allocation47_spill] sm:$0xff] %v12231_v19 }
 0x565   :  { %4991 = vmatpush1.bf16.msra.mxu0 %v12157_v62  ;;  %5032 = vmatpush1.bf16.msra.mxu1 %v12159_v12  ;;  %v4182_v12 = vld [vmem:[%s13629_s2 + $0x170] sm:$0xff] }
 0x566   :  { %4992 = vmatprep.subr.bf16.mxu0 %v12163_v3  ;;  %5033 = vmatprep.subr.bf16.mxu1 %v12165_v53  ;;  %v12211_v53 = vcombine.high %v4178_v1, %v4182_v12  ;;  %v12213_v3 = vcombine.high %v4179_v10, %v4183_v44  ;;  %v4186_v62 = vld [vmem:[%s13629_s2 + $0x190] sm:$0xff]  ;;  %v12229_v37 = vcombine.low %v4178_v1, %v4182_v12  ;;  %v4195_v1 = vld [vmem:[%s13629_s2 + $0x1d8] sm:$0xff] }
 0x567   :  { %v4199_v12 = vld [vmem:[%s13629_s2 + $0x1f8] sm:$0xff]  ;;  %v12255_v44 = vcombine.low %v4187_v4, %v4191_v25 }
 0x568   :  { %14145 = vst [vmem:[#allocation44_spill] sm:$0xff] %v12211_v53  ;;  %14146 = vst [vmem:[#allocation45_spill] sm:$0xff] %v12213_v3 }
 0x569   :  { %4993 = vmatpush1.bf16.msra.mxu0 %v12181_v34  ;;  %5034 = vmatpush1.bf16.msra.mxu1 %v12183_v7  ;;  %v4190_v7 = vld [vmem:[%s13629_s2 + $0x1b0] sm:$0xff]  ;;  %14147 = vst [vmem:[#allocation46_spill] sm:$0xff] %v12229_v37  ;;  %14152 = vst [vmem:[#allocation51_spill] sm:$0xff] %v12255_v44 }
 0x56a   :  { %4994 = vmatprep.subr.bf16.mxu0 %v12187_v16  ;;  %5035 = vmatprep.subr.bf16.mxu1 %v12189_v58  ;;  %v12235_v58 = vcombine.high %v4186_v62, %v4190_v7  ;;  %v12237_v16 = vcombine.high %v4187_v4, %v4191_v25  ;;  %v4194_v34 = vld [vmem:[%s13629_s2 + $0x1d0] sm:$0xff]  ;;  %v12253_v10 = vcombine.low %v4186_v62, %v4190_v7  ;;  %v4203_v62 = vld [vmem:[%s13629_s2 + $0x218] sm:$0xff] }
 0x56b   :  { %v4207_v7 = vld [vmem:[%s13629_s2 + $0x238] sm:$0xff]  ;;  %v12279_v25 = vcombine.low %v4195_v1, %v4199_v12 }
 0x56c   :  { %14149 = vst [vmem:[#allocation48_spill] sm:$0xff] %v12235_v58  ;;  %14150 = vst [vmem:[#allocation49_spill] sm:$0xff] %v12237_v16 }
 0x56d   :  { %4995 = vmatpush1.bf16.msra.mxu0 %v12205_v36  ;;  %5036 = vmatpush1.bf16.msra.mxu1 %v12207_v39  ;;  %v4198_v39 = vld [vmem:[%s13629_s2 + $0x1f0] sm:$0xff]  ;;  %14151 = vst [vmem:[#allocation50_spill] sm:$0xff] %v12253_v10  ;;  %14156 = vst [vmem:[#allocation55_spill] sm:$0xff] %v12279_v25 }
 0x56e   :  { %4996 = vmatprep.subr.bf16.mxu0 %v12211_v53  ;;  %5037 = vmatprep.subr.bf16.mxu1 %v12213_v3  ;;  %v12259_v3 = vcombine.high %v4194_v34, %v4198_v39  ;;  %v12261_v53 = vcombine.high %v4195_v1, %v4199_v12  ;;  %v4202_v36 = vld [vmem:[%s13629_s2 + $0x210] sm:$0xff]  ;;  %v12277_v4 = vcombine.low %v4194_v34, %v4198_v39  ;;  %v4211_v34 = vld [vmem:[%s13629_s2 + $0x258] sm:$0xff] }
 0x56f   :  { %v4215_v39 = vld [vmem:[%s13629_s2 + $0x278] sm:$0xff]  ;;  %v12303_v12 = vcombine.low %v4203_v62, %v4207_v7 }
 0x570   :  { %14153 = vst [vmem:[#allocation52_spill] sm:$0xff] %v12259_v3  ;;  %14154 = vst [vmem:[#allocation53_spill] sm:$0xff] %v12261_v53 }
 0x571   :  { %4997 = vmatpush1.bf16.msra.mxu0 %v12229_v37  ;;  %5038 = vmatpush1.bf16.msra.mxu1 %v12231_v19  ;;  %v4206_v19 = vld [vmem:[%s13629_s2 + $0x230] sm:$0xff]  ;;  %14155 = vst [vmem:[#allocation54_spill] sm:$0xff] %v12277_v4  ;;  %14160 = vst [vmem:[#allocation59_spill] sm:$0xff] %v12303_v12 }
 0x572   :  { %4998 = vmatprep.subr.bf16.mxu0 %v12235_v58  ;;  %5039 = vmatprep.subr.bf16.mxu1 %v12237_v16  ;;  %v12283_v16 = vcombine.high %v4202_v36, %v4206_v19  ;;  %v12285_v58 = vcombine.high %v4203_v62, %v4207_v7  ;;  %v4210_v37 = vld [vmem:[%s13629_s2 + $0x250] sm:$0xff]  ;;  %v12301_v1 = vcombine.low %v4202_v36, %v4206_v19  ;;  %v4219_v36 = vld [vmem:[%s13629_s2 + $0x298] sm:$0xff] }
 0x573   :  { %v4223_v19 = vld [vmem:[%s13629_s2 + $0x2b8] sm:$0xff]  ;;  %v12327_v7 = vcombine.low %v4211_v34, %v4215_v39 }
 0x574   :  { %14157 = vst [vmem:[#allocation56_spill] sm:$0xff] %v12283_v16  ;;  %14158 = vst [vmem:[#allocation57_spill] sm:$0xff] %v12285_v58 }
 0x575   :  { %4999 = vmatpush1.bf16.msra.mxu0 %v12253_v10  ;;  %5040 = vmatpush1.bf16.msra.mxu1 %v12255_v44  ;;  %v4214_v44 = vld [vmem:[%s13629_s2 + $0x270] sm:$0xff]  ;;  %14159 = vst [vmem:[#allocation58_spill] sm:$0xff] %v12301_v1  ;;  %14164 = vst [vmem:[#allocation63_spill] sm:$0xff] %v12327_v7 }
 0x576   :  { %5000 = vmatprep.subr.bf16.mxu0 %v12259_v3  ;;  %5041 = vmatprep.subr.bf16.mxu1 %v12261_v53  ;;  %v12307_v53 = vcombine.high %v4210_v37, %v4214_v44  ;;  %v12309_v3 = vcombine.high %v4211_v34, %v4215_v39  ;;  %v4218_v10 = vld [vmem:[%s13629_s2 + $0x290] sm:$0xff]  ;;  %v12325_v62 = vcombine.low %v4210_v37, %v4214_v44  ;;  %v4227_v37 = vld [vmem:[%s13629_s2 + $0x2d8] sm:$0xff] }
 0x577   :  { %v4231_v44 = vld [vmem:[%s13629_s2 + $0x2f8] sm:$0xff]  ;;  %v12351_v39 = vcombine.low %v4219_v36, %v4223_v19 }
 0x578   :  { %14161 = vst [vmem:[#allocation60_spill] sm:$0xff] %v12307_v53  ;;  %14162 = vst [vmem:[#allocation61_spill] sm:$0xff] %v12309_v3 }
 0x579   :  { %5001 = vmatpush1.bf16.msra.mxu0 %v12277_v4  ;;  %5042 = vmatpush1.bf16.msra.mxu1 %v12279_v25  ;;  %v4222_v25 = vld [vmem:[%s13629_s2 + $0x2b0] sm:$0xff]  ;;  %14163 = vst [vmem:[#allocation62_spill] sm:$0xff] %v12325_v62  ;;  %14168 = vst [vmem:[#allocation67_spill] sm:$0xff] %v12351_v39 }
 0x57a   :  { %5002 = vmatprep.subr.bf16.mxu0 %v12283_v16  ;;  %5043 = vmatprep.subr.bf16.mxu1 %v12285_v58  ;;  %v12331_v58 = vcombine.high %v4218_v10, %v4222_v25  ;;  %v12333_v16 = vcombine.high %v4219_v36, %v4223_v19  ;;  %v4226_v4 = vld [vmem:[%s13629_s2 + $0x2d0] sm:$0xff]  ;;  %v12349_v34 = vcombine.low %v4218_v10, %v4222_v25  ;;  %v4235_v10 = vld [vmem:[%s13629_s2 + $0x318] sm:$0xff] }
 0x57b   :  { %v4239_v25 = vld [vmem:[%s13629_s2 + $0x338] sm:$0xff]  ;;  %v12375_v19 = vcombine.low %v4227_v37, %v4231_v44 }
 0x57c   :  { %14165 = vst [vmem:[#allocation64_spill] sm:$0xff] %v12331_v58  ;;  %14166 = vst [vmem:[#allocation65_spill] sm:$0xff] %v12333_v16 }
 0x57d   :  { %5003 = vmatpush1.bf16.msra.mxu0 %v12301_v1  ;;  %5044 = vmatpush1.bf16.msra.mxu1 %v12303_v12  ;;  %v4230_v12 = vld [vmem:[%s13629_s2 + $0x2f0] sm:$0xff]  ;;  %14167 = vst [vmem:[#allocation66_spill] sm:$0xff] %v12349_v34  ;;  %14172 = vst [vmem:[#allocation71_spill] sm:$0xff] %v12375_v19 }
 0x57e   :  { %5004 = vmatprep.subr.bf16.mxu0 %v12307_v53  ;;  %5045 = vmatprep.subr.bf16.mxu1 %v12309_v3  ;;  %v12355_v3 = vcombine.high %v4226_v4, %v4230_v12  ;;  %v12357_v53 = vcombine.high %v4227_v37, %v4231_v44  ;;  %v4234_v1 = vld [vmem:[%s13629_s2 + $0x310] sm:$0xff]  ;;  %v12373_v36 = vcombine.low %v4226_v4, %v4230_v12  ;;  %v4243_v4 = vld [vmem:[%s13629_s2 + $0x358] sm:$0xff] }
 0x57f   :  { %v4247_v12 = vld [vmem:[%s13629_s2 + $0x378] sm:$0xff]  ;;  %v12399_v44 = vcombine.low %v4235_v10, %v4239_v25 }
 0x580   :  { %14169 = vst [vmem:[#allocation68_spill] sm:$0xff] %v12355_v3  ;;  %14170 = vst [vmem:[#allocation69_spill] sm:$0xff] %v12357_v53 }
 0x581   :  { %5005 = vmatpush1.bf16.msra.mxu0 %v12325_v62  ;;  %5046 = vmatpush1.bf16.msra.mxu1 %v12327_v7  ;;  %v4238_v7 = vld [vmem:[%s13629_s2 + $0x330] sm:$0xff]  ;;  %14171 = vst [vmem:[#allocation70_spill] sm:$0xff] %v12373_v36  ;;  %14176 = vst [vmem:[#allocation75_spill] sm:$0xff] %v12399_v44 }
 0x582   :  { %5006 = vmatprep.subr.bf16.mxu0 %v12331_v58  ;;  %5047 = vmatprep.subr.bf16.mxu1 %v12333_v16  ;;  %v12379_v16 = vcombine.high %v4234_v1, %v4238_v7  ;;  %v12381_v58 = vcombine.high %v4235_v10, %v4239_v25  ;;  %v4242_v62 = vld [vmem:[%s13629_s2 + $0x350] sm:$0xff]  ;;  %v12397_v37 = vcombine.low %v4234_v1, %v4238_v7  ;;  %v4251_v1 = vld [vmem:[%s13629_s2 + $0x398] sm:$0xff] }
 0x583   :  { %v4255_v7 = vld [vmem:[%s13629_s2 + $0x3b8] sm:$0xff]  ;;  %v12423_v25 = vcombine.low %v4243_v4, %v4247_v12 }
 0x584   :  { %14173 = vst [vmem:[#allocation72_spill] sm:$0xff] %v12379_v16  ;;  %14174 = vst [vmem:[#allocation73_spill] sm:$0xff] %v12381_v58 }
 0x585   :  { %5007 = vmatpush1.bf16.msra.mxu0 %v12349_v34  ;;  %5048 = vmatpush1.bf16.msra.mxu1 %v12351_v39  ;;  %v4246_v39 = vld [vmem:[%s13629_s2 + $0x370] sm:$0xff]  ;;  %14175 = vst [vmem:[#allocation74_spill] sm:$0xff] %v12397_v37 }
 0x586   :  { %5008 = vmatprep.subr.bf16.mxu0 %v12355_v3  ;;  %5049 = vmatprep.subr.bf16.mxu1 %v12357_v53  ;;  %v12403_v53 = vcombine.high %v4242_v62, %v4246_v39  ;;  %v12405_v3 = vcombine.high %v4243_v4, %v4247_v12  ;;  %v4250_v34 = vld [vmem:[%s13629_s2 + $0x390] sm:$0xff]  ;;  %v12421_v10 = vcombine.low %v4242_v62, %v4246_v39  ;;  %v4259_v62 = vld [vmem:[%s13629_s2 + $0x3d8] sm:$0xff] }
 0x587   :  { %v4263_v39 = vld [vmem:[%s13629_s2 + $0x3f8] sm:$0xff]  ;;  %v12447_v12 = vcombine.low %v4251_v1, %v4255_v7 }
 0x588   :  { %14177 = vst [vmem:[#allocation76_spill] sm:$0xff] %v12403_v53  ;;  %14178 = vst [vmem:[#allocation77_spill] sm:$0xff] %v12405_v3 }
 0x589   :  { %5009 = vmatpush1.bf16.msra.mxu0 %v12373_v36  ;;  %5050 = vmatpush1.bf16.msra.mxu1 %v12375_v19  ;;  %v4254_v19 = vld [vmem:[%s13629_s2 + $0x3b0] sm:$0xff]  ;;  %14179 = vst [vmem:[#allocation78_spill] sm:$0xff] %v12421_v10 }
 0x58a   :  { %5010 = vmatprep.subr.bf16.mxu0 %v12379_v16  ;;  %5051 = vmatprep.subr.bf16.mxu1 %v12381_v58  ;;  %v12427_v58 = vcombine.high %v4250_v34, %v4254_v19  ;;  %v12429_v16 = vcombine.high %v4251_v1, %v4255_v7  ;;  %v4258_v36 = vld [vmem:[%s13629_s2 + $0x3d0] sm:$0xff]  ;;  %v12445_v4 = vcombine.low %v4250_v34, %v4254_v19 }
 0x58d   :  { %5011 = vmatpush1.bf16.msra.mxu0 %v12397_v37  ;;  %5052 = vmatpush1.bf16.msra.mxu1 %v12399_v44  ;;  %v4262_v44 = vld [vmem:[%s13629_s2 + $0x3f0] sm:$0xff] }
 0x58e   :  { %5012 = vmatprep.subr.bf16.mxu0 %v12403_v53  ;;  %5053 = vmatprep.subr.bf16.mxu1 %v12405_v3  ;;  %v12451_v3 = vcombine.high %v4258_v36, %v4262_v44  ;;  %v12453_v53 = vcombine.high %v4259_v62, %v4263_v39  ;;  %v12457_v37 = vcombine.low %v4258_v36, %v4262_v44 }
 0x591   :  { %5013 = vmatpush1.bf16.msra.mxu0 %v12421_v10  ;;  %5054 = vmatpush1.bf16.msra.mxu1 %v12423_v25  ;;  %v12459_v10 = vcombine.low %v4259_v62, %v4263_v39 }
 0x592   :  { %5014 = vmatprep.subr.bf16.mxu0 %v12427_v58  ;;  %5055 = vmatprep.subr.bf16.mxu1 %v12429_v16 }
 0x595   :  { %5015 = vmatpush1.bf16.msra.mxu0 %v12445_v4  ;;  %5056 = vmatpush1.bf16.msra.mxu1 %v12447_v12 }
 0x596   :  { %5016 = vmatprep.subr.bf16.mxu0 %v12451_v3  ;;  %5057 = vmatprep.subr.bf16.mxu1 %v12453_v53 }
 0x599   :  { %5017 = vmatpush1.bf16.msra.mxu0 %v12457_v37  ;;  %5058 = vmatpush1.bf16.msra.mxu1 %v12459_v10 }
 0x59a   :  { %5930 = vmatprep.subr.bf16.mxu0 %v11668_v11  ;;  %5971 = vmatprep.subr.bf16.mxu1 %v11681_v51  ;;  %v14181_v11 = vld [vmem:[#allocation7_spill] sm:$0xff]  ;;  %v14183_v51 = vld [vmem:[#allocation4_spill] sm:$0xff] }
 0x59c   :  { %5019 = vmatmul.mubr.bf16.vlgmr.msra.gmra.mrb[36].mxu0 %v12108_v59  ;;  %5060 = vmatmul.mubr.bf16.vlgmr.msra.gmra.mrb[36].mxu1 %v12108_v59  ;;  %v8955_v59 = vld [vmem:[%s13631_s0 + $0x88] sm:$0xff] }
 0x59d   :  { %5931 = vmatpush1.bf16.msra.mxu0 %v11666_v0  ;;  %5972 = vmatpush1.bf16.msra.mxu1 %v11679_v20  ;;  %v14180_v0 = vld [vmem:[#allocation2_spill] sm:$0xff]  ;;  %v14182_v20 = vld [vmem:[#allocation3_spill] sm:$0xff] }
 0x59e   :  { %5932 = vmatprep.subr.bf16.mxu0 %v11683_v28  ;;  %5973 = vmatprep.subr.bf16.mxu1 %v11695_v14  ;;  %v14184_v28 = vld [vmem:[#allocation5_spill] sm:$0xff]  ;;  %v14185_v14 = vld [vmem:[#allocation11_spill] sm:$0xff] }
 0x5a1   :  { %5933 = vmatpush1.bf16.msra.mxu0 %v11708_v61  ;;  %5974 = vmatpush1.bf16.msra.mxu1 %v11712_v18  ;;  %v14186_v61 = vld [vmem:[#allocation6_spill] sm:$0xff]  ;;  %v14187_v18 = vld [vmem:[#allocation8_spill] sm:$0xff] }
 0x5a2   :  { %5934 = vmatprep.subr.bf16.mxu0 %v11714_v42  ;;  %5975 = vmatprep.subr.bf16.mxu1 %v11717_v56  ;;  %v14188_v42 = vld [vmem:[#allocation9_spill] sm:$0xff]  ;;  %v14189_v56 = vld [vmem:[#allocation15_spill] sm:$0xff] }
 0x5a5   :  { %5935 = vmatpush1.bf16.msra.mxu0 %v11732_v23  ;;  %5976 = vmatpush1.bf16.msra.mxu1 %v11736_v35  ;;  %v14190_v23 = vld [vmem:[#allocation10_spill] sm:$0xff]  ;;  %v14191_v35 = vld [vmem:[#allocation12_spill] sm:$0xff] }
 0x5a6   :  { %5936 = vmatprep.subr.bf16.mxu0 %v11738_v45  ;;  %5977 = vmatprep.subr.bf16.mxu1 %v11741_v47  ;;  %v14192_v45 = vld [vmem:[#allocation13_spill] sm:$0xff]  ;;  %v14193_v47 = vld [vmem:[#allocation19_spill] sm:$0xff] }
 0x5a9   :  { %5937 = vmatpush1.bf16.msra.mxu0 %v11744_v41  ;;  %5978 = vmatpush1.bf16.msra.mxu1 %v11748_v33  ;;  %v14194_v41 = vld [vmem:[#allocation14_spill] sm:$0xff]  ;;  %v14195_v33 = vld [vmem:[#allocation16_spill] sm:$0xff] }
 0x5aa   :  { %5938 = vmatprep.subr.bf16.mxu0 %v11762_v57  ;;  %5979 = vmatprep.subr.bf16.mxu1 %v11771_v27  ;;  %v14196_v57 = vld [vmem:[#allocation17_spill] sm:$0xff]  ;;  %v14199_v27 = vld [vmem:[#allocation22_spill] sm:$0xff] }
 0x5ad   :  { %5939 = vmatpush1.bf16.msra.mxu0 %v11767_v6  ;;  %5980 = vmatpush1.bf16.msra.mxu1 %v11769_v29  ;;  %v14197_v6 = vld [vmem:[#allocation20_spill] sm:$0xff]  ;;  %v14198_v29 = vld [vmem:[#allocation18_spill] sm:$0xff] }
 0x5ae   :  { %5940 = vmatprep.subr.bf16.mxu0 %v11786_v17  ;;  %5981 = vmatprep.subr.bf16.mxu1 %v11795_v50  ;;  %v14200_v17 = vld [vmem:[#allocation21_spill] sm:$0xff] }
 0x5af   :  { %v14203_v50 = vld [vmem:[#allocation25_spill] sm:$0xff] }
 0x5b1   :  { %5941 = vmatpush1.bf16.msra.mxu0 %v11791_v32  ;;  %5982 = vmatpush1.bf16.msra.mxu1 %v11793_v40  ;;  %v14201_v32 = vld [vmem:[#allocation24_spill] sm:$0xff]  ;;  %v14202_v40 = vld [vmem:[#allocation23_spill] sm:$0xff] }
 0x5b2   :  { %5942 = vmatprep.subr.bf16.mxu0 %v11810_v22  ;;  %5983 = vmatprep.subr.bf16.mxu1 %v11819_v43  ;;  %v14204_v22 = vld [vmem:[#allocation26_spill] sm:$0xff]  ;;  %v14207_v43 = vld [vmem:[#allocation29_spill] sm:$0xff] }
 0x5b5   :  { %5943 = vmatpush1.bf16.msra.mxu0 %v11815_v63  ;;  %5984 = vmatpush1.bf16.msra.mxu1 %v11817_v21  ;;  %v14205_v63 = vld [vmem:[#allocation28_spill] sm:$0xff]  ;;  %v14206_v21 = vld [vmem:[#allocation27_spill] sm:$0xff] }
 0x5b6   :  { %5944 = vmatprep.subr.bf16.mxu0 %v11834_v38  ;;  %5985 = vmatprep.subr.bf16.mxu1 %v11843_v46  ;;  %v14208_v38 = vld [vmem:[#allocation30_spill] sm:$0xff] }
 0x5b9   :  { %5945 = vmatpush1.bf16.msra.mxu0 %v11839_v24  ;;  %5986 = vmatpush1.bf16.msra.mxu1 %v11841_v54  ;;  %v14209_v24 = vld [vmem:[#allocation31_spill] sm:$0xff]  ;;  %v8954_v54 = vld [vmem:[%s13631_s0 + $0x80] sm:$0xff] }
 0x5ba   :  { %5946 = vmatprep.subr.bf16.mxu0 %v11858_v8  ;;  %5987 = vmatprep.subr.bf16.mxu1 %v11867_v60  ;;  %v5070_v46 = vunpack.c.l.bf16 %v8954_v54  ;;  %v5071_v8 = vunpack.c.h.bf16 %v8954_v54 }
 0x5bd   :  { %5947 = vmatpush1.bf16.msra.mxu0 %v11863_v55  ;;  %5988 = vmatpush1.bf16.msra.mxu1 %v11865_v48 }
 0x5be   :  { %5948 = vmatprep.subr.bf16.mxu0 %v14180_v0  ;;  %5989 = vmatprep.subr.bf16.mxu1 %v14181_v11  ;;  %v5073_v11 = vunpack.c.h.bf16 %v8955_v59 }
 0x5c1   :  { %5949 = vmatpush1.bf16.msra.mxu0 %v14182_v20  ;;  %5990 = vmatpush1.bf16.msra.mxu1 %v14183_v51  ;;  %v5072_v51 = vunpack.c.l.bf16 %v8955_v59 }
 0x5c2   :  { %5950 = vmatprep.subr.bf16.mxu0 %v14184_v28  ;;  %5991 = vmatprep.subr.bf16.mxu1 %v14185_v14 }
 0x5c5   :  { %5951 = vmatpush1.bf16.msra.mxu0 %v14186_v61  ;;  %5992 = vmatpush1.bf16.msra.mxu1 %v14187_v18 }
 0x5c6   :  { %5952 = vmatprep.subr.bf16.mxu0 %v14188_v42  ;;  %5993 = vmatprep.subr.bf16.mxu1 %v14189_v56 }
 0x5c9   :  { %5953 = vmatpush1.bf16.msra.mxu0 %v14190_v23  ;;  %5994 = vmatpush1.bf16.msra.mxu1 %v14191_v35 }
 0x5ca   :  { %5954 = vmatprep.subr.bf16.mxu0 %v14192_v45  ;;  %5995 = vmatprep.subr.bf16.mxu1 %v14193_v47 }
 0x5cd   :  { %5955 = vmatpush1.bf16.msra.mxu0 %v14194_v41  ;;  %5996 = vmatpush1.bf16.msra.mxu1 %v14195_v33 }
 0x5ce   :  { %5956 = vmatprep.subr.bf16.mxu0 %v14196_v57  ;;  %5997 = vmatprep.subr.bf16.mxu1 %v14197_v6  ;;  %v5143_v6 = vpop.permute.xlu1 %5142 }
 0x5cf   :  { %vm5144_vm6 = vcmp.eq.s32.totalorder %v5143_v6, 1 }
 0x5d1   :  { %5957 = vmatpush1.bf16.msra.mxu0 %v14198_v29  ;;  %5998 = vmatpush1.bf16.msra.mxu1 %v14199_v27 }
 0x5d2   :  { %5958 = vmatprep.subr.bf16.mxu0 %v14200_v17  ;;  %5999 = vmatprep.subr.bf16.mxu1 %v14201_v32 }
 0x5d5   :  { %5959 = vmatpush1.bf16.msra.mxu0 %v14202_v40  ;;  %6000 = vmatpush1.bf16.msra.mxu1 %v14203_v50 }
 0x5d6   :  { %5960 = vmatprep.subr.bf16.mxu0 %v14204_v22  ;;  %6001 = vmatprep.subr.bf16.mxu1 %v14205_v63 }
 0x5d9   :  { %5961 = vmatpush1.bf16.msra.mxu0 %v14206_v21  ;;  %6002 = vmatpush1.bf16.msra.mxu1 %v14207_v43  ;;  %v8956_v21 = vld [vmem:[%s13631_s0 + $0x70] sm:$0xff] }
 0x5da   :  { %6012 = vmatprep.subr.bf16.mxu0 %v14208_v38  ;;  %6053 = vmatprep.subr.bf16.mxu1 %v14209_v24  ;;  %v5080_v43 = vunpack.c.l.bf16 %v8956_v21  ;;  %v5081_v38 = vunpack.c.h.bf16 %v8956_v21  ;;  %v14216_v21 = vld [vmem:[#allocation38_spill] sm:$0xff] }
 0x62f   :  { %v4938_v55 = vpop.f32.mrb[32].mxu0  ;;  %v4979_v48 = vpop.f32.mrb[32].mxu1 }
 0x630   :  { %v5074_v60 = vadd.f32 %v5070_v46, %v4938_v55  ;;  %v4940_v34 = vpop.f32.mrb[33].mxu0  ;;  %v4981_v36 = vpop.f32.mrb[33].mxu1  ;;  %v5076_v14 = vadd.f32 %v5072_v51, %v4979_v48  ;;  %v8957_v46 = vld [vmem:[%s13631_s0 + $0x78] sm:$0xff] }
 0x631   :  { %v5075_v19 = vadd.f32 %v5071_v8, %v4940_v34  ;;  %v4942_v44 = vpop.f32.mrb[34].mxu0  ;;  %v4983_v1 = vpop.f32.mrb[34].mxu1  ;;  %v5077_v20 = vadd.f32 %v5073_v11, %v4981_v36 }
 0x632   :  { %v8960_v7 = vmul.f32 -1.442695, %v5074_v60  ;;  %v4943_v62 = vpop.f32.mrb[35].mxu0  ;;  %v4984_v39 = vpop.f32.mrb[35].mxu1  ;;  %v5083_v44 = vunpack.c.h.bf16 %v8957_v46 }
 0x633   :  { %v8961_v0 = vmul.f32 -1.442695, %v5075_v19  ;;  %v8962_v28 = vmul.f32 -1.442695, %v5077_v20 }
 0x634   :  { %9522 = vpow2.f32 %v8960_v7  ;;  %v5082_v7 = vunpack.c.l.bf16 %v8957_v46  ;;  %v14226_v46 = vld [vmem:[#allocation48_spill] sm:$0xff] }
 0x635   :  { %9524 = vpow2.f32 %v8961_v0 }
 0x636   :  { %9526 = vpow2.f32 %v8962_v28 }
 0x637   :  { %9528 = vtanh.f32 %v5076_v14 }
 0x63e   :  { %v9523_v61 = vpop.eup %9522 }
 0x63f   :  { %v9525_v18 = vpop.eup %9524  ;;  %v5095_v42 = vadd.f32 1.0, %v9523_v61 }
 0x640   :  { %v5101_v56 = vadd.f32 1.0, %v9525_v18  ;;  %v9527_v23 = vpop.eup %9526 }
 0x641   :  { %9530 = vrcp.f32 %v5095_v42  ;;  %v9529_v35 = vpop.eup %9528  ;;  %v5108_v33 = vadd.f32 1.0, %v9527_v23 }
 0x642   :  { %9532 = vrcp.f32 %v5101_v56 }
 0x643   :  { %9534 = vrcp.f32 %v5108_v33 }
 0x64b   :  { %v9531_v45 = vpop.eup %9530 }
 0x64c   :  { %v9533_v47 = vpop.eup %9532  ;;  %v5112_v41 = vmul.f32 %v9531_v45, %v9529_v35  ;;  %v5151_v35 = vpop.permute.xlu0 %5150 }
 0x64d   :  { %v5111_v57 = vmul.f32 %v9533_v47, %v12071_v26  ;;  %v9535_v17 = vpop.eup %9534  ;;  %vm5152_vm7 = vcmp.eq.s32.totalorder %v5151_v35, 1  ;;  %v14252_v35 = vld [vmem:[#allocation74_spill] sm:$0xff] }
 0x64f   :  { %v5113_v29 = vadd.f32 %v5112_v41, %v5111_v57 }
 0x651   :  { %9536 = vtanh.f32 %v5113_v29  ;;  %v12541_v27 = vsel %vm5144_vm6, %v5113_v29, %v12071_v26 }
 0x65b   :  { %v9537_v32 = vpop.eup %9536 }
 0x65c   :  { %v5115_v40 = vmul.f32 %v9537_v32, %v9535_v17 }
 0x65e   :  { %v5145_v50 = vsel %vm5144_vm6, %v5115_v40, 0.0  ;;  %v12544_v22 = vsel %vm5144_vm6, %v5115_v40, %v12074_v2 }
 0x65f   :  { %v5146_v63 = vpack.c.bf16 %v5145_v50, %v5145_v50  ;;  %v12566_v40 = vpack.c.bf16 %v12544_v22, %v12544_v22  ;;  %v14212_v50 = vld [vmem:[#allocation34_spill] sm:$0xff] }
 0x661   :  { %8966 = vst [vmem:[%s13632_s3 + $0x20] sm:$0xf] %v5146_v63  ;;  %v14213_v63 = vld [vmem:[#allocation35_spill] sm:$0xff] }
 0x66f   :  { %v5020_v26 = vpop.f32.mrb[36].mxu0  ;;  %v5061_v24 = vpop.f32.mrb[36].mxu1 }
 0x670   :  { %v5084_v54 = vadd.f32 %v5080_v43, %v5020_v26  ;;  %v5022_v2 = vpop.f32.mrb[37].mxu0  ;;  %v5063_v8 = vpop.f32.mrb[37].mxu1  ;;  %v5086_v39 = vadd.f32 %v5082_v7, %v5061_v24  ;;  %v14221_v43 = vld [vmem:[#allocation43_spill] sm:$0xff]  ;;  %v14223_v26 = vld [vmem:[#allocation45_spill] sm:$0xff]  ;;  %v14224_v24 = vld [vmem:[#allocation46_spill] sm:$0xff] }
 0x671   :  { %v5085_v55 = vadd.f32 %v5081_v38, %v5022_v2  ;;  %v5024_v48 = vpop.f32.mrb[38].mxu0  ;;  %v5065_v60 = vpop.f32.mrb[38].mxu1  ;;  %v5087_v1 = vadd.f32 %v5083_v44, %v5063_v8  ;;  %v14222_v38 = vld [vmem:[#allocation44_spill] sm:$0xff]  ;;  %v14227_v2 = vld [vmem:[#allocation49_spill] sm:$0xff]  ;;  %v14228_v8 = vld [vmem:[#allocation50_spill] sm:$0xff] }
 0x672   :  { %v8963_v59 = vmul.f32 -1.442695, %v5084_v54  ;;  %v5025_v34 = vpop.f32.mrb[39].mxu0  ;;  %v5066_v36 = vpop.f32.mrb[39].mxu1  ;;  %v14225_v54 = vld [vmem:[#allocation47_spill] sm:$0xff]  ;;  %v14230_v48 = vld [vmem:[#allocation52_spill] sm:$0xff] }
 0x673   :  { %v8964_v19 = vmul.f32 -1.442695, %v5085_v55  ;;  %v8965_v62 = vmul.f32 -1.442695, %v5087_v1  ;;  %v14229_v55 = vld [vmem:[#allocation51_spill] sm:$0xff]  ;;  %v14231_v60 = vld [vmem:[#allocation53_spill] sm:$0xff] }
 0x674   :  { %9538 = vpow2.f32 %v8963_v59  ;;  %v14232_v59 = vld [vmem:[#allocation54_spill] sm:$0xff]  ;;  %v14233_v34 = vld [vmem:[#allocation55_spill] sm:$0xff]  ;;  %v14234_v36 = vld [vmem:[#allocation56_spill] sm:$0xff] }
 0x675   :  { %9540 = vpow2.f32 %v8964_v19  ;;  %v14235_v19 = vld [vmem:[#allocation57_spill] sm:$0xff]  ;;  %v14236_v44 = vld [vmem:[#allocation58_spill] sm:$0xff]  ;;  %v14237_v1 = vld [vmem:[#allocation59_spill] sm:$0xff] }
 0x676   :  { %9542 = vpow2.f32 %v8965_v62  ;;  %v14238_v7 = vld [vmem:[#allocation60_spill] sm:$0xff]  ;;  %v14239_v62 = vld [vmem:[#allocation61_spill] sm:$0xff] }
 0x677   :  { %9544 = vtanh.f32 %v5086_v39  ;;  %v14240_v39 = vld [vmem:[#allocation62_spill] sm:$0xff] }
 0x67e   :  { %v9539_v0 = vpop.eup %9538 }
 0x67f   :  { %v9541_v11 = vpop.eup %9540  ;;  %v5119_v20 = vadd.f32 1.0, %v9539_v0  ;;  %v14241_v0 = vld [vmem:[#allocation63_spill] sm:$0xff] }
 0x680   :  { %v5125_v51 = vadd.f32 1.0, %v9541_v11  ;;  %v9543_v28 = vpop.eup %9542  ;;  %v14242_v11 = vld [vmem:[#allocation64_spill] sm:$0xff] }
 0x681   :  { %9546 = vrcp.f32 %v5119_v20  ;;  %v9545_v14 = vpop.eup %9544  ;;  %v5132_v56 = vadd.f32 1.0, %v9543_v28  ;;  %v14243_v20 = vld [vmem:[#allocation65_spill] sm:$0xff]  ;;  %v14245_v28 = vld [vmem:[#allocation67_spill] sm:$0xff] }
 0x682   :  { %9548 = vrcp.f32 %v5125_v51  ;;  %v14244_v51 = vld [vmem:[#allocation66_spill] sm:$0xff] }
 0x683   :  { %9550 = vrcp.f32 %v5132_v56  ;;  %v14250_v56 = vld [vmem:[#allocation72_spill] sm:$0xff] }
 0x68b   :  { %v9547_v61 = vpop.eup %9546 }
 0x68c   :  { %v9549_v18 = vpop.eup %9548  ;;  %v5136_v42 = vmul.f32 %v9547_v61, %v9545_v14  ;;  %v14246_v14 = vld [vmem:[#allocation68_spill] sm:$0xff]  ;;  %v14247_v61 = vld [vmem:[#allocation69_spill] sm:$0xff] }
 0x68d   :  { %v5135_v23 = vmul.f32 %v9549_v18, %v12087_v30  ;;  %v9551_v41 = vpop.eup %9550  ;;  %v14248_v18 = vld [vmem:[#allocation70_spill] sm:$0xff] }
 0x68f   :  { %v5137_v45 = vadd.f32 %v5136_v42, %v5135_v23  ;;  %v14249_v42 = vld [vmem:[#allocation71_spill] sm:$0xff]  ;;  %v14251_v23 = vld [vmem:[#allocation73_spill] sm:$0xff] }
 0x691   :  { %9552 = vtanh.f32 %v5137_v45  ;;  %v12557_v47 = vsel %vm5152_vm7, %v5137_v45, %v12087_v30  ;;  %v14210_v30 = vld [vmem:[#allocation32_spill] sm:$0xff]  ;;  %v14253_v45 = vld [vmem:[#allocation75_spill] sm:$0xff] }
 0x69b   :  { %v9553_v33 = vpop.eup %9552 }
 0x69c   :  { %v5139_v57 = vmul.f32 %v9553_v33, %v9551_v41  ;;  %v14254_v41 = vld [vmem:[#allocation76_spill] sm:$0xff]  ;;  %v14255_v33 = vld [vmem:[#allocation77_spill] sm:$0xff] }
 0x69e   :  { %v5153_v6 = vsel %vm5152_vm7, %v5139_v57, 0.0  ;;  %v12560_v29 = vsel %vm5152_vm7, %v5139_v57, %v12093_v9  ;;  %v14211_v9 = vld [vmem:[#allocation33_spill] sm:$0xff]  ;;  %v14256_v57 = vld [vmem:[#allocation78_spill] sm:$0xff] }
 0x69f   :  { %v5154_v17 = vpack.c.bf16 %v5153_v6, %v5153_v6  ;;  %v5161_v32 = vpack.c.bf16 %v12560_v29, %v12560_v29 }
 0x6a1   :  { %8967 = vst [vmem:[%s13632_s3 + $0x1c] sm:$0xf] %v5154_v17  ;;  %5962 = vmatprep.mubr.bf16.mxu0 %v5161_v32  ;;  %6003 = vmatprep.mubr.bf16.mxu1 %v5161_v32 }
 0x6a2   :  { %5963 = vmatmul.mubr.bf16.vlgmr.msra.gmra.mrb[40].mxu0 %v12566_v40  ;;  %6004 = vmatmul.mubr.bf16.vlgmr.msra.gmra.mrb[40].mxu1 %v12566_v40 }
 0x6a3   :  { %6013 = vmatpush1.bf16.msra.mxu0 %v12055_v31  ;;  %6054 = vmatpush1.bf16.msra.mxu1 %v12057_v52  ;;  %v14214_v31 = vld [vmem:[#allocation36_spill] sm:$0xff]  ;;  %v14215_v52 = vld [vmem:[#allocation37_spill] sm:$0xff] }
 0x6a4   :  { %6044 = vmatprep.mubr.bf16.mxu0 %v5161_v32  ;;  %6085 = vmatprep.mubr.bf16.mxu1 %v5161_v32  ;;  %v6197_v32 = vld [vmem:[%s13629_s2 + $0x48] sm:$0xff] }
 0x6a5   :  { %6014 = vmatprep.subr.bf16.mxu0 %v12116_v49  ;;  %6055 = vmatprep.subr.bf16.mxu1 %v12118_v5  ;;  %v14217_v49 = vld [vmem:[#allocation39_spill] sm:$0xff]  ;;  %v14218_v5 = vld [vmem:[#allocation40_spill] sm:$0xff] }
 0x6a7   :  { %6015 = vmatpush1.bf16.msra.mxu0 %v12133_v15  ;;  %6056 = vmatpush1.bf16.msra.mxu1 %v12135_v13  ;;  %v14219_v15 = vld [vmem:[#allocation41_spill] sm:$0xff]  ;;  %v14220_v13 = vld [vmem:[#allocation42_spill] sm:$0xff] }
 0x6a8   :  { %6016 = vmatprep.subr.bf16.mxu0 %v14210_v30  ;;  %6057 = vmatprep.subr.bf16.mxu1 %v14211_v9  ;;  %v6204_v30 = vld [vmem:[%s13629_s2 + $0x80] sm:$0xff] }
 0x6ab   :  { %6017 = vmatpush1.bf16.msra.mxu0 %v14212_v50  ;;  %6058 = vmatpush1.bf16.msra.mxu1 %v14213_v63  ;;  %v6208_v50 = vld [vmem:[%s13629_s2 + $0xa0] sm:$0xff]  ;;  %v6205_v63 = vld [vmem:[%s13629_s2 + $0x88] sm:$0xff] }
 0x6ac   :  { %6018 = vmatprep.subr.bf16.mxu0 %v14214_v31  ;;  %6059 = vmatprep.subr.bf16.mxu1 %v14215_v52  ;;  %v6209_v31 = vld [vmem:[%s13629_s2 + $0xa8] sm:$0xff] }
 0x6af   :  { %6019 = vmatpush1.bf16.msra.mxu0 %v14216_v21  ;;  %6060 = vmatpush1.bf16.msra.mxu1 %v14217_v49  ;;  %v12694_v49 = vcombine.high %v6204_v30, %v6208_v50 }
 0x6b0   :  { %6020 = vmatprep.subr.bf16.mxu0 %v14218_v5  ;;  %6061 = vmatprep.subr.bf16.mxu1 %v14219_v15  ;;  %v12697_v5 = vcombine.high %v6205_v63, %v6209_v31  ;;  %v6212_v15 = vld [vmem:[%s13629_s2 + $0xc0] sm:$0xff] }
 0x6b3   :  { %6021 = vmatpush1.bf16.msra.mxu0 %v14220_v13  ;;  %6062 = vmatpush1.bf16.msra.mxu1 %v14221_v43  ;;  %v6216_v13 = vld [vmem:[%s13629_s2 + $0xe0] sm:$0xff]  ;;  %v6213_v43 = vld [vmem:[%s13629_s2 + $0xc8] sm:$0xff] }
 0x6b4   :  { %6022 = vmatprep.subr.bf16.mxu0 %v14222_v38  ;;  %6063 = vmatprep.subr.bf16.mxu1 %v14223_v26  ;;  %v6217_v38 = vld [vmem:[%s13629_s2 + $0xe8] sm:$0xff]  ;;  %v12712_v26 = vcombine.low %v6204_v30, %v6208_v50 }
 0x6b5   :  { %v6257_v30 = vld [vmem:[%s13629_s2 + $0x228] sm:$0xff] }
 0x6b7   :  { %6023 = vmatpush1.bf16.msra.mxu0 %v14224_v24  ;;  %6064 = vmatpush1.bf16.msra.mxu1 %v14225_v54  ;;  %v12716_v24 = vcombine.low %v6205_v63, %v6209_v31  ;;  %v12718_v54 = vcombine.high %v6212_v15, %v6216_v13 }
 0x6b8   :  { %6024 = vmatprep.subr.bf16.mxu0 %v14226_v46  ;;  %6065 = vmatprep.subr.bf16.mxu1 %v14227_v2  ;;  %v12721_v46 = vcombine.high %v6213_v43, %v6217_v38  ;;  %v12724_v2 = vcombine.low %v6212_v15, %v6216_v13  ;;  %v6260_v15 = vld [vmem:[%s13629_s2 + $0x240] sm:$0xff] }
 0x6b9   :  { %v6264_v13 = vld [vmem:[%s13629_s2 + $0x260] sm:$0xff] }
 0x6bb   :  { %6025 = vmatpush1.bf16.msra.mxu0 %v14228_v8  ;;  %6066 = vmatpush1.bf16.msra.mxu1 %v14229_v55  ;;  %v12728_v8 = vcombine.low %v6213_v43, %v6217_v38  ;;  %v6220_v55 = vld [vmem:[%s13629_s2 + $0x100] sm:$0xff]  ;;  %v6261_v43 = vld [vmem:[%s13629_s2 + $0x248] sm:$0xff]  ;;  %v12862_v38 = vcombine.high %v6260_v15, %v6264_v13 }
 0x6bc   :  { %6026 = vmatprep.subr.bf16.mxu0 %v14230_v48  ;;  %6067 = vmatprep.subr.bf16.mxu1 %v14231_v60  ;;  %v6224_v48 = vld [vmem:[%s13629_s2 + $0x120] sm:$0xff]  ;;  %v6221_v60 = vld [vmem:[%s13629_s2 + $0x108] sm:$0xff] }
 0x6bd   :  { %14257 = vst [vmem:[#allocation2_spill] sm:$0xff] %v12862_v38 }
 0x6bf   :  { %6027 = vmatpush1.bf16.msra.mxu0 %v14232_v59  ;;  %6068 = vmatpush1.bf16.msra.mxu1 %v14233_v34  ;;  %v12742_v59 = vcombine.high %v6220_v55, %v6224_v48  ;;  %v6225_v34 = vld [vmem:[%s13629_s2 + $0x128] sm:$0xff] }
 0x6c0   :  { %6028 = vmatprep.subr.bf16.mxu0 %v14234_v36  ;;  %6069 = vmatprep.subr.bf16.mxu1 %v14235_v19  ;;  %v12747_v36 = vcombine.low %v6220_v55, %v6224_v48  ;;  %v12749_v19 = vcombine.low %v6221_v60, %v6225_v34  ;;  %v6265_v55 = vld [vmem:[%s13629_s2 + $0x268] sm:$0xff]  ;;  %v12867_v48 = vcombine.low %v6260_v15, %v6264_v13  ;;  %v6284_v15 = vld [vmem:[%s13629_s2 + $0x300] sm:$0xff] }
 0x6c1   :  { %v6288_v13 = vld [vmem:[%s13629_s2 + $0x320] sm:$0xff] }
 0x6c2   :  { %14258 = vst [vmem:[#allocation7_spill] sm:$0xff] %v12867_v48 }
 0x6c3   :  { %6029 = vmatpush1.bf16.msra.mxu0 %v14236_v44  ;;  %6070 = vmatpush1.bf16.msra.mxu1 %v14237_v1  ;;  %v12751_v44 = vcombine.high %v6221_v60, %v6225_v34  ;;  %v6228_v1 = vld [vmem:[%s13629_s2 + $0x140] sm:$0xff]  ;;  %v12869_v60 = vcombine.low %v6261_v43, %v6265_v55  ;;  %v12871_v34 = vcombine.high %v6261_v43, %v6265_v55  ;;  %v6285_v43 = vld [vmem:[%s13629_s2 + $0x308] sm:$0xff] }
 0x6c4   :  { %6030 = vmatprep.subr.bf16.mxu0 %v14238_v7  ;;  %6071 = vmatprep.subr.bf16.mxu1 %v14239_v62  ;;  %v6232_v7 = vld [vmem:[%s13629_s2 + $0x160] sm:$0xff]  ;;  %v6229_v62 = vld [vmem:[%s13629_s2 + $0x148] sm:$0xff]  ;;  %v12934_v55 = vcombine.high %v6284_v15, %v6288_v13 }
 0x6c5   :  { %14259 = vst [vmem:[#allocation3_spill] sm:$0xff] %v12869_v60  ;;  %14260 = vst [vmem:[#allocation4_spill] sm:$0xff] %v12871_v34 }
 0x6c6   :  { %14269 = vst [vmem:[#allocation13_spill] sm:$0xff] %v12934_v55 }
 0x6c7   :  { %6031 = vmatpush1.bf16.msra.mxu0 %v14240_v39  ;;  %6072 = vmatpush1.bf16.msra.mxu1 %v14241_v0  ;;  %v12766_v39 = vcombine.high %v6228_v1, %v6232_v7  ;;  %v6233_v0 = vld [vmem:[%s13629_s2 + $0x168] sm:$0xff] }
 0x6c8   :  { %6032 = vmatprep.subr.bf16.mxu0 %v14242_v11  ;;  %6073 = vmatprep.subr.bf16.mxu1 %v14243_v20  ;;  %v12771_v11 = vcombine.low %v6228_v1, %v6232_v7  ;;  %v12773_v20 = vcombine.low %v6229_v62, %v6233_v0  ;;  %v6268_v1 = vld [vmem:[%s13629_s2 + $0x280] sm:$0xff] }
 0x6c9   :  { %v6272_v7 = vld [vmem:[%s13629_s2 + $0x2a0] sm:$0xff] }
 0x6cb   :  { %6033 = vmatpush1.bf16.msra.mxu0 %v14244_v51  ;;  %6074 = vmatpush1.bf16.msra.mxu1 %v14245_v28  ;;  %v12775_v51 = vcombine.high %v6229_v62, %v6233_v0  ;;  %v6236_v28 = vld [vmem:[%s13629_s2 + $0x180] sm:$0xff]  ;;  %v6269_v62 = vld [vmem:[%s13629_s2 + $0x288] sm:$0xff]  ;;  %v12886_v0 = vcombine.high %v6268_v1, %v6272_v7 }
 0x6cc   :  { %6034 = vmatprep.subr.bf16.mxu0 %v14246_v14  ;;  %6075 = vmatprep.subr.bf16.mxu1 %v14247_v61  ;;  %v6240_v14 = vld [vmem:[%s13629_s2 + $0x1a0] sm:$0xff]  ;;  %v6237_v61 = vld [vmem:[%s13629_s2 + $0x188] sm:$0xff] }
 0x6cd   :  { %14261 = vst [vmem:[#allocation5_spill] sm:$0xff] %v12886_v0 }
 0x6cf   :  { %6035 = vmatpush1.bf16.msra.mxu0 %v14248_v18  ;;  %6076 = vmatpush1.bf16.msra.mxu1 %v14249_v42  ;;  %v12790_v18 = vcombine.high %v6236_v28, %v6240_v14  ;;  %v6241_v42 = vld [vmem:[%s13629_s2 + $0x1a8] sm:$0xff] }
 0x6d0   :  { %6036 = vmatprep.subr.bf16.mxu0 %v14250_v56  ;;  %6077 = vmatprep.subr.bf16.mxu1 %v14251_v23  ;;  %v12795_v56 = vcombine.low %v6236_v28, %v6240_v14  ;;  %v12797_v23 = vcombine.low %v6237_v61, %v6241_v42  ;;  %v6273_v28 = vld [vmem:[%s13629_s2 + $0x2a8] sm:$0xff]  ;;  %v12891_v14 = vcombine.low %v6268_v1, %v6272_v7 }
 0x6d1   :  { %v6289_v1 = vld [vmem:[%s13629_s2 + $0x328] sm:$0xff]  ;;  %v12939_v7 = vcombine.low %v6284_v15, %v6288_v13  ;;  %v6300_v13 = vld [vmem:[%s13629_s2 + $0x380] sm:$0xff] }
 0x6d2   :  { %14262 = vst [vmem:[#allocation11_spill] sm:$0xff] %v12891_v14  ;;  %v6297_v15 = vld [vmem:[%s13629_s2 + $0x368] sm:$0xff] }
 0x6d3   :  { %6037 = vmatpush1.bf16.msra.mxu0 %v14252_v35  ;;  %6078 = vmatpush1.bf16.msra.mxu1 %v14253_v45  ;;  %v12799_v35 = vcombine.high %v6237_v61, %v6241_v42  ;;  %v6244_v45 = vld [vmem:[%s13629_s2 + $0x1c0] sm:$0xff]  ;;  %v12893_v61 = vcombine.low %v6269_v62, %v6273_v28  ;;  %v12895_v42 = vcombine.high %v6269_v62, %v6273_v28 }
 0x6d4   :  { %6038 = vmatprep.subr.bf16.mxu0 %v14254_v41  ;;  %6079 = vmatprep.subr.bf16.mxu1 %v14255_v33  ;;  %v6248_v41 = vld [vmem:[%s13629_s2 + $0x1e0] sm:$0xff]  ;;  %v6245_v33 = vld [vmem:[%s13629_s2 + $0x1c8] sm:$0xff]  ;;  %14270 = vst [vmem:[#allocation19_spill] sm:$0xff] %v12939_v7  ;;  %v12941_v62 = vcombine.low %v6285_v43, %v6289_v1  ;;  %v12943_v28 = vcombine.high %v6285_v43, %v6289_v1 }
 0x6d5   :  { %14263 = vst [vmem:[#allocation6_spill] sm:$0xff] %v12893_v61  ;;  %14264 = vst [vmem:[#allocation8_spill] sm:$0xff] %v12895_v42  ;;  %v6304_v43 = vld [vmem:[%s13629_s2 + $0x3a0] sm:$0xff] }
 0x6d6   :  { %14271 = vst [vmem:[#allocation14_spill] sm:$0xff] %v12941_v62  ;;  %14272 = vst [vmem:[#allocation16_spill] sm:$0xff] %v12943_v28 }
 0x6d7   :  { %6039 = vmatpush1.bf16.msra.mxu0 %v14256_v57  ;;  %6080 = vmatpush1.bf16.msra.mxu1 %v12423_v25  ;;  %v6196_v25 = vld [vmem:[%s13629_s2 + $0x40] sm:$0xff]  ;;  %v12814_v57 = vcombine.high %v6244_v45, %v6248_v41 }
 0x6d8   :  { %6040 = vmatprep.subr.bf16.mxu0 %v12427_v58  ;;  %6081 = vmatprep.subr.bf16.mxu1 %v12429_v16  ;;  %v6188_v58 = vld [vmem:[%s13629_s2] sm:$0xff] }
 0x6d9   :  { %v6192_v16 = vld [vmem:[%s13629_s2 + $0x20] sm:$0xff] }
 0x6db   :  { %6041 = vmatpush1.bf16.msra.mxu0 %v12445_v4  ;;  %6082 = vmatpush1.bf16.msra.mxu1 %v12447_v12  ;;  %v6200_v4 = vld [vmem:[%s13629_s2 + $0x60] sm:$0xff] }
 0x6dc   :  { %6042 = vmatprep.subr.bf16.mxu0 %v12451_v3  ;;  %6083 = vmatprep.subr.bf16.mxu1 %v12453_v53  ;;  %v6189_v3 = vld [vmem:[%s13629_s2 + $0x8] sm:$0xff]  ;;  %v12646_v53 = vcombine.low %v6188_v58, %v6192_v16  ;;  %v12663_v17 = vcombine.high %v6196_v25, %v6200_v4  ;;  %v12688_v52 = vcombine.low %v6196_v25, %v6200_v4  ;;  %v6252_v25 = vld [vmem:[%s13629_s2 + $0x200] sm:$0xff] }
 0x6dd   :  { %v6256_v4 = vld [vmem:[%s13629_s2 + $0x220] sm:$0xff] }
 0x6de   :  { %v12843_v50 = vcombine.low %v6252_v25, %v6256_v4 }
 0x6df   :  { %6043 = vmatpush1.bf16.msra.mxu0 %v12457_v37  ;;  %6084 = vmatpush1.bf16.msra.mxu1 %v12459_v10  ;;  %v12648_v37 = vcombine.high %v6188_v58, %v6192_v16  ;;  %v6193_v10 = vld [vmem:[%s13629_s2 + $0x28] sm:$0xff]  ;;  %v12819_v16 = vcombine.low %v6244_v45, %v6248_v41  ;;  %v6276_v45 = vld [vmem:[%s13629_s2 + $0x2c0] sm:$0xff] }
 0x6e0   :  { %v12659_v12 = vcombine.low %v6189_v3, %v6193_v10  ;;  %v12661_v6 = vcombine.high %v6189_v3, %v6193_v10  ;;  %v6249_v58 = vld [vmem:[%s13629_s2 + $0x1e8] sm:$0xff]  ;;  %v6280_v41 = vld [vmem:[%s13629_s2 + $0x2e0] sm:$0xff] }
 0x6e1   :  { %6956 = vmatprep.subr.bf16.mxu0 %v12648_v37  ;;  %v12821_v3 = vcombine.low %v6245_v33, %v6249_v58  ;;  %v12823_v10 = vcombine.high %v6245_v33, %v6249_v58  ;;  %v6277_v33 = vld [vmem:[%s13629_s2 + $0x2c8] sm:$0xff]  ;;  %v12910_v58 = vcombine.high %v6276_v45, %v6280_v41 }
 0x6e2   :  { %6045 = vmatmul.mubr.bf16.vlgmr.msra.gmra.mrb[44].mxu0 %v12566_v40  ;;  %6086 = vmatmul.mubr.bf16.vlgmr.msra.gmra.mrb[44].mxu1 %v12566_v40  ;;  %v6201_v40 = vld [vmem:[%s13629_s2 + $0x68] sm:$0xff] }
 0x6e3   :  { %v12675_v9 = vcombine.high %v6197_v32, %v6201_v40  ;;  %6997 = vmatprep.subr.bf16.mxu1 %v12661_v6  ;;  %6957 = vmatpush1.bf16.msra.mxu0 %v12646_v53  ;;  %v12692_v21 = vcombine.low %v6197_v32, %v6201_v40  ;;  %v6253_v32 = vld [vmem:[%s13629_s2 + $0x208] sm:$0xff]  ;;  %v12838_v40 = vcombine.high %v6252_v25, %v6256_v4 }
 0x6e4   :  { %6998 = vmatpush1.bf16.msra.mxu1 %v12659_v12  ;;  %6958 = vmatprep.subr.bf16.mxu0 %v12663_v17  ;;  %v12845_v63 = vcombine.low %v6253_v32, %v6257_v30  ;;  %v12847_v31 = vcombine.high %v6253_v32, %v6257_v30  ;;  %14265 = vst [vmem:[#allocation9_spill] sm:$0xff] %v12910_v58  ;;  %v6281_v25 = vld [vmem:[%s13629_s2 + $0x2e8] sm:$0xff] }
 0x6e5   :  { %6999 = vmatprep.subr.bf16.mxu1 %v12675_v9  ;;  %v12915_v4 = vcombine.low %v6276_v45, %v6280_v41  ;;  %v12917_v32 = vcombine.low %v6277_v33, %v6281_v25  ;;  %v12919_v30 = vcombine.high %v6277_v33, %v6281_v25  ;;  %v6292_v45 = vld [vmem:[%s13629_s2 + $0x340] sm:$0xff]  ;;  %v6293_v33 = vld [vmem:[%s13629_s2 + $0x348] sm:$0xff] }
 0x6e6   :  { %v6296_v41 = vld [vmem:[%s13629_s2 + $0x360] sm:$0xff] }
 0x6e7   :  { %6959 = vmatpush1.bf16.msra.mxu0 %v12688_v52  ;;  %14266 = vst [vmem:[#allocation15_spill] sm:$0xff] %v12915_v4  ;;  %14267 = vst [vmem:[#allocation10_spill] sm:$0xff] %v12917_v32  ;;  %v12955_v25 = vcombine.high %v6292_v45, %v6296_v41  ;;  %v12968_v1 = vcombine.low %v6292_v45, %v6296_v41  ;;  %v6308_v41 = vld [vmem:[%s13629_s2 + $0x3c0] sm:$0xff] }
 0x6e8   :  { %7000 = vmatpush1.bf16.msra.mxu1 %v12692_v21  ;;  %6960 = vmatprep.subr.bf16.mxu0 %v12694_v49  ;;  %14268 = vst [vmem:[#allocation12_spill] sm:$0xff] %v12919_v30 }
 0x6e9   :  { %7001 = vmatprep.subr.bf16.mxu1 %v12697_v5  ;;  %14273 = vst [vmem:[#allocation17_spill] sm:$0xff] %v12955_v25  ;;  %14274 = vst [vmem:[#allocation20_spill] sm:$0xff] %v12968_v1 }
 0x6eb   :  { %6961 = vmatpush1.bf16.msra.mxu0 %v12712_v26 }
 0x6ec   :  { %7002 = vmatpush1.bf16.msra.mxu1 %v12716_v24  ;;  %6962 = vmatprep.subr.bf16.mxu0 %v12718_v54 }
 0x6ed   :  { %7003 = vmatprep.subr.bf16.mxu1 %v12721_v46 }
 0x6ef   :  { %6963 = vmatpush1.bf16.msra.mxu0 %v12724_v2 }
 0x6f0   :  { %7004 = vmatpush1.bf16.msra.mxu1 %v12728_v8  ;;  %6964 = vmatprep.subr.bf16.mxu0 %v12742_v59 }
 0x6f1   :  { %7005 = vmatprep.subr.bf16.mxu1 %v12751_v44 }
 0x6f3   :  { %6965 = vmatpush1.bf16.msra.mxu0 %v12747_v36 }
 0x6f4   :  { %7006 = vmatpush1.bf16.msra.mxu1 %v12749_v19  ;;  %6966 = vmatprep.subr.bf16.mxu0 %v12766_v39 }
 0x6f5   :  { %7007 = vmatprep.subr.bf16.mxu1 %v12775_v51 }
 0x6f7   :  { %6967 = vmatpush1.bf16.msra.mxu0 %v12771_v11 }
 0x6f8   :  { %7008 = vmatpush1.bf16.msra.mxu1 %v12773_v20  ;;  %6968 = vmatprep.subr.bf16.mxu0 %v12790_v18 }
 0x6f9   :  { %7009 = vmatprep.subr.bf16.mxu1 %v12799_v35 }
 0x6fb   :  { %6969 = vmatpush1.bf16.msra.mxu0 %v12795_v56 }
 0x6fc   :  { %7010 = vmatpush1.bf16.msra.mxu1 %v12797_v23  ;;  %6970 = vmatprep.subr.bf16.mxu0 %v12814_v57 }
 0x6fd   :  { %7011 = vmatprep.subr.bf16.mxu1 %v12823_v10 }
 0x6ff   :  { %6971 = vmatpush1.bf16.msra.mxu0 %v12819_v16 }
 0x700   :  { %7012 = vmatpush1.bf16.msra.mxu1 %v12821_v3  ;;  %6972 = vmatprep.subr.bf16.mxu0 %v12838_v40 }
 0x701   :  { %7013 = vmatprep.subr.bf16.mxu1 %v12847_v31 }
 0x703   :  { %6973 = vmatpush1.bf16.msra.mxu0 %v12843_v50 }
 0x704   :  { %7014 = vmatpush1.bf16.msra.mxu1 %v12845_v63  ;;  %6974 = vmatprep.subr.bf16.mxu0 %v12862_v38 }
 0x705   :  { %7015 = vmatprep.subr.bf16.mxu1 %v12871_v34 }
 0x707   :  { %6975 = vmatpush1.bf16.msra.mxu0 %v12867_v48 }
 0x708   :  { %7016 = vmatpush1.bf16.msra.mxu1 %v12869_v60  ;;  %6976 = vmatprep.subr.bf16.mxu0 %v12886_v0 }
 0x709   :  { %7017 = vmatprep.subr.bf16.mxu1 %v12895_v42 }
 0x70b   :  { %6977 = vmatpush1.bf16.msra.mxu0 %v12891_v14 }
 0x70c   :  { %7018 = vmatpush1.bf16.msra.mxu1 %v12893_v61  ;;  %6978 = vmatprep.subr.bf16.mxu0 %v12910_v58 }
 0x70d   :  { %7019 = vmatprep.subr.bf16.mxu1 %v12919_v30  ;;  %v12980_v30 = vcombine.low %v6293_v33, %v6297_v15 }
 0x70f   :  { %6979 = vmatpush1.bf16.msra.mxu0 %v12915_v4  ;;  %v6305_v4 = vld [vmem:[%s13629_s2 + $0x3a8] sm:$0xff]  ;;  %14276 = vst [vmem:[#allocation22_spill] sm:$0xff] %v12980_v30 }
 0x710   :  { %7020 = vmatpush1.bf16.msra.mxu1 %v12917_v32  ;;  %6980 = vmatprep.subr.bf16.mxu0 %v12934_v55  ;;  %v12970_v55 = vcombine.high %v6293_v33, %v6297_v15  ;;  %v6301_v32 = vld [vmem:[%s13629_s2 + $0x388] sm:$0xff]  ;;  %v13000_v15 = vcombine.low %v6300_v13, %v6304_v43 }
 0x711   :  { %7021 = vmatprep.subr.bf16.mxu1 %v12943_v28  ;;  %v12982_v28 = vcombine.high %v6300_v13, %v6304_v43  ;;  %v12985_v45 = vcombine.high %v6301_v32, %v6305_v4  ;;  %v6313_v33 = vld [vmem:[%s13629_s2 + $0x3e8] sm:$0xff]  ;;  %v6195_v43 = vld [vmem:[%s13629_s2 + $0x38] sm:$0xff] }
 0x712   :  { %14275 = vst [vmem:[#allocation18_spill] sm:$0xff] %v12970_v55  ;;  %14279 = vst [vmem:[#allocation23_spill] sm:$0xff] %v13000_v15 }
 0x713   :  { %6981 = vmatpush1.bf16.msra.mxu0 %v12939_v7  ;;  %14277 = vst [vmem:[#allocation21_spill] sm:$0xff] %v12982_v28  ;;  %14278 = vst [vmem:[#allocation24_spill] sm:$0xff] %v12985_v45  ;;  %v6312_v7 = vld [vmem:[%s13629_s2 + $0x3e0] sm:$0xff] }
 0x714   :  { %7022 = vmatpush1.bf16.msra.mxu1 %v12941_v62  ;;  %6982 = vmatprep.subr.bf16.mxu0 %v12955_v25  ;;  %v6309_v25 = vld [vmem:[%s13629_s2 + $0x3c8] sm:$0xff]  ;;  %v13006_v62 = vcombine.high %v6308_v41, %v6312_v7  ;;  %v13012_v61 = vcombine.low %v6308_v41, %v6312_v7  ;;  %v6191_v7 = vld [vmem:[%s13629_s2 + $0x18] sm:$0xff] }
 0x715   :  { %7023 = vmatprep.subr.bf16.mxu1 %v12970_v55  ;;  %v13004_v55 = vcombine.low %v6301_v32, %v6305_v4  ;;  %v13009_v58 = vcombine.high %v6309_v25, %v6313_v33  ;;  %v13016_v13 = vcombine.low %v6309_v25, %v6313_v33  ;;  %v6190_v4 = vld [vmem:[%s13629_s2 + $0x10] sm:$0xff]  ;;  %v13037_v33 = vcombine.low %v6191_v7, %v6195_v43 }
 0x716   :  { %14281 = vst [vmem:[#allocation26_spill] sm:$0xff] %v13006_v62  ;;  %14283 = vst [vmem:[#allocation27_spill] sm:$0xff] %v13012_v61  ;;  %v6194_v32 = vld [vmem:[%s13629_s2 + $0x30] sm:$0xff] }
 0x717   :  { %6983 = vmatpush1.bf16.msra.mxu0 %v12968_v1  ;;  %14280 = vst [vmem:[#allocation25_spill] sm:$0xff] %v13004_v55  ;;  %14282 = vst [vmem:[#allocation28_spill] sm:$0xff] %v13009_v58  ;;  %v13030_v25 = vcombine.high %v6190_v4, %v6194_v32  ;;  %v13035_v41 = vcombine.low %v6190_v4, %v6194_v32  ;;  %v9097_v4 = vld [vmem:[%s13631_s0 + $0xa8] sm:$0xff] }
 0x718   :  { %7024 = vmatpush1.bf16.msra.mxu1 %v12980_v30  ;;  %6984 = vmatprep.subr.bf16.mxu0 %v12982_v28  ;;  %14284 = vst [vmem:[#allocation29_spill] sm:$0xff] %v13016_v13  ;;  %v6099_v42 = vunpack.c.h.bf16 %v9097_v4  ;;  %v6098_v0 = vunpack.c.l.bf16 %v9097_v4 }
 0x719   :  { %7025 = vmatprep.subr.bf16.mxu1 %v12985_v45  ;;  %14285 = vst [vmem:[#allocation30_spill] sm:$0xff] %v13030_v25 }
 0x71b   :  { %6985 = vmatpush1.bf16.msra.mxu0 %v13000_v15 }
 0x71c   :  { %7026 = vmatpush1.bf16.msra.mxu1 %v13004_v55  ;;  %6986 = vmatprep.subr.bf16.mxu0 %v13006_v62 }
 0x71d   :  { %7027 = vmatprep.subr.bf16.mxu1 %v13009_v58 }
 0x71f   :  { %6987 = vmatpush1.bf16.msra.mxu0 %v13012_v61  ;;  %v13039_v61 = vcombine.high %v6191_v7, %v6195_v43 }
 0x720   :  { %7028 = vmatpush1.bf16.msra.mxu1 %v13016_v13  ;;  %7038 = vmatprep.subr.bf16.mxu0 %v13030_v25  ;;  %v9096_v13 = vld [vmem:[%s13631_s0 + $0xa0] sm:$0xff] }
 0x721   :  { %14286 = vst [vmem:[#allocation31_spill] sm:$0xff] %v13039_v61  ;;  %7079 = vmatprep.subr.bf16.mxu1 %v13039_v61  ;;  %v6096_v58 = vunpack.c.l.bf16 %v9096_v13  ;;  %v6097_v62 = vunpack.c.h.bf16 %v9096_v13 }
 0x775   :  { %v5964_v55 = vpop.f32.mrb[40].mxu0  ;;  %v6005_v15 = vpop.f32.mrb[40].mxu1 }
 0x776   :  { %v6100_v45 = vadd.f32 %v6096_v58, %v5964_v55  ;;  %v5966_v32 = vpop.f32.mrb[41].mxu0  ;;  %v6007_v7 = vpop.f32.mrb[41].mxu1  ;;  %v6102_v58 = vadd.f32 %v6098_v0, %v6005_v15 }
 0x777   :  { %v6101_v43 = vadd.f32 %v6097_v62, %v5966_v32  ;;  %v5968_v28 = vpop.f32.mrb[42].mxu0  ;;  %v6009_v25 = vpop.f32.mrb[42].mxu1  ;;  %v6103_v13 = vadd.f32 %v6099_v42, %v6007_v7  ;;  %v9098_v32 = vld [vmem:[%s13631_s0 + $0x50] sm:$0xff] }
 0x778   :  { %v9102_v30 = vmul.f32 -1.442695, %v6100_v45  ;;  %v5969_v61 = vpop.f32.mrb[43].mxu0  ;;  %v6010_v1 = vpop.f32.mrb[43].mxu1  ;;  %v6106_v7 = vunpack.c.l.bf16 %v9098_v32 }
 0x779   :  { %v9103_v14 = vmul.f32 -1.442695, %v6101_v43  ;;  %v9104_v60 = vmul.f32 -1.442695, %v6103_v13  ;;  %v6169_v42 = vpop.permute.xlu1 %6168  ;;  %v6107_v43 = vunpack.c.h.bf16 %v9098_v32 }
 0x77a   :  { %9554 = vpow2.f32 %v9102_v30  ;;  %vm6170_vm8 = vcmp.eq.s32.totalorder %v6169_v42, 1 }
 0x77b   :  { %9556 = vpow2.f32 %v9103_v14 }
 0x77c   :  { %9558 = vpow2.f32 %v9104_v60 }
 0x77d   :  { %9560 = vtanh.f32 %v6102_v58 }
 0x784   :  { %v9555_v55 = vpop.eup %9554 }
 0x785   :  { %v9557_v48 = vpop.eup %9556  ;;  %v6121_v34 = vadd.f32 1.0, %v9555_v55  ;;  %v9099_v55 = vld [vmem:[%s13631_s0 + $0x58] sm:$0xff] }
 0x786   :  { %v6127_v38 = vadd.f32 1.0, %v9557_v48  ;;  %v9559_v62 = vpop.eup %9558 }
 0x787   :  { %9562 = vrcp.f32 %v6121_v34  ;;  %v9561_v28 = vpop.eup %9560  ;;  %v6134_v25 = vadd.f32 1.0, %v9559_v62 }
 0x788   :  { %9564 = vrcp.f32 %v6127_v38 }
 0x789   :  { %9566 = vrcp.f32 %v6134_v25 }
 0x791   :  { %v9563_v61 = vpop.eup %9562 }
 0x792   :  { %v9565_v1 = vpop.eup %9564  ;;  %v6138_v45 = vmul.f32 %v9563_v61, %v9561_v28 }
 0x793   :  { %v6137_v14 = vmul.f32 %v9565_v1, %v12541_v27  ;;  %v9567_v60 = vpop.eup %9566 }
 0x795   :  { %v6139_v30 = vadd.f32 %v6138_v45, %v6137_v14 }
 0x797   :  { %9568 = vtanh.f32 %v6139_v30  ;;  %v13051_v0 = vsel %vm6170_vm8, %v6139_v30, %v12541_v27  ;;  %v6109_v30 = vunpack.c.h.bf16 %v9099_v55 }
 0x7a1   :  { %v9569_v48 = vpop.eup %9568 }
 0x7a2   :  { %v6141_v34 = vmul.f32 %v9569_v48, %v9567_v60  ;;  %v6108_v48 = vunpack.c.l.bf16 %v9099_v55 }
 0x7a4   :  { %v6171_v38 = vsel %vm6170_vm8, %v6141_v34, 0.0  ;;  %v13054_v15 = vsel %vm6170_vm8, %v6141_v34, %v12544_v22 }
 0x7a5   :  { %v6172_v4 = vpack.c.bf16 %v6171_v38, %v6171_v38 }
 0x7a7   :  { %9108 = vst [vmem:[%s13632_s3 + $0x28] sm:$0xf] %v6172_v4 }
 0x7b5   :  { %v6046_v27 = vpop.f32.mrb[44].mxu0  ;;  %v6087_v13 = vpop.f32.mrb[44].mxu1 }
 0x7b6   :  { %v6110_v58 = vadd.f32 %v6106_v7, %v6046_v27  ;;  %v6048_v22 = vpop.f32.mrb[45].mxu0  ;;  %v6089_v62 = vpop.f32.mrb[45].mxu1  ;;  %v6112_v38 = vadd.f32 %v6108_v48, %v6087_v13 }
 0x7b7   :  { %v6111_v28 = vadd.f32 %v6107_v43, %v6048_v22  ;;  %v6050_v61 = vpop.f32.mrb[46].mxu0  ;;  %v6091_v1 = vpop.f32.mrb[46].mxu1  ;;  %v6113_v60 = vadd.f32 %v6109_v30, %v6089_v62  ;;  %v6198_v30 = vld [vmem:[%s13629_s2 + $0x50] sm:$0xff] }
 0x7b8   :  { %v9105_v45 = vmul.f32 -1.442695, %v6110_v58  ;;  %v6051_v25 = vpop.f32.mrb[47].mxu0  ;;  %v6092_v14 = vpop.f32.mrb[47].mxu1 }
 0x7b9   :  { %v9106_v42 = vmul.f32 -1.442695, %v6111_v28  ;;  %v9107_v34 = vmul.f32 -1.442695, %v6113_v60  ;;  %v6177_v62 = vpop.permute.xlu0 %6176 }
 0x7ba   :  { %9570 = vpow2.f32 %v9105_v45  ;;  %vm6178_vm9 = vcmp.eq.s32.totalorder %v6177_v62, 1 }
 0x7bb   :  { %9572 = vpow2.f32 %v9106_v42 }
 0x7bc   :  { %9574 = vpow2.f32 %v9107_v34  ;;  %v6202_v34 = vld [vmem:[%s13629_s2 + $0x70] sm:$0xff] }
 0x7bd   :  { %9576 = vtanh.f32 %v6112_v38  ;;  %v6203_v38 = vld [vmem:[%s13629_s2 + $0x78] sm:$0xff] }
 0x7c4   :  { %v9571_v4 = vpop.eup %9570 }
 0x7c5   :  { %v9573_v32 = vpop.eup %9572  ;;  %v6145_v7 = vadd.f32 1.0, %v9571_v4 }
 0x7c6   :  { %v6151_v27 = vadd.f32 1.0, %v9573_v32  ;;  %v9575_v43 = vpop.eup %9574 }
 0x7c7   :  { %9578 = vrcp.f32 %v6145_v7  ;;  %v9577_v58 = vpop.eup %9576  ;;  %v6158_v1 = vadd.f32 1.0, %v9575_v43  ;;  %v6206_v7 = vld [vmem:[%s13629_s2 + $0x90] sm:$0xff] }
 0x7c8   :  { %9580 = vrcp.f32 %v6151_v27  ;;  %v13096_v27 = vcombine.high %v6198_v30, %v6202_v34 }
 0x7c9   :  { %9582 = vrcp.f32 %v6158_v1 }
 0x7d1   :  { %v9579_v22 = vpop.eup %9578 }
 0x7d2   :  { %v9581_v61 = vpop.eup %9580  ;;  %v6162_v28 = vmul.f32 %v9579_v22, %v9577_v58  ;;  %v6210_v58 = vld [vmem:[%s13629_s2 + $0xb0] sm:$0xff]  ;;  %v6207_v22 = vld [vmem:[%s13629_s2 + $0x98] sm:$0xff] }
 0x7d3   :  { %v6161_v45 = vmul.f32 %v9581_v61, %v12557_v47  ;;  %v9583_v25 = vpop.eup %9582  ;;  %v6211_v61 = vld [vmem:[%s13629_s2 + $0xb8] sm:$0xff] }
 0x7d4   :  { %v13119_v62 = vcombine.high %v6207_v22, %v6211_v61 }
 0x7d5   :  { %v6163_v55 = vadd.f32 %v6162_v28, %v6161_v45  ;;  %v13113_v28 = vcombine.low %v6198_v30, %v6202_v34  ;;  %v13117_v45 = vcombine.high %v6206_v7, %v6210_v58  ;;  %v13137_v30 = vcombine.low %v6206_v7, %v6210_v58  ;;  %v6227_v7 = vld [vmem:[%s13629_s2 + $0x138] sm:$0xff] }
 0x7d6   :  { %14288 = vst [vmem:[#allocation33_spill] sm:$0xff] %v13119_v62 }
 0x7d7   :  { %9584 = vtanh.f32 %v6163_v55  ;;  %v13067_v13 = vsel %vm6178_vm9, %v6163_v55, %v12557_v47  ;;  %v6199_v47 = vld [vmem:[%s13629_s2 + $0x58] sm:$0xff]  ;;  %14287 = vst [vmem:[#allocation32_spill] sm:$0xff] %v13117_v45  ;;  %v6214_v55 = vld [vmem:[%s13629_s2 + $0xd0] sm:$0xff]  ;;  %14289 = vst [vmem:[#allocation34_spill] sm:$0xff] %v13137_v30 }
 0x7d8   :  { %v13098_v43 = vcombine.high %v6199_v47, %v6203_v38  ;;  %v13115_v1 = vcombine.low %v6199_v47, %v6203_v38  ;;  %v6222_v38 = vld [vmem:[%s13629_s2 + $0x110] sm:$0xff] }
 0x7e1   :  { %v9585_v14 = vpop.eup %9584 }
 0x7e2   :  { %v6165_v42 = vmul.f32 %v9585_v14, %v9583_v25  ;;  %v6218_v25 = vld [vmem:[%s13629_s2 + $0xf0] sm:$0xff]  ;;  %v6215_v14 = vld [vmem:[%s13629_s2 + $0xd8] sm:$0xff] }
 0x7e3   :  { %v13143_v34 = vcombine.high %v6214_v55, %v6218_v25  ;;  %v13161_v58 = vcombine.low %v6214_v55, %v6218_v25  ;;  %v6231_v55 = vld [vmem:[%s13629_s2 + $0x158] sm:$0xff] }
 0x7e4   :  { %v6179_v60 = vsel %vm6178_vm9, %v6165_v42, 0.0  ;;  %v13073_v48 = vsel %vm6178_vm9, %v6165_v42, %v12560_v29  ;;  %v13088_v29 = vpack.c.bf16 %v13054_v15, %v13054_v15  ;;  %v6219_v42 = vld [vmem:[%s13629_s2 + $0xf8] sm:$0xff] }
 0x7e5   :  { %v6180_v4 = vpack.c.bf16 %v6179_v60, %v6179_v60  ;;  %v6187_v32 = vpack.c.bf16 %v13073_v48, %v13073_v48  ;;  %v13139_v60 = vcombine.low %v6207_v22, %v6211_v61  ;;  %14291 = vst [vmem:[#allocation36_spill] sm:$0xff] %v13143_v34  ;;  %v13145_v47 = vcombine.high %v6215_v14, %v6219_v42  ;;  %v6235_v25 = vld [vmem:[%s13629_s2 + $0x178] sm:$0xff] }
 0x7e6   :  { %14293 = vst [vmem:[#allocation38_spill] sm:$0xff] %v13161_v58  ;;  %v13163_v22 = vcombine.low %v6215_v14, %v6219_v42 }
 0x7e7   :  { %9109 = vst [vmem:[%s13632_s3 + $0x14] sm:$0xf] %v6180_v4  ;;  %6988 = vmatprep.mubr.bf16.mxu0 %v6187_v32  ;;  %7029 = vmatprep.mubr.bf16.mxu1 %v6187_v32  ;;  %14290 = vst [vmem:[#allocation35_spill] sm:$0xff] %v13139_v60  ;;  %v6226_v4 = vld [vmem:[%s13629_s2 + $0x130] sm:$0xff] }
 0x7e8   :  { %6989 = vmatmul.mubr.bf16.vlgmr.msra.gmra.mrb[48].mxu0 %v13088_v29  ;;  %7030 = vmatmul.mubr.bf16.vlgmr.msra.gmra.mrb[48].mxu1 %v13088_v29  ;;  %14292 = vst [vmem:[#allocation37_spill] sm:$0xff] %v13145_v47  ;;  %14294 = vst [vmem:[#allocation39_spill] sm:$0xff] %v13163_v22  ;;  %v13167_v61 = vcombine.high %v6222_v38, %v6226_v4  ;;  %v13185_v14 = vcombine.low %v6222_v38, %v6226_v4  ;;  %v6239_v38 = vld [vmem:[%s13629_s2 + $0x198] sm:$0xff] }
 0x7e9   :  { %7039 = vmatpush1.bf16.msra.mxu0 %v13035_v41  ;;  %7080 = vmatpush1.bf16.msra.mxu1 %v13037_v33  ;;  %v6243_v4 = vld [vmem:[%s13629_s2 + $0x1b8] sm:$0xff] }
 0x7ea   :  { %7070 = vmatprep.mubr.bf16.mxu0 %v6187_v32  ;;  %7111 = vmatprep.mubr.bf16.mxu1 %v6187_v32  ;;  %v6223_v32 = vld [vmem:[%s13629_s2 + $0x118] sm:$0xff]  ;;  %14295 = vst [vmem:[#allocation40_spill] sm:$0xff] %v13167_v61  ;;  %14297 = vst [vmem:[#allocation42_spill] sm:$0xff] %v13185_v14 }
 0x7eb   :  { %7040 = vmatprep.subr.bf16.mxu0 %v13096_v27  ;;  %7081 = vmatprep.subr.bf16.mxu1 %v13098_v43  ;;  %v13187_v42 = vcombine.low %v6223_v32, %v6227_v7 }
 0x7ed   :  { %7041 = vmatpush1.bf16.msra.mxu0 %v13113_v28  ;;  %7082 = vmatpush1.bf16.msra.mxu1 %v13115_v1  ;;  %14298 = vst [vmem:[#allocation43_spill] sm:$0xff] %v13187_v42 }
 0x7ee   :  { %7042 = vmatprep.subr.bf16.mxu0 %v13117_v45  ;;  %7083 = vmatprep.subr.bf16.mxu1 %v13119_v62  ;;  %v13169_v62 = vcombine.high %v6223_v32, %v6227_v7  ;;  %v6230_v45 = vld [vmem:[%s13629_s2 + $0x150] sm:$0xff]  ;;  %v13211_v7 = vcombine.low %v6231_v55, %v6235_v25 }
 0x7f0   :  { %14296 = vst [vmem:[#allocation41_spill] sm:$0xff] %v13169_v62  ;;  %14302 = vst [vmem:[#allocation47_spill] sm:$0xff] %v13211_v7 }
 0x7f1   :  { %7043 = vmatpush1.bf16.msra.mxu0 %v13137_v30  ;;  %7084 = vmatpush1.bf16.msra.mxu1 %v13139_v60  ;;  %v6234_v60 = vld [vmem:[%s13629_s2 + $0x170] sm:$0xff] }
 0x7f2   :  { %7044 = vmatprep.subr.bf16.mxu0 %v13143_v34  ;;  %7085 = vmatprep.subr.bf16.mxu1 %v13145_v47  ;;  %v13191_v47 = vcombine.high %v6230_v45, %v6234_v60  ;;  %v13193_v34 = vcombine.high %v6231_v55, %v6235_v25  ;;  %v6238_v30 = vld [vmem:[%s13629_s2 + $0x190] sm:$0xff]  ;;  %v13209_v32 = vcombine.low %v6230_v45, %v6234_v60  ;;  %v6247_v45 = vld [vmem:[%s13629_s2 + $0x1d8] sm:$0xff] }
 0x7f3   :  { %v6251_v60 = vld [vmem:[%s13629_s2 + $0x1f8] sm:$0xff]  ;;  %v13235_v25 = vcombine.low %v6239_v38, %v6243_v4 }
 0x7f4   :  { %14299 = vst [vmem:[#allocation44_spill] sm:$0xff] %v13191_v47  ;;  %14300 = vst [vmem:[#allocation45_spill] sm:$0xff] %v13193_v34 }
 0x7f5   :  { %7045 = vmatpush1.bf16.msra.mxu0 %v13161_v58  ;;  %7086 = vmatpush1.bf16.msra.mxu1 %v13163_v22  ;;  %v6242_v22 = vld [vmem:[%s13629_s2 + $0x1b0] sm:$0xff]  ;;  %14301 = vst [vmem:[#allocation46_spill] sm:$0xff] %v13209_v32  ;;  %14306 = vst [vmem:[#allocation51_spill] sm:$0xff] %v13235_v25 }
 0x7f6   :  { %7046 = vmatprep.subr.bf16.mxu0 %v13167_v61  ;;  %7087 = vmatprep.subr.bf16.mxu1 %v13169_v62  ;;  %v13215_v62 = vcombine.high %v6238_v30, %v6242_v22  ;;  %v13217_v61 = vcombine.high %v6239_v38, %v6243_v4  ;;  %v6246_v58 = vld [vmem:[%s13629_s2 + $0x1d0] sm:$0xff]  ;;  %v13233_v55 = vcombine.low %v6238_v30, %v6242_v22  ;;  %v6255_v30 = vld [vmem:[%s13629_s2 + $0x218] sm:$0xff] }
 0x7f7   :  { %v6259_v22 = vld [vmem:[%s13629_s2 + $0x238] sm:$0xff]  ;;  %v13259_v4 = vcombine.low %v6247_v45, %v6251_v60 }
 0x7f8   :  { %14303 = vst [vmem:[#allocation48_spill] sm:$0xff] %v13215_v62  ;;  %14304 = vst [vmem:[#allocation49_spill] sm:$0xff] %v13217_v61 }
 0x7f9   :  { %7047 = vmatpush1.bf16.msra.mxu0 %v13185_v14  ;;  %7088 = vmatpush1.bf16.msra.mxu1 %v13187_v42  ;;  %v6250_v42 = vld [vmem:[%s13629_s2 + $0x1f0] sm:$0xff]  ;;  %14305 = vst [vmem:[#allocation50_spill] sm:$0xff] %v13233_v55  ;;  %14310 = vst [vmem:[#allocation55_spill] sm:$0xff] %v13259_v4 }
 0x7fa   :  { %7048 = vmatprep.subr.bf16.mxu0 %v13191_v47  ;;  %7089 = vmatprep.subr.bf16.mxu1 %v13193_v34  ;;  %v13239_v34 = vcombine.high %v6246_v58, %v6250_v42  ;;  %v13241_v47 = vcombine.high %v6247_v45, %v6251_v60  ;;  %v6254_v14 = vld [vmem:[%s13629_s2 + $0x210] sm:$0xff]  ;;  %v13257_v38 = vcombine.low %v6246_v58, %v6250_v42  ;;  %v6263_v58 = vld [vmem:[%s13629_s2 + $0x258] sm:$0xff] }
 0x7fb   :  { %v6267_v42 = vld [vmem:[%s13629_s2 + $0x278] sm:$0xff]  ;;  %v13283_v60 = vcombine.low %v6255_v30, %v6259_v22 }
 0x7fc   :  { %14307 = vst [vmem:[#allocation52_spill] sm:$0xff] %v13239_v34  ;;  %14308 = vst [vmem:[#allocation53_spill] sm:$0xff] %v13241_v47 }
 0x7fd   :  { %7049 = vmatpush1.bf16.msra.mxu0 %v13209_v32  ;;  %7090 = vmatpush1.bf16.msra.mxu1 %v13211_v7  ;;  %v6258_v7 = vld [vmem:[%s13629_s2 + $0x230] sm:$0xff]  ;;  %14309 = vst [vmem:[#allocation54_spill] sm:$0xff] %v13257_v38  ;;  %14314 = vst [vmem:[#allocation59_spill] sm:$0xff] %v13283_v60 }
 0x7fe   :  { %7050 = vmatprep.subr.bf16.mxu0 %v13215_v62  ;;  %7091 = vmatprep.subr.bf16.mxu1 %v13217_v61  ;;  %v13263_v61 = vcombine.high %v6254_v14, %v6258_v7  ;;  %v13265_v62 = vcombine.high %v6255_v30, %v6259_v22  ;;  %v6262_v32 = vld [vmem:[%s13629_s2 + $0x250] sm:$0xff]  ;;  %v13281_v45 = vcombine.low %v6254_v14, %v6258_v7  ;;  %v6271_v14 = vld [vmem:[%s13629_s2 + $0x298] sm:$0xff] }
 0x7ff   :  { %v6275_v7 = vld [vmem:[%s13629_s2 + $0x2b8] sm:$0xff]  ;;  %v13307_v22 = vcombine.low %v6263_v58, %v6267_v42 }
 0x800   :  { %14311 = vst [vmem:[#allocation56_spill] sm:$0xff] %v13263_v61  ;;  %14312 = vst [vmem:[#allocation57_spill] sm:$0xff] %v13265_v62 }
 0x801   :  { %7051 = vmatpush1.bf16.msra.mxu0 %v13233_v55  ;;  %7092 = vmatpush1.bf16.msra.mxu1 %v13235_v25  ;;  %v6266_v25 = vld [vmem:[%s13629_s2 + $0x270] sm:$0xff]  ;;  %14313 = vst [vmem:[#allocation58_spill] sm:$0xff] %v13281_v45  ;;  %14318 = vst [vmem:[#allocation63_spill] sm:$0xff] %v13307_v22 }
 0x802   :  { %7052 = vmatprep.subr.bf16.mxu0 %v13239_v34  ;;  %7093 = vmatprep.subr.bf16.mxu1 %v13241_v47  ;;  %v13287_v47 = vcombine.high %v6262_v32, %v6266_v25  ;;  %v13289_v34 = vcombine.high %v6263_v58, %v6267_v42  ;;  %v6270_v55 = vld [vmem:[%s13629_s2 + $0x290] sm:$0xff]  ;;  %v13305_v30 = vcombine.low %v6262_v32, %v6266_v25  ;;  %v6279_v32 = vld [vmem:[%s13629_s2 + $0x2d8] sm:$0xff] }
 0x803   :  { %v6283_v25 = vld [vmem:[%s13629_s2 + $0x2f8] sm:$0xff]  ;;  %v13331_v42 = vcombine.low %v6271_v14, %v6275_v7 }
 0x804   :  { %14315 = vst [vmem:[#allocation60_spill] sm:$0xff] %v13287_v47  ;;  %14316 = vst [vmem:[#allocation61_spill] sm:$0xff] %v13289_v34 }
 0x805   :  { %7053 = vmatpush1.bf16.msra.mxu0 %v13257_v38  ;;  %7094 = vmatpush1.bf16.msra.mxu1 %v13259_v4  ;;  %v6274_v4 = vld [vmem:[%s13629_s2 + $0x2b0] sm:$0xff]  ;;  %14317 = vst [vmem:[#allocation62_spill] sm:$0xff] %v13305_v30  ;;  %14322 = vst [vmem:[#allocation67_spill] sm:$0xff] %v13331_v42 }
 0x806   :  { %7054 = vmatprep.subr.bf16.mxu0 %v13263_v61  ;;  %7095 = vmatprep.subr.bf16.mxu1 %v13265_v62  ;;  %v13311_v62 = vcombine.high %v6270_v55, %v6274_v4  ;;  %v13313_v61 = vcombine.high %v6271_v14, %v6275_v7  ;;  %v6278_v38 = vld [vmem:[%s13629_s2 + $0x2d0] sm:$0xff]  ;;  %v13329_v58 = vcombine.low %v6270_v55, %v6274_v4  ;;  %v6287_v55 = vld [vmem:[%s13629_s2 + $0x318] sm:$0xff] }
 0x807   :  { %v6291_v4 = vld [vmem:[%s13629_s2 + $0x338] sm:$0xff]  ;;  %v13355_v7 = vcombine.low %v6279_v32, %v6283_v25 }
 0x808   :  { %14319 = vst [vmem:[#allocation64_spill] sm:$0xff] %v13311_v62  ;;  %14320 = vst [vmem:[#allocation65_spill] sm:$0xff] %v13313_v61 }
 0x809   :  { %7055 = vmatpush1.bf16.msra.mxu0 %v13281_v45  ;;  %7096 = vmatpush1.bf16.msra.mxu1 %v13283_v60  ;;  %v6282_v60 = vld [vmem:[%s13629_s2 + $0x2f0] sm:$0xff]  ;;  %14321 = vst [vmem:[#allocation66_spill] sm:$0xff] %v13329_v58  ;;  %14326 = vst [vmem:[#allocation71_spill] sm:$0xff] %v13355_v7 }
 0x80a   :  { %7056 = vmatprep.subr.bf16.mxu0 %v13287_v47  ;;  %7097 = vmatprep.subr.bf16.mxu1 %v13289_v34  ;;  %v13335_v34 = vcombine.high %v6278_v38, %v6282_v60  ;;  %v13337_v47 = vcombine.high %v6279_v32, %v6283_v25  ;;  %v6286_v45 = vld [vmem:[%s13629_s2 + $0x310] sm:$0xff]  ;;  %v13353_v14 = vcombine.low %v6278_v38, %v6282_v60  ;;  %v6295_v38 = vld [vmem:[%s13629_s2 + $0x358] sm:$0xff] }
 0x80b   :  { %v6299_v60 = vld [vmem:[%s13629_s2 + $0x378] sm:$0xff]  ;;  %v13379_v25 = vcombine.low %v6287_v55, %v6291_v4 }
 0x80c   :  { %14323 = vst [vmem:[#allocation68_spill] sm:$0xff] %v13335_v34  ;;  %14324 = vst [vmem:[#allocation69_spill] sm:$0xff] %v13337_v47 }
 0x80d   :  { %7057 = vmatpush1.bf16.msra.mxu0 %v13305_v30  ;;  %7098 = vmatpush1.bf16.msra.mxu1 %v13307_v22  ;;  %v6290_v22 = vld [vmem:[%s13629_s2 + $0x330] sm:$0xff]  ;;  %14325 = vst [vmem:[#allocation70_spill] sm:$0xff] %v13353_v14  ;;  %14330 = vst [vmem:[#allocation75_spill] sm:$0xff] %v13379_v25 }
 0x80e   :  { %7058 = vmatprep.subr.bf16.mxu0 %v13311_v62  ;;  %7099 = vmatprep.subr.bf16.mxu1 %v13313_v61  ;;  %v13359_v61 = vcombine.high %v6286_v45, %v6290_v22  ;;  %v13361_v62 = vcombine.high %v6287_v55, %v6291_v4  ;;  %v6294_v30 = vld [vmem:[%s13629_s2 + $0x350] sm:$0xff]  ;;  %v13377_v32 = vcombine.low %v6286_v45, %v6290_v22  ;;  %v6303_v45 = vld [vmem:[%s13629_s2 + $0x398] sm:$0xff] }
 0x80f   :  { %v6307_v22 = vld [vmem:[%s13629_s2 + $0x3b8] sm:$0xff]  ;;  %v13403_v4 = vcombine.low %v6295_v38, %v6299_v60 }
 0x810   :  { %14327 = vst [vmem:[#allocation72_spill] sm:$0xff] %v13359_v61  ;;  %14328 = vst [vmem:[#allocation73_spill] sm:$0xff] %v13361_v62 }
 0x811   :  { %7059 = vmatpush1.bf16.msra.mxu0 %v13329_v58  ;;  %7100 = vmatpush1.bf16.msra.mxu1 %v13331_v42  ;;  %v6298_v42 = vld [vmem:[%s13629_s2 + $0x370] sm:$0xff]  ;;  %14329 = vst [vmem:[#allocation74_spill] sm:$0xff] %v13377_v32 }
 0x812   :  { %7060 = vmatprep.subr.bf16.mxu0 %v13335_v34  ;;  %7101 = vmatprep.subr.bf16.mxu1 %v13337_v47  ;;  %v13383_v47 = vcombine.high %v6294_v30, %v6298_v42  ;;  %v13385_v34 = vcombine.high %v6295_v38, %v6299_v60  ;;  %v6302_v58 = vld [vmem:[%s13629_s2 + $0x390] sm:$0xff]  ;;  %v13401_v55 = vcombine.low %v6294_v30, %v6298_v42  ;;  %v6311_v30 = vld [vmem:[%s13629_s2 + $0x3d8] sm:$0xff] }
 0x813   :  { %v6315_v42 = vld [vmem:[%s13629_s2 + $0x3f8] sm:$0xff]  ;;  %v13427_v60 = vcombine.low %v6303_v45, %v6307_v22 }
 0x814   :  { %14331 = vst [vmem:[#allocation76_spill] sm:$0xff] %v13383_v47  ;;  %14332 = vst [vmem:[#allocation77_spill] sm:$0xff] %v13385_v34 }
 0x815   :  { %7061 = vmatpush1.bf16.msra.mxu0 %v13353_v14  ;;  %7102 = vmatpush1.bf16.msra.mxu1 %v13355_v7  ;;  %v6306_v7 = vld [vmem:[%s13629_s2 + $0x3b0] sm:$0xff]  ;;  %14333 = vst [vmem:[#allocation78_spill] sm:$0xff] %v13401_v55 }
 0x816   :  { %7062 = vmatprep.subr.bf16.mxu0 %v13359_v61  ;;  %7103 = vmatprep.subr.bf16.mxu1 %v13361_v62  ;;  %v13407_v62 = vcombine.high %v6302_v58, %v6306_v7  ;;  %v13409_v61 = vcombine.high %v6303_v45, %v6307_v22  ;;  %v6310_v14 = vld [vmem:[%s13629_s2 + $0x3d0] sm:$0xff]  ;;  %v13425_v38 = vcombine.low %v6302_v58, %v6306_v7 }
 0x819   :  { %7063 = vmatpush1.bf16.msra.mxu0 %v13377_v32  ;;  %7104 = vmatpush1.bf16.msra.mxu1 %v13379_v25  ;;  %v6314_v25 = vld [vmem:[%s13629_s2 + $0x3f0] sm:$0xff] }
 0x81a   :  { %7064 = vmatprep.subr.bf16.mxu0 %v13383_v47  ;;  %7105 = vmatprep.subr.bf16.mxu1 %v13385_v34  ;;  %v13431_v34 = vcombine.high %v6310_v14, %v6314_v25  ;;  %v13433_v47 = vcombine.high %v6311_v30, %v6315_v42  ;;  %v13437_v32 = vcombine.low %v6310_v14, %v6314_v25 }
 0x81d   :  { %7065 = vmatpush1.bf16.msra.mxu0 %v13401_v55  ;;  %7106 = vmatpush1.bf16.msra.mxu1 %v13403_v4  ;;  %v13439_v55 = vcombine.low %v6311_v30, %v6315_v42 }
 0x81e   :  { %7066 = vmatprep.subr.bf16.mxu0 %v13407_v62  ;;  %7107 = vmatprep.subr.bf16.mxu1 %v13409_v61 }
 0x821   :  { %7067 = vmatpush1.bf16.msra.mxu0 %v13425_v38  ;;  %7108 = vmatpush1.bf16.msra.mxu1 %v13427_v60 }
 0x822   :  { %7068 = vmatprep.subr.bf16.mxu0 %v13431_v34  ;;  %7109 = vmatprep.subr.bf16.mxu1 %v13433_v47 }
 0x825   :  { %7069 = vmatpush1.bf16.msra.mxu0 %v13437_v32  ;;  %7110 = vmatpush1.bf16.msra.mxu1 %v13439_v55 }
 0x826   :  { %7982 = vmatprep.subr.bf16.mxu0 %v12648_v37  ;;  %8023 = vmatprep.subr.bf16.mxu1 %v12661_v6  ;;  %v14335_v37 = vld [vmem:[#allocation4_spill] sm:$0xff]  ;;  %v14337_v6 = vld [vmem:[#allocation3_spill] sm:$0xff] }
 0x828   :  { %7071 = vmatmul.mubr.bf16.vlgmr.msra.gmra.mrb[52].mxu0 %v13088_v29  ;;  %7112 = vmatmul.mubr.bf16.vlgmr.msra.gmra.mrb[52].mxu1 %v13088_v29  ;;  %v9239_v29 = vld [vmem:[%s13631_s0 + $0xc8] sm:$0xff] }
 0x829   :  { %7983 = vmatpush1.bf16.msra.mxu0 %v12646_v53  ;;  %8024 = vmatpush1.bf16.msra.mxu1 %v12659_v12  ;;  %v14334_v53 = vld [vmem:[#allocation2_spill] sm:$0xff]  ;;  %v14336_v12 = vld [vmem:[#allocation7_spill] sm:$0xff] }
 0x82a   :  { %7984 = vmatprep.subr.bf16.mxu0 %v12663_v17  ;;  %8025 = vmatprep.subr.bf16.mxu1 %v12675_v9  ;;  %v14338_v17 = vld [vmem:[#allocation5_spill] sm:$0xff]  ;;  %v14339_v9 = vld [vmem:[#allocation8_spill] sm:$0xff] }
 0x82d   :  { %7985 = vmatpush1.bf16.msra.mxu0 %v12688_v52  ;;  %8026 = vmatpush1.bf16.msra.mxu1 %v12692_v21  ;;  %v14340_v52 = vld [vmem:[#allocation11_spill] sm:$0xff]  ;;  %v14341_v21 = vld [vmem:[#allocation6_spill] sm:$0xff] }
 0x82e   :  { %7986 = vmatprep.subr.bf16.mxu0 %v12694_v49  ;;  %8027 = vmatprep.subr.bf16.mxu1 %v12697_v5  ;;  %v14342_v49 = vld [vmem:[#allocation9_spill] sm:$0xff]  ;;  %v14343_v5 = vld [vmem:[#allocation12_spill] sm:$0xff] }
 0x831   :  { %7987 = vmatpush1.bf16.msra.mxu0 %v12712_v26  ;;  %8028 = vmatpush1.bf16.msra.mxu1 %v12716_v24  ;;  %v14344_v26 = vld [vmem:[#allocation15_spill] sm:$0xff]  ;;  %v14345_v24 = vld [vmem:[#allocation10_spill] sm:$0xff] }
 0x832   :  { %7988 = vmatprep.subr.bf16.mxu0 %v12718_v54  ;;  %8029 = vmatprep.subr.bf16.mxu1 %v12721_v46  ;;  %v14346_v54 = vld [vmem:[#allocation13_spill] sm:$0xff]  ;;  %v14347_v46 = vld [vmem:[#allocation16_spill] sm:$0xff] }
 0x835   :  { %7989 = vmatpush1.bf16.msra.mxu0 %v12724_v2  ;;  %8030 = vmatpush1.bf16.msra.mxu1 %v12728_v8  ;;  %v14348_v2 = vld [vmem:[#allocation19_spill] sm:$0xff]  ;;  %v14349_v8 = vld [vmem:[#allocation14_spill] sm:$0xff] }
 0x836   :  { %7990 = vmatprep.subr.bf16.mxu0 %v12742_v59  ;;  %8031 = vmatprep.subr.bf16.mxu1 %v12751_v44  ;;  %v14350_v59 = vld [vmem:[#allocation17_spill] sm:$0xff]  ;;  %v14353_v44 = vld [vmem:[#allocation22_spill] sm:$0xff] }
 0x839   :  { %7991 = vmatpush1.bf16.msra.mxu0 %v12747_v36  ;;  %8032 = vmatpush1.bf16.msra.mxu1 %v12749_v19  ;;  %v14351_v36 = vld [vmem:[#allocation18_spill] sm:$0xff]  ;;  %v14352_v19 = vld [vmem:[#allocation20_spill] sm:$0xff] }
 0x83a   :  { %7992 = vmatprep.subr.bf16.mxu0 %v12766_v39  ;;  %8033 = vmatprep.subr.bf16.mxu1 %v12775_v51  ;;  %v14354_v39 = vld [vmem:[#allocation21_spill] sm:$0xff] }
 0x83b   :  { %v14357_v51 = vld [vmem:[#allocation25_spill] sm:$0xff] }
 0x83d   :  { %7993 = vmatpush1.bf16.msra.mxu0 %v12771_v11  ;;  %8034 = vmatpush1.bf16.msra.mxu1 %v12773_v20  ;;  %v14355_v11 = vld [vmem:[#allocation24_spill] sm:$0xff]  ;;  %v14356_v20 = vld [vmem:[#allocation23_spill] sm:$0xff] }
 0x83e   :  { %7994 = vmatprep.subr.bf16.mxu0 %v12790_v18  ;;  %8035 = vmatprep.subr.bf16.mxu1 %v12799_v35  ;;  %v14358_v18 = vld [vmem:[#allocation26_spill] sm:$0xff]  ;;  %v14361_v35 = vld [vmem:[#allocation29_spill] sm:$0xff] }
 0x841   :  { %7995 = vmatpush1.bf16.msra.mxu0 %v12795_v56  ;;  %8036 = vmatpush1.bf16.msra.mxu1 %v12797_v23  ;;  %v14359_v56 = vld [vmem:[#allocation28_spill] sm:$0xff]  ;;  %v14360_v23 = vld [vmem:[#allocation27_spill] sm:$0xff] }
 0x842   :  { %7996 = vmatprep.subr.bf16.mxu0 %v12814_v57  ;;  %8037 = vmatprep.subr.bf16.mxu1 %v12823_v10  ;;  %v14362_v57 = vld [vmem:[#allocation30_spill] sm:$0xff] }
 0x845   :  { %7997 = vmatpush1.bf16.msra.mxu0 %v12819_v16  ;;  %8038 = vmatpush1.bf16.msra.mxu1 %v12821_v3  ;;  %v14363_v16 = vld [vmem:[#allocation31_spill] sm:$0xff]  ;;  %v9238_v3 = vld [vmem:[%s13631_s0 + $0xc0] sm:$0xff] }
 0x846   :  { %7998 = vmatprep.subr.bf16.mxu0 %v12838_v40  ;;  %8039 = vmatprep.subr.bf16.mxu1 %v12847_v31  ;;  %v7122_v10 = vunpack.c.l.bf16 %v9238_v3  ;;  %v7123_v40 = vunpack.c.h.bf16 %v9238_v3 }
 0x849   :  { %7999 = vmatpush1.bf16.msra.mxu0 %v12843_v50  ;;  %8040 = vmatpush1.bf16.msra.mxu1 %v12845_v63 }
 0x84a   :  { %8000 = vmatprep.subr.bf16.mxu0 %v14334_v53  ;;  %8041 = vmatprep.subr.bf16.mxu1 %v14335_v37  ;;  %v7125_v37 = vunpack.c.h.bf16 %v9239_v29 }
 0x84d   :  { %8001 = vmatpush1.bf16.msra.mxu0 %v14336_v12  ;;  %8042 = vmatpush1.bf16.msra.mxu1 %v14337_v6  ;;  %v7124_v6 = vunpack.c.l.bf16 %v9239_v29 }
 0x84e   :  { %8002 = vmatprep.subr.bf16.mxu0 %v14338_v17  ;;  %8043 = vmatprep.subr.bf16.mxu1 %v14339_v9 }
 0x851   :  { %8003 = vmatpush1.bf16.msra.mxu0 %v14340_v52  ;;  %8044 = vmatpush1.bf16.msra.mxu1 %v14341_v21 }
 0x852   :  { %8004 = vmatprep.subr.bf16.mxu0 %v14342_v49  ;;  %8045 = vmatprep.subr.bf16.mxu1 %v14343_v5 }
 0x855   :  { %8005 = vmatpush1.bf16.msra.mxu0 %v14344_v26  ;;  %8046 = vmatpush1.bf16.msra.mxu1 %v14345_v24 }
 0x856   :  { %8006 = vmatprep.subr.bf16.mxu0 %v14346_v54  ;;  %8047 = vmatprep.subr.bf16.mxu1 %v14347_v46 }
 0x859   :  { %8007 = vmatpush1.bf16.msra.mxu0 %v14348_v2  ;;  %8048 = vmatpush1.bf16.msra.mxu1 %v14349_v8 }
 0x85a   :  { %8008 = vmatprep.subr.bf16.mxu0 %v14350_v59  ;;  %8049 = vmatprep.subr.bf16.mxu1 %v14351_v36  ;;  %v7195_v36 = vpop.permute.xlu1 %7194 }
 0x85b   :  { %vm7196_vm10 = vcmp.eq.s32.totalorder %v7195_v36, 1 }
 0x85d   :  { %8009 = vmatpush1.bf16.msra.mxu0 %v14352_v19  ;;  %8050 = vmatpush1.bf16.msra.mxu1 %v14353_v44 }
 0x85e   :  { %8010 = vmatprep.subr.bf16.mxu0 %v14354_v39  ;;  %8051 = vmatprep.subr.bf16.mxu1 %v14355_v11 }
 0x861   :  { %8011 = vmatpush1.bf16.msra.mxu0 %v14356_v20  ;;  %8052 = vmatpush1.bf16.msra.mxu1 %v14357_v51 }
 0x862   :  { %8012 = vmatprep.subr.bf16.mxu0 %v14358_v18  ;;  %8053 = vmatprep.subr.bf16.mxu1 %v14359_v56 }
 0x865   :  { %8013 = vmatpush1.bf16.msra.mxu0 %v14360_v23  ;;  %8054 = vmatpush1.bf16.msra.mxu1 %v14361_v35  ;;  %v9240_v23 = vld [vmem:[%s13631_s0 + $0x30] sm:$0xff] }
 0x866   :  { %8064 = vmatprep.subr.bf16.mxu0 %v14362_v57  ;;  %8105 = vmatprep.subr.bf16.mxu1 %v14363_v16  ;;  %v7132_v35 = vunpack.c.l.bf16 %v9240_v23  ;;  %v7133_v57 = vunpack.c.h.bf16 %v9240_v23  ;;  %v14375_v23 = vld [vmem:[#allocation43_spill] sm:$0xff] }
 0x8bb   :  { %v6990_v50 = vpop.f32.mrb[48].mxu0  ;;  %v7031_v63 = vpop.f32.mrb[48].mxu1 }
 0x8bc   :  { %v7126_v31 = vadd.f32 %v7122_v10, %v6990_v50  ;;  %v6992_v58 = vpop.f32.mrb[49].mxu0  ;;  %v7033_v14 = vpop.f32.mrb[49].mxu1  ;;  %v7128_v9 = vadd.f32 %v7124_v6, %v7031_v63  ;;  %v9241_v10 = vld [vmem:[%s13631_s0 + $0x38] sm:$0xff] }
 0x8bd   :  { %v7127_v7 = vadd.f32 %v7123_v40, %v6992_v58  ;;  %v6994_v25 = vpop.f32.mrb[50].mxu0  ;;  %v7035_v45 = vpop.f32.mrb[50].mxu1  ;;  %v7129_v12 = vadd.f32 %v7125_v37, %v7033_v14 }
 0x8be   :  { %v9244_v22 = vmul.f32 -1.442695, %v7126_v31  ;;  %v6995_v30 = vpop.f32.mrb[51].mxu0  ;;  %v7036_v42 = vpop.f32.mrb[51].mxu1  ;;  %v7135_v25 = vunpack.c.h.bf16 %v9241_v10 }
 0x8bf   :  { %v9245_v53 = vmul.f32 -1.442695, %v7127_v7  ;;  %v9246_v17 = vmul.f32 -1.442695, %v7129_v12 }
 0x8c0   :  { %9586 = vpow2.f32 %v9244_v22  ;;  %v7134_v22 = vunpack.c.l.bf16 %v9241_v10  ;;  %v14381_v10 = vld [vmem:[#allocation49_spill] sm:$0xff] }
 0x8c1   :  { %9588 = vpow2.f32 %v9245_v53 }
 0x8c2   :  { %9590 = vpow2.f32 %v9246_v17 }
 0x8c3   :  { %9592 = vtanh.f32 %v7128_v9 }
 0x8ca   :  { %v9587_v52 = vpop.eup %9586 }
 0x8cb   :  { %v9589_v21 = vpop.eup %9588  ;;  %v7147_v49 = vadd.f32 1.0, %v9587_v52 }
 0x8cc   :  { %v7153_v5 = vadd.f32 1.0, %v9589_v21  ;;  %v9591_v26 = vpop.eup %9590 }
 0x8cd   :  { %9594 = vrcp.f32 %v7147_v49  ;;  %v9593_v24 = vpop.eup %9592  ;;  %v7160_v8 = vadd.f32 1.0, %v9591_v26 }
 0x8ce   :  { %9596 = vrcp.f32 %v7153_v5 }
 0x8cf   :  { %9598 = vrcp.f32 %v7160_v8 }
 0x8d7   :  { %v9595_v54 = vpop.eup %9594 }
 0x8d8   :  { %v9597_v46 = vpop.eup %9596  ;;  %v7164_v2 = vmul.f32 %v9595_v54, %v9593_v24  ;;  %v7203_v24 = vpop.permute.xlu0 %7202 }
 0x8d9   :  { %v7163_v59 = vmul.f32 %v9597_v46, %v13051_v0  ;;  %v9599_v39 = vpop.eup %9598  ;;  %vm7204_vm11 = vcmp.eq.s32.totalorder %v7203_v24, 1  ;;  %v14407_v24 = vld [vmem:[#allocation75_spill] sm:$0xff] }
 0x8db   :  { %v7165_v19 = vadd.f32 %v7164_v2, %v7163_v59 }
 0x8dd   :  { %9600 = vtanh.f32 %v7165_v19  ;;  %v13521_v44 = vsel %vm7196_vm10, %v7165_v19, %v13051_v0 }
 0x8e7   :  { %v9601_v11 = vpop.eup %9600 }
 0x8e8   :  { %v7167_v20 = vmul.f32 %v9601_v11, %v9599_v39 }
 0x8ea   :  { %v7197_v51 = vsel %vm7196_vm10, %v7167_v20, 0.0  ;;  %v7208_v18 = vsel %vm7196_vm10, %v7167_v20, %v13054_v15 }
 0x8eb   :  { %v7198_v56 = vpack.c.bf16 %v7197_v51, %v7197_v51  ;;  %v13538_v20 = vpack.c.bf16 %v7208_v18, %v7208_v18  ;;  %v14366_v51 = vld [vmem:[#allocation34_spill] sm:$0xff]  ;;  %v14367_v18 = vld [vmem:[#allocation35_spill] sm:$0xff] }
 0x8ed   :  { %9250 = vst [vmem:[%s13632_s3 + $0x30] sm:$0xf] %v7198_v56  ;;  %v14370_v56 = vld [vmem:[#allocation38_spill] sm:$0xff] }
 0x8fb   :  { %v7072_v16 = vpop.f32.mrb[52].mxu0  ;;  %v7113_v0 = vpop.f32.mrb[52].mxu1 }
 0x8fc   :  { %v7136_v3 = vadd.f32 %v7132_v35, %v7072_v16  ;;  %v7074_v40 = vpop.f32.mrb[53].mxu0  ;;  %v7115_v15 = vpop.f32.mrb[53].mxu1  ;;  %v7138_v42 = vadd.f32 %v7134_v22, %v7113_v0  ;;  %v14376_v35 = vld [vmem:[#allocation44_spill] sm:$0xff]  ;;  %v14378_v16 = vld [vmem:[#allocation46_spill] sm:$0xff]  ;;  %v14379_v0 = vld [vmem:[#allocation47_spill] sm:$0xff] }
 0x8fd   :  { %v7137_v50 = vadd.f32 %v7133_v57, %v7074_v40  ;;  %v7076_v63 = vpop.f32.mrb[54].mxu0  ;;  %v7117_v31 = vpop.f32.mrb[54].mxu1  ;;  %v7139_v45 = vadd.f32 %v7135_v25, %v7115_v15  ;;  %v14377_v57 = vld [vmem:[#allocation45_spill] sm:$0xff]  ;;  %v14382_v40 = vld [vmem:[#allocation50_spill] sm:$0xff]  ;;  %v14383_v15 = vld [vmem:[#allocation51_spill] sm:$0xff] }
 0x8fe   :  { %v9247_v29 = vmul.f32 -1.442695, %v7136_v3  ;;  %v7077_v58 = vpop.f32.mrb[55].mxu0  ;;  %v7118_v14 = vpop.f32.mrb[55].mxu1  ;;  %v14380_v3 = vld [vmem:[#allocation48_spill] sm:$0xff]  ;;  %v14385_v63 = vld [vmem:[#allocation53_spill] sm:$0xff] }
 0x8ff   :  { %v9248_v7 = vmul.f32 -1.442695, %v7137_v50  ;;  %v9249_v30 = vmul.f32 -1.442695, %v7139_v45  ;;  %v14384_v50 = vld [vmem:[#allocation52_spill] sm:$0xff]  ;;  %v14386_v31 = vld [vmem:[#allocation54_spill] sm:$0xff] }
 0x900   :  { %9602 = vpow2.f32 %v9247_v29  ;;  %v14387_v29 = vld [vmem:[#allocation55_spill] sm:$0xff]  ;;  %v14388_v58 = vld [vmem:[#allocation56_spill] sm:$0xff]  ;;  %v14389_v14 = vld [vmem:[#allocation57_spill] sm:$0xff] }
 0x901   :  { %9604 = vpow2.f32 %v9248_v7  ;;  %v14390_v7 = vld [vmem:[#allocation58_spill] sm:$0xff]  ;;  %v14391_v25 = vld [vmem:[#allocation59_spill] sm:$0xff]  ;;  %v14392_v45 = vld [vmem:[#allocation60_spill] sm:$0xff] }
 0x902   :  { %9606 = vpow2.f32 %v9249_v30  ;;  %v14393_v22 = vld [vmem:[#allocation61_spill] sm:$0xff]  ;;  %v14394_v30 = vld [vmem:[#allocation62_spill] sm:$0xff] }
 0x903   :  { %9608 = vtanh.f32 %v7138_v42  ;;  %v14395_v42 = vld [vmem:[#allocation63_spill] sm:$0xff] }
 0x90a   :  { %v9603_v53 = vpop.eup %9602 }
 0x90b   :  { %v9605_v37 = vpop.eup %9604  ;;  %v7171_v12 = vadd.f32 1.0, %v9603_v53  ;;  %v14396_v53 = vld [vmem:[#allocation64_spill] sm:$0xff] }
 0x90c   :  { %v7177_v6 = vadd.f32 1.0, %v9605_v37  ;;  %v9607_v17 = vpop.eup %9606  ;;  %v14397_v37 = vld [vmem:[#allocation65_spill] sm:$0xff] }
 0x90d   :  { %9610 = vrcp.f32 %v7171_v12  ;;  %v9609_v9 = vpop.eup %9608  ;;  %v7184_v5 = vadd.f32 1.0, %v9607_v17  ;;  %v14398_v12 = vld [vmem:[#allocation66_spill] sm:$0xff]  ;;  %v14400_v17 = vld [vmem:[#allocation68_spill] sm:$0xff] }
 0x90e   :  { %9612 = vrcp.f32 %v7177_v6  ;;  %v14399_v6 = vld [vmem:[#allocation67_spill] sm:$0xff] }
 0x90f   :  { %9614 = vrcp.f32 %v7184_v5  ;;  %v14405_v5 = vld [vmem:[#allocation73_spill] sm:$0xff] }
 0x917   :  { %v9611_v52 = vpop.eup %9610 }
 0x918   :  { %v9613_v21 = vpop.eup %9612  ;;  %v7188_v49 = vmul.f32 %v9611_v52, %v9609_v9  ;;  %v14401_v9 = vld [vmem:[#allocation69_spill] sm:$0xff]  ;;  %v14402_v52 = vld [vmem:[#allocation70_spill] sm:$0xff] }
 0x919   :  { %v7187_v26 = vmul.f32 %v9613_v21, %v13067_v13  ;;  %v9615_v2 = vpop.eup %9614  ;;  %v14403_v21 = vld [vmem:[#allocation71_spill] sm:$0xff] }
 0x91b   :  { %v7189_v54 = vadd.f32 %v7188_v49, %v7187_v26  ;;  %v14404_v49 = vld [vmem:[#allocation72_spill] sm:$0xff]  ;;  %v14406_v26 = vld [vmem:[#allocation74_spill] sm:$0xff] }
 0x91d   :  { %9616 = vtanh.f32 %v7189_v54  ;;  %v13535_v46 = vsel %vm7204_vm11, %v7189_v54, %v13067_v13  ;;  %v14364_v13 = vld [vmem:[#allocation32_spill] sm:$0xff] }
 0x91e   :  { %v14408_v54 = vld [vmem:[#allocation76_spill] sm:$0xff] }
 0x927   :  { %v9617_v8 = vpop.eup %9616 }
 0x928   :  { %v7191_v59 = vmul.f32 %v9617_v8, %v9615_v2  ;;  %v14409_v2 = vld [vmem:[#allocation77_spill] sm:$0xff]  ;;  %v14410_v8 = vld [vmem:[#allocation78_spill] sm:$0xff] }
 0x92a   :  { %v7205_v36 = vsel %vm7204_vm11, %v7191_v59, 0.0  ;;  %v7210_v19 = vsel %vm7204_vm11, %v7191_v59, %v13073_v48  ;;  %v14365_v48 = vld [vmem:[#allocation33_spill] sm:$0xff] }
 0x92b   :  { %v7206_v39 = vpack.c.bf16 %v7205_v36, %v7205_v36  ;;  %v7213_v11 = vpack.c.bf16 %v7210_v19, %v7210_v19 }
 0x92d   :  { %9251 = vst [vmem:[%s13632_s3 + $0xc] sm:$0xf] %v7206_v39  ;;  %8014 = vmatprep.mubr.bf16.mxu0 %v7213_v11  ;;  %8055 = vmatprep.mubr.bf16.mxu1 %v7213_v11 }
 0x92e   :  { %8015 = vmatmul.mubr.bf16.vlgmr.msra.gmra.mrb[56].mxu0 %v13538_v20  ;;  %8056 = vmatmul.mubr.bf16.vlgmr.msra.gmra.mrb[56].mxu1 %v13538_v20 }
 0x92f   :  { %8065 = vmatpush1.bf16.msra.mxu0 %v13035_v41  ;;  %8106 = vmatpush1.bf16.msra.mxu1 %v13037_v33  ;;  %v14368_v41 = vld [vmem:[#allocation36_spill] sm:$0xff]  ;;  %v14369_v33 = vld [vmem:[#allocation37_spill] sm:$0xff] }
 0x930   :  { %8096 = vmatprep.mubr.bf16.mxu0 %v7213_v11  ;;  %8137 = vmatprep.mubr.bf16.mxu1 %v7213_v11 }
 0x931   :  { %8066 = vmatprep.subr.bf16.mxu0 %v13096_v27  ;;  %8107 = vmatprep.subr.bf16.mxu1 %v13098_v43  ;;  %v14371_v27 = vld [vmem:[#allocation39_spill] sm:$0xff]  ;;  %v14372_v43 = vld [vmem:[#allocation40_spill] sm:$0xff] }
 0x933   :  { %8067 = vmatpush1.bf16.msra.mxu0 %v13113_v28  ;;  %8108 = vmatpush1.bf16.msra.mxu1 %v13115_v1  ;;  %v14373_v28 = vld [vmem:[#allocation41_spill] sm:$0xff]  ;;  %v14374_v1 = vld [vmem:[#allocation42_spill] sm:$0xff] }
 0x934   :  { %8068 = vmatprep.subr.bf16.mxu0 %v14364_v13  ;;  %8109 = vmatprep.subr.bf16.mxu1 %v14365_v48 }
 0x937   :  { %8069 = vmatpush1.bf16.msra.mxu0 %v14366_v51  ;;  %8110 = vmatpush1.bf16.msra.mxu1 %v14367_v18 }
 0x938   :  { %8070 = vmatprep.subr.bf16.mxu0 %v14368_v41  ;;  %8111 = vmatprep.subr.bf16.mxu1 %v14369_v33 }
 0x93b   :  { %8071 = vmatpush1.bf16.msra.mxu0 %v14370_v56  ;;  %8112 = vmatpush1.bf16.msra.mxu1 %v14371_v27 }
 0x93c   :  { %8072 = vmatprep.subr.bf16.mxu0 %v14372_v43  ;;  %8113 = vmatprep.subr.bf16.mxu1 %v14373_v28 }
 0x93f   :  { %8073 = vmatpush1.bf16.msra.mxu0 %v14374_v1  ;;  %8114 = vmatpush1.bf16.msra.mxu1 %v14375_v23 }
 0x940   :  { %8074 = vmatprep.subr.bf16.mxu0 %v14376_v35  ;;  %8115 = vmatprep.subr.bf16.mxu1 %v14377_v57 }
 0x943   :  { %8075 = vmatpush1.bf16.msra.mxu0 %v14378_v16  ;;  %8116 = vmatpush1.bf16.msra.mxu1 %v14379_v0 }
 0x944   :  { %8076 = vmatprep.subr.bf16.mxu0 %v14380_v3  ;;  %8117 = vmatprep.subr.bf16.mxu1 %v14381_v10 }
 0x947   :  { %8077 = vmatpush1.bf16.msra.mxu0 %v14382_v40  ;;  %8118 = vmatpush1.bf16.msra.mxu1 %v14383_v15  ;;  %v8221_v15 = vpop.permute.xlu0 %8220 }
 0x948   :  { %8078 = vmatprep.subr.bf16.mxu0 %v14384_v50  ;;  %8119 = vmatprep.subr.bf16.mxu1 %v14385_v63  ;;  %vm8222_vm12 = vcmp.eq.s32.totalorder %v8221_v15, 1 }
 0x94b   :  { %8079 = vmatpush1.bf16.msra.mxu0 %v14386_v31  ;;  %8120 = vmatpush1.bf16.msra.mxu1 %v14387_v29 }
 0x94c   :  { %8080 = vmatprep.subr.bf16.mxu0 %v14388_v58  ;;  %8121 = vmatprep.subr.bf16.mxu1 %v14389_v14  ;;  %v8156_v58 = vld [vmem:[%s13631_s0 + $0x10] sm:$0xff] }
 0x94d   :  { %v8158_v14 = vunpack.c.l.bf16 %v8156_v58 }
 0x94f   :  { %8081 = vmatpush1.bf16.msra.mxu0 %v14390_v7  ;;  %8122 = vmatpush1.bf16.msra.mxu1 %v14391_v25 }
 0x950   :  { %8082 = vmatprep.subr.bf16.mxu0 %v14392_v45  ;;  %8123 = vmatprep.subr.bf16.mxu1 %v14393_v22  ;;  %v8157_v22 = vld [vmem:[%s13631_s0 + $0x18] sm:$0xff] }
 0x953   :  { %8083 = vmatpush1.bf16.msra.mxu0 %v14394_v30  ;;  %8124 = vmatpush1.bf16.msra.mxu1 %v14395_v42 }
 0x954   :  { %8084 = vmatprep.subr.bf16.mxu0 %v14396_v53  ;;  %8125 = vmatprep.subr.bf16.mxu1 %v14397_v37 }
 0x957   :  { %8085 = vmatpush1.bf16.msra.mxu0 %v14398_v12  ;;  %8126 = vmatpush1.bf16.msra.mxu1 %v14399_v6 }
 0x958   :  { %8086 = vmatprep.subr.bf16.mxu0 %v14400_v17  ;;  %8127 = vmatprep.subr.bf16.mxu1 %v14401_v9 }
 0x95b   :  { %8087 = vmatpush1.bf16.msra.mxu0 %v14402_v52  ;;  %8128 = vmatpush1.bf16.msra.mxu1 %v14403_v21  ;;  %v8161_v21 = vunpack.c.h.bf16 %v8157_v22 }
 0x95c   :  { %8088 = vmatprep.subr.bf16.mxu0 %v14404_v49  ;;  %8129 = vmatprep.subr.bf16.mxu1 %v14405_v5  ;;  %v8160_v5 = vunpack.c.l.bf16 %v8157_v22 }
 0x95f   :  { %8089 = vmatpush1.bf16.msra.mxu0 %v14406_v26  ;;  %8130 = vmatpush1.bf16.msra.mxu1 %v14407_v24 }
 0x960   :  { %8090 = vmatprep.subr.bf16.mxu0 %v14408_v54  ;;  %8131 = vmatprep.subr.bf16.mxu1 %v14409_v2 }
 0x963   :  { %8091 = vmatpush1.bf16.msra.mxu0 %v14410_v8  ;;  %8132 = vmatpush1.bf16.msra.mxu1 %v13403_v4 }
 0x964   :  { %8092 = vmatprep.subr.bf16.mxu0 %v13407_v62  ;;  %8133 = vmatprep.subr.bf16.mxu1 %v13409_v61  ;;  %v9380_v62 = vld [vmem:[%s13631_s0 + $0xe0] sm:$0xff] }
 0x965   :  { %v8148_v61 = vunpack.c.l.bf16 %v9380_v62  ;;  %v8149_v4 = vunpack.c.h.bf16 %v9380_v62 }
 0x967   :  { %8093 = vmatpush1.bf16.msra.mxu0 %v13425_v38  ;;  %8134 = vmatpush1.bf16.msra.mxu1 %v13427_v60 }
 0x968   :  { %8094 = vmatprep.subr.bf16.mxu0 %v13431_v34  ;;  %8135 = vmatprep.subr.bf16.mxu1 %v13433_v47  ;;  %v9381_v34 = vld [vmem:[%s13631_s0 + $0xe8] sm:$0xff] }
 0x969   :  { %v8151_v48 = vunpack.c.h.bf16 %v9381_v34  ;;  %v8150_v18 = vunpack.c.l.bf16 %v9381_v34 }
 0x96b   :  { %8095 = vmatpush1.bf16.msra.mxu0 %v13437_v32  ;;  %8136 = vmatpush1.bf16.msra.mxu1 %v13439_v55 }
 0x96e   :  { %8097 = vmatmul.mubr.bf16.vlgmr.msra.gmra.mrb[60].mxu0 %v13538_v20  ;;  %8138 = vmatmul.mubr.bf16.vlgmr.msra.gmra.mrb[60].mxu1 %v13538_v20 }
 0xa01   :  { %v8016_v38 = vpop.f32.mrb[56].mxu0  ;;  %v8057_v60 = vpop.f32.mrb[56].mxu1 }
 0xa02   :  { %v8152_v59 = vadd.f32 %v8148_v61, %v8016_v38  ;;  %v8018_v47 = vpop.f32.mrb[57].mxu0  ;;  %v8059_v32 = vpop.f32.mrb[57].mxu1  ;;  %v8154_v33 = vadd.f32 %v8150_v18, %v8057_v60 }
 0xa03   :  { %v8153_v55 = vadd.f32 %v8149_v4, %v8018_v47  ;;  %v8020_v36 = vpop.f32.mrb[58].mxu0  ;;  %v8061_v19 = vpop.f32.mrb[58].mxu1  ;;  %v8155_v51 = vadd.f32 %v8151_v48, %v8059_v32 }
 0xa04   :  { %v9383_v39 = vmul.f32 -1.442695, %v8152_v59  ;;  %v8021_v11 = vpop.f32.mrb[59].mxu0  ;;  %v8062_v20 = vpop.f32.mrb[59].mxu1 }
 0xa05   :  { %v9384_v13 = vmul.f32 -1.442695, %v8153_v55  ;;  %v9385_v41 = vmul.f32 -1.442695, %v8155_v51  ;;  %v8229_v36 = vpop.permute.xlu1 %8228 }
 0xa06   :  { %9618 = vpow2.f32 %v9383_v39  ;;  %vm8230_vm13 = vcmp.eq.s32.totalorder %v8229_v36, 1 }
 0xa07   :  { %9620 = vpow2.f32 %v9384_v13 }
 0xa08   :  { %9622 = vpow2.f32 %v9385_v41 }
 0xa09   :  { %9624 = vtanh.f32 %v8154_v33 }
 0xa10   :  { %v9619_v56 = vpop.eup %9618 }
 0xa11   :  { %v9621_v27 = vpop.eup %9620  ;;  %v8173_v43 = vadd.f32 1.0, %v9619_v56 }
 0xa12   :  { %v8179_v28 = vadd.f32 1.0, %v9621_v27  ;;  %v9623_v1 = vpop.eup %9622 }
 0xa13   :  { %9626 = vrcp.f32 %v8173_v43  ;;  %v9625_v23 = vpop.eup %9624  ;;  %v8186_v0 = vadd.f32 1.0, %v9623_v1 }
 0xa14   :  { %9628 = vrcp.f32 %v8179_v28 }
 0xa15   :  { %9630 = vrcp.f32 %v8186_v0 }
 0xa1d   :  { %v9627_v35 = vpop.eup %9626 }
 0xa1e   :  { %v9629_v57 = vpop.eup %9628  ;;  %v8190_v16 = vmul.f32 %v9627_v35, %v9625_v23 }
 0xa1f   :  { %v8189_v3 = vmul.f32 %v9629_v57, %v13521_v44  ;;  %v9631_v40 = vpop.eup %9630  ;;  %v8159_v44 = vunpack.c.h.bf16 %v8156_v58 }
 0xa21   :  { %v8191_v10 = vadd.f32 %v8190_v16, %v8189_v3 }
 0xa23   :  { %9632 = vtanh.f32 %v8191_v10 }
 0xa2d   :  { %v9633_v50 = vpop.eup %9632 }
 0xa2e   :  { %v8193_v63 = vmul.f32 %v9633_v50, %v9631_v40 }
 0xa30   :  { %v8223_v31 = vsel %vm8222_vm12, %v8193_v63, 0.0 }
 0xa31   :  { %v8224_v29 = vpack.c.bf16 %v8223_v31, %v8223_v31 }
 0xa33   :  { %9389 = vst [vmem:[%s13632_s3 + $0x38] sm:$0xf] %v8224_v29 }
 0xa41   :  { %v8098_v7 = vpop.f32.mrb[60].mxu0  ;;  %v8139_v25 = vpop.f32.mrb[60].mxu1 }
 0xa42   :  { %v8162_v45 = vadd.f32 %v8158_v14, %v8098_v7  ;;  %v8100_v30 = vpop.f32.mrb[61].mxu0  ;;  %v8141_v42 = vpop.f32.mrb[61].mxu1  ;;  %v8164_v24 = vadd.f32 %v8160_v5, %v8139_v25 }
 0xa43   :  { %v8163_v53 = vadd.f32 %v8159_v44, %v8100_v30  ;;  %v8102_v37 = vpop.f32.mrb[62].mxu0  ;;  %v8143_v12 = vpop.f32.mrb[62].mxu1  ;;  %v8165_v49 = vadd.f32 %v8161_v21, %v8141_v42 }
 0xa44   :  { %v9386_v6 = vmul.f32 -1.442695, %v8162_v45  ;;  %v8103_v17 = vpop.f32.mrb[63].mxu0  ;;  %v8144_v9 = vpop.f32.mrb[63].mxu1 }
 0xa45   :  { %v9387_v52 = vmul.f32 -1.442695, %v8163_v53  ;;  %v9388_v26 = vmul.f32 -1.442695, %v8165_v49 }
 0xa46   :  { %9634 = vpow2.f32 %v9386_v6 }
 0xa47   :  { %9636 = vpow2.f32 %v9387_v52 }
 0xa48   :  { %9638 = vpow2.f32 %v9388_v26 }
 0xa49   :  { %9640 = vtanh.f32 %v8164_v24 }
 0xa50   :  { %v9635_v54 = vpop.eup %9634 }
 0xa51   :  { %v9637_v2 = vpop.eup %9636  ;;  %v8197_v8 = vadd.f32 1.0, %v9635_v54 }
 0xa52   :  { %v8203_v62 = vadd.f32 1.0, %v9637_v2  ;;  %v9639_v61 = vpop.eup %9638 }
 0xa53   :  { %9642 = vrcp.f32 %v8197_v8  ;;  %v9641_v4 = vpop.eup %9640  ;;  %v8210_v34 = vadd.f32 1.0, %v9639_v61 }
 0xa54   :  { %9644 = vrcp.f32 %v8203_v62 }
 0xa55   :  { %9646 = vrcp.f32 %v8210_v34 }
 0xa5d   :  { %v9643_v38 = vpop.eup %9642 }
 0xa5e   :  { %v9645_v60 = vpop.eup %9644  ;;  %v8214_v59 = vmul.f32 %v9643_v38, %v9641_v4 }
 0xa5f   :  { %v8213_v47 = vmul.f32 %v9645_v60, %v13535_v46  ;;  %v9647_v55 = vpop.eup %9646 }
 0xa61   :  { %v8215_v32 = vadd.f32 %v8214_v59, %v8213_v47 }
 0xa63   :  { %9648 = vtanh.f32 %v8215_v32 }
 0xa6d   :  { %v9649_v19 = vpop.eup %9648 }
 0xa6e   :  { %v8217_v39 = vmul.f32 %v9649_v19, %v9647_v55 }
 0xa70   :  { %v8231_v11 = vsel %vm8230_vm13, %v8217_v39, 0.0 }
 0xa71   :  { %v8232_v20 = vpack.c.bf16 %v8231_v11, %v8231_v11 }
 0xa73   :  { %8233 = vst [vmem:[%s13632_s3 + $0x4] sm:$0xf] %v8232_v20 }

</bundles_post_ra>
